<compile_context>
chip_gen: v6e
topology: v6e:2x2x1
jax: 0.10.0
libtpu: 0.0.40
codegen_flags: <defaults>
</compile_context>

<pallas_src>
import functools
import math

import jax
import jax.numpy as jnp
from jax.experimental import pallas as pl
from jax.experimental.pallas import tpu as pltpu

BN_EPS = 1e-5
_VMEM_CAP = 48 * 1024 * 1024  # stay well under v7x's 64 MiB physical VMEM per TC


# ----------------------------------------------------------------------------
# Small helpers
# ----------------------------------------------------------------------------
def _row_tile(m, cap=1024):
    """Largest power-of-two row tile (multiple of 8, <= cap) dividing m."""
    t = cap
    while t >= 8:
        if t <= m and m % t == 0:
            return t
        t //= 2
    return m


def _mosaic_params(dim_semantics, streamed, resident=(), extra_bytes=0):
    """VMEM limit = 2 x streamed (double-buffered) + 1 x resident + temporaries."""
    sb = sum(math.prod(s) * jnp.dtype(d).itemsize for s, d in streamed)
    rb = sum(math.prod(s) * jnp.dtype(d).itemsize for s, d in resident)
    need = 2 * sb + rb + extra_bytes
    assert need <= _VMEM_CAP, f"VMEM footprint {need} exceeds budget {_VMEM_CAP}"
    limit = int(min(max(2 * need, 16 << 20) + (8 << 20), _VMEM_CAP))
    return pltpu.CompilerParams(dimension_semantics=dim_semantics,
                                vmem_limit_bytes=limit)


def _stats_tile(acc):
    """(8, Cout) tile: row0 = per-channel sum, row1 = per-channel sumsq."""
    cout = acc.shape[1]
    s = jnp.sum(acc, axis=0, keepdims=True)
    q = jnp.sum(acc * acc, axis=0, keepdims=True)
    rows = jax.lax.broadcasted_iota(jnp.int32, (8, cout), 0)
    return jnp.where(rows == 0, jnp.broadcast_to(s, (8, cout)),
                     jnp.where(rows == 1, jnp.broadcast_to(q, (8, cout)),
                               jnp.zeros((8, cout), jnp.float32)))


def _bn_scale_shift(s, q, count, gamma, beta):
    mean = s / count
    # TODO(synk): E[x^2]-mean^2 can cancel for large means; fine at these scales.
    var = jnp.maximum(q / count - mean * mean, 0.0)
    scale = gamma * jax.lax.rsqrt(var + BN_EPS)
    shift = beta - mean * scale
    return scale, shift


# ----------------------------------------------------------------------------
# Kernel 1: concat-fused 1x1 conv  (z = [y, skip] @ W) + fused BN statistics
# ----------------------------------------------------------------------------
def _concat_mm_kernel(a1_ref, a2_ref, w1_ref, w2_ref, z_ref, st_ref):
    acc = jnp.dot(a1_ref[...], w1_ref[...], preferred_element_type=jnp.float32)
    acc = acc + jnp.dot(a2_ref[...], w2_ref[...],
                        preferred_element_type=jnp.float32)
    z_ref[...] = acc.astype(z_ref.dtype)
    st_ref[0] = _stats_tile(acc)


def _conv1x1_concat(a1, a2, w, cap=1024):
    """a1:(M,K1) bf16, a2:(M,K2) bf16, w:(1,1,K1+K2,Cout) f32.

    Returns z:(M,Cout) bf16 plus per-channel (sum, sumsq) f32.  The channel
    concat never hits HBM; per-block stats keep the M axis 'parallel'.
    """
    m, k1 = a1.shape
    k2 = a2.shape[1]
    cout = w.shape[-1]
    wm = w.reshape(k1 + k2, cout).astype(jnp.bfloat16)
    w1, w2 = wm[:k1], wm[k1:]
    tm = _row_tile(m, cap)
    nblk = m // tm

    streamed = [((tm, k1), jnp.bfloat16), ((tm, k2), jnp.bfloat16),
                ((tm, cout), jnp.bfloat16), ((1, 8, cout), jnp.float32)]
    resident = [((k1, cout), jnp.bfloat16), ((k2, cout), jnp.bfloat16)]

    z, st = pl.pallas_call(
        _concat_mm_kernel,
        out_shape=(jax.ShapeDtypeStruct((m, cout), jnp.bfloat16),
                   jax.ShapeDtypeStruct((nblk, 8, cout), jnp.float32)),
        grid=(nblk,),
        in_specs=[pl.BlockSpec((tm, k1), lambda i: (i, 0)),
                  pl.BlockSpec((tm, k2), lambda i: (i, 0)),
                  pl.BlockSpec((k1, cout), lambda i: (0, 0)),
                  pl.BlockSpec((k2, cout), lambda i: (0, 0))],
        out_specs=(pl.BlockSpec((tm, cout), lambda i: (i, 0)),
                   pl.BlockSpec((1, 8, cout), lambda i: (i, 0, 0))),
        compiler_params=_mosaic_params(("parallel",), streamed, resident,
                                       extra_bytes=8 * tm * cout),
        cost_estimate=pl.CostEstimate(
            flops=2 * m * (k1 + k2) * cout + 4 * m * cout,
            transcendentals=0,
            bytes_accessed=(2 * m * (k1 + k2) + 2 * (k1 + k2) * cout
                            + 2 * m * cout + 32 * nblk * cout)),
    )(a1, a2, w1, w2)
    return z, st[:, 0, :].sum(axis=0), st[:, 1, :].sum(axis=0)


# ----------------------------------------------------------------------------
# Kernel 2: 3x3 conv over relu(bn(z_prev)) with resident weights, whole image
#           per grid step (flattened rows -> constant-offset 2D taps), fused
#           input BN+ReLU and fused output BN statistics.
# ----------------------------------------------------------------------------
def _conv3x3_fused_kernel(wp, mout, zf_ref, sc_ref, sh_ref, im_ref, om_ref,
                          w_ref, z_ref, st_ref):
    cout = w_ref.shape[2]

    zp = zf_ref[0].astype(jnp.float32)                      # (Lin, Cin) f32
    a = jnp.maximum(zp * sc_ref[...] + sh_ref[...], 0.0)    # fused prev BN+ReLU
    a = (a * im_ref[0]).astype(jnp.bfloat16)                # zero halo / tail rows

    acc = jnp.zeros((mout, cout), jnp.float32)
    for dy in range(3):                                      # 9 unrolled MXU taps
        for dx in range(3):
            off = dy * wp + dx
            acc = acc + jnp.dot(a[off:off + mout, :], w_ref[dy * 3 + dx],
                                preferred_element_type=jnp.float32)

    z_ref[0] = acc.astype(z_ref.dtype)
    st_ref[0] = _stats_tile(acc * om_ref[0])                 # mask garbage columns


def _conv3x3_bn_relu_fused(z_prev, scale, shift, w):
    """3x3 conv (padding=1) over relu(z_prev*scale+shift).

    z_prev: (nb,H,W,Cin) bf16 pre-activation; scale/shift: (Cin,) f32 of the
    previous BN; w: (3,3,Cin,Cout) f32.  Returns z:(nb,H,W,Cout) bf16 plus
    per-channel (sum, sumsq) f32 of this conv's output.
    """
    nb, h, wd, cin = z_prev.shape
    cout = w.shape[-1]
    hp, wp = h + 2, wd + 2
    mout = h * wp
    lin = hp * wp + 8                                        # +8 rows of slack

    zp = jnp.pad(z_prev, ((0, 0), (1, 1), (1, 1), (0, 0)))
    zf = jnp.pad(zp.reshape(nb, hp * wp, cin), ((0, 0), (0, 8), (0, 0)))

    idx = jnp.arange(lin)
    rr, cc = idx // wp, idx % wp
    in_mask = ((rr >= 1) & (rr <= h) & (cc >= 1) & (cc <= wd)
               ).astype(jnp.float32).reshape(1, lin, 1)
    out_mask = ((jnp.arange(mout) % wp) < wd
                ).astype(jnp.float32).reshape(1, mout, 1)

    wk = w.reshape(9, cin, cout).astype(jnp.bfloat16)
    sc = scale.reshape(1, cin).astype(jnp.float32)
    sh = shift.reshape(1, cin).astype(jnp.float32)

    streamed = [((1, lin, cin), jnp.bfloat16), ((1, mout, cout), jnp.bfloat16),
                ((1, 8, cout), jnp.float32)]
    resident = [((9, cin, cout), jnp.bfloat16), ((1, cin), jnp.float32),
                ((1, cin), jnp.float32), ((1, lin, 1), jnp.float32),
                ((1, mout, 1), jnp.float32)]
    extra = 2 * (6 * lin * cin + 4 * mout * cout)            # in-kernel temporaries

    zg, st = pl.pallas_call(
        functools.partial(_conv3x3_fused_kernel, wp, mout),
        out_shape=(jax.ShapeDtypeStruct((nb, mout, cout), jnp.bfloat16),
                   jax.ShapeDtypeStruct((nb, 8, cout), jnp.float32)),
        grid=(nb,),
        in_specs=[pl.BlockSpec((1, lin, cin), lambda b: (b, 0, 0)),
                  pl.BlockSpec((1, cin), lambda b: (0, 0)),
                  pl.BlockSpec((1, cin), lambda b: (0, 0)),
                  pl.BlockSpec((1, lin, 1), lambda b: (0, 0, 0)),
                  pl.BlockSpec((1, mout, 1), lambda b: (0, 0, 0)),
                  pl.BlockSpec((9, cin, cout), lambda b: (0, 0, 0))],
        out_specs=(pl.BlockSpec((1, mout, cout), lambda b: (b, 0, 0)),
                   pl.BlockSpec((1, 8, cout), lambda b: (b, 0, 0))),
        compiler_params=_mosaic_params(("parallel",), streamed, resident, extra),
        cost_estimate=pl.CostEstimate(
            flops=2 * nb * mout * 9 * cin * cout + 6 * nb * lin * cin,
            transcendentals=0,
            bytes_accessed=(2 * nb * lin * cin + 18 * cin * cout
                            + 2 * nb * mout * cout + 32 * nb * cout)),
    )(zf, sc, sh, in_mask, out_mask, wk)

    z_out = zg.reshape(nb, h, wp, cout)[:, :, :wd, :]        # strip garbage cols
    return z_out, st[:, 0, :].sum(axis=0), st[:, 1, :].sum(axis=0)


# ----------------------------------------------------------------------------
# Kernel 3: standalone BN-apply + ReLU (lane-dense for C = 32/64)
# ----------------------------------------------------------------------------
def _bn_relu_kernel(z_ref, sc_ref, sh_ref, o_ref):
    z = z_ref[...].astype(jnp.float32)                       # f32 VPU math (v5e)
    o_ref[...] = jnp.maximum(z * sc_ref[...] + sh_ref[...], 0.0).astype(o_ref.dtype)


def _bn_relu_apply(z, scale, shift, out_dtype, cap=1024):
    """z:(M,C) bf16 -> relu(z*scale+shift):(M,C) out_dtype, lane-dense if C<128."""
    m, c = z.shape
    if c < 128 and 128 % c == 0 and (m * c) % 128 == 0:
        rep = 128 // c
        zl = z.reshape(m * c // 128, 128)
        scl = jnp.tile(scale.reshape(1, c), (1, rep)).astype(jnp.float32)
        shl = jnp.tile(shift.reshape(1, c), (1, rep)).astype(jnp.float32)
    else:
        zl = z
        scl = scale.reshape(1, c).astype(jnp.float32)
        shl = shift.reshape(1, c).astype(jnp.float32)
    rows, cols = zl.shape
    tr = _row_tile(rows, cap)

    streamed = [((tr, cols), zl.dtype), ((tr, cols), out_dtype)]
    resident = [((1, cols), jnp.float32), ((1, cols), jnp.float32)]

    out = pl.pallas_call(
        _bn_relu_kernel,
        out_shape=jax.ShapeDtypeStruct((rows, cols), out_dtype),
        grid=(rows // tr,),
        in_specs=[pl.BlockSpec((tr, cols), lambda i: (i, 0)),
                  pl.BlockSpec((1, cols), lambda i: (0, 0)),
                  pl.BlockSpec((1, cols), lambda i: (0, 0))],
        out_specs=pl.BlockSpec((tr, cols), lambda i: (i, 0)),
        compiler_params=_mosaic_params(("parallel",), streamed, resident,
                                       extra_bytes=4 * tr * cols),
        cost_estimate=pl.CostEstimate(
            flops=3 * rows * cols, transcendentals=0,
            bytes_accessed=rows * cols * (jnp.dtype(zl.dtype).itemsize
                                          + jnp.dtype(out_dtype).itemsize)
                           + 8 * cols),
    )(zl, scl, shl)
    return out.reshape(m, c)


# ----------------------------------------------------------------------------
# Glue (cheap; plain JAX): bilinear x2 upsample, align_corners=True (bf16 path)
# ----------------------------------------------------------------------------
# TODO(synk): gather-based bilinear upsample and pad/strip layout glue stay in
# plain JAX; they are tiny gather/slice ops with no clean Pallas win here.
def upsample2x_bilinear_align_corners(x):
    n, h, w, c = x.shape
    dtype = x.dtype

    def coords(size_in, size_out):
        if size_in == 1:
            src = jnp.zeros((size_out,), jnp.float32)
        else:
            src = jnp.arange(size_out, dtype=jnp.float32) * (
                (size_in - 1) / (size_out - 1))
        lo = jnp.floor(src).astype(jnp.int32)
        hi = jnp.minimum(lo + 1, size_in - 1)
        frac = (src - lo.astype(jnp.float32)).astype(dtype)
        return lo, hi, frac

    ylo, yhi, fy = coords(h, 2 * h)
    xlo, xhi, fx = coords(w, 2 * w)
    one = jnp.asarray(1.0, dtype)
    top, bot = x[:, ylo], x[:, yhi]
    v = top * (one - fy)[None, :, None, None] + bot * fy[None, :, None, None]
    left, right = v[:, :, xlo], v[:, :, xhi]
    return (left * (one - fx)[None, None, :, None]
            + right * fx[None, None, :, None])


# ----------------------------------------------------------------------------
# Deterministic synthetic parameters (matching the module's init)
# ----------------------------------------------------------------------------
# (kernel_size, C_in, C_out) for conv1..conv7 of Merge.
MERGE_DEFS = [(1, 1024, 128), (3, 128, 128), (1, 384, 64), (3, 64, 64),
              (1, 192, 32), (3, 32, 32), (3, 32, 32)]


def build_params(key):
    """Conv: kaiming_normal_(fan_out, relu), bias=0 (omitted; cancelled by BN
    batch-stat mean subtraction); BN: weight=1, bias=0."""
    keys = jax.random.split(key, len(MERGE_DEFS))
    params = []
    for k, (ks, cin, cout) in zip(keys, MERGE_DEFS):
        std = (2.0 / (cout * ks * ks)) ** 0.5
        w = jax.random.normal(k, (ks, ks, cin, cout), jnp.float32) * std  # HWIO
        params.append((w, jnp.ones((cout,), jnp.float32),
                       jnp.zeros((cout,), jnp.float32)))
    return params


# ----------------------------------------------------------------------------
# Forward pass (Merge.forward)
# ----------------------------------------------------------------------------
def merge_forward(params, x0, x1, x2, x3):
    """x0..x3: NCHW fp32 feature maps (channels 128/256/512/512). Returns NCHW fp32."""
    p1, p2, p3, p4, p5, p6, p7 = params
    f = [jnp.transpose(t, (0, 2, 3, 1)).astype(jnp.bfloat16)
         for t in (x0, x1, x2, x3)]

    def concat_stage(y_act, skip, p):
        w, g, b = p
        nb, h, wd, c1 = y_act.shape
        c2 = skip.shape[-1]
        m = nb * h * wd
        z, s, q = _conv1x1_concat(y_act.reshape(m, c1), skip.reshape(m, c2), w)
        sc, sh = _bn_scale_shift(s, q, m, g, b)
        return z.reshape(nb, h, wd, -1), sc, sh

    def conv3_stage(z_prev, sc_prev, sh_prev, p):
        w, g, b = p
        nb, h, wd, _ = z_prev.shape
        z, s, q = _conv3x3_bn_relu_fused(z_prev, sc_prev, sh_prev, w)
        sc, sh = _bn_scale_shift(s, q, nb * h * wd, g, b)
        return z, sc, sh

    def bn_relu_img(z, sc, sh, out_dtype):
        nb, h, wd, c = z.shape
        return _bn_relu_apply(z.reshape(nb * h * wd, c), sc, sh,
                              out_dtype).reshape(nb, h, wd, c)

    # Stage 1
    y = upsample2x_bilinear_align_corners(f[3])
    z1, sc1, sh1 = concat_stage(y, f[2], p1)          # conv1 (+bn1 stats)
    z2, sc2, sh2 = conv3_stage(z1, sc1, sh1, p2)      # bn1+relu1 fused into conv2
    a2 = bn_relu_img(z2, sc2, sh2, jnp.bfloat16)      # bn2+relu2 (pre-upsample)

    # Stage 2
    y = upsample2x_bilinear_align_corners(a2)
    z3, sc3, sh3 = concat_stage(y, f[1], p3)          # conv3
    z4, sc4, sh4 = conv3_stage(z3, sc3, sh3, p4)      # bn3+relu3 fused into conv4
    a4 = bn_relu_img(z4, sc4, sh4, jnp.bfloat16)      # bn4+relu4 (pre-upsample)

    # Stage 3
    y = upsample2x_bilinear_align_corners(a4)
    z5, sc5, sh5 = concat_stage(y, f[0], p5)          # conv5
    z6, sc6, sh6 = conv3_stage(z5, sc5, sh5, p6)      # bn5+relu5 fused into conv6
    z7, sc7, sh7 = conv3_stage(z6, sc6, sh6, p7)      # bn6+relu6 fused into conv7
    out = bn_relu_img(z7, sc7, sh7, jnp.float32)      # bn7+relu7
    return jnp.transpose(out, (0, 3, 1, 2))


# ----------------------------------------------------------------------------
# Pure-JAX fp32 reference (for correctness checking)
# ----------------------------------------------------------------------------
def merge_reference(params, x0, x1, x2, x3):
    def cbr(x, p):
        w, gamma, beta = p
        z = jax.lax.conv_general_dilated(
            x, w, window_strides=(1, 1), padding='SAME',
            dimension_numbers=('NHWC', 'HWIO', 'NHWC'))
        mean = jnp.mean(z, axis=(0, 1, 2))
        var = jnp.mean(jnp.square(z - mean), axis=(0, 1, 2))
        return jnp.maximum(
            (z - mean) * jax.lax.rsqrt(var + BN_EPS) * gamma + beta, 0.0)

    f = [jnp.transpose(t, (0, 2, 3, 1)) for t in (x0, x1, x2, x3)]
    y = upsample2x_bilinear_align_corners(f[3])
    y = cbr(jnp.concatenate([y, f[2]], axis=-1), params[0])
    y = cbr(y, params[1])
    y = upsample2x_bilinear_align_corners(y)
    y = cbr(jnp.concatenate([y, f[1]], axis=-1), params[2])
    y = cbr(y, params[3])
    y = upsample2x_bilinear_align_corners(y)
    y = cbr(jnp.concatenate([y, f[0]], axis=-1), params[4])
    y = cbr(y, params[5])
    y = cbr(y, params[6])
    return jnp.transpose(y, (0, 3, 1, 2))


if __name__ == "__main__":
    key = jax.random.PRNGKey(0)
    pkey, k0, k1, k2, k3 = jax.random.split(key, 5)
    params = build_params(pkey)

    # Small feature pyramid consistent with the module: channels [128,256,512,512]
    # at strides 4/8/16/32 of a 64x64 input image, batch=2.
    x0 = jax.random.normal(k0, (2, 128, 16, 16), jnp.float32)
    x1 = jax.random.normal(k1, (2, 256, 8, 8), jnp.float32)
    x2 = jax.random.normal(k2, (2, 512, 4, 4), jnp.float32)
    x3 = jax.random.normal(k3, (2, 512, 2, 2), jnp.float32)

    out = jax.jit(merge_forward)(params, x0, x1, x2, x3)
    out = jax.block_until_ready(out)
    assert out.shape == (2, 32, 16, 16), out.shape
    assert bool(jnp.all(jnp.isfinite(out)))
    assert bool(jnp.all(out >= 0.0))  # post-ReLU

    # Numerical check vs fp32 reference (bf16 MXU operands and bf16 Z storage
    # => loose tolerances).
    ref = jax.block_until_ready(jax.jit(merge_reference)(params, x0, x1, x2, x3))
    max_err = float(jnp.max(jnp.abs(out - ref)))
    mean_err = float(jnp.mean(jnp.abs(out - ref)))
    assert mean_err < 5e-2 and max_err < 5e-1, (mean_err, max_err)

    print("KERNEL_OK")
</pallas_src>

<mosaic_0001>
module attributes {stable_mosaic.version = 11 : i64} {
  func.func @_concat_mm_kernel(%arg0: i32, %arg1: memref<32x512xbf16, #tpu.memory_space<vmem>>, %arg2: memref<32x512xbf16, #tpu.memory_space<vmem>>, %arg3: memref<512x128xbf16, #tpu.memory_space<vmem>>, %arg4: memref<512x128xbf16, #tpu.memory_space<vmem>>, %arg5: memref<32x128xbf16, #tpu.memory_space<vmem>>, %arg6: memref<1x8x128xf32, #tpu.memory_space<vmem>>) attributes {dimension_semantics = [#tpu.dimension_semantics<parallel>], iteration_bounds = array<i64: 1>, scalar_prefetch = 0 : i64, scratch_operands = 0 : i64, tpu.core_type = #tpu.core_type<tc>, window_params = [{transform_indices = @transform_0, window_bounds = array<i64: 32, 512>}, {transform_indices = @transform_1, window_bounds = array<i64: 32, 512>}, {pipeline_mode = #tpu.pipeline_mode<synchronous>, transform_indices = @transform_2, window_bounds = array<i64: 512, 128>}, {pipeline_mode = #tpu.pipeline_mode<synchronous>, transform_indices = @transform_3, window_bounds = array<i64: 512, 128>}, {transform_indices = @transform_4, window_bounds = array<i64: 32, 128>}, {transform_indices = @transform_5, window_bounds = array<i64: 1, 8, 128>}]} {
    %c0 = arith.constant 0 : index
    %c0_0 = arith.constant 0 : index
    %0 = vector.load %arg1[%c0, %c0_0] : memref<32x512xbf16, #tpu.memory_space<vmem>>, vector<32x512xbf16>
    %c0_1 = arith.constant 0 : index
    %c0_2 = arith.constant 0 : index
    %1 = vector.load %arg3[%c0_1, %c0_2] : memref<512x128xbf16, #tpu.memory_space<vmem>>, vector<512x128xbf16>
    %cst = arith.constant dense<0.000000e+00> : vector<32x128xf32>
    %2 = tpu.matmul %0, %1, %cst {dimension_numbers = #tpu.dot_dimension_numbers<[1], [0], [0], [1], [0, 0, 1, 1], [], []>} : vector<32x512xbf16>, vector<512x128xbf16>, vector<32x128xf32> -> vector<32x128xf32>
    %c0_3 = arith.constant 0 : index
    %c0_4 = arith.constant 0 : index
    %3 = vector.load %arg2[%c0_3, %c0_4] : memref<32x512xbf16, #tpu.memory_space<vmem>>, vector<32x512xbf16>
    %c0_5 = arith.constant 0 : index
    %c0_6 = arith.constant 0 : index
    %4 = vector.load %arg4[%c0_5, %c0_6] : memref<512x128xbf16, #tpu.memory_space<vmem>>, vector<512x128xbf16>
    %cst_7 = arith.constant dense<0.000000e+00> : vector<32x128xf32>
    %5 = tpu.matmul %3, %4, %cst_7 {dimension_numbers = #tpu.dot_dimension_numbers<[1], [0], [0], [1], [0, 0, 1, 1], [], []>} : vector<32x512xbf16>, vector<512x128xbf16>, vector<32x128xf32> -> vector<32x128xf32>
    %6 = arith.addf %2, %5 : vector<32x128xf32>
    %7 = arith.truncf %6 : vector<32x128xf32> to vector<32x128xbf16>
    %c0_8 = arith.constant 0 : index
    %c0_9 = arith.constant 0 : index
    %8 = vector.load %arg5[%c0_8, %c0_9] : memref<32x128xbf16, #tpu.memory_space<vmem>>, vector<32x128xbf16>
    tpu.vector_store %arg5[%c0_8, %c0_9], %7 {strides = array<i32>} : memref<32x128xbf16, #tpu.memory_space<vmem>>, vector<32x128xbf16>,
    %cst_10 = arith.constant dense<0.000000e+00> : vector<128xf32>
    %9 = vector.multi_reduction <add>, %6, %cst_10 [0] : vector<32x128xf32> to vector<128xf32>
    %10 = vector.shape_cast %9 : vector<128xf32> to vector<1x128xf32>
    %11 = arith.mulf %6, %6 : vector<32x128xf32>
    %cst_11 = arith.constant dense<0.000000e+00> : vector<128xf32>
    %12 = vector.multi_reduction <add>, %11, %cst_11 [0] : vector<32x128xf32> to vector<128xf32>
    %13 = vector.shape_cast %12 : vector<128xf32> to vector<1x128xf32>
    %14 = tpu.iota {dimensions = array<i32: 0>} : vector<8x128xi32>
    %c0_i32 = arith.constant 0 : i32
    %15 = vector.broadcast %c0_i32 : i32 to vector<8x128xi32>
    %16 = arith.cmpi eq, %14, %15 : vector<8x128xi32>
    %17 = vector.shape_cast %10 : vector<1x128xf32> to vector<1x128xf32>
    %18 = vector.broadcast %17 : vector<1x128xf32> to vector<8x128xf32>
    %c1_i32 = arith.constant 1 : i32
    %19 = vector.broadcast %c1_i32 : i32 to vector<8x128xi32>
    %20 = arith.cmpi eq, %14, %19 : vector<8x128xi32>
    %21 = vector.shape_cast %13 : vector<1x128xf32> to vector<1x128xf32>
    %22 = vector.broadcast %21 : vector<1x128xf32> to vector<8x128xf32>
    %cst_12 = arith.constant 0.000000e+00 : f32
    %23 = vector.broadcast %cst_12 : f32 to vector<8x128xf32>
    %24 = arith.select %20, %22, %23 : vector<8x128xi1>, vector<8x128xf32>
    %25 = arith.select %16, %18, %24 : vector<8x128xi1>, vector<8x128xf32>
    %c0_13 = arith.constant 0 : index
    %c0_14 = arith.constant 0 : index
    %c0_15 = arith.constant 0 : index
    %26 = vector.load %arg6[%c0_13, %c0_14, %c0_15] : memref<1x8x128xf32, #tpu.memory_space<vmem>>, vector<1x8x128xf32>
    %27 = vector.shape_cast %26 : vector<1x8x128xf32> to vector<8x128xf32>
    %28 = vector.shape_cast %25 : vector<8x128xf32> to vector<1x8x128xf32>
    tpu.vector_store %arg6[%c0_13, %c0_14, %c0_15], %28 {strides = array<i32>} : memref<1x8x128xf32, #tpu.memory_space<vmem>>, vector<1x8x128xf32>,
    return
  }
  func.func @transform_0(%arg0: i32) -> (i32, i32) {
    %c0_i32 = arith.constant 0 : i32
    %c0_i32_0 = arith.constant 0 : i32
    return %arg0, %c0_i32 : i32, i32
  }
  func.func @transform_1(%arg0: i32) -> (i32, i32) {
    %c0_i32 = arith.constant 0 : i32
    %c0_i32_0 = arith.constant 0 : i32
    return %arg0, %c0_i32 : i32, i32
  }
  func.func @transform_2(%arg0: i32) -> (i32, i32) {
    %c0_i32 = arith.constant 0 : i32
    %c0_i32_0 = arith.constant 0 : i32
    %c0_i32_1 = arith.constant 0 : i32
    return %c0_i32, %c0_i32_0 : i32, i32
  }
  func.func @transform_3(%arg0: i32) -> (i32, i32) {
    %c0_i32 = arith.constant 0 : i32
    %c0_i32_0 = arith.constant 0 : i32
    %c0_i32_1 = arith.constant 0 : i32
    return %c0_i32, %c0_i32_0 : i32, i32
  }
  func.func @transform_4(%arg0: i32) -> (i32, i32) {
    %c0_i32 = arith.constant 0 : i32
    %c0_i32_0 = arith.constant 0 : i32
    return %arg0, %c0_i32 : i32, i32
  }
  func.func @transform_5(%arg0: i32) -> (i32, i32, i32) {
    %c0_i32 = arith.constant 0 : i32
    %c0_i32_0 = arith.constant 0 : i32
    %c0_i32_1 = arith.constant 0 : i32
    return %arg0, %c0_i32, %c0_i32_0 : i32, i32, i32
  }
}

module attributes {stable_mosaic.version = 11 : i64} {
  func.func @_conv3x3_fused_kernel(%arg0: i32, %arg1: memref<1x44x128xbf16, #tpu.memory_space<vmem>>, %arg2: memref<1x128xf32, #tpu.memory_space<vmem>>, %arg3: memref<1x128xf32, #tpu.memory_space<vmem>>, %arg4: memref<1x44x1xf32, #tpu.memory_space<vmem>>, %arg5: memref<1x24x1xf32, #tpu.memory_space<vmem>>, %arg6: memref<9x128x128xbf16, #tpu.memory_space<vmem>>, %arg7: memref<1x24x128xbf16, #tpu.memory_space<vmem>>, %arg8: memref<1x8x128xf32, #tpu.memory_space<vmem>>) attributes {dimension_semantics = [#tpu.dimension_semantics<parallel>], iteration_bounds = array<i64: 2>, scalar_prefetch = 0 : i64, scratch_operands = 0 : i64, tpu.core_type = #tpu.core_type<tc>, window_params = [{transform_indices = @transform_0, window_bounds = array<i64: 1, 44, 128>}, {pipeline_mode = #tpu.pipeline_mode<synchronous>, transform_indices = @transform_1, window_bounds = array<i64: 1, 128>}, {pipeline_mode = #tpu.pipeline_mode<synchronous>, transform_indices = @transform_2, window_bounds = array<i64: 1, 128>}, {pipeline_mode = #tpu.pipeline_mode<synchronous>, transform_indices = @transform_3, window_bounds = array<i64: 1, 44, 1>}, {pipeline_mode = #tpu.pipeline_mode<synchronous>, transform_indices = @transform_4, window_bounds = array<i64: 1, 24, 1>}, {pipeline_mode = #tpu.pipeline_mode<synchronous>, transform_indices = @transform_5, window_bounds = array<i64: 9, 128, 128>}, {transform_indices = @transform_6, window_bounds = array<i64: 1, 24, 128>}, {transform_indices = @transform_7, window_bounds = array<i64: 1, 8, 128>}]} {
    %c0 = arith.constant 0 : index
    %c0_0 = arith.constant 0 : index
    %c0_1 = arith.constant 0 : index
    %0 = vector.load %arg1[%c0, %c0_0, %c0_1] : memref<1x44x128xbf16, #tpu.memory_space<vmem>>, vector<1x44x128xbf16>
    %1 = vector.shape_cast %0 : vector<1x44x128xbf16> to vector<44x128xbf16>
    %2 = arith.extf %1 : vector<44x128xbf16> to vector<44x128xf32>
    %c0_2 = arith.constant 0 : index
    %c0_3 = arith.constant 0 : index
    %3 = vector.load %arg2[%c0_2, %c0_3] : memref<1x128xf32, #tpu.memory_space<vmem>>, vector<1x128xf32>
    %4 = vector.broadcast %3 : vector<1x128xf32> to vector<44x128xf32>
    %5 = arith.mulf %2, %4 : vector<44x128xf32>
    %c0_4 = arith.constant 0 : index
    %c0_5 = arith.constant 0 : index
    %6 = vector.load %arg3[%c0_4, %c0_5] : memref<1x128xf32, #tpu.memory_space<vmem>>, vector<1x128xf32>
    %7 = vector.broadcast %6 : vector<1x128xf32> to vector<44x128xf32>
    %8 = arith.addf %5, %7 : vector<44x128xf32>
    %cst = arith.constant 0.000000e+00 : f32
    %9 = vector.broadcast %cst : f32 to vector<44x128xf32>
    %10 = arith.maximumf %8, %9 : vector<44x128xf32>
    %c0_6 = arith.constant 0 : index
    %c0_7 = arith.constant 0 : index
    %c0_8 = arith.constant 0 : index
    %11 = vector.load %arg4[%c0_6, %c0_7, %c0_8] : memref<1x44x1xf32, #tpu.memory_space<vmem>>, vector<1x44x1xf32>
    %12 = vector.shape_cast %11 : vector<1x44x1xf32> to vector<44x1xf32>
    %13 = vector.broadcast %12 : vector<44x1xf32> to vector<44x128xf32>
    %14 = arith.mulf %10, %13 : vector<44x128xf32>
    %15 = arith.truncf %14 : vector<44x128xf32> to vector<44x128xbf16>
    %cst_9 = arith.constant 0.000000e+00 : f32
    %16 = vector.broadcast %cst_9 : f32 to vector<24x128xf32>
    %17 = vector.extract_strided_slice %15 {offsets = [0, 0], sizes = [24, 128], strides = [1, 1]} : vector<44x128xbf16> to vector<24x128xbf16>
    %c0_10 = arith.constant 0 : index
    %c0_11 = arith.constant 0 : index
    %c0_12 = arith.constant 0 : index
    %18 = vector.load %arg6[%c0_10, %c0_11, %c0_12] : memref<9x128x128xbf16, #tpu.memory_space<vmem>>, vector<1x128x128xbf16>
    %19 = vector.shape_cast %18 : vector<1x128x128xbf16> to vector<128x128xbf16>
    %cst_13 = arith.constant dense<0.000000e+00> : vector<24x128xf32>
    %20 = tpu.matmul %17, %19, %cst_13 {dimension_numbers = #tpu.dot_dimension_numbers<[1], [0], [0], [1], [0, 0, 1, 1], [], []>} : vector<24x128xbf16>, vector<128x128xbf16>, vector<24x128xf32> -> vector<24x128xf32>
    %21 = arith.addf %16, %20 : vector<24x128xf32>
    %22 = vector.extract_strided_slice %15 {offsets = [1, 0], sizes = [24, 128], strides = [1, 1]} : vector<44x128xbf16> to vector<24x128xbf16>
    %c1 = arith.constant 1 : index
    %c0_14 = arith.constant 0 : index
    %c0_15 = arith.constant 0 : index
    %23 = vector.load %arg6[%c1, %c0_14, %c0_15] : memref<9x128x128xbf16, #tpu.memory_space<vmem>>, vector<1x128x128xbf16>
    %24 = vector.shape_cast %23 : vector<1x128x128xbf16> to vector<128x128xbf16>
    %cst_16 = arith.constant dense<0.000000e+00> : vector<24x128xf32>
    %25 = tpu.matmul %22, %24, %cst_16 {dimension_numbers = #tpu.dot_dimension_numbers<[1], [0], [0], [1], [0, 0, 1, 1], [], []>} : vector<24x128xbf16>, vector<128x128xbf16>, vector<24x128xf32> -> vector<24x128xf32>
    %26 = arith.addf %21, %25 : vector<24x128xf32>
    %27 = vector.extract_strided_slice %15 {offsets = [2, 0], sizes = [24, 128], strides = [1, 1]} : vector<44x128xbf16> to vector<24x128xbf16>
    %c2 = arith.constant 2 : index
    %c0_17 = arith.constant 0 : index
    %c0_18 = arith.constant 0 : index
    %28 = vector.load %arg6[%c2, %c0_17, %c0_18] : memref<9x128x128xbf16, #tpu.memory_space<vmem>>, vector<1x128x128xbf16>
    %29 = vector.shape_cast %28 : vector<1x128x128xbf16> to vector<128x128xbf16>
    %cst_19 = arith.constant dense<0.000000e+00> : vector<24x128xf32>
    %30 = tpu.matmul %27, %29, %cst_19 {dimension_numbers = #tpu.dot_dimension_numbers<[1], [0], [0], [1], [0, 0, 1, 1], [], []>} : vector<24x128xbf16>, vector<128x128xbf16>, vector<24x128xf32> -> vector<24x128xf32>
    %31 = arith.addf %26, %30 : vector<24x128xf32>
    %32 = vector.extract_strided_slice %15 {offsets = [6, 0], sizes = [24, 128], strides = [1, 1]} : vector<44x128xbf16> to vector<24x128xbf16>
    %c3 = arith.constant 3 : index
    %c0_20 = arith.constant 0 : index
    %c0_21 = arith.constant 0 : index
    %33 = vector.load %arg6[%c3, %c0_20, %c0_21] : memref<9x128x128xbf16, #tpu.memory_space<vmem>>, vector<1x128x128xbf16>
    %34 = vector.shape_cast %33 : vector<1x128x128xbf16> to vector<128x128xbf16>
    %cst_22 = arith.constant dense<0.000000e+00> : vector<24x128xf32>
    %35 = tpu.matmul %32, %34, %cst_22 {dimension_numbers = #tpu.dot_dimension_numbers<[1], [0], [0], [1], [0, 0, 1, 1], [], []>} : vector<24x128xbf16>, vector<128x128xbf16>, vector<24x128xf32> -> vector<24x128xf32>
    %36 = arith.addf %31, %35 : vector<24x128xf32>
    %37 = vector.extract_strided_slice %15 {offsets = [7, 0], sizes = [24, 128], strides = [1, 1]} : vector<44x128xbf16> to vector<24x128xbf16>
    %c4 = arith.constant 4 : index
    %c0_23 = arith.constant 0 : index
    %c0_24 = arith.constant 0 : index
    %38 = vector.load %arg6[%c4, %c0_23, %c0_24] : memref<9x128x128xbf16, #tpu.memory_space<vmem>>, vector<1x128x128xbf16>
    %39 = vector.shape_cast %38 : vector<1x128x128xbf16> to vector<128x128xbf16>
    %cst_25 = arith.constant dense<0.000000e+00> : vector<24x128xf32>
    %40 = tpu.matmul %37, %39, %cst_25 {dimension_numbers = #tpu.dot_dimension_numbers<[1], [0], [0], [1], [0, 0, 1, 1], [], []>} : vector<24x128xbf16>, vector<128x128xbf16>, vector<24x128xf32> -> vector<24x128xf32>
    %41 = arith.addf %36, %40 : vector<24x128xf32>
    %42 = vector.extract_strided_slice %15 {offsets = [8, 0], sizes = [24, 128], strides = [1, 1]} : vector<44x128xbf16> to vector<24x128xbf16>
    %c5 = arith.constant 5 : index
    %c0_26 = arith.constant 0 : index
    %c0_27 = arith.constant 0 : index
    %43 = vector.load %arg6[%c5, %c0_26, %c0_27] : memref<9x128x128xbf16, #tpu.memory_space<vmem>>, vector<1x128x128xbf16>
    %44 = vector.shape_cast %43 : vector<1x128x128xbf16> to vector<128x128xbf16>
    %cst_28 = arith.constant dense<0.000000e+00> : vector<24x128xf32>
    %45 = tpu.matmul %42, %44, %cst_28 {dimension_numbers = #tpu.dot_dimension_numbers<[1], [0], [0], [1], [0, 0, 1, 1], [], []>} : vector<24x128xbf16>, vector<128x128xbf16>, vector<24x128xf32> -> vector<24x128xf32>
    %46 = arith.addf %41, %45 : vector<24x128xf32>
    %47 = vector.extract_strided_slice %15 {offsets = [12, 0], sizes = [24, 128], strides = [1, 1]} : vector<44x128xbf16> to vector<24x128xbf16>
    %c6 = arith.constant 6 : index
    %c0_29 = arith.constant 0 : index
    %c0_30 = arith.constant 0 : index
    %48 = vector.load %arg6[%c6, %c0_29, %c0_30] : memref<9x128x128xbf16, #tpu.memory_space<vmem>>, vector<1x128x128xbf16>
    %49 = vector.shape_cast %48 : vector<1x128x128xbf16> to vector<128x128xbf16>
    %cst_31 = arith.constant dense<0.000000e+00> : vector<24x128xf32>
    %50 = tpu.matmul %47, %49, %cst_31 {dimension_numbers = #tpu.dot_dimension_numbers<[1], [0], [0], [1], [0, 0, 1, 1], [], []>} : vector<24x128xbf16>, vector<128x128xbf16>, vector<24x128xf32> -> vector<24x128xf32>
    %51 = arith.addf %46, %50 : vector<24x128xf32>
    %52 = vector.extract_strided_slice %15 {offsets = [13, 0], sizes = [24, 128], strides = [1, 1]} : vector<44x128xbf16> to vector<24x128xbf16>
    %c7 = arith.constant 7 : index
    %c0_32 = arith.constant 0 : index
    %c0_33 = arith.constant 0 : index
    %53 = vector.load %arg6[%c7, %c0_32, %c0_33] : memref<9x128x128xbf16, #tpu.memory_space<vmem>>, vector<1x128x128xbf16>
    %54 = vector.shape_cast %53 : vector<1x128x128xbf16> to vector<128x128xbf16>
    %cst_34 = arith.constant dense<0.000000e+00> : vector<24x128xf32>
    %55 = tpu.matmul %52, %54, %cst_34 {dimension_numbers = #tpu.dot_dimension_numbers<[1], [0], [0], [1], [0, 0, 1, 1], [], []>} : vector<24x128xbf16>, vector<128x128xbf16>, vector<24x128xf32> -> vector<24x128xf32>
    %56 = arith.addf %51, %55 : vector<24x128xf32>
    %57 = vector.extract_strided_slice %15 {offsets = [14, 0], sizes = [24, 128], strides = [1, 1]} : vector<44x128xbf16> to vector<24x128xbf16>
    %c8 = arith.constant 8 : index
    %c0_35 = arith.constant 0 : index
    %c0_36 = arith.constant 0 : index
    %58 = vector.load %arg6[%c8, %c0_35, %c0_36] : memref<9x128x128xbf16, #tpu.memory_space<vmem>>, vector<1x128x128xbf16>
    %59 = vector.shape_cast %58 : vector<1x128x128xbf16> to vector<128x128xbf16>
    %cst_37 = arith.constant dense<0.000000e+00> : vector<24x128xf32>
    %60 = tpu.matmul %57, %59, %cst_37 {dimension_numbers = #tpu.dot_dimension_numbers<[1], [0], [0], [1], [0, 0, 1, 1], [], []>} : vector<24x128xbf16>, vector<128x128xbf16>, vector<24x128xf32> -> vector<24x128xf32>
    %61 = arith.addf %56, %60 : vector<24x128xf32>
    %62 = arith.truncf %61 : vector<24x128xf32> to vector<24x128xbf16>
    %c0_38 = arith.constant 0 : index
    %c0_39 = arith.constant 0 : index
    %c0_40 = arith.constant 0 : index
    %63 = vector.load %arg7[%c0_38, %c0_39, %c0_40] : memref<1x24x128xbf16, #tpu.memory_space<vmem>>, vector<1x24x128xbf16>
    %64 = vector.shape_cast %63 : vector<1x24x128xbf16> to vector<24x128xbf16>
    %65 = vector.shape_cast %62 : vector<24x128xbf16> to vector<1x24x128xbf16>
    tpu.vector_store %arg7[%c0_38, %c0_39, %c0_40], %65 {strides = array<i32>} : memref<1x24x128xbf16, #tpu.memory_space<vmem>>, vector<1x24x128xbf16>,
    %c0_41 = arith.constant 0 : index
    %c0_42 = arith.constant 0 : index
    %c0_43 = arith.constant 0 : index
    %66 = vector.load %arg5[%c0_41, %c0_42, %c0_43] : memref<1x24x1xf32, #tpu.memory_space<vmem>>, vector<1x24x1xf32>
    %67 = vector.shape_cast %66 : vector<1x24x1xf32> to vector<24x1xf32>
    %68 = vector.broadcast %67 : vector<24x1xf32> to vector<24x128xf32>
    %69 = arith.mulf %61, %68 : vector<24x128xf32>
    %cst_44 = arith.constant dense<0.000000e+00> : vector<128xf32>
    %70 = vector.multi_reduction <add>, %69, %cst_44 [0] : vector<24x128xf32> to vector<128xf32>
    %71 = vector.shape_cast %70 : vector<128xf32> to vector<1x128xf32>
    %72 = arith.mulf %69, %69 : vector<24x128xf32>
    %cst_45 = arith.constant dense<0.000000e+00> : vector<128xf32>
    %73 = vector.multi_reduction <add>, %72, %cst_45 [0] : vector<24x128xf32> to vector<128xf32>
    %74 = vector.shape_cast %73 : vector<128xf32> to vector<1x128xf32>
    %75 = tpu.iota {dimensions = array<i32: 0>} : vector<8x128xi32>
    %c0_i32 = arith.constant 0 : i32
    %76 = vector.broadcast %c0_i32 : i32 to vector<8x128xi32>
    %77 = arith.cmpi eq, %75, %76 : vector<8x128xi32>
    %78 = vector.shape_cast %71 : vector<1x128xf32> to vector<1x128xf32>
    %79 = vector.broadcast %78 : vector<1x128xf32> to vector<8x128xf32>
    %c1_i32 = arith.constant 1 : i32
    %80 = vector.broadcast %c1_i32 : i32 to vector<8x128xi32>
    %81 = arith.cmpi eq, %75, %80 : vector<8x128xi32>
    %82 = vector.shape_cast %74 : vector<1x128xf32> to vector<1x128xf32>
    %83 = vector.broadcast %82 : vector<1x128xf32> to vector<8x128xf32>
    %cst_46 = arith.constant 0.000000e+00 : f32
    %84 = vector.broadcast %cst_46 : f32 to vector<8x128xf32>
    %85 = arith.select %81, %83, %84 : vector<8x128xi1>, vector<8x128xf32>
    %86 = arith.select %77, %79, %85 : vector<8x128xi1>, vector<8x128xf32>
    %c0_47 = arith.constant 0 : index
    %c0_48 = arith.constant 0 : index
    %c0_49 = arith.constant 0 : index
    %87 = vector.load %arg8[%c0_47, %c0_48, %c0_49] : memref<1x8x128xf32, #tpu.memory_space<vmem>>, vector<1x8x128xf32>
    %88 = vector.shape_cast %87 : vector<1x8x128xf32> to vector<8x128xf32>
    %89 = vector.shape_cast %86 : vector<8x128xf32> to vector<1x8x128xf32>
    tpu.vector_store %arg8[%c0_47, %c0_48, %c0_49], %89 {strides = array<i32>} : memref<1x8x128xf32, #tpu.memory_space<vmem>>, vector<1x8x128xf32>,
    return
  }
  func.func @transform_0(%arg0: i32) -> (i32, i32, i32) {
    %c0_i32 = arith.constant 0 : i32
    %c0_i32_0 = arith.constant 0 : i32
    %c0_i32_1 = arith.constant 0 : i32
    return %arg0, %c0_i32, %c0_i32_0 : i32, i32, i32
  }
  func.func @transform_1(%arg0: i32) -> (i32, i32) {
    %c0_i32 = arith.constant 0 : i32
    %c0_i32_0 = arith.constant 0 : i32
    %c0_i32_1 = arith.constant 0 : i32
    return %c0_i32, %c0_i32_0 : i32, i32
  }
  func.func @transform_2(%arg0: i32) -> (i32, i32) {
    %c0_i32 = arith.constant 0 : i32
    %c0_i32_0 = arith.constant 0 : i32
    %c0_i32_1 = arith.constant 0 : i32
    return %c0_i32, %c0_i32_0 : i32, i32
  }
  func.func @transform_3(%arg0: i32) -> (i32, i32, i32) {
    %c0_i32 = arith.constant 0 : i32
    %c0_i32_0 = arith.constant 0 : i32
    %c0_i32_1 = arith.constant 0 : i32
    %c0_i32_2 = arith.constant 0 : i32
    return %c0_i32, %c0_i32_0, %c0_i32_1 : i32, i32, i32
  }
  func.func @transform_4(%arg0: i32) -> (i32, i32, i32) {
    %c0_i32 = arith.constant 0 : i32
    %c0_i32_0 = arith.constant 0 : i32
    %c0_i32_1 = arith.constant 0 : i32
    %c0_i32_2 = arith.constant 0 : i32
    return %c0_i32, %c0_i32_0, %c0_i32_1 : i32, i32, i32
  }
  func.func @transform_5(%arg0: i32) -> (i32, i32, i32) {
    %c0_i32 = arith.constant 0 : i32
    %c0_i32_0 = arith.constant 0 : i32
    %c0_i32_1 = arith.constant 0 : i32
    %c0_i32_2 = arith.constant 0 : i32
    return %c0_i32, %c0_i32_0, %c0_i32_1 : i32, i32, i32
  }
  func.func @transform_6(%arg0: i32) -> (i32, i32, i32) {
    %c0_i32 = arith.constant 0 : i32
    %c0_i32_0 = arith.constant 0 : i32
    %c0_i32_1 = arith.constant 0 : i32
    return %arg0, %c0_i32, %c0_i32_0 : i32, i32, i32
  }
  func.func @transform_7(%arg0: i32) -> (i32, i32, i32) {
    %c0_i32 = arith.constant 0 : i32
    %c0_i32_0 = arith.constant 0 : i32
    %c0_i32_1 = arith.constant 0 : i32
    return %arg0, %c0_i32, %c0_i32_0 : i32, i32, i32
  }
}

module attributes {stable_mosaic.version = 11 : i64} {
  func.func @_bn_relu_kernel(%arg0: i32, %arg1: memref<32x128xbf16, #tpu.memory_space<vmem>>, %arg2: memref<1x128xf32, #tpu.memory_space<vmem>>, %arg3: memref<1x128xf32, #tpu.memory_space<vmem>>, %arg4: memref<32x128xbf16, #tpu.memory_space<vmem>>) attributes {dimension_semantics = [#tpu.dimension_semantics<parallel>], iteration_bounds = array<i64: 1>, scalar_prefetch = 0 : i64, scratch_operands = 0 : i64, tpu.core_type = #tpu.core_type<tc>, window_params = [{transform_indices = @transform_0, window_bounds = array<i64: 32, 128>}, {pipeline_mode = #tpu.pipeline_mode<synchronous>, transform_indices = @transform_1, window_bounds = array<i64: 1, 128>}, {pipeline_mode = #tpu.pipeline_mode<synchronous>, transform_indices = @transform_2, window_bounds = array<i64: 1, 128>}, {transform_indices = @transform_3, window_bounds = array<i64: 32, 128>}]} {
    %c0 = arith.constant 0 : index
    %c0_0 = arith.constant 0 : index
    %0 = vector.load %arg1[%c0, %c0_0] : memref<32x128xbf16, #tpu.memory_space<vmem>>, vector<32x128xbf16>
    %1 = arith.extf %0 : vector<32x128xbf16> to vector<32x128xf32>
    %c0_1 = arith.constant 0 : index
    %c0_2 = arith.constant 0 : index
    %2 = vector.load %arg2[%c0_1, %c0_2] : memref<1x128xf32, #tpu.memory_space<vmem>>, vector<1x128xf32>
    %3 = vector.broadcast %2 : vector<1x128xf32> to vector<32x128xf32>
    %4 = arith.mulf %1, %3 : vector<32x128xf32>
    %c0_3 = arith.constant 0 : index
    %c0_4 = arith.constant 0 : index
    %5 = vector.load %arg3[%c0_3, %c0_4] : memref<1x128xf32, #tpu.memory_space<vmem>>, vector<1x128xf32>
    %6 = vector.broadcast %5 : vector<1x128xf32> to vector<32x128xf32>
    %7 = arith.addf %4, %6 : vector<32x128xf32>
    %cst = arith.constant 0.000000e+00 : f32
    %8 = vector.broadcast %cst : f32 to vector<32x128xf32>
    %9 = arith.maximumf %7, %8 : vector<32x128xf32>
    %10 = arith.truncf %9 : vector<32x128xf32> to vector<32x128xbf16>
    %c0_5 = arith.constant 0 : index
    %c0_6 = arith.constant 0 : index
    %11 = vector.load %arg4[%c0_5, %c0_6] : memref<32x128xbf16, #tpu.memory_space<vmem>>, vector<32x128xbf16>
    tpu.vector_store %arg4[%c0_5, %c0_6], %10 {strides = array<i32>} : memref<32x128xbf16, #tpu.memory_space<vmem>>, vector<32x128xbf16>,
    return
  }
  func.func @transform_0(%arg0: i32) -> (i32, i32) {
    %c0_i32 = arith.constant 0 : i32
    %c0_i32_0 = arith.constant 0 : i32
    return %arg0, %c0_i32 : i32, i32
  }
  func.func @transform_1(%arg0: i32) -> (i32, i32) {
    %c0_i32 = arith.constant 0 : i32
    %c0_i32_0 = arith.constant 0 : i32
    %c0_i32_1 = arith.constant 0 : i32
    return %c0_i32, %c0_i32_0 : i32, i32
  }
  func.func @transform_2(%arg0: i32) -> (i32, i32) {
    %c0_i32 = arith.constant 0 : i32
    %c0_i32_0 = arith.constant 0 : i32
    %c0_i32_1 = arith.constant 0 : i32
    return %c0_i32, %c0_i32_0 : i32, i32
  }
  func.func @transform_3(%arg0: i32) -> (i32, i32) {
    %c0_i32 = arith.constant 0 : i32
    %c0_i32_0 = arith.constant 0 : i32
    return %arg0, %c0_i32 : i32, i32
  }
}

module attributes {stable_mosaic.version = 11 : i64} {
  func.func @_concat_mm_kernel(%arg0: i32, %arg1: memref<128x128xbf16, #tpu.memory_space<vmem>>, %arg2: memref<128x256xbf16, #tpu.memory_space<vmem>>, %arg3: memref<128x64xbf16, #tpu.memory_space<vmem>>, %arg4: memref<256x64xbf16, #tpu.memory_space<vmem>>, %arg5: memref<128x64xbf16, #tpu.memory_space<vmem>>, %arg6: memref<1x8x64xf32, #tpu.memory_space<vmem>>) attributes {dimension_semantics = [#tpu.dimension_semantics<parallel>], iteration_bounds = array<i64: 1>, scalar_prefetch = 0 : i64, scratch_operands = 0 : i64, tpu.core_type = #tpu.core_type<tc>, window_params = [{transform_indices = @transform_0, window_bounds = array<i64: 128, 128>}, {transform_indices = @transform_1, window_bounds = array<i64: 128, 256>}, {pipeline_mode = #tpu.pipeline_mode<synchronous>, transform_indices = @transform_2, window_bounds = array<i64: 128, 64>}, {pipeline_mode = #tpu.pipeline_mode<synchronous>, transform_indices = @transform_3, window_bounds = array<i64: 256, 64>}, {transform_indices = @transform_4, window_bounds = array<i64: 128, 64>}, {transform_indices = @transform_5, window_bounds = array<i64: 1, 8, 64>}]} {
    %c0 = arith.constant 0 : index
    %c0_0 = arith.constant 0 : index
    %0 = vector.load %arg1[%c0, %c0_0] : memref<128x128xbf16, #tpu.memory_space<vmem>>, vector<128x128xbf16>
    %c0_1 = arith.constant 0 : index
    %c0_2 = arith.constant 0 : index
    %1 = vector.load %arg3[%c0_1, %c0_2] : memref<128x64xbf16, #tpu.memory_space<vmem>>, vector<128x64xbf16>
    %cst = arith.constant dense<0.000000e+00> : vector<128x64xf32>
    %2 = tpu.matmul %0, %1, %cst {dimension_numbers = #tpu.dot_dimension_numbers<[1], [0], [0], [1], [0, 0, 1, 1], [], []>} : vector<128x128xbf16>, vector<128x64xbf16>, vector<128x64xf32> -> vector<128x64xf32>
    %c0_3 = arith.constant 0 : index
    %c0_4 = arith.constant 0 : index
    %3 = vector.load %arg2[%c0_3, %c0_4] : memref<128x256xbf16, #tpu.memory_space<vmem>>, vector<128x256xbf16>
    %c0_5 = arith.constant 0 : index
    %c0_6 = arith.constant 0 : index
    %4 = vector.load %arg4[%c0_5, %c0_6] : memref<256x64xbf16, #tpu.memory_space<vmem>>, vector<256x64xbf16>
    %cst_7 = arith.constant dense<0.000000e+00> : vector<128x64xf32>
    %5 = tpu.matmul %3, %4, %cst_7 {dimension_numbers = #tpu.dot_dimension_numbers<[1], [0], [0], [1], [0, 0, 1, 1], [], []>} : vector<128x256xbf16>, vector<256x64xbf16>, vector<128x64xf32> -> vector<128x64xf32>
    %6 = arith.addf %2, %5 : vector<128x64xf32>
    %7 = arith.truncf %6 : vector<128x64xf32> to vector<128x64xbf16>
    %c0_8 = arith.constant 0 : index
    %c0_9 = arith.constant 0 : index
    %8 = vector.load %arg5[%c0_8, %c0_9] : memref<128x64xbf16, #tpu.memory_space<vmem>>, vector<128x64xbf16>
    tpu.vector_store %arg5[%c0_8, %c0_9], %7 {strides = array<i32>} : memref<128x64xbf16, #tpu.memory_space<vmem>>, vector<128x64xbf16>,
    %cst_10 = arith.constant dense<0.000000e+00> : vector<64xf32>
    %9 = vector.multi_reduction <add>, %6, %cst_10 [0] : vector<128x64xf32> to vector<64xf32>
    %10 = vector.shape_cast %9 : vector<64xf32> to vector<1x64xf32>
    %11 = arith.mulf %6, %6 : vector<128x64xf32>
    %cst_11 = arith.constant dense<0.000000e+00> : vector<64xf32>
    %12 = vector.multi_reduction <add>, %11, %cst_11 [0] : vector<128x64xf32> to vector<64xf32>
    %13 = vector.shape_cast %12 : vector<64xf32> to vector<1x64xf32>
    %14 = tpu.iota {dimensions = array<i32: 0>} : vector<8x64xi32>
    %c0_i32 = arith.constant 0 : i32
    %15 = vector.broadcast %c0_i32 : i32 to vector<8x64xi32>
    %16 = arith.cmpi eq, %14, %15 : vector<8x64xi32>
    %17 = vector.shape_cast %10 : vector<1x64xf32> to vector<1x64xf32>
    %18 = vector.broadcast %17 : vector<1x64xf32> to vector<8x64xf32>
    %c1_i32 = arith.constant 1 : i32
    %19 = vector.broadcast %c1_i32 : i32 to vector<8x64xi32>
    %20 = arith.cmpi eq, %14, %19 : vector<8x64xi32>
    %21 = vector.shape_cast %13 : vector<1x64xf32> to vector<1x64xf32>
    %22 = vector.broadcast %21 : vector<1x64xf32> to vector<8x64xf32>
    %cst_12 = arith.constant 0.000000e+00 : f32
    %23 = vector.broadcast %cst_12 : f32 to vector<8x64xf32>
    %24 = arith.select %20, %22, %23 : vector<8x64xi1>, vector<8x64xf32>
    %25 = arith.select %16, %18, %24 : vector<8x64xi1>, vector<8x64xf32>
    %c0_13 = arith.constant 0 : index
    %c0_14 = arith.constant 0 : index
    %c0_15 = arith.constant 0 : index
    %26 = vector.load %arg6[%c0_13, %c0_14, %c0_15] : memref<1x8x64xf32, #tpu.memory_space<vmem>>, vector<1x8x64xf32>
    %27 = vector.shape_cast %26 : vector<1x8x64xf32> to vector<8x64xf32>
    %28 = vector.shape_cast %25 : vector<8x64xf32> to vector<1x8x64xf32>
    tpu.vector_store %arg6[%c0_13, %c0_14, %c0_15], %28 {strides = array<i32>} : memref<1x8x64xf32, #tpu.memory_space<vmem>>, vector<1x8x64xf32>,
    return
  }
  func.func @transform_0(%arg0: i32) -> (i32, i32) {
    %c0_i32 = arith.constant 0 : i32
    %c0_i32_0 = arith.constant 0 : i32
    return %arg0, %c0_i32 : i32, i32
  }
  func.func @transform_1(%arg0: i32) -> (i32, i32) {
    %c0_i32 = arith.constant 0 : i32
    %c0_i32_0 = arith.constant 0 : i32
    return %arg0, %c0_i32 : i32, i32
  }
  func.func @transform_2(%arg0: i32) -> (i32, i32) {
    %c0_i32 = arith.constant 0 : i32
    %c0_i32_0 = arith.constant 0 : i32
    %c0_i32_1 = arith.constant 0 : i32
    return %c0_i32, %c0_i32_0 : i32, i32
  }
  func.func @transform_3(%arg0: i32) -> (i32, i32) {
    %c0_i32 = arith.constant 0 : i32
    %c0_i32_0 = arith.constant 0 : i32
    %c0_i32_1 = arith.constant 0 : i32
    return %c0_i32, %c0_i32_0 : i32, i32
  }
  func.func @transform_4(%arg0: i32) -> (i32, i32) {
    %c0_i32 = arith.constant 0 : i32
    %c0_i32_0 = arith.constant 0 : i32
    return %arg0, %c0_i32 : i32, i32
  }
  func.func @transform_5(%arg0: i32) -> (i32, i32, i32) {
    %c0_i32 = arith.constant 0 : i32
    %c0_i32_0 = arith.constant 0 : i32
    %c0_i32_1 = arith.constant 0 : i32
    return %arg0, %c0_i32, %c0_i32_0 : i32, i32, i32
  }
}

module attributes {stable_mosaic.version = 11 : i64} {
  func.func @_conv3x3_fused_kernel(%arg0: i32, %arg1: memref<1x108x64xbf16, #tpu.memory_space<vmem>>, %arg2: memref<1x64xf32, #tpu.memory_space<vmem>>, %arg3: memref<1x64xf32, #tpu.memory_space<vmem>>, %arg4: memref<1x108x1xf32, #tpu.memory_space<vmem>>, %arg5: memref<1x80x1xf32, #tpu.memory_space<vmem>>, %arg6: memref<9x64x64xbf16, #tpu.memory_space<vmem>>, %arg7: memref<1x80x64xbf16, #tpu.memory_space<vmem>>, %arg8: memref<1x8x64xf32, #tpu.memory_space<vmem>>) attributes {dimension_semantics = [#tpu.dimension_semantics<parallel>], iteration_bounds = array<i64: 2>, scalar_prefetch = 0 : i64, scratch_operands = 0 : i64, tpu.core_type = #tpu.core_type<tc>, window_params = [{transform_indices = @transform_0, window_bounds = array<i64: 1, 108, 64>}, {pipeline_mode = #tpu.pipeline_mode<synchronous>, transform_indices = @transform_1, window_bounds = array<i64: 1, 64>}, {pipeline_mode = #tpu.pipeline_mode<synchronous>, transform_indices = @transform_2, window_bounds = array<i64: 1, 64>}, {pipeline_mode = #tpu.pipeline_mode<synchronous>, transform_indices = @transform_3, window_bounds = array<i64: 1, 108, 1>}, {pipeline_mode = #tpu.pipeline_mode<synchronous>, transform_indices = @transform_4, window_bounds = array<i64: 1, 80, 1>}, {pipeline_mode = #tpu.pipeline_mode<synchronous>, transform_indices = @transform_5, window_bounds = array<i64: 9, 64, 64>}, {transform_indices = @transform_6, window_bounds = array<i64: 1, 80, 64>}, {transform_indices = @transform_7, window_bounds = array<i64: 1, 8, 64>}]} {
    %c0 = arith.constant 0 : index
    %c0_0 = arith.constant 0 : index
    %c0_1 = arith.constant 0 : index
    %0 = vector.load %arg1[%c0, %c0_0, %c0_1] : memref<1x108x64xbf16, #tpu.memory_space<vmem>>, vector<1x108x64xbf16>
    %1 = vector.shape_cast %0 : vector<1x108x64xbf16> to vector<108x64xbf16>
    %2 = arith.extf %1 : vector<108x64xbf16> to vector<108x64xf32>
    %c0_2 = arith.constant 0 : index
    %c0_3 = arith.constant 0 : index
    %3 = vector.load %arg2[%c0_2, %c0_3] : memref<1x64xf32, #tpu.memory_space<vmem>>, vector<1x64xf32>
    %4 = vector.broadcast %3 : vector<1x64xf32> to vector<108x64xf32>
    %5 = arith.mulf %2, %4 : vector<108x64xf32>
    %c0_4 = arith.constant 0 : index
    %c0_5 = arith.constant 0 : index
    %6 = vector.load %arg3[%c0_4, %c0_5] : memref<1x64xf32, #tpu.memory_space<vmem>>, vector<1x64xf32>
    %7 = vector.broadcast %6 : vector<1x64xf32> to vector<108x64xf32>
    %8 = arith.addf %5, %7 : vector<108x64xf32>
    %cst = arith.constant 0.000000e+00 : f32
    %9 = vector.broadcast %cst : f32 to vector<108x64xf32>
    %10 = arith.maximumf %8, %9 : vector<108x64xf32>
    %c0_6 = arith.constant 0 : index
    %c0_7 = arith.constant 0 : index
    %c0_8 = arith.constant 0 : index
    %11 = vector.load %arg4[%c0_6, %c0_7, %c0_8] : memref<1x108x1xf32, #tpu.memory_space<vmem>>, vector<1x108x1xf32>
    %12 = vector.shape_cast %11 : vector<1x108x1xf32> to vector<108x1xf32>
    %13 = vector.broadcast %12 : vector<108x1xf32> to vector<108x64xf32>
    %14 = arith.mulf %10, %13 : vector<108x64xf32>
    %15 = arith.truncf %14 : vector<108x64xf32> to vector<108x64xbf16>
    %cst_9 = arith.constant 0.000000e+00 : f32
    %16 = vector.broadcast %cst_9 : f32 to vector<80x64xf32>
    %17 = vector.extract_strided_slice %15 {offsets = [0, 0], sizes = [80, 64], strides = [1, 1]} : vector<108x64xbf16> to vector<80x64xbf16>
    %c0_10 = arith.constant 0 : index
    %c0_11 = arith.constant 0 : index
    %c0_12 = arith.constant 0 : index
    %18 = vector.load %arg6[%c0_10, %c0_11, %c0_12] : memref<9x64x64xbf16, #tpu.memory_space<vmem>>, vector<1x64x64xbf16>
    %19 = vector.shape_cast %18 : vector<1x64x64xbf16> to vector<64x64xbf16>
    %cst_13 = arith.constant dense<0.000000e+00> : vector<80x64xf32>
    %20 = tpu.matmul %17, %19, %cst_13 {dimension_numbers = #tpu.dot_dimension_numbers<[1], [0], [0], [1], [0, 0, 1, 1], [], []>} : vector<80x64xbf16>, vector<64x64xbf16>, vector<80x64xf32> -> vector<80x64xf32>
    %21 = arith.addf %16, %20 : vector<80x64xf32>
    %22 = vector.extract_strided_slice %15 {offsets = [1, 0], sizes = [80, 64], strides = [1, 1]} : vector<108x64xbf16> to vector<80x64xbf16>
    %c1 = arith.constant 1 : index
    %c0_14 = arith.constant 0 : index
    %c0_15 = arith.constant 0 : index
    %23 = vector.load %arg6[%c1, %c0_14, %c0_15] : memref<9x64x64xbf16, #tpu.memory_space<vmem>>, vector<1x64x64xbf16>
    %24 = vector.shape_cast %23 : vector<1x64x64xbf16> to vector<64x64xbf16>
    %cst_16 = arith.constant dense<0.000000e+00> : vector<80x64xf32>
    %25 = tpu.matmul %22, %24, %cst_16 {dimension_numbers = #tpu.dot_dimension_numbers<[1], [0], [0], [1], [0, 0, 1, 1], [], []>} : vector<80x64xbf16>, vector<64x64xbf16>, vector<80x64xf32> -> vector<80x64xf32>
    %26 = arith.addf %21, %25 : vector<80x64xf32>
    %27 = vector.extract_strided_slice %15 {offsets = [2, 0], sizes = [80, 64], strides = [1, 1]} : vector<108x64xbf16> to vector<80x64xbf16>
    %c2 = arith.constant 2 : index
    %c0_17 = arith.constant 0 : index
    %c0_18 = arith.constant 0 : index
    %28 = vector.load %arg6[%c2, %c0_17, %c0_18] : memref<9x64x64xbf16, #tpu.memory_space<vmem>>, vector<1x64x64xbf16>
    %29 = vector.shape_cast %28 : vector<1x64x64xbf16> to vector<64x64xbf16>
    %cst_19 = arith.constant dense<0.000000e+00> : vector<80x64xf32>
    %30 = tpu.matmul %27, %29, %cst_19 {dimension_numbers = #tpu.dot_dimension_numbers<[1], [0], [0], [1], [0, 0, 1, 1], [], []>} : vector<80x64xbf16>, vector<64x64xbf16>, vector<80x64xf32> -> vector<80x64xf32>
    %31 = arith.addf %26, %30 : vector<80x64xf32>
    %32 = vector.extract_strided_slice %15 {offsets = [10, 0], sizes = [80, 64], strides = [1, 1]} : vector<108x64xbf16> to vector<80x64xbf16>
    %c3 = arith.constant 3 : index
    %c0_20 = arith.constant 0 : index
    %c0_21 = arith.constant 0 : index
    %33 = vector.load %arg6[%c3, %c0_20, %c0_21] : memref<9x64x64xbf16, #tpu.memory_space<vmem>>, vector<1x64x64xbf16>
    %34 = vector.shape_cast %33 : vector<1x64x64xbf16> to vector<64x64xbf16>
    %cst_22 = arith.constant dense<0.000000e+00> : vector<80x64xf32>
    %35 = tpu.matmul %32, %34, %cst_22 {dimension_numbers = #tpu.dot_dimension_numbers<[1], [0], [0], [1], [0, 0, 1, 1], [], []>} : vector<80x64xbf16>, vector<64x64xbf16>, vector<80x64xf32> -> vector<80x64xf32>
    %36 = arith.addf %31, %35 : vector<80x64xf32>
    %37 = vector.extract_strided_slice %15 {offsets = [11, 0], sizes = [80, 64], strides = [1, 1]} : vector<108x64xbf16> to vector<80x64xbf16>
    %c4 = arith.constant 4 : index
    %c0_23 = arith.constant 0 : index
    %c0_24 = arith.constant 0 : index
    %38 = vector.load %arg6[%c4, %c0_23, %c0_24] : memref<9x64x64xbf16, #tpu.memory_space<vmem>>, vector<1x64x64xbf16>
    %39 = vector.shape_cast %38 : vector<1x64x64xbf16> to vector<64x64xbf16>
    %cst_25 = arith.constant dense<0.000000e+00> : vector<80x64xf32>
    %40 = tpu.matmul %37, %39, %cst_25 {dimension_numbers = #tpu.dot_dimension_numbers<[1], [0], [0], [1], [0, 0, 1, 1], [], []>} : vector<80x64xbf16>, vector<64x64xbf16>, vector<80x64xf32> -> vector<80x64xf32>
    %41 = arith.addf %36, %40 : vector<80x64xf32>
    %42 = vector.extract_strided_slice %15 {offsets = [12, 0], sizes = [80, 64], strides = [1, 1]} : vector<108x64xbf16> to vector<80x64xbf16>
    %c5 = arith.constant 5 : index
    %c0_26 = arith.constant 0 : index
    %c0_27 = arith.constant 0 : index
    %43 = vector.load %arg6[%c5, %c0_26, %c0_27] : memref<9x64x64xbf16, #tpu.memory_space<vmem>>, vector<1x64x64xbf16>
    %44 = vector.shape_cast %43 : vector<1x64x64xbf16> to vector<64x64xbf16>
    %cst_28 = arith.constant dense<0.000000e+00> : vector<80x64xf32>
    %45 = tpu.matmul %42, %44, %cst_28 {dimension_numbers = #tpu.dot_dimension_numbers<[1], [0], [0], [1], [0, 0, 1, 1], [], []>} : vector<80x64xbf16>, vector<64x64xbf16>, vector<80x64xf32> -> vector<80x64xf32>
    %46 = arith.addf %41, %45 : vector<80x64xf32>
    %47 = vector.extract_strided_slice %15 {offsets = [20, 0], sizes = [80, 64], strides = [1, 1]} : vector<108x64xbf16> to vector<80x64xbf16>
    %c6 = arith.constant 6 : index
    %c0_29 = arith.constant 0 : index
    %c0_30 = arith.constant 0 : index
    %48 = vector.load %arg6[%c6, %c0_29, %c0_30] : memref<9x64x64xbf16, #tpu.memory_space<vmem>>, vector<1x64x64xbf16>
    %49 = vector.shape_cast %48 : vector<1x64x64xbf16> to vector<64x64xbf16>
    %cst_31 = arith.constant dense<0.000000e+00> : vector<80x64xf32>
    %50 = tpu.matmul %47, %49, %cst_31 {dimension_numbers = #tpu.dot_dimension_numbers<[1], [0], [0], [1], [0, 0, 1, 1], [], []>} : vector<80x64xbf16>, vector<64x64xbf16>, vector<80x64xf32> -> vector<80x64xf32>
    %51 = arith.addf %46, %50 : vector<80x64xf32>
    %52 = vector.extract_strided_slice %15 {offsets = [21, 0], sizes = [80, 64], strides = [1, 1]} : vector<108x64xbf16> to vector<80x64xbf16>
    %c7 = arith.constant 7 : index
    %c0_32 = arith.constant 0 : index
    %c0_33 = arith.constant 0 : index
    %53 = vector.load %arg6[%c7, %c0_32, %c0_33] : memref<9x64x64xbf16, #tpu.memory_space<vmem>>, vector<1x64x64xbf16>
    %54 = vector.shape_cast %53 : vector<1x64x64xbf16> to vector<64x64xbf16>
    %cst_34 = arith.constant dense<0.000000e+00> : vector<80x64xf32>
    %55 = tpu.matmul %52, %54, %cst_34 {dimension_numbers = #tpu.dot_dimension_numbers<[1], [0], [0], [1], [0, 0, 1, 1], [], []>} : vector<80x64xbf16>, vector<64x64xbf16>, vector<80x64xf32> -> vector<80x64xf32>
    %56 = arith.addf %51, %55 : vector<80x64xf32>
    %57 = vector.extract_strided_slice %15 {offsets = [22, 0], sizes = [80, 64], strides = [1, 1]} : vector<108x64xbf16> to vector<80x64xbf16>
    %c8 = arith.constant 8 : index
    %c0_35 = arith.constant 0 : index
    %c0_36 = arith.constant 0 : index
    %58 = vector.load %arg6[%c8, %c0_35, %c0_36] : memref<9x64x64xbf16, #tpu.memory_space<vmem>>, vector<1x64x64xbf16>
    %59 = vector.shape_cast %58 : vector<1x64x64xbf16> to vector<64x64xbf16>
    %cst_37 = arith.constant dense<0.000000e+00> : vector<80x64xf32>
    %60 = tpu.matmul %57, %59, %cst_37 {dimension_numbers = #tpu.dot_dimension_numbers<[1], [0], [0], [1], [0, 0, 1, 1], [], []>} : vector<80x64xbf16>, vector<64x64xbf16>, vector<80x64xf32> -> vector<80x64xf32>
    %61 = arith.addf %56, %60 : vector<80x64xf32>
    %62 = arith.truncf %61 : vector<80x64xf32> to vector<80x64xbf16>
    %c0_38 = arith.constant 0 : index
    %c0_39 = arith.constant 0 : index
    %c0_40 = arith.constant 0 : index
    %63 = vector.load %arg7[%c0_38, %c0_39, %c0_40] : memref<1x80x64xbf16, #tpu.memory_space<vmem>>, vector<1x80x64xbf16>
    %64 = vector.shape_cast %63 : vector<1x80x64xbf16> to vector<80x64xbf16>
    %65 = vector.shape_cast %62 : vector<80x64xbf16> to vector<1x80x64xbf16>
    tpu.vector_store %arg7[%c0_38, %c0_39, %c0_40], %65 {strides = array<i32>} : memref<1x80x64xbf16, #tpu.memory_space<vmem>>, vector<1x80x64xbf16>,
    %c0_41 = arith.constant 0 : index
    %c0_42 = arith.constant 0 : index
    %c0_43 = arith.constant 0 : index
    %66 = vector.load %arg5[%c0_41, %c0_42, %c0_43] : memref<1x80x1xf32, #tpu.memory_space<vmem>>, vector<1x80x1xf32>
    %67 = vector.shape_cast %66 : vector<1x80x1xf32> to vector<80x1xf32>
    %68 = vector.broadcast %67 : vector<80x1xf32> to vector<80x64xf32>
    %69 = arith.mulf %61, %68 : vector<80x64xf32>
    %cst_44 = arith.constant dense<0.000000e+00> : vector<64xf32>
    %70 = vector.multi_reduction <add>, %69, %cst_44 [0] : vector<80x64xf32> to vector<64xf32>
    %71 = vector.shape_cast %70 : vector<64xf32> to vector<1x64xf32>
    %72 = arith.mulf %69, %69 : vector<80x64xf32>
    %cst_45 = arith.constant dense<0.000000e+00> : vector<64xf32>
    %73 = vector.multi_reduction <add>, %72, %cst_45 [0] : vector<80x64xf32> to vector<64xf32>
    %74 = vector.shape_cast %73 : vector<64xf32> to vector<1x64xf32>
    %75 = tpu.iota {dimensions = array<i32: 0>} : vector<8x64xi32>
    %c0_i32 = arith.constant 0 : i32
    %76 = vector.broadcast %c0_i32 : i32 to vector<8x64xi32>
    %77 = arith.cmpi eq, %75, %76 : vector<8x64xi32>
    %78 = vector.shape_cast %71 : vector<1x64xf32> to vector<1x64xf32>
    %79 = vector.broadcast %78 : vector<1x64xf32> to vector<8x64xf32>
    %c1_i32 = arith.constant 1 : i32
    %80 = vector.broadcast %c1_i32 : i32 to vector<8x64xi32>
    %81 = arith.cmpi eq, %75, %80 : vector<8x64xi32>
    %82 = vector.shape_cast %74 : vector<1x64xf32> to vector<1x64xf32>
    %83 = vector.broadcast %82 : vector<1x64xf32> to vector<8x64xf32>
    %cst_46 = arith.constant 0.000000e+00 : f32
    %84 = vector.broadcast %cst_46 : f32 to vector<8x64xf32>
    %85 = arith.select %81, %83, %84 : vector<8x64xi1>, vector<8x64xf32>
    %86 = arith.select %77, %79, %85 : vector<8x64xi1>, vector<8x64xf32>
    %c0_47 = arith.constant 0 : index
    %c0_48 = arith.constant 0 : index
    %c0_49 = arith.constant 0 : index
    %87 = vector.load %arg8[%c0_47, %c0_48, %c0_49] : memref<1x8x64xf32, #tpu.memory_space<vmem>>, vector<1x8x64xf32>
    %88 = vector.shape_cast %87 : vector<1x8x64xf32> to vector<8x64xf32>
    %89 = vector.shape_cast %86 : vector<8x64xf32> to vector<1x8x64xf32>
    tpu.vector_store %arg8[%c0_47, %c0_48, %c0_49], %89 {strides = array<i32>} : memref<1x8x64xf32, #tpu.memory_space<vmem>>, vector<1x8x64xf32>,
    return
  }
  func.func @transform_0(%arg0: i32) -> (i32, i32, i32) {
    %c0_i32 = arith.constant 0 : i32
    %c0_i32_0 = arith.constant 0 : i32
    %c0_i32_1 = arith.constant 0 : i32
    return %arg0, %c0_i32, %c0_i32_0 : i32, i32, i32
  }
  func.func @transform_1(%arg0: i32) -> (i32, i32) {
    %c0_i32 = arith.constant 0 : i32
    %c0_i32_0 = arith.constant 0 : i32
    %c0_i32_1 = arith.constant 0 : i32
    return %c0_i32, %c0_i32_0 : i32, i32
  }
  func.func @transform_2(%arg0: i32) -> (i32, i32) {
    %c0_i32 = arith.constant 0 : i32
    %c0_i32_0 = arith.constant 0 : i32
    %c0_i32_1 = arith.constant 0 : i32
    return %c0_i32, %c0_i32_0 : i32, i32
  }
  func.func @transform_3(%arg0: i32) -> (i32, i32, i32) {
    %c0_i32 = arith.constant 0 : i32
    %c0_i32_0 = arith.constant 0 : i32
    %c0_i32_1 = arith.constant 0 : i32
    %c0_i32_2 = arith.constant 0 : i32
    return %c0_i32, %c0_i32_0, %c0_i32_1 : i32, i32, i32
  }
  func.func @transform_4(%arg0: i32) -> (i32, i32, i32) {
    %c0_i32 = arith.constant 0 : i32
    %c0_i32_0 = arith.constant 0 : i32
    %c0_i32_1 = arith.constant 0 : i32
    %c0_i32_2 = arith.constant 0 : i32
    return %c0_i32, %c0_i32_0, %c0_i32_1 : i32, i32, i32
  }
  func.func @transform_5(%arg0: i32) -> (i32, i32, i32) {
    %c0_i32 = arith.constant 0 : i32
    %c0_i32_0 = arith.constant 0 : i32
    %c0_i32_1 = arith.constant 0 : i32
    %c0_i32_2 = arith.constant 0 : i32
    return %c0_i32, %c0_i32_0, %c0_i32_1 : i32, i32, i32
  }
  func.func @transform_6(%arg0: i32) -> (i32, i32, i32) {
    %c0_i32 = arith.constant 0 : i32
    %c0_i32_0 = arith.constant 0 : i32
    %c0_i32_1 = arith.constant 0 : i32
    return %arg0, %c0_i32, %c0_i32_0 : i32, i32, i32
  }
  func.func @transform_7(%arg0: i32) -> (i32, i32, i32) {
    %c0_i32 = arith.constant 0 : i32
    %c0_i32_0 = arith.constant 0 : i32
    %c0_i32_1 = arith.constant 0 : i32
    return %arg0, %c0_i32, %c0_i32_0 : i32, i32, i32
  }
}

module attributes {stable_mosaic.version = 11 : i64} {
  func.func @_bn_relu_kernel(%arg0: i32, %arg1: memref<64x128xbf16, #tpu.memory_space<vmem>>, %arg2: memref<1x128xf32, #tpu.memory_space<vmem>>, %arg3: memref<1x128xf32, #tpu.memory_space<vmem>>, %arg4: memref<64x128xbf16, #tpu.memory_space<vmem>>) attributes {dimension_semantics = [#tpu.dimension_semantics<parallel>], iteration_bounds = array<i64: 1>, scalar_prefetch = 0 : i64, scratch_operands = 0 : i64, tpu.core_type = #tpu.core_type<tc>, window_params = [{transform_indices = @transform_0, window_bounds = array<i64: 64, 128>}, {pipeline_mode = #tpu.pipeline_mode<synchronous>, transform_indices = @transform_1, window_bounds = array<i64: 1, 128>}, {pipeline_mode = #tpu.pipeline_mode<synchronous>, transform_indices = @transform_2, window_bounds = array<i64: 1, 128>}, {transform_indices = @transform_3, window_bounds = array<i64: 64, 128>}]} {
    %c0 = arith.constant 0 : index
    %c0_0 = arith.constant 0 : index
    %0 = vector.load %arg1[%c0, %c0_0] : memref<64x128xbf16, #tpu.memory_space<vmem>>, vector<64x128xbf16>
    %1 = arith.extf %0 : vector<64x128xbf16> to vector<64x128xf32>
    %c0_1 = arith.constant 0 : index
    %c0_2 = arith.constant 0 : index
    %2 = vector.load %arg2[%c0_1, %c0_2] : memref<1x128xf32, #tpu.memory_space<vmem>>, vector<1x128xf32>
    %3 = vector.broadcast %2 : vector<1x128xf32> to vector<64x128xf32>
    %4 = arith.mulf %1, %3 : vector<64x128xf32>
    %c0_3 = arith.constant 0 : index
    %c0_4 = arith.constant 0 : index
    %5 = vector.load %arg3[%c0_3, %c0_4] : memref<1x128xf32, #tpu.memory_space<vmem>>, vector<1x128xf32>
    %6 = vector.broadcast %5 : vector<1x128xf32> to vector<64x128xf32>
    %7 = arith.addf %4, %6 : vector<64x128xf32>
    %cst = arith.constant 0.000000e+00 : f32
    %8 = vector.broadcast %cst : f32 to vector<64x128xf32>
    %9 = arith.maximumf %7, %8 : vector<64x128xf32>
    %10 = arith.truncf %9 : vector<64x128xf32> to vector<64x128xbf16>
    %c0_5 = arith.constant 0 : index
    %c0_6 = arith.constant 0 : index
    %11 = vector.load %arg4[%c0_5, %c0_6] : memref<64x128xbf16, #tpu.memory_space<vmem>>, vector<64x128xbf16>
    tpu.vector_store %arg4[%c0_5, %c0_6], %10 {strides = array<i32>} : memref<64x128xbf16, #tpu.memory_space<vmem>>, vector<64x128xbf16>,
    return
  }
  func.func @transform_0(%arg0: i32) -> (i32, i32) {
    %c0_i32 = arith.constant 0 : i32
    %c0_i32_0 = arith.constant 0 : i32
    return %arg0, %c0_i32 : i32, i32
  }
  func.func @transform_1(%arg0: i32) -> (i32, i32) {
    %c0_i32 = arith.constant 0 : i32
    %c0_i32_0 = arith.constant 0 : i32
    %c0_i32_1 = arith.constant 0 : i32
    return %c0_i32, %c0_i32_0 : i32, i32
  }
  func.func @transform_2(%arg0: i32) -> (i32, i32) {
    %c0_i32 = arith.constant 0 : i32
    %c0_i32_0 = arith.constant 0 : i32
    %c0_i32_1 = arith.constant 0 : i32
    return %c0_i32, %c0_i32_0 : i32, i32
  }
  func.func @transform_3(%arg0: i32) -> (i32, i32) {
    %c0_i32 = arith.constant 0 : i32
    %c0_i32_0 = arith.constant 0 : i32
    return %arg0, %c0_i32 : i32, i32
  }
}

module attributes {stable_mosaic.version = 11 : i64} {
  func.func @_concat_mm_kernel(%arg0: i32, %arg1: memref<512x64xbf16, #tpu.memory_space<vmem>>, %arg2: memref<512x128xbf16, #tpu.memory_space<vmem>>, %arg3: memref<64x32xbf16, #tpu.memory_space<vmem>>, %arg4: memref<128x32xbf16, #tpu.memory_space<vmem>>, %arg5: memref<512x32xbf16, #tpu.memory_space<vmem>>, %arg6: memref<1x8x32xf32, #tpu.memory_space<vmem>>) attributes {dimension_semantics = [#tpu.dimension_semantics<parallel>], iteration_bounds = array<i64: 1>, scalar_prefetch = 0 : i64, scratch_operands = 0 : i64, tpu.core_type = #tpu.core_type<tc>, window_params = [{transform_indices = @transform_0, window_bounds = array<i64: 512, 64>}, {transform_indices = @transform_1, window_bounds = array<i64: 512, 128>}, {pipeline_mode = #tpu.pipeline_mode<synchronous>, transform_indices = @transform_2, window_bounds = array<i64: 64, 32>}, {pipeline_mode = #tpu.pipeline_mode<synchronous>, transform_indices = @transform_3, window_bounds = array<i64: 128, 32>}, {transform_indices = @transform_4, window_bounds = array<i64: 512, 32>}, {transform_indices = @transform_5, window_bounds = array<i64: 1, 8, 32>}]} {
    %c0 = arith.constant 0 : index
    %c0_0 = arith.constant 0 : index
    %0 = vector.load %arg1[%c0, %c0_0] : memref<512x64xbf16, #tpu.memory_space<vmem>>, vector<512x64xbf16>
    %c0_1 = arith.constant 0 : index
    %c0_2 = arith.constant 0 : index
    %1 = vector.load %arg3[%c0_1, %c0_2] : memref<64x32xbf16, #tpu.memory_space<vmem>>, vector<64x32xbf16>
    %cst = arith.constant dense<0.000000e+00> : vector<512x32xf32>
    %2 = tpu.matmul %0, %1, %cst {dimension_numbers = #tpu.dot_dimension_numbers<[1], [0], [0], [1], [0, 0, 1, 1], [], []>} : vector<512x64xbf16>, vector<64x32xbf16>, vector<512x32xf32> -> vector<512x32xf32>
    %c0_3 = arith.constant 0 : index
    %c0_4 = arith.constant 0 : index
    %3 = vector.load %arg2[%c0_3, %c0_4] : memref<512x128xbf16, #tpu.memory_space<vmem>>, vector<512x128xbf16>
    %c0_5 = arith.constant 0 : index
    %c0_6 = arith.constant 0 : index
    %4 = vector.load %arg4[%c0_5, %c0_6] : memref<128x32xbf16, #tpu.memory_space<vmem>>, vector<128x32xbf16>
    %cst_7 = arith.constant dense<0.000000e+00> : vector<512x32xf32>
    %5 = tpu.matmul %3, %4, %cst_7 {dimension_numbers = #tpu.dot_dimension_numbers<[1], [0], [0], [1], [0, 0, 1, 1], [], []>} : vector<512x128xbf16>, vector<128x32xbf16>, vector<512x32xf32> -> vector<512x32xf32>
    %6 = arith.addf %2, %5 : vector<512x32xf32>
    %7 = arith.truncf %6 : vector<512x32xf32> to vector<512x32xbf16>
    %c0_8 = arith.constant 0 : index
    %c0_9 = arith.constant 0 : index
    %8 = vector.load %arg5[%c0_8, %c0_9] : memref<512x32xbf16, #tpu.memory_space<vmem>>, vector<512x32xbf16>
    tpu.vector_store %arg5[%c0_8, %c0_9], %7 {strides = array<i32>} : memref<512x32xbf16, #tpu.memory_space<vmem>>, vector<512x32xbf16>,
    %cst_10 = arith.constant dense<0.000000e+00> : vector<32xf32>
    %9 = vector.multi_reduction <add>, %6, %cst_10 [0] : vector<512x32xf32> to vector<32xf32>
    %10 = vector.shape_cast %9 : vector<32xf32> to vector<1x32xf32>
    %11 = arith.mulf %6, %6 : vector<512x32xf32>
    %cst_11 = arith.constant dense<0.000000e+00> : vector<32xf32>
    %12 = vector.multi_reduction <add>, %11, %cst_11 [0] : vector<512x32xf32> to vector<32xf32>
    %13 = vector.shape_cast %12 : vector<32xf32> to vector<1x32xf32>
    %14 = tpu.iota {dimensions = array<i32: 0>} : vector<8x32xi32>
    %c0_i32 = arith.constant 0 : i32
    %15 = vector.broadcast %c0_i32 : i32 to vector<8x32xi32>
    %16 = arith.cmpi eq, %14, %15 : vector<8x32xi32>
    %17 = vector.shape_cast %10 : vector<1x32xf32> to vector<1x32xf32>
    %18 = vector.broadcast %17 : vector<1x32xf32> to vector<8x32xf32>
    %c1_i32 = arith.constant 1 : i32
    %19 = vector.broadcast %c1_i32 : i32 to vector<8x32xi32>
    %20 = arith.cmpi eq, %14, %19 : vector<8x32xi32>
    %21 = vector.shape_cast %13 : vector<1x32xf32> to vector<1x32xf32>
    %22 = vector.broadcast %21 : vector<1x32xf32> to vector<8x32xf32>
    %cst_12 = arith.constant 0.000000e+00 : f32
    %23 = vector.broadcast %cst_12 : f32 to vector<8x32xf32>
    %24 = arith.select %20, %22, %23 : vector<8x32xi1>, vector<8x32xf32>
    %25 = arith.select %16, %18, %24 : vector<8x32xi1>, vector<8x32xf32>
    %c0_13 = arith.constant 0 : index
    %c0_14 = arith.constant 0 : index
    %c0_15 = arith.constant 0 : index
    %26 = vector.load %arg6[%c0_13, %c0_14, %c0_15] : memref<1x8x32xf32, #tpu.memory_space<vmem>>, vector<1x8x32xf32>
    %27 = vector.shape_cast %26 : vector<1x8x32xf32> to vector<8x32xf32>
    %28 = vector.shape_cast %25 : vector<8x32xf32> to vector<1x8x32xf32>
    tpu.vector_store %arg6[%c0_13, %c0_14, %c0_15], %28 {strides = array<i32>} : memref<1x8x32xf32, #tpu.memory_space<vmem>>, vector<1x8x32xf32>,
    return
  }
  func.func @transform_0(%arg0: i32) -> (i32, i32) {
    %c0_i32 = arith.constant 0 : i32
    %c0_i32_0 = arith.constant 0 : i32
    return %arg0, %c0_i32 : i32, i32
  }
  func.func @transform_1(%arg0: i32) -> (i32, i32) {
    %c0_i32 = arith.constant 0 : i32
    %c0_i32_0 = arith.constant 0 : i32
    return %arg0, %c0_i32 : i32, i32
  }
  func.func @transform_2(%arg0: i32) -> (i32, i32) {
    %c0_i32 = arith.constant 0 : i32
    %c0_i32_0 = arith.constant 0 : i32
    %c0_i32_1 = arith.constant 0 : i32
    return %c0_i32, %c0_i32_0 : i32, i32
  }
  func.func @transform_3(%arg0: i32) -> (i32, i32) {
    %c0_i32 = arith.constant 0 : i32
    %c0_i32_0 = arith.constant 0 : i32
    %c0_i32_1 = arith.constant 0 : i32
    return %c0_i32, %c0_i32_0 : i32, i32
  }
  func.func @transform_4(%arg0: i32) -> (i32, i32) {
    %c0_i32 = arith.constant 0 : i32
    %c0_i32_0 = arith.constant 0 : i32
    return %arg0, %c0_i32 : i32, i32
  }
  func.func @transform_5(%arg0: i32) -> (i32, i32, i32) {
    %c0_i32 = arith.constant 0 : i32
    %c0_i32_0 = arith.constant 0 : i32
    %c0_i32_1 = arith.constant 0 : i32
    return %arg0, %c0_i32, %c0_i32_0 : i32, i32, i32
  }
}

module attributes {stable_mosaic.version = 11 : i64} {
  func.func @_conv3x3_fused_kernel(%arg0: i32, %arg1: memref<1x332x32xbf16, #tpu.memory_space<vmem>>, %arg2: memref<1x32xf32, #tpu.memory_space<vmem>>, %arg3: memref<1x32xf32, #tpu.memory_space<vmem>>, %arg4: memref<1x332x1xf32, #tpu.memory_space<vmem>>, %arg5: memref<1x288x1xf32, #tpu.memory_space<vmem>>, %arg6: memref<9x32x32xbf16, #tpu.memory_space<vmem>>, %arg7: memref<1x288x32xbf16, #tpu.memory_space<vmem>>, %arg8: memref<1x8x32xf32, #tpu.memory_space<vmem>>) attributes {dimension_semantics = [#tpu.dimension_semantics<parallel>], iteration_bounds = array<i64: 2>, scalar_prefetch = 0 : i64, scratch_operands = 0 : i64, tpu.core_type = #tpu.core_type<tc>, window_params = [{transform_indices = @transform_0, window_bounds = array<i64: 1, 332, 32>}, {pipeline_mode = #tpu.pipeline_mode<synchronous>, transform_indices = @transform_1, window_bounds = array<i64: 1, 32>}, {pipeline_mode = #tpu.pipeline_mode<synchronous>, transform_indices = @transform_2, window_bounds = array<i64: 1, 32>}, {pipeline_mode = #tpu.pipeline_mode<synchronous>, transform_indices = @transform_3, window_bounds = array<i64: 1, 332, 1>}, {pipeline_mode = #tpu.pipeline_mode<synchronous>, transform_indices = @transform_4, window_bounds = array<i64: 1, 288, 1>}, {pipeline_mode = #tpu.pipeline_mode<synchronous>, transform_indices = @transform_5, window_bounds = array<i64: 9, 32, 32>}, {transform_indices = @transform_6, window_bounds = array<i64: 1, 288, 32>}, {transform_indices = @transform_7, window_bounds = array<i64: 1, 8, 32>}]} {
    %c0 = arith.constant 0 : index
    %c0_0 = arith.constant 0 : index
    %c0_1 = arith.constant 0 : index
    %0 = vector.load %arg1[%c0, %c0_0, %c0_1] : memref<1x332x32xbf16, #tpu.memory_space<vmem>>, vector<1x332x32xbf16>
    %1 = vector.shape_cast %0 : vector<1x332x32xbf16> to vector<332x32xbf16>
    %2 = arith.extf %1 : vector<332x32xbf16> to vector<332x32xf32>
    %c0_2 = arith.constant 0 : index
    %c0_3 = arith.constant 0 : index
    %3 = vector.load %arg2[%c0_2, %c0_3] : memref<1x32xf32, #tpu.memory_space<vmem>>, vector<1x32xf32>
    %4 = vector.broadcast %3 : vector<1x32xf32> to vector<332x32xf32>
    %5 = arith.mulf %2, %4 : vector<332x32xf32>
    %c0_4 = arith.constant 0 : index
    %c0_5 = arith.constant 0 : index
    %6 = vector.load %arg3[%c0_4, %c0_5] : memref<1x32xf32, #tpu.memory_space<vmem>>, vector<1x32xf32>
    %7 = vector.broadcast %6 : vector<1x32xf32> to vector<332x32xf32>
    %8 = arith.addf %5, %7 : vector<332x32xf32>
    %cst = arith.constant 0.000000e+00 : f32
    %9 = vector.broadcast %cst : f32 to vector<332x32xf32>
    %10 = arith.maximumf %8, %9 : vector<332x32xf32>
    %c0_6 = arith.constant 0 : index
    %c0_7 = arith.constant 0 : index
    %c0_8 = arith.constant 0 : index
    %11 = vector.load %arg4[%c0_6, %c0_7, %c0_8] : memref<1x332x1xf32, #tpu.memory_space<vmem>>, vector<1x332x1xf32>
    %12 = vector.shape_cast %11 : vector<1x332x1xf32> to vector<332x1xf32>
    %13 = vector.broadcast %12 : vector<332x1xf32> to vector<332x32xf32>
    %14 = arith.mulf %10, %13 : vector<332x32xf32>
    %15 = arith.truncf %14 : vector<332x32xf32> to vector<332x32xbf16>
    %cst_9 = arith.constant 0.000000e+00 : f32
    %16 = vector.broadcast %cst_9 : f32 to vector<288x32xf32>
    %17 = vector.extract_strided_slice %15 {offsets = [0, 0], sizes = [288, 32], strides = [1, 1]} : vector<332x32xbf16> to vector<288x32xbf16>
    %c0_10 = arith.constant 0 : index
    %c0_11 = arith.constant 0 : index
    %c0_12 = arith.constant 0 : index
    %18 = vector.load %arg6[%c0_10, %c0_11, %c0_12] : memref<9x32x32xbf16, #tpu.memory_space<vmem>>, vector<1x32x32xbf16>
    %19 = vector.shape_cast %18 : vector<1x32x32xbf16> to vector<32x32xbf16>
    %cst_13 = arith.constant dense<0.000000e+00> : vector<288x32xf32>
    %20 = tpu.matmul %17, %19, %cst_13 {dimension_numbers = #tpu.dot_dimension_numbers<[1], [0], [0], [1], [0, 0, 1, 1], [], []>} : vector<288x32xbf16>, vector<32x32xbf16>, vector<288x32xf32> -> vector<288x32xf32>
    %21 = arith.addf %16, %20 : vector<288x32xf32>
    %22 = vector.extract_strided_slice %15 {offsets = [1, 0], sizes = [288, 32], strides = [1, 1]} : vector<332x32xbf16> to vector<288x32xbf16>
    %c1 = arith.constant 1 : index
    %c0_14 = arith.constant 0 : index
    %c0_15 = arith.constant 0 : index
    %23 = vector.load %arg6[%c1, %c0_14, %c0_15] : memref<9x32x32xbf16, #tpu.memory_space<vmem>>, vector<1x32x32xbf16>
    %24 = vector.shape_cast %23 : vector<1x32x32xbf16> to vector<32x32xbf16>
    %cst_16 = arith.constant dense<0.000000e+00> : vector<288x32xf32>
    %25 = tpu.matmul %22, %24, %cst_16 {dimension_numbers = #tpu.dot_dimension_numbers<[1], [0], [0], [1], [0, 0, 1, 1], [], []>} : vector<288x32xbf16>, vector<32x32xbf16>, vector<288x32xf32> -> vector<288x32xf32>
    %26 = arith.addf %21, %25 : vector<288x32xf32>
    %27 = vector.extract_strided_slice %15 {offsets = [2, 0], sizes = [288, 32], strides = [1, 1]} : vector<332x32xbf16> to vector<288x32xbf16>
    %c2 = arith.constant 2 : index
    %c0_17 = arith.constant 0 : index
    %c0_18 = arith.constant 0 : index
    %28 = vector.load %arg6[%c2, %c0_17, %c0_18] : memref<9x32x32xbf16, #tpu.memory_space<vmem>>, vector<1x32x32xbf16>
    %29 = vector.shape_cast %28 : vector<1x32x32xbf16> to vector<32x32xbf16>
    %cst_19 = arith.constant dense<0.000000e+00> : vector<288x32xf32>
    %30 = tpu.matmul %27, %29, %cst_19 {dimension_numbers = #tpu.dot_dimension_numbers<[1], [0], [0], [1], [0, 0, 1, 1], [], []>} : vector<288x32xbf16>, vector<32x32xbf16>, vector<288x32xf32> -> vector<288x32xf32>
    %31 = arith.addf %26, %30 : vector<288x32xf32>
    %32 = vector.extract_strided_slice %15 {offsets = [18, 0], sizes = [288, 32], strides = [1, 1]} : vector<332x32xbf16> to vector<288x32xbf16>
    %c3 = arith.constant 3 : index
    %c0_20 = arith.constant 0 : index
    %c0_21 = arith.constant 0 : index
    %33 = vector.load %arg6[%c3, %c0_20, %c0_21] : memref<9x32x32xbf16, #tpu.memory_space<vmem>>, vector<1x32x32xbf16>
    %34 = vector.shape_cast %33 : vector<1x32x32xbf16> to vector<32x32xbf16>
    %cst_22 = arith.constant dense<0.000000e+00> : vector<288x32xf32>
    %35 = tpu.matmul %32, %34, %cst_22 {dimension_numbers = #tpu.dot_dimension_numbers<[1], [0], [0], [1], [0, 0, 1, 1], [], []>} : vector<288x32xbf16>, vector<32x32xbf16>, vector<288x32xf32> -> vector<288x32xf32>
    %36 = arith.addf %31, %35 : vector<288x32xf32>
    %37 = vector.extract_strided_slice %15 {offsets = [19, 0], sizes = [288, 32], strides = [1, 1]} : vector<332x32xbf16> to vector<288x32xbf16>
    %c4 = arith.constant 4 : index
    %c0_23 = arith.constant 0 : index
    %c0_24 = arith.constant 0 : index
    %38 = vector.load %arg6[%c4, %c0_23, %c0_24] : memref<9x32x32xbf16, #tpu.memory_space<vmem>>, vector<1x32x32xbf16>
    %39 = vector.shape_cast %38 : vector<1x32x32xbf16> to vector<32x32xbf16>
    %cst_25 = arith.constant dense<0.000000e+00> : vector<288x32xf32>
    %40 = tpu.matmul %37, %39, %cst_25 {dimension_numbers = #tpu.dot_dimension_numbers<[1], [0], [0], [1], [0, 0, 1, 1], [], []>} : vector<288x32xbf16>, vector<32x32xbf16>, vector<288x32xf32> -> vector<288x32xf32>
    %41 = arith.addf %36, %40 : vector<288x32xf32>
    %42 = vector.extract_strided_slice %15 {offsets = [20, 0], sizes = [288, 32], strides = [1, 1]} : vector<332x32xbf16> to vector<288x32xbf16>
    %c5 = arith.constant 5 : index
    %c0_26 = arith.constant 0 : index
    %c0_27 = arith.constant 0 : index
    %43 = vector.load %arg6[%c5, %c0_26, %c0_27] : memref<9x32x32xbf16, #tpu.memory_space<vmem>>, vector<1x32x32xbf16>
    %44 = vector.shape_cast %43 : vector<1x32x32xbf16> to vector<32x32xbf16>
    %cst_28 = arith.constant dense<0.000000e+00> : vector<288x32xf32>
    %45 = tpu.matmul %42, %44, %cst_28 {dimension_numbers = #tpu.dot_dimension_numbers<[1], [0], [0], [1], [0, 0, 1, 1], [], []>} : vector<288x32xbf16>, vector<32x32xbf16>, vector<288x32xf32> -> vector<288x32xf32>
    %46 = arith.addf %41, %45 : vector<288x32xf32>
    %47 = vector.extract_strided_slice %15 {offsets = [36, 0], sizes = [288, 32], strides = [1, 1]} : vector<332x32xbf16> to vector<288x32xbf16>
    %c6 = arith.constant 6 : index
    %c0_29 = arith.constant 0 : index
    %c0_30 = arith.constant 0 : index
    %48 = vector.load %arg6[%c6, %c0_29, %c0_30] : memref<9x32x32xbf16, #tpu.memory_space<vmem>>, vector<1x32x32xbf16>
    %49 = vector.shape_cast %48 : vector<1x32x32xbf16> to vector<32x32xbf16>
    %cst_31 = arith.constant dense<0.000000e+00> : vector<288x32xf32>
    %50 = tpu.matmul %47, %49, %cst_31 {dimension_numbers = #tpu.dot_dimension_numbers<[1], [0], [0], [1], [0, 0, 1, 1], [], []>} : vector<288x32xbf16>, vector<32x32xbf16>, vector<288x32xf32> -> vector<288x32xf32>
    %51 = arith.addf %46, %50 : vector<288x32xf32>
    %52 = vector.extract_strided_slice %15 {offsets = [37, 0], sizes = [288, 32], strides = [1, 1]} : vector<332x32xbf16> to vector<288x32xbf16>
    %c7 = arith.constant 7 : index
    %c0_32 = arith.constant 0 : index
    %c0_33 = arith.constant 0 : index
    %53 = vector.load %arg6[%c7, %c0_32, %c0_33] : memref<9x32x32xbf16, #tpu.memory_space<vmem>>, vector<1x32x32xbf16>
    %54 = vector.shape_cast %53 : vector<1x32x32xbf16> to vector<32x32xbf16>
    %cst_34 = arith.constant dense<0.000000e+00> : vector<288x32xf32>
    %55 = tpu.matmul %52, %54, %cst_34 {dimension_numbers = #tpu.dot_dimension_numbers<[1], [0], [0], [1], [0, 0, 1, 1], [], []>} : vector<288x32xbf16>, vector<32x32xbf16>, vector<288x32xf32> -> vector<288x32xf32>
    %56 = arith.addf %51, %55 : vector<288x32xf32>
    %57 = vector.extract_strided_slice %15 {offsets = [38, 0], sizes = [288, 32], strides = [1, 1]} : vector<332x32xbf16> to vector<288x32xbf16>
    %c8 = arith.constant 8 : index
    %c0_35 = arith.constant 0 : index
    %c0_36 = arith.constant 0 : index
    %58 = vector.load %arg6[%c8, %c0_35, %c0_36] : memref<9x32x32xbf16, #tpu.memory_space<vmem>>, vector<1x32x32xbf16>
    %59 = vector.shape_cast %58 : vector<1x32x32xbf16> to vector<32x32xbf16>
    %cst_37 = arith.constant dense<0.000000e+00> : vector<288x32xf32>
    %60 = tpu.matmul %57, %59, %cst_37 {dimension_numbers = #tpu.dot_dimension_numbers<[1], [0], [0], [1], [0, 0, 1, 1], [], []>} : vector<288x32xbf16>, vector<32x32xbf16>, vector<288x32xf32> -> vector<288x32xf32>
    %61 = arith.addf %56, %60 : vector<288x32xf32>
    %62 = arith.truncf %61 : vector<288x32xf32> to vector<288x32xbf16>
    %c0_38 = arith.constant 0 : index
    %c0_39 = arith.constant 0 : index
    %c0_40 = arith.constant 0 : index
    %63 = vector.load %arg7[%c0_38, %c0_39, %c0_40] : memref<1x288x32xbf16, #tpu.memory_space<vmem>>, vector<1x288x32xbf16>
    %64 = vector.shape_cast %63 : vector<1x288x32xbf16> to vector<288x32xbf16>
    %65 = vector.shape_cast %62 : vector<288x32xbf16> to vector<1x288x32xbf16>
    tpu.vector_store %arg7[%c0_38, %c0_39, %c0_40], %65 {strides = array<i32>} : memref<1x288x32xbf16, #tpu.memory_space<vmem>>, vector<1x288x32xbf16>,
    %c0_41 = arith.constant 0 : index
    %c0_42 = arith.constant 0 : index
    %c0_43 = arith.constant 0 : index
    %66 = vector.load %arg5[%c0_41, %c0_42, %c0_43] : memref<1x288x1xf32, #tpu.memory_space<vmem>>, vector<1x288x1xf32>
    %67 = vector.shape_cast %66 : vector<1x288x1xf32> to vector<288x1xf32>
    %68 = vector.broadcast %67 : vector<288x1xf32> to vector<288x32xf32>
    %69 = arith.mulf %61, %68 : vector<288x32xf32>
    %cst_44 = arith.constant dense<0.000000e+00> : vector<32xf32>
    %70 = vector.multi_reduction <add>, %69, %cst_44 [0] : vector<288x32xf32> to vector<32xf32>
    %71 = vector.shape_cast %70 : vector<32xf32> to vector<1x32xf32>
    %72 = arith.mulf %69, %69 : vector<288x32xf32>
    %cst_45 = arith.constant dense<0.000000e+00> : vector<32xf32>
    %73 = vector.multi_reduction <add>, %72, %cst_45 [0] : vector<288x32xf32> to vector<32xf32>
    %74 = vector.shape_cast %73 : vector<32xf32> to vector<1x32xf32>
    %75 = tpu.iota {dimensions = array<i32: 0>} : vector<8x32xi32>
    %c0_i32 = arith.constant 0 : i32
    %76 = vector.broadcast %c0_i32 : i32 to vector<8x32xi32>
    %77 = arith.cmpi eq, %75, %76 : vector<8x32xi32>
    %78 = vector.shape_cast %71 : vector<1x32xf32> to vector<1x32xf32>
    %79 = vector.broadcast %78 : vector<1x32xf32> to vector<8x32xf32>
    %c1_i32 = arith.constant 1 : i32
    %80 = vector.broadcast %c1_i32 : i32 to vector<8x32xi32>
    %81 = arith.cmpi eq, %75, %80 : vector<8x32xi32>
    %82 = vector.shape_cast %74 : vector<1x32xf32> to vector<1x32xf32>
    %83 = vector.broadcast %82 : vector<1x32xf32> to vector<8x32xf32>
    %cst_46 = arith.constant 0.000000e+00 : f32
    %84 = vector.broadcast %cst_46 : f32 to vector<8x32xf32>
    %85 = arith.select %81, %83, %84 : vector<8x32xi1>, vector<8x32xf32>
    %86 = arith.select %77, %79, %85 : vector<8x32xi1>, vector<8x32xf32>
    %c0_47 = arith.constant 0 : index
    %c0_48 = arith.constant 0 : index
    %c0_49 = arith.constant 0 : index
    %87 = vector.load %arg8[%c0_47, %c0_48, %c0_49] : memref<1x8x32xf32, #tpu.memory_space<vmem>>, vector<1x8x32xf32>
    %88 = vector.shape_cast %87 : vector<1x8x32xf32> to vector<8x32xf32>
    %89 = vector.shape_cast %86 : vector<8x32xf32> to vector<1x8x32xf32>
    tpu.vector_store %arg8[%c0_47, %c0_48, %c0_49], %89 {strides = array<i32>} : memref<1x8x32xf32, #tpu.memory_space<vmem>>, vector<1x8x32xf32>,
    return
  }
  func.func @transform_0(%arg0: i32) -> (i32, i32, i32) {
    %c0_i32 = arith.constant 0 : i32
    %c0_i32_0 = arith.constant 0 : i32
    %c0_i32_1 = arith.constant 0 : i32
    return %arg0, %c0_i32, %c0_i32_0 : i32, i32, i32
  }
  func.func @transform_1(%arg0: i32) -> (i32, i32) {
    %c0_i32 = arith.constant 0 : i32
    %c0_i32_0 = arith.constant 0 : i32
    %c0_i32_1 = arith.constant 0 : i32
    return %c0_i32, %c0_i32_0 : i32, i32
  }
  func.func @transform_2(%arg0: i32) -> (i32, i32) {
    %c0_i32 = arith.constant 0 : i32
    %c0_i32_0 = arith.constant 0 : i32
    %c0_i32_1 = arith.constant 0 : i32
    return %c0_i32, %c0_i32_0 : i32, i32
  }
  func.func @transform_3(%arg0: i32) -> (i32, i32, i32) {
    %c0_i32 = arith.constant 0 : i32
    %c0_i32_0 = arith.constant 0 : i32
    %c0_i32_1 = arith.constant 0 : i32
    %c0_i32_2 = arith.constant 0 : i32
    return %c0_i32, %c0_i32_0, %c0_i32_1 : i32, i32, i32
  }
  func.func @transform_4(%arg0: i32) -> (i32, i32, i32) {
    %c0_i32 = arith.constant 0 : i32
    %c0_i32_0 = arith.constant 0 : i32
    %c0_i32_1 = arith.constant 0 : i32
    %c0_i32_2 = arith.constant 0 : i32
    return %c0_i32, %c0_i32_0, %c0_i32_1 : i32, i32, i32
  }
  func.func @transform_5(%arg0: i32) -> (i32, i32, i32) {
    %c0_i32 = arith.constant 0 : i32
    %c0_i32_0 = arith.constant 0 : i32
    %c0_i32_1 = arith.constant 0 : i32
    %c0_i32_2 = arith.constant 0 : i32
    return %c0_i32, %c0_i32_0, %c0_i32_1 : i32, i32, i32
  }
  func.func @transform_6(%arg0: i32) -> (i32, i32, i32) {
    %c0_i32 = arith.constant 0 : i32
    %c0_i32_0 = arith.constant 0 : i32
    %c0_i32_1 = arith.constant 0 : i32
    return %arg0, %c0_i32, %c0_i32_0 : i32, i32, i32
  }
  func.func @transform_7(%arg0: i32) -> (i32, i32, i32) {
    %c0_i32 = arith.constant 0 : i32
    %c0_i32_0 = arith.constant 0 : i32
    %c0_i32_1 = arith.constant 0 : i32
    return %arg0, %c0_i32, %c0_i32_0 : i32, i32, i32
  }
}

module attributes {stable_mosaic.version = 11 : i64} {
  func.func @_bn_relu_kernel(%arg0: i32, %arg1: memref<128x128xbf16, #tpu.memory_space<vmem>>, %arg2: memref<1x128xf32, #tpu.memory_space<vmem>>, %arg3: memref<1x128xf32, #tpu.memory_space<vmem>>, %arg4: memref<128x128xf32, #tpu.memory_space<vmem>>) attributes {dimension_semantics = [#tpu.dimension_semantics<parallel>], iteration_bounds = array<i64: 1>, scalar_prefetch = 0 : i64, scratch_operands = 0 : i64, tpu.core_type = #tpu.core_type<tc>, window_params = [{transform_indices = @transform_0, window_bounds = array<i64: 128, 128>}, {pipeline_mode = #tpu.pipeline_mode<synchronous>, transform_indices = @transform_1, window_bounds = array<i64: 1, 128>}, {pipeline_mode = #tpu.pipeline_mode<synchronous>, transform_indices = @transform_2, window_bounds = array<i64: 1, 128>}, {transform_indices = @transform_3, window_bounds = array<i64: 128, 128>}]} {
    %c0 = arith.constant 0 : index
    %c0_0 = arith.constant 0 : index
    %0 = vector.load %arg1[%c0, %c0_0] : memref<128x128xbf16, #tpu.memory_space<vmem>>, vector<128x128xbf16>
    %1 = arith.extf %0 : vector<128x128xbf16> to vector<128x128xf32>
    %c0_1 = arith.constant 0 : index
    %c0_2 = arith.constant 0 : index
    %2 = vector.load %arg2[%c0_1, %c0_2] : memref<1x128xf32, #tpu.memory_space<vmem>>, vector<1x128xf32>
    %3 = vector.broadcast %2 : vector<1x128xf32> to vector<128x128xf32>
    %4 = arith.mulf %1, %3 : vector<128x128xf32>
    %c0_3 = arith.constant 0 : index
    %c0_4 = arith.constant 0 : index
    %5 = vector.load %arg3[%c0_3, %c0_4] : memref<1x128xf32, #tpu.memory_space<vmem>>, vector<1x128xf32>
    %6 = vector.broadcast %5 : vector<1x128xf32> to vector<128x128xf32>
    %7 = arith.addf %4, %6 : vector<128x128xf32>
    %cst = arith.constant 0.000000e+00 : f32
    %8 = vector.broadcast %cst : f32 to vector<128x128xf32>
    %9 = arith.maximumf %7, %8 : vector<128x128xf32>
    %c0_5 = arith.constant 0 : index
    %c0_6 = arith.constant 0 : index
    %10 = vector.load %arg4[%c0_5, %c0_6] : memref<128x128xf32, #tpu.memory_space<vmem>>, vector<128x128xf32>
    tpu.vector_store %arg4[%c0_5, %c0_6], %9 {strides = array<i32>} : memref<128x128xf32, #tpu.memory_space<vmem>>, vector<128x128xf32>,
    return
  }
  func.func @transform_0(%arg0: i32) -> (i32, i32) {
    %c0_i32 = arith.constant 0 : i32
    %c0_i32_0 = arith.constant 0 : i32
    return %arg0, %c0_i32 : i32, i32
  }
  func.func @transform_1(%arg0: i32) -> (i32, i32) {
    %c0_i32 = arith.constant 0 : i32
    %c0_i32_0 = arith.constant 0 : i32
    %c0_i32_1 = arith.constant 0 : i32
    return %c0_i32, %c0_i32_0 : i32, i32
  }
  func.func @transform_2(%arg0: i32) -> (i32, i32) {
    %c0_i32 = arith.constant 0 : i32
    %c0_i32_0 = arith.constant 0 : i32
    %c0_i32_1 = arith.constant 0 : i32
    return %c0_i32, %c0_i32_0 : i32, i32
  }
  func.func @transform_3(%arg0: i32) -> (i32, i32) {
    %c0_i32 = arith.constant 0 : i32
    %c0_i32_0 = arith.constant 0 : i32
    return %arg0, %c0_i32 : i32, i32
  }
}

</mosaic_0001>

<bundles_post_ra>
// kernel: merge_forward.12
= control target key start
LH: loop header
LB: loop body
LE: loop exit
PB: predicated region body
PF: predicated region fallthrough
CT: control target
= control target key end

     0   :  { %s140_s0 = inlined_call_operand.vmem [shape: bf16[32,128], index: 0, kind: input, shape index: {}]   ;;  %s141_s1 = inlined_call_operand.vmem [shape: f32[1,128], index: 1, kind: input, shape index: {}]   ;;  %s142_s2 = inlined_call_operand.vmem [shape: f32[1,128], index: 2, kind: input, shape index: {}]   ;;  %s143_s3 = inlined_call_operand.vmem [shape: bf16[32,128], index: 3, kind: output, shape index: {}]  }
   0x1   :  { %v83_v0 = vld [vmem:[%s140_s0] sm:$0xff]   ;;  %v100_v4 = vld [vmem:[%s140_s0 + $0x8] sm:$0xff]  }
   0x2   :  { %v72_v1 = vld [vmem:[%s141_s1] ss:$0 sm:$0xff]  ;;  %v84_v2 = vunpack.c.l.bf16 %v83_v0  ;;  %v85_v3 = vunpack.c.h.bf16 %v83_v0  ;;  %v88_v6 = vunpack.c.l.bf16 %v100_v4  ;;  %v89_v7 = vunpack.c.h.bf16 %v100_v4 }
   0x3   :  { %v73_v5 = vld [vmem:[%s142_s2] ss:$0 sm:$0xff] }
   0x4   :  { %v29_v8 = vmul.f32 %v84_v2, %v72_v1  ;;  %v30_v9 = vmul.f32 %v85_v3, %v72_v1  ;;  %v31_v10 = vmul.f32 %v88_v6, %v72_v1  ;;  %v32_v11 = vmul.f32 %v89_v7, %v72_v1 }
   0x6   :  { %v40_v12 = vadd.f32 %v73_v5, %v29_v8  ;;  %v41_v13 = vadd.f32 %v73_v5, %v30_v9  ;;  %v42_v14 = vadd.f32 %v73_v5, %v31_v10  ;;  %v43_v15 = vadd.f32 %v73_v5, %v32_v11 }
   0x8   :  { %v44_v16 = vmax.f32 %v40_v12, 0.0  ;;  %v45_v17 = vmax.f32 %v41_v13, 0.0  ;;  %v46_v18 = vmax.f32 %v42_v14, 0.0  ;;  %v47_v19 = vmax.f32 %v43_v15, 0.0 }
   0xa   :  { %v93_v20 = vpack.c.bf16 %v45_v17, %v44_v16  ;;  %v98_v21 = vpack.c.bf16 %v47_v19, %v46_v18 }
   0xc   :  { %94 = vst [vmem:[%s143_s3] sm:$0xff] %v93_v20   ;;  %101 = vst [vmem:[%s143_s3 + $0x8] sm:$0xff] %v98_v21  }

// kernel: merge_forward.10
= control target key start
LH: loop header
LB: loop body
LE: loop exit
PB: predicated region body
PF: predicated region fallthrough
CT: control target
= control target key end

     0   :  { %s1459_s3 = inlined_call_operand.vmem [shape: bf16[512,128], index: 3, kind: input, shape index: {}]   ;;  %s1460_s1 = inlined_call_operand.vmem [shape: bf16[32,512], index: 1, kind: input, shape index: {}]   ;;  %s1461_s2 = inlined_call_operand.vmem [shape: bf16[512,128], index: 2, kind: input, shape index: {}]   ;;  %s1462_s0 = inlined_call_operand.vmem [shape: bf16[32,512], index: 0, kind: input, shape index: {}]   ;;  %s1463_s4 = inlined_call_operand.vmem [shape: bf16[32,128], index: 4, kind: output, shape index: {0}]   ;;  %s1464_s5 = inlined_call_operand.vmem [shape: f32[1,8,128], index: 5, kind: output, shape index: {1}]  }
   0x1   :  { %v1092_v0 = vld [vmem:[%s1459_s3 + $0x78] sm:$0xff]   ;;  %v1096_v4 = vld [vmem:[%s1459_s3 + $0x70] sm:$0xff]   ;;  %v1100_v8 = vld [vmem:[%s1459_s3 + $0x68] sm:$0xff]  }
   0x2   :  { %v1093_v1 = vld [vmem:[%s1459_s3 + $0xf8] sm:$0xff]   ;;  %980 = vmatprep.subr.bf16.mxu0 %v1092_v0  ;;  %v1097_v5 = vld [vmem:[%s1459_s3 + $0xf0] sm:$0xff]   ;;  %v1101_v9 = vld [vmem:[%s1459_s3 + $0xe8] sm:$0xff]  }
   0x3   :  { %v1094_v2 = vld [vmem:[%s1459_s3 + $0x38] sm:$0xff]   ;;  %1008 = vmatprep.subr.bf16.mxu1 %v1093_v1  ;;  %v1098_v6 = vld [vmem:[%s1459_s3 + $0x30] sm:$0xff]   ;;  %v1102_v10 = vld [vmem:[%s1459_s3 + $0x28] sm:$0xff]  }
   0x4   :  { %v1095_v3 = vld [vmem:[%s1459_s3 + $0xb8] sm:$0xff]   ;;  %981 = vmatpush3.bf16.msra.mxu0 %v1094_v2  ;;  %v1099_v7 = vld [vmem:[%s1459_s3 + $0xb0] sm:$0xff]   ;;  %v1103_v11 = vld [vmem:[%s1459_s3 + $0xa8] sm:$0xff]  }
   0x5   :  { %1009 = vmatpush3.bf16.msra.mxu1 %v1095_v3  ;;  %982 = vmatprep.subr.bf16.mxu0 %v1096_v4  ;;  %v1104_v12 = vld [vmem:[%s1459_s3 + $0x60] sm:$0xff]   ;;  %v1108_v16 = vld [vmem:[%s1459_s3 + $0x58] sm:$0xff]   ;;  %v1112_v20 = vld [vmem:[%s1459_s3 + $0x50] sm:$0xff]  }
   0x6   :  { %1010 = vmatprep.subr.bf16.mxu1 %v1097_v5  ;;  %v1105_v13 = vld [vmem:[%s1459_s3 + $0xe0] sm:$0xff]   ;;  %v1109_v17 = vld [vmem:[%s1459_s3 + $0xd8] sm:$0xff]   ;;  %v1113_v21 = vld [vmem:[%s1459_s3 + $0xd0] sm:$0xff]  }
   0x7   :  { %v1106_v14 = vld [vmem:[%s1459_s3 + $0x20] sm:$0xff]   ;;  %v1110_v18 = vld [vmem:[%s1459_s3 + $0x18] sm:$0xff]   ;;  %v1114_v22 = vld [vmem:[%s1459_s3 + $0x10] sm:$0xff]  }
   0x8   :  { %983 = vmatpush3.bf16.msra.mxu0 %v1098_v6  ;;  %v1107_v15 = vld [vmem:[%s1459_s3 + $0xa0] sm:$0xff]   ;;  %v1111_v19 = vld [vmem:[%s1459_s3 + $0x98] sm:$0xff]   ;;  %v1115_v23 = vld [vmem:[%s1459_s3 + $0x90] sm:$0xff]  }
   0x9   :  { %1011 = vmatpush3.bf16.msra.mxu1 %v1099_v7  ;;  %984 = vmatprep.subr.bf16.mxu0 %v1100_v8  ;;  %v1116_v24 = vld [vmem:[%s1459_s3 + $0x48] sm:$0xff]   ;;  %v1120_v28 = vld [vmem:[%s1459_s3 + $0x40] sm:$0xff]   ;;  %v1130_v36 = vld [vmem:[%s1461_s2 + $0x78] sm:$0xff]  }
   0xa   :  { %1012 = vmatprep.subr.bf16.mxu1 %v1101_v9  ;;  %v1117_v25 = vld [vmem:[%s1459_s3 + $0xc8] sm:$0xff]   ;;  %v1121_v29 = vld [vmem:[%s1459_s3 + $0xc0] sm:$0xff]   ;;  %v1131_v37 = vld [vmem:[%s1461_s2 + $0xf8] sm:$0xff]  }
   0xb   :  { %v1118_v26 = vld [vmem:[%s1459_s3 + $0x8] sm:$0xff]   ;;  %v1122_v30 = vld [vmem:[%s1459_s3] sm:$0xff]   ;;  %v1132_v38 = vld [vmem:[%s1461_s2 + $0x38] sm:$0xff]  }
   0xc   :  { %985 = vmatpush3.bf16.msra.mxu0 %v1102_v10  ;;  %v1119_v27 = vld [vmem:[%s1459_s3 + $0x88] sm:$0xff]   ;;  %v1123_v31 = vld [vmem:[%s1459_s3 + $0x80] sm:$0xff]   ;;  %v1133_v39 = vld [vmem:[%s1461_s2 + $0xb8] sm:$0xff]  }
   0xd   :  { %1013 = vmatpush3.bf16.msra.mxu1 %v1103_v11  ;;  %986 = vmatprep.subr.bf16.mxu0 %v1104_v12  ;;  %v1124_v32 = vld [vmem:[%s1460_s1] ss:$16 sps:$4 sm:$0xff]   ;;  %v1126_v33 = vld [vmem:[%s1460_s1 + $0x4] ss:$16 sps:$4 sm:$0xff]   ;;  %v1127_v34 = vld [vmem:[%s1460_s1 + $0x8] ss:$16 sps:$4 sm:$0xff]  }
   0xe   :  { %1014 = vmatprep.subr.bf16.mxu1 %v1105_v13  ;;  %v1129_v35 = vld [vmem:[%s1460_s1 + $0xc] ss:$16 sps:$4 sm:$0xff]   ;;  %428 = vmatprep.mubr.bf16.mxu0 %v1126_v33  ;;  %v1134_v40 = vld [vmem:[%s1461_s2 + $0x70] sm:$0xff]   ;;  %v1142_v48 = vld [vmem:[%s1461_s2 + $0x60] sm:$0xff]  }
   0xf   :  { %477 = vmatprep.mubr.bf16.mxu1 %v1129_v35  ;;  %v1135_v41 = vld [vmem:[%s1461_s2 + $0xf0] sm:$0xff]   ;;  %v1138_v44 = vld [vmem:[%s1461_s2 + $0x68] sm:$0xff]   ;;  %v1143_v49 = vld [vmem:[%s1461_s2 + $0xe0] sm:$0xff]  }
  0x10   :  { %987 = vmatpush3.bf16.msra.mxu0 %v1106_v14  ;;  %v1136_v42 = vld [vmem:[%s1461_s2 + $0x30] sm:$0xff]   ;;  %v1139_v45 = vld [vmem:[%s1461_s2 + $0xe8] sm:$0xff]   ;;  %v1144_v50 = vld [vmem:[%s1461_s2 + $0x20] sm:$0xff]  }
  0x11   :  { %1015 = vmatpush3.bf16.msra.mxu1 %v1107_v15  ;;  %988 = vmatprep.subr.bf16.mxu0 %v1108_v16  ;;  %v1137_v43 = vld [vmem:[%s1461_s2 + $0xb0] sm:$0xff]   ;;  %v1140_v46 = vld [vmem:[%s1461_s2 + $0x28] sm:$0xff]   ;;  %v1145_v51 = vld [vmem:[%s1461_s2 + $0xa0] sm:$0xff]  }
  0x12   :  { %1016 = vmatprep.subr.bf16.mxu1 %v1109_v17  ;;  %v1141_v47 = vld [vmem:[%s1461_s2 + $0xa8] sm:$0xff]   ;;  %v1146_v52 = vld [vmem:[%s1461_s2 + $0x58] sm:$0xff]   ;;  %v1148_v54 = vld [vmem:[%s1460_s1 + $0x24] ss:$16 sps:$4 sm:$0xff]  }
  0x13   :  { %v1147_v53 = vld [vmem:[%s1461_s2 + $0xd8] sm:$0xff]   ;;  %v1154_v58 = vld [vmem:[%s1460_s1 + $0x20] ss:$16 sps:$4 sm:$0xff]   ;;  %v1160_v0 = vld [vmem:[%s1461_s2 + $0x48] sm:$0xff]  }
  0x14   :  { %989 = vmatpush3.bf16.msra.mxu0 %v1110_v18  ;;  %v1150_v55 = vld [vmem:[%s1460_s1 + $0x2c] ss:$16 sps:$4 sm:$0xff]   ;;  %v1155_v59 = vld [vmem:[%s1460_s1 + $0x28] ss:$16 sps:$4 sm:$0xff]   ;;  %v1156_v60 = vld [vmem:[%s1461_s2 + $0x50] sm:$0xff]  }
  0x15   :  { %1017 = vmatpush3.bf16.msra.mxu1 %v1111_v19  ;;  %990 = vmatprep.subr.bf16.mxu0 %v1112_v20  ;;  %v1152_v56 = vld [vmem:[%s1461_s2 + $0x18] sm:$0xff]   ;;  %v1157_v61 = vld [vmem:[%s1461_s2 + $0xd0] sm:$0xff]   ;;  %v1161_v1 = vld [vmem:[%s1461_s2 + $0xc8] sm:$0xff]  }
  0x16   :  { %1018 = vmatprep.subr.bf16.mxu1 %v1113_v21  ;;  %v1153_v57 = vld [vmem:[%s1461_s2 + $0x98] sm:$0xff]   ;;  %v1158_v62 = vld [vmem:[%s1461_s2 + $0x10] sm:$0xff]   ;;  %v1162_v2 = vld [vmem:[%s1461_s2 + $0x8] sm:$0xff]  }
  0x17   :  { %v1159_v63 = vld [vmem:[%s1461_s2 + $0x90] sm:$0xff]   ;;  %v1163_v3 = vld [vmem:[%s1461_s2 + $0x88] sm:$0xff]   ;;  %v1164_v4 = vld [vmem:[%s1461_s2 + $0x40] sm:$0xff]  }
  0x18   :  { %991 = vmatpush3.bf16.msra.mxu0 %v1114_v22  ;;  %v1165_v5 = vld [vmem:[%s1461_s2 + $0xc0] sm:$0xff]   ;;  %v1171_v10 = vld [vmem:[%s1462_s0 + $0x8] ss:$16 sps:$4 sm:$0xff]   ;;  %v1173_v11 = vld [vmem:[%s1462_s0 + $0xc] ss:$16 sps:$4 sm:$0xff]  }
  0x19   :  { %1019 = vmatpush3.bf16.msra.mxu1 %v1115_v23  ;;  %992 = vmatprep.subr.bf16.mxu0 %v1116_v24  ;;  %v1166_v6 = vld [vmem:[%s1461_s2] sm:$0xff]   ;;  %v1176_v13 = vld [vmem:[%s1462_s0 + $0x2c] ss:$16 sps:$4 sm:$0xff]   ;;  %v1179_v15 = vld [vmem:[%s1462_s0 + $0x28] ss:$16 sps:$4 sm:$0xff]  }
  0x1a   :  { %1020 = vmatprep.subr.bf16.mxu1 %v1117_v25  ;;  %v1167_v7 = vld [vmem:[%s1461_s2 + $0x80] sm:$0xff]  }
  0x1b   :  { %v1168_v8 = vld [vmem:[%s1462_s0] ss:$16 sps:$4 sm:$0xff]   ;;  %v1170_v9 = vld [vmem:[%s1462_s0 + $0x4] ss:$16 sps:$4 sm:$0xff]  }
  0x1c   :  { %993 = vmatpush3.bf16.msra.mxu0 %v1118_v26  ;;  %v1174_v12 = vld [vmem:[%s1462_s0 + $0x24] ss:$16 sps:$4 sm:$0xff]   ;;  %v1178_v14 = vld [vmem:[%s1462_s0 + $0x20] ss:$16 sps:$4 sm:$0xff]  }
  0x1d   :  { %1021 = vmatpush3.bf16.msra.mxu1 %v1119_v27  ;;  %994 = vmatprep.subr.bf16.mxu0 %v1120_v28 }
  0x1e   :  { %1022 = vmatprep.subr.bf16.mxu1 %v1121_v29 }
  0x20   :  { %995 = vmatpush3.bf16.msra.mxu0 %v1122_v30 }
  0x21   :  { %1023 = vmatpush3.bf16.msra.mxu1 %v1123_v31  ;;  %1036 = vmatprep.subr.bf16.mxu0 %v1130_v36 }
  0x22   :  { %1064 = vmatprep.subr.bf16.mxu1 %v1131_v37 }
  0x23   :  { %429 = vmatmul.mubr.bf16.vlgmr.msra.gmra.mxu0 %v1124_v32 }
  0x24   :  { %478 = vmatmul.mubr.bf16.vlgmr.msra.gmra.mxu1 %v1127_v34  ;;  %1037 = vmatpush3.bf16.msra.mxu0 %v1132_v38 }
  0x25   :  { %1065 = vmatpush3.bf16.msra.mxu1 %v1133_v39  ;;  %1038 = vmatprep.subr.bf16.mxu0 %v1134_v40 }
  0x26   :  { %1066 = vmatprep.subr.bf16.mxu1 %v1135_v41  ;;  %436 = vmatprep.mubr.bf16.mxu0 %v1148_v54 }
  0x27   :  { %485 = vmatprep.mubr.bf16.mxu1 %v1150_v55 }
  0x28   :  { %1039 = vmatpush3.bf16.msra.mxu0 %v1136_v42 }
  0x29   :  { %1067 = vmatpush3.bf16.msra.mxu1 %v1137_v43  ;;  %1040 = vmatprep.subr.bf16.mxu0 %v1138_v44 }
  0x2a   :  { %1068 = vmatprep.subr.bf16.mxu1 %v1139_v45 }
  0x2b   :  { %437 = vmatmul.mubr.bf16.gmra.mxu0 %v1154_v58 }
  0x2c   :  { %1041 = vmatpush3.bf16.msra.mxu0 %v1140_v46  ;;  %486 = vmatmul.mubr.bf16.gmra.mxu1 %v1155_v59 }
  0x2d   :  { %1069 = vmatpush3.bf16.msra.mxu1 %v1141_v47  ;;  %1042 = vmatprep.subr.bf16.mxu0 %v1142_v48 }
  0x2e   :  { %1070 = vmatprep.subr.bf16.mxu1 %v1143_v49  ;;  %758 = vmatprep.mubr.bf16.mxu0 %v1170_v9 }
  0x2f   :  { %807 = vmatprep.mubr.bf16.mxu1 %v1173_v11 }
  0x30   :  { %1043 = vmatpush3.bf16.msra.mxu0 %v1144_v50 }
  0x31   :  { %1071 = vmatpush3.bf16.msra.mxu1 %v1145_v51  ;;  %1044 = vmatprep.subr.bf16.mxu0 %v1146_v52 }
  0x32   :  { %1072 = vmatprep.subr.bf16.mxu1 %v1147_v53 }
  0x34   :  { %1045 = vmatpush3.bf16.msra.mxu0 %v1152_v56 }
  0x35   :  { %1073 = vmatpush3.bf16.msra.mxu1 %v1153_v57  ;;  %1046 = vmatprep.subr.bf16.mxu0 %v1156_v60 }
  0x36   :  { %1074 = vmatprep.subr.bf16.mxu1 %v1157_v61 }
  0x38   :  { %1047 = vmatpush3.bf16.msra.mxu0 %v1158_v62 }
  0x39   :  { %1075 = vmatpush3.bf16.msra.mxu1 %v1159_v63  ;;  %1048 = vmatprep.subr.bf16.mxu0 %v1160_v0 }
  0x3a   :  { %1076 = vmatprep.subr.bf16.mxu1 %v1161_v1 }
  0x3c   :  { %1049 = vmatpush3.bf16.msra.mxu0 %v1162_v2 }
  0x3d   :  { %1077 = vmatpush3.bf16.msra.mxu1 %v1163_v3  ;;  %1050 = vmatprep.subr.bf16.mxu0 %v1164_v4 }
  0x3e   :  { %1078 = vmatprep.subr.bf16.mxu1 %v1165_v5 }
  0x40   :  { %1051 = vmatpush3.bf16.msra.mxu0 %v1166_v6 }
  0x41   :  { %1079 = vmatpush3.bf16.msra.mxu1 %v1167_v7 }
  0x43   :  { %759 = vmatmul.mubr.bf16.vlgmr.msra.gmra.mxu0 %v1168_v8 }
  0x44   :  { %808 = vmatmul.mubr.bf16.vlgmr.msra.gmra.mxu1 %v1171_v10  ;;  %766 = vmatprep.mubr.bf16.mxu0 %v1174_v12 }
  0x45   :  { %815 = vmatprep.mubr.bf16.mxu1 %v1176_v13 }
  0x4b   :  { %767 = vmatmul.mubr.bf16.gmra.mxu0 %v1178_v14 }
  0x4c   :  { %816 = vmatmul.mubr.bf16.gmra.mxu1 %v1179_v15 }
  0xe3   :  { %v996_v16 = vpop.f32.mrf.mxu0 }
  0xe4   :  { %v1024_v17 = vpop.f32.mrf.mxu1 }
  0xe5   :  { %v997_v18 = vpop.f32.mrf.mxu0 }
  0xe6   :  { %v1025_v19 = vpop.f32.mrf.mxu1  ;;  %v998_v33 = vadd.f32 %v997_v18, %v996_v16 }
  0xe7   :  { %v999_v20 = vpop.f32.mrf.mxu0  ;;  %v1026_v34 = vadd.f32 %v1025_v19, %v1024_v17 }
  0xe8   :  { %v1027_v21 = vpop.f32.mrf.mxu1 }
  0xe9   :  { %v1000_v22 = vpop.f32.mrf.mxu0  ;;  %v480_v42 = vadd.f32 %v1026_v34, %v998_v33 }
  0xea   :  { %v1028_v23 = vpop.f32.mrf.mxu1  ;;  %v1001_v37 = vadd.f32 %v1000_v22, %v999_v20 }
  0xeb   :  { %v1002_v24 = vpop.f32.mrf.mxu0  ;;  %v1029_v38 = vadd.f32 %v1028_v23, %v1027_v21 }
  0xec   :  { %v1030_v25 = vpop.f32.mrf.mxu1 }
  0xed   :  { %v1003_v26 = vpop.f32.mrf.mxu0  ;;  %v483_v47 = vadd.f32 %v1029_v38, %v1001_v37 }
  0xee   :  { %v1031_v27 = vpop.f32.mrf.mxu1  ;;  %v1004_v44 = vadd.f32 %v1003_v26, %v1002_v24 }
  0xef   :  { %v1005_v28 = vpop.f32.mrf.mxu0  ;;  %v1032_v45 = vadd.f32 %v1031_v27, %v1030_v25  ;;  %v866_v27 = vlaneseq }
  0xf0   :  { %v1033_v29 = vpop.f32.mrf.mxu1 }
  0xf1   :  { %v1006_v30 = vpop.f32.mrf.mxu0  ;;  %v488_v56 = vadd.f32 %v1032_v45, %v1004_v44 }
  0xf2   :  { %v1034_v31 = vpop.f32.mrf.mxu1  ;;  %v1007_v57 = vadd.f32 %v1006_v30, %v1005_v28 }
  0xf3   :  { %v1035_v59 = vadd.f32 %v1034_v31, %v1033_v29 }
  0xf5   :  { %v491_v6 = vadd.f32 %v1035_v59, %v1007_v57 }
 0x103   :  { %v1052_v32 = vpop.f32.mrf.mxu0 }
 0x104   :  { %v1080_v35 = vpop.f32.mrf.mxu1 }
 0x105   :  { %v1053_v36 = vpop.f32.mrf.mxu0 }
 0x106   :  { %v1054_v39 = vadd.f32 %v1053_v36, %v1052_v32  ;;  %v1081_v40 = vpop.f32.mrf.mxu1  ;;  %v867_v32 = vshrl.u32 %v866_v27, 7 }
 0x107   :  { %v1055_v41 = vpop.f32.mrf.mxu0  ;;  %v1082_v52 = vadd.f32 %v1081_v40, %v1080_v35 }
 0x108   :  { %v1083_v43 = vpop.f32.mrf.mxu1  ;;  %v761_v48 = vadd.f32 %v1054_v39, %v480_v42  ;;  %vm869_vm0 = vcmp.eq.s32.totalorder %v867_v32, 1  ;;  %vm868_vm1 = vcmp.eq.s32.totalorder %v867_v32, 0 }
 0x109   :  { %v1056_v46 = vpop.f32.mrf.mxu0 }
 0x10a   :  { %v1057_v49 = vadd.f32 %v1056_v46, %v1055_v41  ;;  %v1084_v50 = vpop.f32.mrf.mxu1  ;;  %v810_v60 = vadd.f32 %v1082_v52, %v761_v48 }
 0x10b   :  { %v1058_v51 = vpop.f32.mrf.mxu0  ;;  %v1085_v54 = vadd.f32 %v1084_v50, %v1083_v43 }
 0x10c   :  { %v764_v53 = vadd.f32 %v1057_v49, %v483_v47  ;;  %v1086_v55 = vpop.f32.mrf.mxu1  ;;  %v853_v11 = vmul.f32 %v810_v60, %v810_v60 }
 0x10d   :  { %v1059_v58 = vpop.f32.mrf.mxu0 }
 0x10e   :  { %v813_v61 = vadd.f32 %v1085_v54, %v764_v53  ;;  %v1060_v62 = vadd.f32 %v1059_v58, %v1058_v51  ;;  %v1087_v63 = vpop.f32.mrf.mxu1 }
 0x10f   :  { %v1061_v0 = vpop.f32.mrf.mxu0  ;;  %v1088_v3 = vadd.f32 %v1087_v63, %v1086_v55 }
 0x110   :  { %v972_v1 = vpack.c.bf16 %v813_v61, %v810_v60  ;;  %v769_v2 = vadd.f32 %v1060_v62, %v488_v56  ;;  %v1089_v4 = vpop.f32.mrf.mxu1  ;;  %v854_v7 = vmul.f32 %v813_v61, %v813_v61  ;;  %v844_v12 = vadd.f32 %v813_v61, %v810_v60 }
 0x111   :  { %v1062_v5 = vpop.f32.mrf.mxu0 }
 0x112   :  { %973 = vst [vmem:[%s1463_s4] sm:$0xff] %v972_v1   ;;  %v818_v8 = vadd.f32 %v1088_v3, %v769_v2  ;;  %v1063_v9 = vadd.f32 %v1062_v5, %v1061_v0  ;;  %v1090_v10 = vpop.f32.mrf.mxu1  ;;  %v857_v16 = vadd.f32 %v854_v7, %v853_v11 }
 0x113   :  { %v1091_v15 = vadd.f32 %v1090_v10, %v1089_v4 }
 0x114   :  { %v855_v13 = vmul.f32 %v818_v8, %v818_v8  ;;  %v772_v14 = vadd.f32 %v1063_v9, %v491_v6  ;;  %v845_v17 = vadd.f32 %v844_v12, %v818_v8 }
 0x116   :  { %v821_v18 = vadd.f32 %v1091_v15, %v772_v14  ;;  %v858_v19 = vadd.f32 %v857_v16, %v855_v13 }
 0x118   :  { %v977_v20 = vpack.c.bf16 %v821_v18, %v818_v8  ;;  %v846_v21 = vadd.f32 %v845_v17, %v821_v18  ;;  %v856_v22 = vmul.f32 %v821_v18, %v821_v18 }
 0x11a   :  { %979 = vst [vmem:[%s1463_s4 + $0x8] sm:$0xff] %v977_v20   ;;  %v847_v23 = vrot.slane %v846_v21, 4  ;;  %v859_v24 = vadd.f32 %v858_v19, %v856_v22 }
 0x11c   :  { %v848_v25 = vadd.f32 %v847_v23, %v846_v21  ;;  %v860_v26 = vrot.slane %v859_v24, 4 }
 0x11e   :  { %v849_v28 = vrot.slane %v848_v25, 2  ;;  %v861_v29 = vadd.f32 %v860_v26, %v859_v24 }
 0x120   :  { %v850_v30 = vadd.f32 %v849_v28, %v848_v25  ;;  %v862_v31 = vrot.slane %v861_v29, 2 }
 0x122   :  { %v863_v33 = vadd.f32 %v862_v31, %v861_v29  ;;  %v851_v34 = vrot.slane %v850_v30, 1 }
 0x124   :  { %v864_v35 = vrot.slane %v863_v33, 1  ;;  %v852_v37 = vadd.f32 %v851_v34, %v850_v30 }
 0x126   :  { %v865_v36 = vadd.f32 %v864_v35, %v863_v33 }
 0x128   :  { %v870_v38 = vsel %vm869_vm0, %v865_v36, 0.0 }
 0x129   :  { %v871_v39 = vsel %vm868_vm1, %v852_v37, %v870_v38 }
 0x12a   :  { %872 = vst [vmem:[%s1464_s5] sm:$0xff] %v871_v39 }

// kernel: merge_forward.11
= control target key start
LH: loop header
LB: loop body
LE: loop exit
PB: predicated region body
PF: predicated region fallthrough
CT: control target
= control target key end

     0   :  { %s2286_s24 = smov 0   ;;  %s2656_s0 = inlined_call_operand.vmem [shape: bf16[2,44,128], index: 0, kind: input, shape index: {}]   ;;  %s2657_s1 = inlined_call_operand.vmem [shape: f32[1,128], index: 1, kind: input, shape index: {}]   ;;  %s2658_s2 = inlined_call_operand.vmem [shape: f32[1,128], index: 2, kind: input, shape index: {}]   ;;  %s2659_s3 = inlined_call_operand.vmem [shape: f32[1,44,1], index: 3, kind: input, shape index: {}]   ;;  %s2660_s4 = inlined_call_operand.vmem [shape: f32[1,24,1], index: 4, kind: input, shape index: {}]   ;;  %s2661_s5 = inlined_call_operand.vmem [shape: bf16[9,128,128], index: 5, kind: input, shape index: {}]   ;;  %s2662_s6 = inlined_call_operand.vmem [shape: bf16[2,24,128], index: 6, kind: output, shape index: {0}]   ;;  %s2663_s7 = inlined_call_operand.vmem [shape: f32[2,8,128], index: 7, kind: output, shape index: {1}]  }
   0x1 LB: > { %s1650_s25 = sadd.s32 4294967295, %s2243_s24   ;;  %p1654_p0 = scmp.ge.s32.totalorder %s2243_s24, 1  ;;  %s2243_s24 = sphi %s2286_s24, %s18_s24  }
   0x2   : > { %p240_p1 = scmp.lt.s32.totalorder %s2243_s24, 3 }
   0x4   : > { %p241_p2 = pnand %p1654_p0, %p240_p1 }
   0x5   : > { %p276_p3 = scmp.lt.s32.totalorder (!%p241_p2), %s1650_s25, 1 }
   0x6   : > { %244 = sbr.rel (%p241_p2) target bundleno = 506 (0x1fa), region = 44 }
   0xb   : > { %v337_v0 = vld [vmem:[%s2659_s3 + $0x10] sm:$0xff]  ;;  %v335_v1 = vld [vmem:[%s2659_s3] sm:$0xff]  ;;  %v2245_v2 = vmov 0   ;;  %v338_v3 = vld [vmem:[%s2659_s3 + $0x18] sm:$0xff]  ;;  %s2665_s25 = smov (!%p276_p3, %s1650_s25), 1  ;;  %vm764_vm0 = vcmask 1044480  }
   0xc   : > { %2164 = vset.pattern.permute.xlu1 %v2245_v2  ;;  %2163 = vset.pattern.permute.xlu0 %v2245_v2  ;;  %v336_v4 = vld [vmem:[%s2659_s3 + $0x8] sm:$0xff]  ;;  %v2165_v5 = vld [vmem:[%s2661_s5 + $0x38] sm:$0xff]   ;;  %v2166_v6 = vld [vmem:[%s2661_s5 + $0x30] sm:$0xff]   ;;  %s2152_s14 = smul.u32 24, %s2665_s25  ;;  %vm413_vm1 = vsmask.f32 7424 }
   0xd   : > { %353 = vperm.xlu1 %2164, %v337_v0   ;;  %343 = vperm.xlu0 %2163, %v335_v1   ;;  %v340_v7 = vld [vmem:[%s2659_s3 + $0x28] sm:$0xf]  ;;  %v2167_v8 = vld [vmem:[%s2661_s5 + $0x78] sm:$0xff]   ;;  %v339_v9 = vld [vmem:[%s2659_s3 + $0x20] sm:$0xff]  ;;  %vm642_vm2 = vcmask 1046528   ;;  %vm1135_vm3 = vcmask 1041408  }
   0xe   : > { %1992 = vmatprep.subr.bf16.mxu1 %v2165_v5  ;;  %1972 = vmatprep.subr.bf16.mxu0 %v2167_v8  ;;  %v2169_v10 = vld [vmem:[%s2661_s5 + $0x70] sm:$0xff]   ;;  %v2168_v11 = vld [vmem:[%s2661_s5 + $0x28] sm:$0xff]   ;;  %v1517_v14 = vld [vmem:[%s2660_s4] sm:$0xff]  ;;  %s2361_s23 = scalar_lea.vmem %s2656_s0, %s2152_s14  ;;  %vm1394_vm4 = vcmask 1040384   ;;  %vm1012_vm5 = vcmask 1043456   ;;  %s2153_s28 = smul.u32 12, %s2665_s25 }
   0xf   : > { %1993 = vmatpush3.bf16.msra.mxu1 %v2165_v5  ;;  %1973 = vmatpush3.bf16.msra.mxu0 %v2167_v8  ;;  %v2171_v12 = vld [vmem:[%s2661_s5 + $0x68] sm:$0xff]   ;;  %v2170_v15 = vld [vmem:[%s2661_s5 + $0x20] sm:$0xff]   ;;  %v1519_v17 = vld [vmem:[%s2660_s4 + $0x10] sm:$0xff]  ;;  %vm886_vm6 = vsmask.f32 4352  ;;  %s1657_s9 = sshll.u32 %s2665_s25, 3 }
  0x10   : > { %1994 = vmatprep.subr.bf16.mxu1 %v2166_v6  ;;  %1974 = vmatprep.subr.bf16.mxu0 %v2169_v10  ;;  %v1518_v13 = vld [vmem:[%s2660_s4 + $0x8] sm:$0xff]  ;;  %v2173_v16 = vld [vmem:[%s2661_s5 + $0x60] sm:$0xff]   ;;  %v2172_v18 = vld [vmem:[%s2661_s5 + $0x18] sm:$0xff]   ;;  %vm1259_vm7 = vsmask.f32 1280  ;;  %s285_s8 = scalar_lea.vmem %s2662_s6, %s2153_s28  ;;  %s289_s12 = scalar_lea.vmem %s2663_s7, %s1657_s9 }
  0x11   : > { %358 = vperm.xlu1 %2164, %v338_v3   ;;  %348 = vperm.xlu0 %2163, %v336_v4   ;;  %v2175_v19 = vld [vmem:[%s2661_s5 + $0x58] sm:$0xff]   ;;  %v2174_v20 = vld [vmem:[%s2661_s5 + $0x10] sm:$0xff]   ;;  %v1658_v23 = vld [vmem:[%s2657_s1] ss:$0 sm:$0xff] }
  0x12   : > { %v296_v21 = vld [vmem:[%s2361_s23 + $0x14] sm:$0x3]  ;;  %v295_v22 = vld [vmem:[%s2361_s23 + $0x10] sm:$0xf]  ;;  %v1659_v27 = vld [vmem:[%s2658_s2] ss:$0 sm:$0xff] }
  0x13   : > { %1995 = vmatpush3.bf16.msra.mxu1 %v2166_v6  ;;  %1975 = vmatpush3.bf16.msra.mxu0 %v2169_v10  ;;  %v302_v24 = vunpack.c.l.bf16 %v296_v21  ;;  %v301_v25 = vunpack.c.l.bf16 %v295_v22  ;;  %v2177_v26 = vld [vmem:[%s2661_s5 + $0x50] sm:$0xff]   ;;  %v2176_v30 = vld [vmem:[%s2661_s5 + $0x8] sm:$0xff]   ;;  %v2178_v34 = vld [vmem:[%s2661_s5] sm:$0xff]  }
  0x14   : > { %1996 = vmatprep.subr.bf16.mxu1 %v2168_v11  ;;  %1976 = vmatprep.subr.bf16.mxu0 %v2171_v12  ;;  %v2179_v31 = vld [vmem:[%s2661_s5 + $0x48] sm:$0xff]   ;;  %v2181_v35 = vld [vmem:[%s2661_s5 + $0x40] sm:$0xff]   ;;  %v2180_v36 = vld [vmem:[%s2661_s5 + $0xf8] sm:$0xff]  }
  0x15   : > { %368 = vperm.xlu1 %2164, %v340_v7   ;;  %363 = vperm.xlu0 %2163, %v339_v9   ;;  %v315_v28 = vmul.f32 %v1658_v23, %v302_v24  ;;  %v314_v29 = vmul.f32 %v1658_v23, %v301_v25  ;;  %v2395_v37 = vld [vmem:[%s2661_s5 + $0xb8] sm:$0xff]   ;;  %v1881_v38 = vld [vmem:[%s2361_s23 + $0x8] sm:$0xff]   ;;  %v1869_v39 = vld [vmem:[%s2361_s23] sm:$0xff]  }
  0x16   : > { %v1874_v40 = vunpack.c.l.bf16 %v1881_v38  ;;  %v1870_v41 = vunpack.c.l.bf16 %v1869_v39  ;;  %v1875_v42 = vunpack.c.h.bf16 %v1881_v38  ;;  %v1871_v43 = vunpack.c.h.bf16 %v1869_v39  ;;  %v2182_v6 = vld [vmem:[%s2661_s5 + $0xf0] sm:$0xff]  }
  0x17   : > { %1997 = vmatpush3.bf16.msra.mxu1 %v2168_v11  ;;  %1977 = vmatpush3.bf16.msra.mxu0 %v2171_v12  ;;  %v328_v32 = vadd.f32 %v1659_v27, %v315_v28  ;;  %v327_v33 = vadd.f32 %v1659_v27, %v314_v29  ;;  %v2185_v25 = vld [vmem:[%s2661_s5 + $0xb0] sm:$0xff]  }
  0x18   : > { %1998 = vmatprep.subr.bf16.mxu1 %v2170_v15  ;;  %1978 = vmatprep.subr.bf16.mxu0 %v2173_v16  ;;  %v312_v44 = vmul.f32 %v1874_v40, %v1658_v23  ;;  %v310_v45 = vmul.f32 %v1870_v41, %v1658_v23  ;;  %v313_v46 = vmul.f32 %v1875_v42, %v1658_v23  ;;  %v2189_v40 = vld [vmem:[%s2661_s5 + $0xa0] sm:$0xff]   ;;  %v2190_v41 = vld [vmem:[%s2661_s5 + $0xd0] sm:$0xff]   ;;  %v2191_v42 = vld [vmem:[%s2661_s5 + $0x98] sm:$0xff]  }
  0x19   : > { %1527 = vperm.xlu1 %2164, %v1518_v13   ;;  %1522 = vperm.xlu0 %2163, %v1517_v14   ;;  %v311_v47 = vmul.f32 %v1871_v43, %v1658_v23  ;;  %v334_v60 = vmax.f32 %v328_v32, 0.0  ;;  %v333_v61 = vmax.f32 %v327_v33, 0.0  ;;  %v2192_v43 = vld [vmem:[%s2661_s5 + $0xc8] sm:$0xff]  }
  0x1a   : > { %v325_v48 = vadd.f32 %v1659_v27, %v312_v44  ;;  %v323_v49 = vadd.f32 %v1659_v27, %v310_v45  ;;  %v326_v50 = vadd.f32 %v1659_v27, %v313_v46  ;;  %v2193_v44 = vld [vmem:[%s2661_s5 + $0x90] sm:$0xff]   ;;  %v2194_v45 = vld [vmem:[%s2661_s5 + $0xc0] sm:$0xff]   ;;  %v2195_v46 = vld [vmem:[%s2661_s5 + $0x88] sm:$0xff]  }
  0x1b   : > { %1999 = vmatpush3.bf16.msra.mxu1 %v2170_v15  ;;  %1979 = vmatpush3.bf16.msra.mxu0 %v2173_v16  ;;  %v324_v51 = vadd.f32 %v1659_v27, %v311_v47  ;;  %v2186_v27 = vld [vmem:[%s2661_s5 + $0xe0] sm:$0xff]   ;;  %v2196_v47 = vld [vmem:[%s2661_s5 + $0x178] sm:$0xff]  }
  0x1c   : > { %2000 = vmatprep.subr.bf16.mxu1 %v2172_v18  ;;  %1980 = vmatprep.subr.bf16.mxu0 %v2175_v19  ;;  %v331_v54 = vmax.f32 %v325_v48, 0.0  ;;  %v329_v55 = vmax.f32 %v323_v49, 0.0  ;;  %v332_v56 = vmax.f32 %v326_v50, 0.0  ;;  %v2197_v50 = vld [vmem:[%s2661_s5 + $0x80] sm:$0xff]  }
  0x1d   : > { %1532 = vperm.xlu0 %2163, %v1519_v17   ;;  %v330_v57 = vmax.f32 %v324_v51, 0.0  ;;  %v2198_v51 = vld [vmem:[%s2661_s5 + $0x170] sm:$0xff]  }
  0x1f   : > { %2001 = vmatpush3.bf16.msra.mxu1 %v2172_v18  ;;  %1981 = vmatpush3.bf16.msra.mxu0 %v2175_v19  ;;  %v2184_v18 = vld [vmem:[%s2661_s5 + $0xe8] sm:$0xff]  }
  0x20   : > { %2002 = vmatprep.subr.bf16.mxu1 %v2174_v20  ;;  %1982 = vmatprep.subr.bf16.mxu0 %v2177_v26 }
  0x23   : > { %2003 = vmatpush3.bf16.msra.mxu1 %v2174_v20  ;;  %1983 = vmatpush3.bf16.msra.mxu0 %v2177_v26 }
  0x24   : > { %2004 = vmatprep.subr.bf16.mxu1 %v2176_v30  ;;  %1984 = vmatprep.subr.bf16.mxu0 %v2179_v31 }
  0x27   : > { %2005 = vmatpush3.bf16.msra.mxu1 %v2176_v30  ;;  %1985 = vmatpush3.bf16.msra.mxu0 %v2179_v31 }
  0x28   : > { %2006 = vmatprep.subr.bf16.mxu1 %v2178_v34  ;;  %1986 = vmatprep.subr.bf16.mxu0 %v2181_v35 }
  0x2b   : > { %2007 = vmatpush3.bf16.msra.mxu1 %v2178_v34  ;;  %1987 = vmatpush3.bf16.msra.mxu0 %v2181_v35  ;;  %v2187_v34 = vld [vmem:[%s2661_s5 + $0xa8] sm:$0xff]  }
  0x2c   : > { %2032 = vmatprep.subr.bf16.mxu1 %v2180_v36  ;;  %2012 = vmatprep.subr.bf16.mxu0 %v2395_v37 }
  0x88   : > { %v354_v52 = vpop.permute.xlu1 %353  ;;  %v344_v53 = vpop.permute.xlu0 %343 }
  0x89   : > { %v373_v62 = vmul.f32 %v354_v52, %v331_v54  ;;  %v371_v63 = vmul.f32 %v344_v53, %v329_v55 }
  0x8c   : > { %v359_v58 = vpop.permute.xlu1 %358  ;;  %v349_v59 = vpop.permute.xlu0 %348 }
  0x8d   : > { %v374_v0 = vmul.f32 %v359_v58, %v332_v56  ;;  %v372_v1 = vmul.f32 %v349_v59, %v330_v57  ;;  %v2199_v57 = vld [vmem:[%s2661_s5 + $0x138] sm:$0xff]   ;;  %v2200_v58 = vld [vmem:[%s2661_s5 + $0x168] sm:$0xff]  }
  0x8f   : > { %v2400_v2 = vpack.c.bf16 %v374_v0, %v373_v62  ;;  %v2402_v3 = vpack.c.bf16 %v372_v1, %v371_v63  ;;  %v2202_v62 = vld [vmem:[%s2661_s5 + $0x160] sm:$0xff]   ;;  %v2203_v0 = vld [vmem:[%s2661_s5 + $0x128] sm:$0xff]   ;;  %v2204_v1 = vld [vmem:[%s2661_s5 + $0x158] sm:$0xff]  }
  0x90   : > { %v369_v4 = vpop.permute.xlu1 %368  ;;  %v364_v5 = vpop.permute.xlu0 %363 }
  0x91   : > { %v376_v7 = vmul.f32 %v369_v4, %v334_v60  ;;  %v375_v8 = vmul.f32 %v364_v5, %v333_v61  ;;  %2008 = vmatprep.mubr.bf16.mxu1 %v2402_v3  ;;  %v765_v9 = vrot.slane %v2402_v3, 3  ;;  %v766_v10 = vrot.slane %v2400_v2, 3  ;;  %v2201_v61 = vld [vmem:[%s2661_s5 + $0x130] sm:$0xff]   ;;  %v2207_v5 = vld [vmem:[%s2661_s5 + $0x118] sm:$0xff]  }
  0x92   : > { %2009 = vmatmul.mubr.bf16.vlgmr.msra.gmra.mxu1 %v2400_v2  ;;  %v2412_v11 = vshll.u32 %v2402_v3, 16  ;;  %v2415_v12 = vshll.u32 %v2400_v2, 16  ;;  %v2422_v15 = vshrl.u32 %v2402_v3, 16  ;;  %v2431_v20 = vshrl.u32 %v2400_v2, 16  ;;  %v2206_v4 = vld [vmem:[%s2661_s5 + $0x150] sm:$0xff]  }
  0x93   : > { %v2417_v13 = vpack.c.bf16 %v376_v7, %v375_v8  ;;  %2033 = vmatpush3.bf16.msra.mxu1 %v2180_v36  ;;  %v767_v14 = vsel %vm764_vm0, %v765_v9, %v766_v10  ;;  %v643_v21 = vrot.slane %v2402_v3, 1  ;;  %v644_v22 = vrot.slane %v2400_v2, 1  ;;  %v2209_v7 = vld [vmem:[%s2661_s5 + $0x110] sm:$0xff]   ;;  %v2210_v8 = vld [vmem:[%s2661_s5 + $0x140] sm:$0xff]  }
  0x94   : > { %2048 = vmatprep.mubr.bf16.mxu1 %v767_v14  ;;  %2034 = vmatprep.subr.bf16.mxu1 %v2182_v6  ;;  %v419_v16 = vrot.slane %v2412_v11, 1  ;;  %v424_v17 = vrot.slane %v2415_v12, 1  ;;  %v1136_v26 = vrot.slane %v2402_v3, 6  ;;  %v1137_v28 = vrot.slane %v2400_v2, 6 }
  0x95   : > { %v645_v29 = vsel %vm642_vm2, %v643_v21, %v644_v22  ;;  %v1139_v30 = vrot.slane %v2417_v13, 6  ;;  %v1395_v31 = vrot.slane %v2402_v3, 7  ;;  %v1396_v33 = vrot.slane %v2400_v2, 7  ;;  %v2215_v21 = vld [vmem:[%s2661_s5 + $0x1b8] sm:$0xff]  }
  0x96   : > { %v420_v19 = vor.u32 %v419_v16, %v2422_v15  ;;  %v428_v24 = vor.u32 %v2431_v20, %v424_v17  ;;  %v2450_v32 = vsel %vm1135_vm3, %v1136_v26, %v1137_v28  ;;  %v1398_v36 = vrot.slane %v2417_v13, 7  ;;  %v2221_v26 = vld [vmem:[%s2661_s5 + $0x1a0] sm:$0xff]  }
  0x97   : > { %2035 = vmatpush3.bf16.msra.mxu1 %v2182_v6  ;;  %v2457_v35 = vsel %vm1135_vm3, %v1137_v28, %v1139_v30  ;;  %v2463_v38 = vsel %vm1394_vm4, %v1395_v31, %v1396_v33  ;;  %v1013_v48 = vrot.slane %v2402_v3, 4  ;;  %v1014_v49 = vrot.slane %v2400_v2, 4  ;;  %v2205_v3 = vld [vmem:[%s2661_s5 + $0x120] sm:$0xff]   ;;  %v2208_v6 = vld [vmem:[%s2661_s5 + $0x148] sm:$0xff]   ;;  %v2217_v2 = vld [vmem:[%s2661_s5 + $0x1b0] sm:$0xff]  }
  0x98   : > { %v425_v23 = vsel %vm413_vm1, %v420_v19, %v424_v17  ;;  %2036 = vmatprep.subr.bf16.mxu1 %v2184_v18  ;;  %v2465_v39 = vsel %vm1394_vm4, %v1396_v33, %v1398_v36  ;;  %v887_v52 = vrot.slane %v2422_v15, 3  ;;  %v888_v53 = vrot.slane %v2412_v11, 4  ;;  %v2211_v17 = vld [vmem:[%s2661_s5 + $0x108] sm:$0xff]   ;;  %v2223_v28 = vld [vmem:[%s2661_s5 + $0x198] sm:$0xff]   ;;  %v2226_v33 = vld [vmem:[%s2661_s5 + $0x1c0] sm:$0xff]  }
  0x99   : > { %1988 = vmatprep.mubr.bf16.mxu0 %v425_v23  ;;  %v890_v54 = vrot.slane %v2431_v20, 3  ;;  %v891_v55 = vrot.slane %v2415_v12, 4  ;;  %v1015_v56 = vsel %vm1012_vm5, %v1013_v48, %v1014_v49  ;;  %v1260_v9 = vrot.slane %v2422_v15, 6  ;;  %v2218_v23 = vld [vmem:[%s2661_s5 + $0x1e0] sm:$0xff]  }
  0x9a   : > { %1989 = vmatmul.mubr.bf16.vlgmr.msra.gmra.mxu0 %v428_v24  ;;  %v889_v59 = vor.u32 %v888_v53, %v887_v52  ;;  %v1263_v14 = vrot.slane %v2431_v20, 6  ;;  %v1264_v16 = vrot.slane %v2415_v12, 7  ;;  %v2214_v12 = vld [vmem:[%s2661_s5 + $0x1f0] sm:$0xff]   ;;  %v2219_v24 = vld [vmem:[%s2661_s5 + $0x1a8] sm:$0xff]   ;;  %v1268_v30 = vshrl.u32 %v2417_v13, 16 }
  0x9b   : > { %2013 = vmatpush3.bf16.msra.mxu0 %v2395_v37  ;;  %2028 = vmatprep.mubr.bf16.mxu0 %v645_v29  ;;  %v2188_v37 = vld [vmem:[%s2661_s5 + $0xd8] sm:$0xff]   ;;  %v2513_v60 = vor.u32 %v891_v55, %v890_v54  ;;  %v2224_v29 = vld [vmem:[%s2661_s5 + $0x1c8] sm:$0xff]   ;;  %v1271_v31 = vshll.u32 %v2417_v13, 16 }
  0x9c   : > { %2037 = vmatpush3.bf16.msra.mxu1 %v2184_v18  ;;  %2014 = vmatprep.subr.bf16.mxu0 %v2185_v25  ;;  %v2212_v18 = vld [vmem:[%s2661_s5 + $0x1f8] sm:$0xff]   ;;  %v2558_v15 = vor.u32 %v1264_v16, %v1263_v14  ;;  %v2227_v13 = vld [vmem:[%s2661_s5 + $0x188] sm:$0xff]  }
  0x9d   : > { %2038 = vmatprep.subr.bf16.mxu1 %v2186_v27  ;;  %v893_v63 = vsel %vm886_vm6, %v889_v59, %v2513_v60  ;;  %v1273_v36 = vrot.slane %v1271_v31, 7 }
  0x9f   : > { %2015 = vmatpush3.bf16.msra.mxu0 %v2185_v25  ;;  %v2220_v25 = vld [vmem:[%s2661_s5 + $0x1d8] sm:$0xff]  }
  0xa0   : > { %2039 = vmatpush3.bf16.msra.mxu1 %v2186_v27  ;;  %2016 = vmatprep.subr.bf16.mxu0 %v2187_v34  ;;  %v2222_v27 = vld [vmem:[%s2661_s5 + $0x1d0] sm:$0xff]  }
  0xa1   : > { %2040 = vmatprep.subr.bf16.mxu1 %v2188_v37 }
  0xa3   : > { %2017 = vmatpush3.bf16.msra.mxu0 %v2187_v34  ;;  %v1270_v34 = vrot.slane %v1268_v30, 6 }
  0xa4   : > { %2041 = vmatpush3.bf16.msra.mxu1 %v2188_v37  ;;  %2018 = vmatprep.subr.bf16.mxu0 %v2189_v40 }
  0xa5   : > { %2042 = vmatprep.subr.bf16.mxu1 %v2190_v41  ;;  %v1274_v37 = vor.u32 %v1273_v36, %v1270_v34 }
  0xa7   : > { %2019 = vmatpush3.bf16.msra.mxu0 %v2189_v40  ;;  %v2228_v40 = vld [vmem:[%s2661_s5 + $0x180] sm:$0xff]  }
  0xa8   : > { %2043 = vmatpush3.bf16.msra.mxu1 %v2190_v41  ;;  %2020 = vmatprep.subr.bf16.mxu0 %v2191_v42  ;;  %v1275_v41 = vsel %vm1259_vm7, %v2558_v15, %v1274_v37  ;;  %v1523_v37 = vpop.permute.xlu0 %1522 }
  0xa9   : > { %2044 = vmatprep.subr.bf16.mxu1 %v2192_v43 }
  0xab   : > { %2021 = vmatpush3.bf16.msra.mxu0 %v2191_v42  ;;  %v2229_v42 = vld [vmem:[%s2661_s5 + $0x238] sm:$0xff]  }
  0xac   : > { %2045 = vmatpush3.bf16.msra.mxu1 %v2192_v43  ;;  %2022 = vmatprep.subr.bf16.mxu0 %v2193_v44  ;;  %v2230_v43 = vld [vmem:[%s2661_s5 + $0x230] sm:$0xff]  }
  0xad   : > { %2046 = vmatprep.subr.bf16.mxu1 %v2194_v45 }
  0xaf   : > { %2023 = vmatpush3.bf16.msra.mxu0 %v2193_v44  ;;  %v2231_v44 = vld [vmem:[%s2661_s5 + $0x228] sm:$0xff]  }
  0xb0   : > { %2047 = vmatpush3.bf16.msra.mxu1 %v2194_v45  ;;  %2024 = vmatprep.subr.bf16.mxu0 %v2195_v46  ;;  %v2232_v45 = vld [vmem:[%s2661_s5 + $0x220] sm:$0xff]  }
  0xb1   : > { %2072 = vmatprep.subr.bf16.mxu1 %v2196_v47 }
  0xb3   : > { %2025 = vmatpush3.bf16.msra.mxu0 %v2195_v46  ;;  %2049 = vmatmul.mubr.bf16.vlgmr.msra.gmra.mxu1 %v766_v10  ;;  %v1261_v10 = vrot.slane %v2412_v11, 7  ;;  %v2213_v11 = vld [vmem:[%s2661_s5 + $0x100] sm:$0xff]   ;;  %v2235_v46 = vld [vmem:[%s2661_s5 + $0x208] sm:$0xff]  }
  0xb4   : > { %2073 = vmatpush3.bf16.msra.mxu1 %v2196_v47  ;;  %2088 = vmatprep.mubr.bf16.mxu1 %v1015_v56  ;;  %v2236_v47 = vld [vmem:[%s2661_s5 + $0x200] sm:$0xff]  }
  0xb5   : > { %2026 = vmatprep.subr.bf16.mxu0 %v2197_v50  ;;  %2074 = vmatprep.subr.bf16.mxu1 %v2198_v51  ;;  %v1262_v19 = vor.u32 %v1261_v10, %v1260_v9 }
  0xb7   : > { %2027 = vmatpush3.bf16.msra.mxu0 %v2197_v50  ;;  %v1266_v20 = vsel %vm1259_vm7, %v1262_v19, %v2558_v15 }
  0xb8   : > { %2075 = vmatpush3.bf16.msra.mxu1 %v2198_v51  ;;  %2052 = vmatprep.subr.bf16.mxu0 %v2199_v57 }
  0xb9   : > { %2076 = vmatprep.subr.bf16.mxu1 %v2200_v58 }
  0xba   : > { %2029 = vmatmul.mubr.bf16.vlgmr.msra.gmra.mxu0 %v644_v22  ;;  %v2216_v22 = vld [vmem:[%s2661_s5 + $0x1e8] sm:$0xff]  }
  0xbb   : > { %2053 = vmatpush3.bf16.msra.mxu0 %v2199_v57  ;;  %2068 = vmatprep.mubr.bf16.mxu0 %v893_v63 }
  0xbc   : > { %2077 = vmatpush3.bf16.msra.mxu1 %v2200_v58  ;;  %2054 = vmatprep.subr.bf16.mxu0 %v2201_v61 }
  0xbd   : > { %2078 = vmatprep.subr.bf16.mxu1 %v2202_v62 }
  0xbf   : > { %2055 = vmatpush3.bf16.msra.mxu0 %v2201_v61 }
  0xc0   : > { %2079 = vmatpush3.bf16.msra.mxu1 %v2202_v62  ;;  %2056 = vmatprep.subr.bf16.mxu0 %v2203_v0 }
  0xc1   : > { %2080 = vmatprep.subr.bf16.mxu1 %v2204_v1 }
  0xc3   : > { %2057 = vmatpush3.bf16.msra.mxu0 %v2203_v0 }
  0xc4   : > { %2081 = vmatpush3.bf16.msra.mxu1 %v2204_v1  ;;  %2058 = vmatprep.subr.bf16.mxu0 %v2205_v3 }
  0xc5   : > { %2082 = vmatprep.subr.bf16.mxu1 %v2206_v4 }
  0xc7   : > { %2059 = vmatpush3.bf16.msra.mxu0 %v2205_v3 }
  0xc8   : > { %2083 = vmatpush3.bf16.msra.mxu1 %v2206_v4  ;;  %2060 = vmatprep.subr.bf16.mxu0 %v2207_v5 }
  0xc9   : > { %2084 = vmatprep.subr.bf16.mxu1 %v2208_v6 }
  0xcb   : > { %2061 = vmatpush3.bf16.msra.mxu0 %v2207_v5 }
  0xcc   : > { %2085 = vmatpush3.bf16.msra.mxu1 %v2208_v6  ;;  %2062 = vmatprep.subr.bf16.mxu0 %v2209_v7 }
  0xcd   : > { %2086 = vmatprep.subr.bf16.mxu1 %v2210_v8 }
  0xcf   : > { %2063 = vmatpush3.bf16.msra.mxu0 %v2209_v7 }
  0xd0   : > { %2087 = vmatpush3.bf16.msra.mxu1 %v2210_v8  ;;  %2064 = vmatprep.subr.bf16.mxu0 %v2211_v17 }
  0xd1   : > { %2112 = vmatprep.subr.bf16.mxu1 %v2212_v18 }
  0xd3   : > { %2065 = vmatpush3.bf16.msra.mxu0 %v2211_v17  ;;  %2089 = vmatmul.mubr.bf16.vlgmr.msra.gmra.mxu1 %v1014_v49 }
  0xd4   : > { %2113 = vmatpush3.bf16.msra.mxu1 %v2212_v18  ;;  %2128 = vmatprep.mubr.bf16.mxu1 %v1266_v20 }
  0xd5   : > { %2066 = vmatprep.subr.bf16.mxu0 %v2213_v11  ;;  %2114 = vmatprep.subr.bf16.mxu1 %v2214_v12 }
  0xd7   : > { %2067 = vmatpush3.bf16.msra.mxu0 %v2213_v11 }
  0xd8   : > { %2115 = vmatpush3.bf16.msra.mxu1 %v2214_v12  ;;  %2092 = vmatprep.subr.bf16.mxu0 %v2215_v21 }
  0xd9   : > { %2116 = vmatprep.subr.bf16.mxu1 %v2216_v22 }
  0xda   : > { %2069 = vmatmul.mubr.bf16.vlgmr.msra.gmra.mxu0 %v2513_v60 }
  0xdb   : > { %2093 = vmatpush3.bf16.msra.mxu0 %v2215_v21  ;;  %2108 = vmatprep.mubr.bf16.mxu0 %v2450_v32  ;;  %v2225_v32 = vld [vmem:[%s2661_s5 + $0x190] sm:$0xff]  }
  0xdc   : > { %2117 = vmatpush3.bf16.msra.mxu1 %v2216_v22  ;;  %2094 = vmatprep.subr.bf16.mxu0 %v2217_v2 }
  0xdd   : > { %2118 = vmatprep.subr.bf16.mxu1 %v2218_v23 }
  0xdf   : > { %2095 = vmatpush3.bf16.msra.mxu0 %v2217_v2 }
  0xe0   : > { %2119 = vmatpush3.bf16.msra.mxu1 %v2218_v23  ;;  %2096 = vmatprep.subr.bf16.mxu0 %v2219_v24 }
  0xe1   : > { %2120 = vmatprep.subr.bf16.mxu1 %v2220_v25 }
  0xe3   : > { %2097 = vmatpush3.bf16.msra.mxu0 %v2219_v24 }
  0xe4   : > { %2121 = vmatpush3.bf16.msra.mxu1 %v2220_v25  ;;  %2098 = vmatprep.subr.bf16.mxu0 %v2221_v26 }
  0xe5   : > { %2122 = vmatprep.subr.bf16.mxu1 %v2222_v27 }
  0xe7   : > { %2099 = vmatpush3.bf16.msra.mxu0 %v2221_v26 }
  0xe8   : > { %2123 = vmatpush3.bf16.msra.mxu1 %v2222_v27  ;;  %2100 = vmatprep.subr.bf16.mxu0 %v2223_v28 }
  0xe9   : > { %2124 = vmatprep.subr.bf16.mxu1 %v2224_v29 }
  0xeb   : > { %2101 = vmatpush3.bf16.msra.mxu0 %v2223_v28 }
  0xec   : > { %2125 = vmatpush3.bf16.msra.mxu1 %v2224_v29  ;;  %2102 = vmatprep.subr.bf16.mxu0 %v2225_v32 }
  0xed   : > { %2126 = vmatprep.subr.bf16.mxu1 %v2226_v33 }
  0xef   : > { %2103 = vmatpush3.bf16.msra.mxu0 %v2225_v32 }
  0xf0   : > { %2127 = vmatpush3.bf16.msra.mxu1 %v2226_v33  ;;  %2104 = vmatprep.subr.bf16.mxu0 %v2227_v13 }
  0xf3   : > { %2105 = vmatpush3.bf16.msra.mxu0 %v2227_v13  ;;  %2129 = vmatmul.mubr.bf16.vlgmr.msra.gmra.mxu1 %v1275_v41 }
  0xf4   : > { %2106 = vmatprep.subr.bf16.mxu0 %v2228_v40 }
  0xf7   : > { %2107 = vmatpush3.bf16.msra.mxu0 %v2228_v40 }
  0xf8   : > { %2132 = vmatprep.subr.bf16.mxu0 %v2229_v42 }
  0xfa   : > { %2109 = vmatmul.mubr.bf16.vlgmr.msra.gmra.mxu0 %v2457_v35  ;;  %v2233_v35 = vld [vmem:[%s2661_s5 + $0x218] sm:$0xff]  }
  0xfb   : > { %2133 = vmatpush3.bf16.msra.mxu0 %v2229_v42  ;;  %2148 = vmatprep.mubr.bf16.mxu0 %v2463_v38  ;;  %v2234_v38 = vld [vmem:[%s2661_s5 + $0x210] sm:$0xff]  }
  0xfc   : > { %2134 = vmatprep.subr.bf16.mxu0 %v2230_v43 }
  0xff   : > { %2135 = vmatpush3.bf16.msra.mxu0 %v2230_v43 }
 0x100   : > { %2136 = vmatprep.subr.bf16.mxu0 %v2231_v44 }
 0x103   : > { %2137 = vmatpush3.bf16.msra.mxu0 %v2231_v44 }
 0x104   : > { %2138 = vmatprep.subr.bf16.mxu0 %v2232_v45 }
 0x107   : > { %2139 = vmatpush3.bf16.msra.mxu0 %v2232_v45 }
 0x108   : > { %2140 = vmatprep.subr.bf16.mxu0 %v2233_v35 }
 0x10b   : > { %2141 = vmatpush3.bf16.msra.mxu0 %v2233_v35 }
 0x10c   : > { %2142 = vmatprep.subr.bf16.mxu0 %v2234_v38 }
 0x10f   : > { %2143 = vmatpush3.bf16.msra.mxu0 %v2234_v38 }
 0x110   : > { %2144 = vmatprep.subr.bf16.mxu0 %v2235_v46 }
 0x113   : > { %2145 = vmatpush3.bf16.msra.mxu0 %v2235_v46 }
 0x114   : > { %2146 = vmatprep.subr.bf16.mxu0 %v2236_v47 }
 0x117   : > { %2147 = vmatpush3.bf16.msra.mxu0 %v2236_v47  ;;  %v1528_v47 = vpop.permute.xlu1 %1527 }
 0x11a   : > { %2149 = vmatmul.mubr.bf16.vlgmr.msra.gmra.mxu0 %v2465_v39 }
 0x152   : > { %v2010_v48 = vpop.f32.mrf.mxu1 }
 0x154   : > { %v609_v49 = vpop.f32.mrf.mxu1 }
 0x156   : > { %v2011_v50 = vpop.f32.mrf.mxu1 }
 0x158   : > { %v612_v56 = vpop.f32.mrf.mxu1 }
 0x15a   : > { %v1990_v51 = vpop.f32.mrf.mxu0 }
 0x15b   : > { %v618_v52 = vadd.f32 %v2010_v48, %v1990_v51  ;;  %v1533_v48 = vpop.permute.xlu0 %1532 }
 0x15c   : > { %v513_v53 = vpop.f32.mrf.mxu0 }
 0x15d   : > { %v610_v54 = vadd.f32 %v609_v49, %v513_v53 }
 0x15e   : > { %v1991_v55 = vpop.f32.mrf.mxu0 }
 0x160   : > { %v516_v57 = vpop.f32.mrf.mxu0 }
 0x161   : > { %v613_v58 = vadd.f32 %v612_v56, %v516_v57 }
 0x173   : > { %v2050_v59 = vpop.f32.mrf.mxu1 }
 0x175   : > { %v852_v60 = vpop.f32.mrf.mxu1 }
 0x177   : > { %v2051_v61 = vpop.f32.mrf.mxu1 }
 0x179   : > { %v855_v7 = vpop.f32.mrf.mxu1 }
 0x17a   : > { %v2030_v62 = vpop.f32.mrf.mxu0 }
 0x17b   : > { %v746_v63 = vadd.f32 %v2030_v62, %v618_v52  ;;  %v1557_v62 = vlaneseq }
 0x17c   : > { %v730_v0 = vpop.f32.mrf.mxu0 }
 0x17d   : > { %v744_v1 = vadd.f32 %v730_v0, %v610_v54  ;;  %v868_v3 = vadd.f32 %v2050_v59, %v746_v63 }
 0x17e   : > { %v2031_v39 = vpop.f32.mrf.mxu0 }
 0x17f   : > { %v866_v4 = vadd.f32 %v852_v60, %v744_v1  ;;  %v1558_v39 = vshrl.u32 %v1557_v62, 7 }
 0x180   : > { %v733_v5 = vpop.f32.mrf.mxu0 }
 0x181   : > { %v745_v6 = vadd.f32 %v733_v5, %v613_v58  ;;  %vm1560_vm8 = vcmp.eq.s32.totalorder %v1558_v39, 1  ;;  %vm1559_vm9 = vcmp.eq.s32.totalorder %v1558_v39, 0 }
 0x183   : > { %v867_v8 = vadd.f32 %v855_v7, %v745_v6 }
 0x193   : > { %v2090_v9 = vpop.f32.mrf.mxu1 }
 0x195   : > { %v1100_v10 = vpop.f32.mrf.mxu1 }
 0x197   : > { %v2091_v14 = vpop.f32.mrf.mxu1 }
 0x199   : > { %v1103_v20 = vpop.f32.mrf.mxu1 }
 0x19a   : > { %v2070_v16 = vpop.f32.mrf.mxu0 }
 0x19b   : > { %v994_v17 = vadd.f32 %v2070_v16, %v868_v3 }
 0x19c   : > { %v978_v18 = vpop.f32.mrf.mxu0 }
 0x19d   : > { %v992_v19 = vadd.f32 %v978_v18, %v866_v4  ;;  %v1116_v15 = vadd.f32 %v2090_v9, %v994_v17 }
 0x19e   : > { %v2071_v11 = vpop.f32.mrf.mxu0 }
 0x19f   : > { %v1114_v12 = vadd.f32 %v1100_v10, %v992_v19 }
 0x1a0   : > { %v981_v23 = vpop.f32.mrf.mxu0 }
 0x1a1   : > { %v993_v27 = vadd.f32 %v981_v23, %v867_v8 }
 0x1a3   : > { %v1115_v31 = vadd.f32 %v1103_v20, %v993_v27 }
 0x1b3   : > { %v2130_v21 = vpop.f32.mrf.mxu1 }
 0x1b5   : > { %v1360_v22 = vpop.f32.mrf.mxu1 }
 0x1b7   : > { %v2131_v2 = vpop.f32.mrf.mxu1 }
 0x1b9   : > { %v1363_v43 = vpop.f32.mrf.mxu1 }
 0x1ba   : > { %v2110_v24 = vpop.f32.mrf.mxu0 }
 0x1bb   : > { %v1241_v28 = vadd.f32 %v2110_v24, %v1116_v15 }
 0x1bc   : > { %v1225_v25 = vpop.f32.mrf.mxu0 }
 0x1bd   : > { %v1239_v29 = vadd.f32 %v1225_v25, %v1114_v12  ;;  %v1376_v32 = vadd.f32 %v2130_v21, %v1241_v28 }
 0x1be   : > { %v2111_v26 = vpop.f32.mrf.mxu0 }
 0x1bf   : > { %v1374_v13 = vadd.f32 %v1360_v22, %v1239_v29 }
 0x1c0   : > { %v1228_v30 = vpop.f32.mrf.mxu0 }
 0x1c1   : > { %v1240_v34 = vadd.f32 %v1228_v30, %v1115_v31 }
 0x1c3   : > { %v1375_v45 = vadd.f32 %v1363_v43, %v1240_v34 }
 0x1da   : > { %v2150_v33 = vpop.f32.mrf.mxu0 }
 0x1db   : > { %v1500_v36 = vadd.f32 %v2150_v33, %v1376_v32 }
 0x1dc   : > { %v1484_v40 = vpop.f32.mrf.mxu0 }
 0x1dd   : > { %v1867_v41 = vpack.c.bf16 %v1500_v36, %v1500_v36  ;;  %v1498_v42 = vadd.f32 %v1484_v40, %v1374_v13  ;;  %v1537_v49 = vmul.f32 %v1533_v48, %v1500_v36 }
 0x1de   : > { %v2151_v44 = vpop.f32.mrf.mxu0 }
 0x1df   : > { %1516 = vst [vmem:[%s285_s8 + $0x8] sm:$0xf] %v1867_v41  ;;  %v1535_v38 = vmul.f32 %v1523_v37, %v1498_v42  ;;  %v1548_v55 = vmul.f32 %v1537_v49, %v1537_v49 }
 0x1e0   : > { %v1487_v35 = vpop.f32.mrf.mxu0 }
 0x1e1   : > { %v1499_v46 = vadd.f32 %v1487_v35, %v1375_v45  ;;  %v1546_v52 = vmul.f32 %v1535_v38, %v1535_v38 }
 0x1e3   : > { %v1879_v50 = vpack.c.bf16 %v1499_v46, %v1498_v42  ;;  %v1536_v51 = vmul.f32 %v1528_v47, %v1499_v46 }
 0x1e5   : > { %1880 = vst [vmem:[%s285_s8] sm:$0xff] %v1879_v50   ;;  %v1538_v53 = vadd.f32 %v1536_v51, %v1535_v38  ;;  %v1547_v54 = vmul.f32 %v1536_v51, %v1536_v51 }
 0x1e7   : > { %v1539_v56 = vadd.f32 %v1538_v53, %v1537_v49  ;;  %v1549_v57 = vadd.f32 %v1547_v54, %v1546_v52 }
 0x1e9   : > { %v1540_v58 = vrot.slane %v1539_v56, 4  ;;  %v1550_v59 = vadd.f32 %v1549_v57, %v1548_v55 }
 0x1eb   : > { %v1541_v60 = vadd.f32 %v1540_v58, %v1539_v56  ;;  %v1551_v61 = vrot.slane %v1550_v59, 4 }
 0x1ed   : > { %v1542_v63 = vrot.slane %v1541_v60, 2  ;;  %v1552_v0 = vadd.f32 %v1551_v61, %v1550_v59 }
 0x1ef   : > { %v1543_v1 = vadd.f32 %v1542_v63, %v1541_v60  ;;  %v1553_v3 = vrot.slane %v1552_v0, 2 }
 0x1f1   : > { %v1554_v4 = vadd.f32 %v1553_v3, %v1552_v0  ;;  %v1544_v5 = vrot.slane %v1543_v1, 1 }
 0x1f3   : > { %v1555_v6 = vrot.slane %v1554_v4, 1  ;;  %v1545_v8 = vadd.f32 %v1544_v5, %v1543_v1 }
 0x1f5   : > { %v1556_v7 = vadd.f32 %v1555_v6, %v1554_v4 }
 0x1f7   : > { %v1561_v9 = vsel %vm1560_vm8, %v1556_v7, 0.0 }
 0x1f8   : > { %v1562_v10 = vsel %vm1559_vm9, %v1545_v8, %v1561_v9 }
 0x1f9   : > { %1563 = vst [vmem:[%s289_s12] sm:$0xff] %v1562_v10 }
 0x1fa PF: > { %s18_s24 = sadd.s32 1, %s2243_s24  }
 0x1fb   : > { %p15_p4 = scmp.ge.s32.totalorder %s18_s24, 4  }
 0x1fd   :  { %17 = sbr.rel (!%p15_p4) target bundleno = 1 (0x1), region = 94 }

// kernel: merge_forward.13
= control target key start
LH: loop header
LB: loop body
LE: loop exit
PB: predicated region body
PF: predicated region fallthrough
CT: control target
= control target key end

     0   :  { %vm630_vm0 = vcmask 519168   ;;  %vm647_vm1 = vcmask 523264   ;;  %s1285_s3 = inlined_call_operand.vmem [shape: bf16[256,64], index: 3, kind: input, shape index: {}]   ;;  %s1286_s2 = inlined_call_operand.vmem [shape: bf16[128,64], index: 2, kind: input, shape index: {}]   ;;  %s1287_s1 = inlined_call_operand.vmem [shape: bf16[128,256], index: 1, kind: input, shape index: {}]   ;;  %s1288_s0 = inlined_call_operand.vmem [shape: bf16[128,128], index: 0, kind: input, shape index: {}]   ;;  %s1289_s4 = inlined_call_operand.vmem [shape: bf16[128,64], index: 4, kind: output, shape index: {0}]   ;;  %s1290_s5 = inlined_call_operand.vmem [shape: f32[1,8,64], index: 5, kind: output, shape index: {1}]  }
   0x1   :  { %v945_v0 = vld [vmem:[%s1285_s3 + $0x78] sm:$0xff]   ;;  %v948_v3 = vld [vmem:[%s1285_s3 + $0x70] sm:$0xff]   ;;  %v951_v6 = vld [vmem:[%s1285_s3 + $0x68] sm:$0xff]  }
   0x2   :  { %v946_v1 = vld [vmem:[%s1285_s3 + $0x38] sm:$0xff]   ;;  %833 = vmatprep.subr.bf16.mxu0 %v945_v0  ;;  %v949_v4 = vld [vmem:[%s1285_s3 + $0x30] sm:$0xff]   ;;  %v952_v7 = vld [vmem:[%s1285_s3 + $0x28] sm:$0xff]  }
   0x3   :  { %v947_v2 = vld [vmem:[%s1286_s2 + $0x38] sm:$0xff]   ;;  %834 = vmatpush3.bf16.msra.mxu0 %v946_v1  ;;  %v950_v5 = vld [vmem:[%s1286_s2 + $0x30] sm:$0xff]   ;;  %v953_v8 = vld [vmem:[%s1286_s2 + $0x28] sm:$0xff]  }
   0x4   :  { %913 = vmatprep.subr.bf16.mxu1 %v947_v2  ;;  %835 = vmatprep.subr.bf16.mxu0 %v948_v3  ;;  %v954_v9 = vld [vmem:[%s1285_s3 + $0x60] sm:$0xff]   ;;  %v957_v12 = vld [vmem:[%s1285_s3 + $0x58] sm:$0xff]   ;;  %v960_v15 = vld [vmem:[%s1285_s3 + $0x50] sm:$0xff]  }
   0x5   :  { %914 = vmatpush3.bf16.msra.mxu1 %v947_v2  ;;  %v955_v10 = vld [vmem:[%s1285_s3 + $0x20] sm:$0xff]   ;;  %v959_v13 = vld [vmem:[%s1286_s2 + $0x18] sm:$0xff]   ;;  %v962_v16 = vld [vmem:[%s1286_s2 + $0x10] sm:$0xff]  }
   0x6   :  { %915 = vmatprep.subr.bf16.mxu1 %v950_v5  ;;  %v956_v11 = vld [vmem:[%s1286_s2 + $0x20] sm:$0xff]   ;;  %v958_v14 = vld [vmem:[%s1285_s3 + $0x18] sm:$0xff]   ;;  %v961_v17 = vld [vmem:[%s1285_s3 + $0x10] sm:$0xff]  }
   0x7   :  { %836 = vmatpush3.bf16.msra.mxu0 %v949_v4  ;;  %v963_v18 = vld [vmem:[%s1285_s3 + $0x48] sm:$0xff]   ;;  %v966_v21 = vld [vmem:[%s1285_s3 + $0x40] sm:$0xff]   ;;  %v974_v27 = vld [vmem:[%s1287_s1 + $0x14] ss:$8 sps:$4 sm:$0xff]  }
   0x8   :  { %837 = vmatprep.subr.bf16.mxu0 %v951_v6  ;;  %v964_v19 = vld [vmem:[%s1285_s3 + $0x8] sm:$0xff]   ;;  %v968_v22 = vld [vmem:[%s1286_s2] sm:$0xff]   ;;  %v980_v29 = vld [vmem:[%s1288_s0 + $0x10] sm:$0xff]  }
   0x9   :  { %916 = vmatpush3.bf16.msra.mxu1 %v950_v5  ;;  %v965_v20 = vld [vmem:[%s1286_s2 + $0x8] sm:$0xff]   ;;  %v972_v24 = vld [vmem:[%s1288_s0] sm:$0xff]   ;;  %v976_v30 = vld [vmem:[%s1287_s1 + $0x10] ss:$8 sps:$4 sm:$0xff]  }
   0xa   :  { %917 = vmatprep.subr.bf16.mxu1 %v953_v8  ;;  %v971_v23 = vld [vmem:[%s1287_s1 + $0x4] ss:$8 sps:$4 sm:$0xff]   ;;  %929 = vmatprep.mubr.bf16.mxu1 %v972_v24  ;;  %v969_v26 = vld [vmem:[%s1287_s1] ss:$8 sps:$4 sm:$0xff]   ;;  %v981_v32 = vld [vmem:[%s1288_s0 + $0x18] sm:$0xff]  }
   0xb   :  { %838 = vmatpush3.bf16.msra.mxu0 %v952_v7  ;;  %v967_v25 = vld [vmem:[%s1285_s3] sm:$0xff]   ;;  %308 = vmatprep.mubr.bf16.mxu0 %v971_v23  ;;  %v973_v28 = vld [vmem:[%s1288_s0 + $0x8] sm:$0xff]   ;;  %v982_v35 = vld [vmem:[%s1287_s1 + $0x34] ss:$8 sps:$4 sm:$0xff]  }
   0xc   :  { %839 = vmatprep.subr.bf16.mxu0 %v954_v9  ;;  %v977_v31 = vld [vmem:[%s1287_s1 + $0x24] ss:$8 sps:$4 sm:$0xff]   ;;  %v979_v34 = vld [vmem:[%s1287_s1 + $0x20] ss:$8 sps:$4 sm:$0xff]   ;;  %v995_v37 = vld [vmem:[%s1288_s0 + $0x30] sm:$0xff]  }
   0xd   :  { %918 = vmatpush3.bf16.msra.mxu1 %v953_v8  ;;  %v988_v33 = vld [vmem:[%s1288_s0 + $0x20] sm:$0xff]   ;;  %v989_v36 = vld [vmem:[%s1288_s0 + $0x28] sm:$0xff]   ;;  %v984_v38 = vld [vmem:[%s1287_s1 + $0x30] ss:$8 sps:$4 sm:$0xff]  }
   0xe   :  { %919 = vmatprep.subr.bf16.mxu1 %v956_v11  ;;  %v985_v39 = vld [vmem:[%s1287_s1 + $0x44] ss:$8 sps:$4 sm:$0xff]   ;;  %v997_v40 = vld [vmem:[%s1288_s0 + $0x38] sm:$0xff]   ;;  %v987_v41 = vld [vmem:[%s1287_s1 + $0x40] ss:$8 sps:$4 sm:$0xff]  }
   0xf   :  { %840 = vmatpush3.bf16.msra.mxu0 %v955_v10  ;;  %v990_v42 = vld [vmem:[%s1287_s1 + $0x54] ss:$8 sps:$4 sm:$0xff]   ;;  %v992_v43 = vld [vmem:[%s1287_s1 + $0x50] ss:$8 sps:$4 sm:$0xff]   ;;  %v993_v44 = vld [vmem:[%s1287_s1 + $0x64] ss:$8 sps:$4 sm:$0xff]  }
  0x10   :  { %841 = vmatprep.subr.bf16.mxu0 %v957_v12  ;;  %v996_v45 = vld [vmem:[%s1287_s1 + $0x60] ss:$8 sps:$4 sm:$0xff]   ;;  %v998_v46 = vld [vmem:[%s1287_s1 + $0x74] ss:$8 sps:$4 sm:$0xff]   ;;  %v1000_v47 = vld [vmem:[%s1287_s1 + $0x70] ss:$8 sps:$4 sm:$0xff]  }
  0x11   :  { %920 = vmatpush3.bf16.msra.mxu1 %v956_v11 }
  0x12   :  { %921 = vmatprep.subr.bf16.mxu1 %v959_v13 }
  0x13   :  { %842 = vmatpush3.bf16.msra.mxu0 %v958_v14 }
  0x14   :  { %843 = vmatprep.subr.bf16.mxu0 %v960_v15 }
  0x15   :  { %922 = vmatpush3.bf16.msra.mxu1 %v959_v13 }
  0x16   :  { %923 = vmatprep.subr.bf16.mxu1 %v962_v16 }
  0x17   :  { %844 = vmatpush3.bf16.msra.mxu0 %v961_v17 }
  0x18   :  { %845 = vmatprep.subr.bf16.mxu0 %v963_v18 }
  0x19   :  { %924 = vmatpush3.bf16.msra.mxu1 %v962_v16 }
  0x1a   :  { %925 = vmatprep.subr.bf16.mxu1 %v965_v20 }
  0x1b   :  { %846 = vmatpush3.bf16.msra.mxu0 %v964_v19 }
  0x1c   :  { %847 = vmatprep.subr.bf16.mxu0 %v966_v21 }
  0x1d   :  { %926 = vmatpush3.bf16.msra.mxu1 %v965_v20 }
  0x1e   :  { %927 = vmatprep.subr.bf16.mxu1 %v968_v22 }
  0x1f   :  { %848 = vmatpush3.bf16.msra.mxu0 %v967_v25 }
  0x21   :  { %928 = vmatpush3.bf16.msra.mxu1 %v968_v22 }
  0x22   :  { %309 = vmatmul.mubr.bf16.vlgmr.msra.gmra.mxu0 %v969_v26 }
  0x23   :  { %316 = vmatprep.mubr.bf16.mxu0 %v974_v27 }
  0x24   :  { %930 = vmatmul.mubr.bf16.vlgmr.msra.gmra.mxu1 %v973_v28 }
  0x25   :  { %933 = vmatprep.mubr.bf16.mxu1 %v980_v29 }
  0x2a   :  { %317 = vmatmul.mubr.bf16.gmra.mxu0 %v976_v30 }
  0x2b   :  { %324 = vmatprep.mubr.bf16.mxu0 %v977_v31 }
  0x2c   :  { %934 = vmatmul.mubr.bf16.gmra.mxu1 %v981_v32 }
  0x2d   :  { %937 = vmatprep.mubr.bf16.mxu1 %v988_v33 }
  0x32   :  { %325 = vmatmul.mubr.bf16.gmra.mxu0 %v979_v34 }
  0x33   :  { %332 = vmatprep.mubr.bf16.mxu0 %v982_v35 }
  0x34   :  { %938 = vmatmul.mubr.bf16.gmra.mxu1 %v989_v36 }
  0x35   :  { %941 = vmatprep.mubr.bf16.mxu1 %v995_v37 }
  0x3a   :  { %333 = vmatmul.mubr.bf16.gmra.mxu0 %v984_v38 }
  0x3b   :  { %340 = vmatprep.mubr.bf16.mxu0 %v985_v39 }
  0x3c   :  { %942 = vmatmul.mubr.bf16.gmra.mxu1 %v997_v40 }
  0x42   :  { %341 = vmatmul.mubr.bf16.gmra.mxu0 %v987_v41 }
  0x43   :  { %348 = vmatprep.mubr.bf16.mxu0 %v990_v42 }
  0x4a   :  { %349 = vmatmul.mubr.bf16.gmra.mxu0 %v992_v43 }
  0x4b   :  { %356 = vmatprep.mubr.bf16.mxu0 %v993_v44 }
  0x52   :  { %357 = vmatmul.mubr.bf16.gmra.mxu0 %v996_v45 }
  0x53   :  { %364 = vmatprep.mubr.bf16.mxu0 %v998_v46 }
  0x5a   :  { %365 = vmatmul.mubr.bf16.gmra.mxu0 %v1000_v47 }
  0xe2   :  { %v849_v48 = vpop.f32.mrf.mxu0 }
  0xe4   :  { %v850_v49 = vpop.f32.mrf.mxu0  ;;  %v931_v50 = vpop.f32.mrf.mxu1 }
  0xe5   :  { %v851_v51 = vadd.f32 %v850_v49, %v849_v48 }
  0xe6   :  { %v852_v52 = vpop.f32.mrf.mxu0  ;;  %v503_v53 = vpop.f32.mrf.mxu1 }
  0xe7   :  { %v1175_v54 = vadd.f32 %v851_v51, %v503_v53 }
  0xe8   :  { %v853_v55 = vpop.f32.mrf.mxu0  ;;  %v932_v56 = vpop.f32.mrf.mxu1 }
  0xe9   :  { %v817_v57 = vpack.c.bf16 %v1175_v54, %v1175_v54  ;;  %v854_v58 = vadd.f32 %v853_v55, %v852_v52  ;;  %v685_v39 = vmul.f32 %v1175_v54, %v1175_v54  ;;  %v648_v44 = vsel %vm647_vm1, %v1175_v54, 0.0 }
  0xea   :  { %v855_v59 = vpop.f32.mrf.mxu0  ;;  %v506_v60 = vpop.f32.mrf.mxu1 }
  0xeb   :  { %631 = vst.msk [vmem:[%s1289_s4] sm:$0xf] %vm630_vm0, %v817_v57  ;;  %v507_v61 = vadd.f32 %v854_v58, %v506_v60  ;;  %v701_v52 = vsel %vm647_vm1, %v685_v39, 0.0 }
  0xec   :  { %v856_v62 = vpop.f32.mrf.mxu0  ;;  %v935_v63 = vpop.f32.mrf.mxu1 }
  0xed   :  { %v818_v0 = vpack.c.bf16 %v507_v61, %v507_v61  ;;  %v857_v1 = vadd.f32 %v856_v62, %v855_v59  ;;  %v686_v36 = vmul.f32 %v507_v61, %v507_v61  ;;  %v649_v41 = vsel %vm647_vm1, %v507_v61, 0.0 }
  0xee   :  { %v858_v2 = vpop.f32.mrf.mxu0  ;;  %v519_v5 = vpop.f32.mrf.mxu1  ;;  %v650_v53 = vadd.f32 %v649_v41, %v648_v44 }
  0xef   :  { %632 = vst.msk [vmem:[%s1289_s4 + $0x4] sm:$0xf] %vm630_vm0, %v818_v0  ;;  %v512_v3 = vadd.f32 %v931_v50, %v857_v1  ;;  %v702_v48 = vsel %vm647_vm1, %v686_v36, 0.0 }
  0xf0   :  { %v859_v4 = vpop.f32.mrf.mxu0  ;;  %v936_v11 = vpop.f32.mrf.mxu1  ;;  %v703_v59 = vadd.f32 %v702_v48, %v701_v52 }
  0xf1   :  { %v819_v6 = vpack.c.bf16 %v512_v3, %v512_v3  ;;  %v860_v7 = vadd.f32 %v859_v4, %v858_v2  ;;  %v687_v42 = vmul.f32 %v512_v3, %v512_v3  ;;  %v651_v49 = vsel %vm647_vm1, %v512_v3, 0.0 }
  0xf2   :  { %v861_v8 = vpop.f32.mrf.mxu0  ;;  %v522_v17 = vpop.f32.mrf.mxu1  ;;  %v652_v60 = vadd.f32 %v651_v49, %v650_v53 }
  0xf3   :  { %633 = vst.msk [vmem:[%s1289_s4 + $0x8] sm:$0xf] %vm630_vm0, %v819_v6  ;;  %v515_v9 = vadd.f32 %v932_v56, %v860_v7  ;;  %v704_v56 = vsel %vm647_vm1, %v687_v42, 0.0 }
  0xf4   :  { %v862_v10 = vpop.f32.mrf.mxu0  ;;  %v939_v23 = vpop.f32.mrf.mxu1  ;;  %v705_v3 = vadd.f32 %v704_v56, %v703_v59 }
  0xf5   :  { %v820_v12 = vpack.c.bf16 %v515_v9, %v515_v9  ;;  %v863_v13 = vadd.f32 %v862_v10, %v861_v8  ;;  %v688_v45 = vmul.f32 %v515_v9, %v515_v9  ;;  %v653_v57 = vsel %vm647_vm1, %v515_v9, 0.0 }
  0xf6   :  { %v864_v14 = vpop.f32.mrf.mxu0  ;;  %v535_v29 = vpop.f32.mrf.mxu1  ;;  %v654_v4 = vadd.f32 %v653_v57, %v652_v60 }
  0xf7   :  { %634 = vst.msk [vmem:[%s1289_s4 + $0xc] sm:$0xf] %vm630_vm0, %v820_v12  ;;  %v520_v15 = vadd.f32 %v863_v13, %v519_v5  ;;  %v706_v61 = vsel %vm647_vm1, %v688_v45, 0.0 }
  0xf8   :  { %v865_v16 = vpop.f32.mrf.mxu0  ;;  %v940_v35 = vpop.f32.mrf.mxu1  ;;  %v707_v12 = vadd.f32 %v706_v61, %v705_v3 }
  0xf9   :  { %v821_v18 = vpack.c.bf16 %v520_v15, %v520_v15  ;;  %v866_v19 = vadd.f32 %v865_v16, %v864_v14  ;;  %v689_v58 = vmul.f32 %v520_v15, %v520_v15 }
  0xfa   :  { %v867_v20 = vpop.f32.mrf.mxu0  ;;  %v538_v47 = vpop.f32.mrf.mxu1 }
  0xfb   :  { %635 = vst.msk [vmem:[%s1289_s4 + $0x10] sm:$0xf] %vm630_vm0, %v821_v18  ;;  %v523_v21 = vadd.f32 %v866_v19, %v522_v17  ;;  %v708_v7 = vsel %vm647_vm1, %v689_v58, 0.0 }
  0xfc   :  { %v868_v22 = vpop.f32.mrf.mxu0  ;;  %v1227_v6 = vpop.f32.mrf.mxu1  ;;  %v709_v19 = vadd.f32 %v708_v7, %v707_v12 }
  0xfd   :  { %v822_v24 = vpack.c.bf16 %v523_v21, %v523_v21  ;;  %v869_v25 = vadd.f32 %v868_v22, %v867_v20  ;;  %v690_v0 = vmul.f32 %v523_v21, %v523_v21  ;;  %v657_v8 = vsel %vm647_vm1, %v523_v21, 0.0 }
  0xfe   :  { %v870_v26 = vpop.f32.mrf.mxu0  ;;  %v551_v22 = vpop.f32.mrf.mxu1 }
  0xff   :  { %636 = vst.msk [vmem:[%s1289_s4 + $0x14] sm:$0xf] %vm630_vm0, %v822_v24  ;;  %v528_v27 = vadd.f32 %v935_v63, %v869_v25  ;;  %v655_v63 = vsel %vm647_vm1, %v520_v15, 0.0  ;;  %v710_v15 = vsel %vm647_vm1, %v690_v0, 0.0 }
 0x100   :  { %v871_v28 = vpop.f32.mrf.mxu0  ;;  %v944_v39 = vpop.f32.mrf.mxu1 }
 0x101   :  { %v823_v30 = vpack.c.bf16 %v528_v27, %v528_v27  ;;  %v872_v31 = vadd.f32 %v871_v28, %v870_v26  ;;  %v691_v9 = vmul.f32 %v528_v27, %v528_v27  ;;  %v659_v16 = vsel %vm647_vm1, %v528_v27, 0.0 }
 0x102   :  { %v873_v32 = vpop.f32.mrf.mxu0  ;;  %v711_v28 = vadd.f32 %v710_v15, %v709_v19  ;;  %v554_v53 = vpop.f32.mrf.mxu1 }
 0x103   :  { %637 = vst.msk [vmem:[%s1289_s4 + $0x18] sm:$0xf] %vm630_vm0, %v823_v30  ;;  %v531_v33 = vadd.f32 %v936_v11, %v872_v31  ;;  %v656_v11 = vadd.f32 %v655_v63, %v654_v4  ;;  %v712_v24 = vsel %vm647_vm1, %v691_v9, 0.0 }
 0x104   :  { %v874_v34 = vpop.f32.mrf.mxu0 }
 0x105   :  { %v824_v37 = vpack.c.bf16 %v531_v33, %v531_v33  ;;  %v875_v38 = vadd.f32 %v874_v34, %v873_v32  ;;  %v692_v13 = vmul.f32 %v531_v33, %v531_v33  ;;  %v658_v20 = vadd.f32 %v657_v8, %v656_v11 }
 0x106   :  { %v876_v40 = vpop.f32.mrf.mxu0  ;;  %v661_v25 = vsel %vm647_vm1, %v531_v33, 0.0 }
 0x107   :  { %638 = vst.msk [vmem:[%s1289_s4 + $0x1c] sm:$0xf] %vm630_vm0, %v824_v37  ;;  %v536_v43 = vadd.f32 %v875_v38, %v535_v29  ;;  %v660_v29 = vadd.f32 %v659_v16, %v658_v20  ;;  %v714_v27 = vsel %vm647_vm1, %v692_v13, 0.0  ;;  %v713_v37 = vadd.f32 %v712_v24, %v711_v28 }
 0x108   :  { %v877_v46 = vpop.f32.mrf.mxu0 }
 0x109   :  { %v825_v50 = vpack.c.bf16 %v536_v43, %v536_v43  ;;  %v878_v51 = vadd.f32 %v877_v46, %v876_v40  ;;  %v693_v26 = vmul.f32 %v536_v43, %v536_v43  ;;  %v663_v31 = vsel %vm647_vm1, %v536_v43, 0.0 }
 0x10a   :  { %v879_v55 = vpop.f32.mrf.mxu0  ;;  %v662_v38 = vadd.f32 %v661_v25, %v660_v29  ;;  %v715_v43 = vadd.f32 %v714_v27, %v713_v37 }
 0x10b   :  { %639 = vst.msk [vmem:[%s1289_s4 + $0x20] sm:$0xf] %vm630_vm0, %v825_v50  ;;  %v539_v54 = vadd.f32 %v878_v51, %v538_v47  ;;  %v716_v40 = vsel %vm647_vm1, %v693_v26, 0.0 }
 0x10c   :  { %v880_v62 = vpop.f32.mrf.mxu0  ;;  %v664_v44 = vadd.f32 %v663_v31, %v662_v38  ;;  %v717_v51 = vadd.f32 %v716_v40, %v715_v43 }
 0x10d   :  { %v826_v1 = vpack.c.bf16 %v539_v54, %v539_v54  ;;  %v881_v2 = vadd.f32 %v880_v62, %v879_v55  ;;  %v694_v32 = vmul.f32 %v539_v54, %v539_v54  ;;  %v665_v41 = vsel %vm647_vm1, %v539_v54, 0.0 }
 0x10e   :  { %v882_v5 = vpop.f32.mrf.mxu0  ;;  %v666_v52 = vadd.f32 %v665_v41, %v664_v44 }
 0x10f   :  { %640 = vst.msk [vmem:[%s1289_s4 + $0x24] sm:$0xf] %vm630_vm0, %v826_v1  ;;  %v544_v10 = vadd.f32 %v939_v23, %v881_v2  ;;  %v718_v47 = vsel %vm647_vm1, %v694_v32, 0.0 }
 0x110   :  { %v883_v14 = vpop.f32.mrf.mxu0  ;;  %v719_v59 = vadd.f32 %v718_v47, %v717_v51 }
 0x111   :  { %v827_v17 = vpack.c.bf16 %v544_v10, %v544_v10  ;;  %v884_v18 = vadd.f32 %v883_v14, %v882_v5  ;;  %v695_v42 = vmul.f32 %v544_v10, %v544_v10  ;;  %v667_v48 = vsel %vm647_vm1, %v544_v10, 0.0 }
 0x112   :  { %v885_v21 = vpop.f32.mrf.mxu0  ;;  %v668_v60 = vadd.f32 %v667_v48, %v666_v52 }
 0x113   :  { %641 = vst.msk [vmem:[%s1289_s4 + $0x28] sm:$0xf] %vm630_vm0, %v827_v17  ;;  %v547_v23 = vadd.f32 %v940_v35, %v884_v18  ;;  %v720_v56 = vsel %vm647_vm1, %v695_v42, 0.0 }
 0x114   :  { %v886_v30 = vpop.f32.mrf.mxu0  ;;  %v721_v3 = vadd.f32 %v720_v56, %v719_v59 }
 0x115   :  { %v828_v34 = vpack.c.bf16 %v547_v23, %v547_v23  ;;  %v887_v36 = vadd.f32 %v886_v30, %v885_v21  ;;  %v696_v45 = vmul.f32 %v547_v23, %v547_v23  ;;  %v669_v57 = vsel %vm647_vm1, %v547_v23, 0.0 }
 0x116   :  { %v888_v33 = vpop.f32.mrf.mxu0  ;;  %v670_v4 = vadd.f32 %v669_v57, %v668_v60 }
 0x117   :  { %642 = vst.msk [vmem:[%s1289_s4 + $0x2c] sm:$0xf] %vm630_vm0, %v828_v34  ;;  %v552_v35 = vadd.f32 %v887_v36, %v551_v22  ;;  %v722_v61 = vsel %vm647_vm1, %v696_v45, 0.0  ;;  %v738_v34 = vlaneseq }
 0x118   :  { %v889_v46 = vpop.f32.mrf.mxu0  ;;  %v723_v11 = vadd.f32 %v722_v61, %v721_v3 }
 0x119   :  { %v829_v49 = vpack.c.bf16 %v552_v35, %v552_v35  ;;  %v890_v50 = vadd.f32 %v889_v46, %v888_v33  ;;  %v697_v58 = vmul.f32 %v552_v35, %v552_v35  ;;  %v671_v63 = vsel %vm647_vm1, %v552_v35, 0.0 }
 0x11a   :  { %v891_v55 = vpop.f32.mrf.mxu0  ;;  %v672_v10 = vadd.f32 %v671_v63, %v670_v4 }
 0x11b   :  { %643 = vst.msk [vmem:[%s1289_s4 + $0x30] sm:$0xf] %vm630_vm0, %v829_v49  ;;  %v555_v54 = vadd.f32 %v890_v50, %v554_v53  ;;  %v724_v7 = vsel %vm647_vm1, %v697_v58, 0.0 }
 0x11c   :  { %v892_v62 = vpop.f32.mrf.mxu0  ;;  %v725_v18 = vadd.f32 %v724_v7, %v723_v11 }
 0x11d   :  { %v830_v0 = vpack.c.bf16 %v555_v54, %v555_v54  ;;  %v698_v1 = vmul.f32 %v555_v54, %v555_v54  ;;  %v893_v2 = vadd.f32 %v892_v62, %v891_v55  ;;  %v673_v8 = vsel %vm647_vm1, %v555_v54, 0.0 }
 0x11e   :  { %v894_v5 = vpop.f32.mrf.mxu0  ;;  %v674_v19 = vadd.f32 %v673_v8, %v672_v10 }
 0x11f   :  { %644 = vst.msk [vmem:[%s1289_s4 + $0x34] sm:$0xf] %vm630_vm0, %v830_v0  ;;  %v560_v9 = vadd.f32 %v1227_v6, %v893_v2  ;;  %v726_v12 = vsel %vm647_vm1, %v698_v1, 0.0 }
 0x120   :  { %v895_v13 = vpop.f32.mrf.mxu0  ;;  %v727_v21 = vadd.f32 %v726_v12, %v725_v18 }
 0x121   :  { %v831_v14 = vpack.c.bf16 %v560_v9, %v560_v9  ;;  %v675_v15 = vsel %vm647_vm1, %v560_v9, 0.0  ;;  %v699_v16 = vmul.f32 %v560_v9, %v560_v9  ;;  %v896_v17 = vadd.f32 %v895_v13, %v894_v5 }
 0x122   :  { %v676_v22 = vadd.f32 %v675_v15, %v674_v19 }
 0x123   :  { %645 = vst.msk [vmem:[%s1289_s4 + $0x38] sm:$0xf] %vm630_vm0, %v831_v14  ;;  %v728_v20 = vsel %vm647_vm1, %v699_v16, 0.0  ;;  %v563_v6 = vadd.f32 %v944_v39, %v896_v17  ;;  %v739_v39 = vshrl.u32 %v738_v34, 7 }
 0x124   :  { %v729_v23 = vadd.f32 %v728_v20, %v727_v21 }
 0x125   :  { %v832_v24 = vpack.c.bf16 %v563_v6, %v563_v6  ;;  %v677_v25 = vsel %vm647_vm1, %v563_v6, 0.0  ;;  %v700_v26 = vmul.f32 %v563_v6, %v563_v6  ;;  %vm741_vm2 = vcmp.eq.s32.totalorder %v739_v39, 1 }
 0x126   :  { %v678_v28 = vadd.f32 %v677_v25, %v676_v22  ;;  %vm740_vm3 = vcmp.eq.s32.totalorder %v739_v39, 0 }
 0x127   :  { %646 = vst.msk [vmem:[%s1289_s4 + $0x3c] sm:$0xf] %vm630_vm0, %v832_v24  ;;  %v730_v29 = vsel %vm647_vm1, %v700_v26, 0.0 }
 0x128   :  { %v679_v27 = vrot.slane %v678_v28, 4  ;;  %v731_v30 = vadd.f32 %v730_v29, %v729_v23 }
 0x12a   :  { %v680_v31 = vadd.f32 %v679_v27, %v678_v28  ;;  %v732_v32 = vrot.slane %v731_v30, 4 }
 0x12c   :  { %v681_v36 = vrot.slane %v680_v31, 2  ;;  %v733_v37 = vadd.f32 %v732_v32, %v731_v30 }
 0x12e   :  { %v682_v38 = vadd.f32 %v681_v36, %v680_v31  ;;  %v734_v33 = vrot.slane %v733_v37, 2 }
 0x130   :  { %v735_v40 = vadd.f32 %v734_v33, %v733_v37  ;;  %v683_v41 = vrot.slane %v682_v38, 1 }
 0x132   :  { %v736_v42 = vrot.slane %v735_v40, 1  ;;  %v684_v44 = vadd.f32 %v683_v41, %v682_v38 }
 0x134   :  { %v737_v35 = vadd.f32 %v736_v42, %v735_v40 }
 0x136   :  { %v742_v43 = vsel %vm741_vm2, %v737_v35, 0.0 }
 0x137   :  { %v743_v45 = vsel %vm740_vm3, %v684_v44, %v742_v43 }
 0x138   :  { %744 = vst.msk [vmem:[%s1290_s5] sm:$0xff] %vm647_vm1, %v743_v45 }

// kernel: merge_forward.15
= control target key start
LH: loop header
LB: loop body
LE: loop exit
PB: predicated region body
PF: predicated region fallthrough
CT: control target
= control target key end

     0   :  { %s222_s0 = inlined_call_operand.vmem [shape: bf16[64,128], index: 0, kind: input, shape index: {}]   ;;  %s223_s1 = inlined_call_operand.vmem [shape: f32[1,128], index: 1, kind: input, shape index: {}]   ;;  %s224_s2 = inlined_call_operand.vmem [shape: f32[1,128], index: 2, kind: input, shape index: {}]   ;;  %s225_s3 = inlined_call_operand.vmem [shape: bf16[64,128], index: 3, kind: output, shape index: {}]  }
   0x1   :  { %v131_v0 = vld [vmem:[%s222_s0] sm:$0xff]   ;;  %v166_v4 = vld [vmem:[%s222_s0 + $0x8] sm:$0xff]   ;;  %v167_v5 = vld [vmem:[%s222_s0 + $0x10] sm:$0xff]  }
   0x2   :  { %v112_v1 = vld [vmem:[%s223_s1] ss:$0 sm:$0xff]  ;;  %v132_v2 = vunpack.c.l.bf16 %v131_v0  ;;  %v133_v3 = vunpack.c.h.bf16 %v131_v0  ;;  %v168_v6 = vld [vmem:[%s222_s0 + $0x18] sm:$0xff]   ;;  %v136_v8 = vunpack.c.l.bf16 %v166_v4  ;;  %v137_v9 = vunpack.c.h.bf16 %v166_v4 }
   0x3   :  { %v113_v7 = vld [vmem:[%s224_s2] ss:$0 sm:$0xff]  ;;  %v140_v10 = vunpack.c.l.bf16 %v167_v5  ;;  %v141_v11 = vunpack.c.h.bf16 %v167_v5  ;;  %v144_v14 = vunpack.c.l.bf16 %v168_v6  ;;  %v145_v15 = vunpack.c.h.bf16 %v168_v6 }
   0x4   :  { %v37_v12 = vmul.f32 %v132_v2, %v112_v1  ;;  %v38_v13 = vmul.f32 %v133_v3, %v112_v1  ;;  %v39_v16 = vmul.f32 %v136_v8, %v112_v1  ;;  %v40_v17 = vmul.f32 %v137_v9, %v112_v1 }
   0x5   :  { %v41_v18 = vmul.f32 %v140_v10, %v112_v1  ;;  %v42_v19 = vmul.f32 %v141_v11, %v112_v1  ;;  %v43_v22 = vmul.f32 %v144_v14, %v112_v1  ;;  %v44_v23 = vmul.f32 %v145_v15, %v112_v1 }
   0x6   :  { %v52_v20 = vadd.f32 %v113_v7, %v37_v12  ;;  %v53_v21 = vadd.f32 %v113_v7, %v38_v13  ;;  %v54_v24 = vadd.f32 %v113_v7, %v39_v16  ;;  %v55_v25 = vadd.f32 %v113_v7, %v40_v17 }
   0x7   :  { %v56_v26 = vadd.f32 %v113_v7, %v41_v18  ;;  %v57_v27 = vadd.f32 %v113_v7, %v42_v19  ;;  %v58_v30 = vadd.f32 %v113_v7, %v43_v22  ;;  %v59_v31 = vadd.f32 %v113_v7, %v44_v23 }
   0x8   :  { %v60_v28 = vmax.f32 %v52_v20, 0.0  ;;  %v61_v29 = vmax.f32 %v53_v21, 0.0  ;;  %v62_v32 = vmax.f32 %v54_v24, 0.0  ;;  %v63_v33 = vmax.f32 %v55_v25, 0.0 }
   0x9   :  { %v64_v34 = vmax.f32 %v56_v26, 0.0  ;;  %v65_v35 = vmax.f32 %v57_v27, 0.0  ;;  %v66_v37 = vmax.f32 %v58_v30, 0.0  ;;  %v67_v38 = vmax.f32 %v59_v31, 0.0 }
   0xa   :  { %v149_v36 = vpack.c.bf16 %v61_v29, %v60_v28  ;;  %v154_v39 = vpack.c.bf16 %v63_v33, %v62_v32 }
   0xb   :  { %v159_v40 = vpack.c.bf16 %v65_v35, %v64_v34  ;;  %v164_v41 = vpack.c.bf16 %v67_v38, %v66_v37 }
   0xc   :  { %150 = vst [vmem:[%s225_s3] sm:$0xff] %v149_v36   ;;  %169 = vst [vmem:[%s225_s3 + $0x8] sm:$0xff] %v154_v39  }
   0xd   :  { %170 = vst [vmem:[%s225_s3 + $0x10] sm:$0xff] %v159_v40   ;;  %171 = vst [vmem:[%s225_s3 + $0x18] sm:$0xff] %v164_v41  }

// kernel: merge_forward.14
= control target key start
LH: loop header
LB: loop body
LE: loop exit
PB: predicated region body
PF: predicated region fallthrough
CT: control target
= control target key end

     0   :  { %s2724_s24 = smov 0   ;;  %s3521_s0 = inlined_call_operand.vmem [shape: bf16[2,108,64], index: 0, kind: input, shape index: {}]   ;;  %s3522_s1 = inlined_call_operand.vmem [shape: f32[1,64], index: 1, kind: input, shape index: {}]   ;;  %s3523_s2 = inlined_call_operand.vmem [shape: f32[1,64], index: 2, kind: input, shape index: {}]   ;;  %s3524_s3 = inlined_call_operand.vmem [shape: f32[1,108,1], index: 3, kind: input, shape index: {}]   ;;  %s3525_s4 = inlined_call_operand.vmem [shape: f32[1,80,1], index: 4, kind: input, shape index: {}]   ;;  %s3526_s5 = inlined_call_operand.vmem [shape: bf16[9,64,64], index: 5, kind: input, shape index: {}]   ;;  %s3527_s6 = inlined_call_operand.vmem [shape: bf16[2,80,64], index: 6, kind: output, shape index: {0}]   ;;  %s3528_s7 = inlined_call_operand.vmem [shape: f32[2,8,64], index: 7, kind: output, shape index: {1}]  }
   0x1 LB: > { %s2075_s25 = sadd.s32 4294967295, %s2679_s24   ;;  %p2079_p0 = scmp.ge.s32.totalorder %s2679_s24, 1  ;;  %s2679_s24 = sphi %s2724_s24, %s18_s24  }
   0x2   : > { %p240_p1 = scmp.lt.s32.totalorder %s2679_s24, 3 }
   0x4   : > { %p241_p2 = pnand %p2079_p0, %p240_p1 }
   0x5   : > { %p276_p3 = scmp.lt.s32.totalorder (!%p241_p2), %s2075_s25, 1 }
   0x6   : > { %244 = sbr.rel (%p241_p2) target bundleno = 551 (0x227), region = 44 }
   0xb   : > { %v381_v0 = vld [vmem:[%s3524_s3 + $0x30] sm:$0xff]  ;;  %v379_v1 = vld [vmem:[%s3524_s3 + $0x20] sm:$0xff]  ;;  %v2681_v2 = vmov 0   ;;  %v382_v3 = vld [vmem:[%s3524_s3 + $0x38] sm:$0xff]  ;;  %v2682_v5 = vmov 0.0   ;;  %s3530_s25 = smov (!%p276_p3, %s2075_s25), 1 }
   0xc   : > { %2636 = vset.pattern.permute.xlu1 %v2681_v2  ;;  %2635 = vset.pattern.permute.xlu0 %v2681_v2  ;;  %v380_v4 = vld [vmem:[%s3524_s3 + $0x28] sm:$0xff]  ;;  %v375_v7 = vld [vmem:[%s3524_s3] sm:$0xff]  ;;  %v2637_v8 = vld [vmem:[%s3526_s5 + $0x38] sm:$0xff]   ;;  %s2622_s23 = smul.u32 56, %s3530_s25  ;;  %vm2683_vm0 = vmmov 0   ;;  %vm920_vm1 = vcmask 1042432  }
   0xd   : > { %421 = vperm.xlu1 %2636, %v381_v0   ;;  %411 = vperm.xlu0 %2635, %v379_v1   ;;  %v376_v6 = vld [vmem:[%s3524_s3 + $0x8] sm:$0xff]  ;;  %v383_v10 = vld [vmem:[%s3524_s3 + $0x40] sm:$0xff]  ;;  %v2638_v11 = vld [vmem:[%s3526_s5 + $0x30] sm:$0xff]   ;;  %vm497_vm2 = vsmask.f32 7424  ;;  %vm566_vm3 = vcmask 523264  }
   0xe   : > { %2614 = vmatprep.subr.bf16.mxu1 %v2682_v5  ;;  %2362 = vmatprep.subr.bf16.mxu0 %v2682_v5  ;;  %v384_v9 = vld [vmem:[%s3524_s3 + $0x48] sm:$0xff]  ;;  %v378_v12 = vld [vmem:[%s3524_s3 + $0x18] sm:$0xff]  ;;  %v377_v13 = vld [vmem:[%s3524_s3 + $0x10] sm:$0xff]  ;;  %s2785_s11 = scalar_lea.vmem %s3521_s0, %s2622_s23  ;;  %vm1063_vm4 = vsmask.f32 2304  ;;  %vm777_vm5 = vcmask 1046528  }
   0xf   : > { %2618 = vmatpush3.bf16.msra.mxu1 %v2637_v8  ;;  %2363 = vmatpush3.bf16.msra.mxu0 %v2637_v8  ;;  %v2639_v14 = vld [vmem:[%s3526_s5 + $0x28] sm:$0xff]   ;;  %v386_v15 = vld [vmem:[%s3524_s3 + $0x58] sm:$0xff]  ;;  %v304_v16 = vld [vmem:[%s2785_s11 + $0x34] sm:$0x3]  ;;  %vm1220_vm6 = vcmask 1041408   ;;  %vm1364_vm7 = vcmask 1045504  }
  0x10   : > { %2615 = vmatprep.subr.bf16.mxu1 %v2682_v5  ;;  %2364 = vmatprep.subr.bf16.mxu0 %v2682_v5  ;;  %v303_v17 = vld [vmem:[%s2785_s11 + $0x30] sm:$0xf]  ;;  %v2640_v19 = vld [vmem:[%s3526_s5 + $0x20] sm:$0xff]   ;;  %v388_v21 = vld [vmem:[%s3524_s3 + $0x68] sm:$0xf]  ;;  %v318_v22 = vunpack.c.l.bf16 %v304_v16  ;;  %vm1667_vm8 = vcmask 1044480  }
  0x11   : > { %426 = vperm.xlu1 %2636, %v382_v3   ;;  %416 = vperm.xlu0 %2635, %v380_v4   ;;  %v385_v18 = vld [vmem:[%s3524_s3 + $0x50] sm:$0xff]  ;;  %v2803_v20 = vld [vmem:[%s3522_s1] ss:$0 sm:$0xff]  ;;  %v317_v23 = vunpack.c.l.bf16 %v303_v17  ;;  %v1853_v30 = vld [vmem:[%s3525_s4 + $0x8] sm:$0xff]  ;;  %vm1507_vm9 = vsmask.f32 5376 }
  0x12   : > { %2378 = vmatprep.mubr.msk.bf16.mxu1 %vm2683_vm0, %v2682_v5  ;;  %2370 = vmatprep.mubr.msk.bf16.mxu0 %vm2683_vm0, %v2682_v5  ;;  %v387_v24 = vld [vmem:[%s3524_s3 + $0x60] sm:$0xff]  ;;  %v339_v25 = vmul.f32 %v2803_v20, %v318_v22  ;;  %v1855_v32 = vld [vmem:[%s3525_s4 + $0x18] sm:$0xff]  ;;  %v1854_v33 = vld [vmem:[%s3525_s4 + $0x10] sm:$0xff]  ;;  %s2623_s28 = smul.u32 40, %s3530_s25  ;;  %vm1841_vm10 = vcmask 519168   ;;  %s2082_s9 = sshll.u32 %s3530_s25, 3 }
  0x13   : > { %2619 = vmatpush3.bf16.msra.mxu1 %v2638_v11  ;;  %2365 = vmatpush3.bf16.msra.mxu0 %v2638_v11  ;;  %v338_v26 = vmul.f32 %v2803_v20, %v317_v23  ;;  %v2818_v27 = vld [vmem:[%s3523_s2] ss:$0 sm:$0xff]  ;;  %v1857_v34 = vld [vmem:[%s3525_s4 + $0x28] sm:$0xff]  ;;  %v1859_v36 = vld [vmem:[%s3525_s4 + $0x38] sm:$0xff]  ;;  %s289_s13 = scalar_lea.vmem %s3528_s7, %s2082_s9 }
  0x14   : > { %2616 = vmatprep.subr.bf16.mxu1 %v2682_v5  ;;  %2366 = vmatprep.subr.bf16.mxu0 %v2682_v5  ;;  %v2822_v28 = vadd.f32 %v2818_v27, %v339_v25  ;;  %v1852_v31 = vld [vmem:[%s3525_s4] sm:$0xff]  ;;  %v1858_v37 = vld [vmem:[%s3525_s4 + $0x30] sm:$0xff]  ;;  %v1861_v38 = vld [vmem:[%s3525_s4 + $0x48] sm:$0xff]  ;;  %s3453_s8 = scalar_lea.vmem %s3527_s6, %s2623_s28 }
  0x15   : > { %396 = vperm.xlu1 %2636, %v376_v6   ;;  %391 = vperm.xlu0 %2635, %v375_v7   ;;  %v2825_v29 = vadd.f32 %v2818_v27, %v338_v26  ;;  %v1856_v35 = vld [vmem:[%s3525_s4 + $0x20] sm:$0xff]  ;;  %v2278_v40 = vld [vmem:[%s2785_s11 + $0x18] sm:$0xff]   ;;  %v2277_v41 = vld [vmem:[%s2785_s11 + $0x10] sm:$0xff]  }
  0x16   : > { %v1860_v39 = vld [vmem:[%s3525_s4 + $0x40] sm:$0xff]  ;;  %v2266_v42 = vunpack.c.l.bf16 %v2278_v40  ;;  %v2262_v43 = vunpack.c.l.bf16 %v2277_v41  ;;  %v2267_v44 = vunpack.c.h.bf16 %v2278_v40  ;;  %v2263_v45 = vunpack.c.h.bf16 %v2277_v41  ;;  %v2276_v54 = vld [vmem:[%s2785_s11 + $0x8] sm:$0xff]  }
  0x17   : > { %2620 = vmatpush3.bf16.msra.mxu1 %v2639_v14  ;;  %2367 = vmatpush3.bf16.msra.mxu0 %v2639_v14  ;;  %v2253_v46 = vld [vmem:[%s2785_s11] sm:$0xff]   ;;  %v2259_v63 = vunpack.c.h.bf16 %v2276_v54  ;;  %v2258_v0 = vunpack.c.l.bf16 %v2276_v54  ;;  %v2280_v1 = vld [vmem:[%s2785_s11 + $0x28] sm:$0xff]  }
  0x18   : > { %2617 = vmatprep.subr.bf16.mxu1 %v2682_v5  ;;  %2368 = vmatprep.subr.bf16.mxu0 %v2682_v5  ;;  %v2255_v47 = vunpack.c.h.bf16 %v2253_v46  ;;  %v2254_v48 = vunpack.c.l.bf16 %v2253_v46  ;;  %v332_v49 = vmul.f32 %v2266_v42, %v2803_v20  ;;  %v330_v50 = vmul.f32 %v2262_v43, %v2803_v20  ;;  %v2279_v53 = vld [vmem:[%s2785_s11 + $0x20] sm:$0xff]  }
  0x19   : > { %436 = vperm.xlu1 %2636, %v384_v9   ;;  %431 = vperm.xlu0 %2635, %v383_v10   ;;  %v333_v51 = vmul.f32 %v2267_v44, %v2803_v20  ;;  %v331_v52 = vmul.f32 %v2263_v45, %v2803_v20  ;;  %v2271_v57 = vunpack.c.h.bf16 %v2279_v53  ;;  %v2270_v58 = vunpack.c.l.bf16 %v2279_v53 }
  0x1a   : > { %v327_v55 = vmul.f32 %v2255_v47, %v2803_v20  ;;  %v326_v56 = vmul.f32 %v2254_v48, %v2803_v20  ;;  %v353_v59 = vadd.f32 %v2818_v27, %v332_v49  ;;  %v351_v60 = vadd.f32 %v2818_v27, %v330_v50 }
  0x1b   : > { %2621 = vmatpush3.bf16.msra.mxu1 %v2640_v19  ;;  %2369 = vmatpush3.bf16.msra.mxu0 %v2640_v19  ;;  %v354_v61 = vadd.f32 %v2818_v27, %v333_v51  ;;  %v352_v62 = vadd.f32 %v2818_v27, %v331_v52  ;;  %v335_v7 = vmul.f32 %v2271_v57, %v2803_v20  ;;  %v2274_v16 = vunpack.c.l.bf16 %v2280_v1 }
  0x1c   : > { %2390 = vmatprep.subr.bf16.mxu1 %v2682_v5  ;;  %2418 = vmatprep.subr.bf16.mxu0 %v2682_v5  ;;  %v348_v4 = vadd.f32 %v2818_v27, %v327_v55  ;;  %v347_v6 = vadd.f32 %v2818_v27, %v326_v56  ;;  %v334_v8 = vmul.f32 %v2270_v58, %v2803_v20  ;;  %v367_v9 = vmax.f32 %v353_v59, 0.0 }
  0x1d   : > { %406 = vperm.xlu1 %2636, %v378_v12   ;;  %401 = vperm.xlu0 %2635, %v377_v13   ;;  %v365_v10 = vmax.f32 %v351_v60, 0.0  ;;  %v368_v11 = vmax.f32 %v354_v61, 0.0  ;;  %v366_v12 = vmax.f32 %v352_v62, 0.0  ;;  %v329_v13 = vmul.f32 %v2259_v63, %v2803_v20  ;;  %v2641_v61 = vld [vmem:[%s3526_s5 + $0x18] sm:$0xff]  }
  0x1e   : > { %v328_v14 = vmul.f32 %v2258_v0, %v2803_v20  ;;  %v362_v19 = vmax.f32 %v348_v4, 0.0  ;;  %v356_v22 = vadd.f32 %v2818_v27, %v335_v7  ;;  %v355_v23 = vadd.f32 %v2818_v27, %v334_v8 }
  0x20   : > { %v369_v40 = vmax.f32 %v355_v23, 0.0 }
  0x21   : > { %446 = vperm.xlu1 %2636, %v386_v15   ;;  %441 = vperm.xlu0 %2635, %v385_v18   ;;  %v2275_v15 = vunpack.c.h.bf16 %v2280_v1 }
  0x25   : > { %456 = vperm.xlu1 %2636, %v388_v21   ;;  %451 = vperm.xlu0 %2635, %v387_v24   ;;  %v361_v21 = vmax.f32 %v347_v6, 0.0 }
  0x29   : > { %1869 = vperm.xlu1 %2636, %v1853_v30   ;;  %1864 = vperm.xlu0 %2635, %v1852_v31   ;;  %v350_v31 = vadd.f32 %v2818_v27, %v329_v13 }
  0x2b   : > { %v364_v45 = vmax.f32 %v350_v31, 0.0 }
  0x2d   : > { %1879 = vperm.xlu1 %2636, %v1855_v32   ;;  %1874 = vperm.xlu0 %2635, %v1854_v33   ;;  %v349_v32 = vadd.f32 %v2818_v27, %v328_v14  ;;  %v337_v33 = vmul.f32 %v2275_v15, %v2803_v20 }
  0x2f   : > { %v363_v46 = vmax.f32 %v349_v32, 0.0 }
  0x31   : > { %1889 = vperm.xlu1 %2636, %v1857_v34   ;;  %1884 = vperm.xlu0 %2635, %v1856_v35  }
  0x35   : > { %1899 = vperm.xlu1 %2636, %v1859_v36   ;;  %1894 = vperm.xlu0 %2635, %v1858_v37   ;;  %v336_v36 = vmul.f32 %v2274_v16, %v2803_v20  ;;  %v358_v20 = vadd.f32 %v2818_v27, %v337_v33 }
  0x37   : > { %v357_v50 = vadd.f32 %v2818_v27, %v336_v36  ;;  %v372_v4 = vmax.f32 %v358_v20, 0.0 }
  0x39   : > { %1909 = vperm.xlu1 %2636, %v1861_v38   ;;  %1904 = vperm.xlu0 %2635, %v1860_v39   ;;  %v370_v39 = vmax.f32 %v356_v22, 0.0  ;;  %v373_v22 = vmax.f32 %v2825_v29, 0.0 }
  0x88   : > { %v422_v2 = vpop.permute.xlu1 %421  ;;  %v412_v3 = vpop.permute.xlu0 %411 }
  0x89   : > { %v465_v24 = vmul.f32 %v422_v2, %v367_v9  ;;  %v463_v25 = vmul.f32 %v412_v3, %v365_v10  ;;  %v371_v10 = vmax.f32 %v357_v50, 0.0 }
  0x8c   : > { %v427_v17 = vpop.permute.xlu1 %426  ;;  %v417_v18 = vpop.permute.xlu0 %416 }
  0x8d   : > { %v466_v26 = vmul.f32 %v427_v17, %v368_v11  ;;  %v464_v30 = vmul.f32 %v417_v18, %v366_v12  ;;  %v2642_v11 = vld [vmem:[%s3526_s5 + $0x10] sm:$0xff]   ;;  %v374_v17 = vmax.f32 %v2822_v28, 0.0  ;;  %v2644_v28 = vld [vmem:[%s3526_s5 + $0x8] sm:$0xff]  }
  0x8f   : > { %v2885_v34 = vpack.c.bf16 %v466_v26, %v465_v24  ;;  %v2887_v35 = vpack.c.bf16 %v464_v30, %v463_v25 }
  0x90   : > { %v397_v37 = vpop.permute.xlu1 %396  ;;  %v392_v38 = vpop.permute.xlu0 %391 }
  0x91   : > { %v460_v41 = vmul.f32 %v397_v37, %v362_v19  ;;  %v459_v42 = vmul.f32 %v392_v38, %v361_v21  ;;  %v2891_v43 = vshll.u32 %v2887_v35, 16  ;;  %v2894_v44 = vshrl.u32 %v2887_v35, 16 }
  0x92   : > { %v2897_v47 = vshll.u32 %v2885_v34, 16  ;;  %v2906_v54 = vshrl.u32 %v2885_v34, 16  ;;  %v924_v55 = vrot.slane %v2887_v35, 5  ;;  %v926_v57 = vrot.slane %v2885_v34, 5 }
  0x93   : > { %v2900_v48 = vpack.c.bf16 %v460_v41, %v459_v42  ;;  %v516_v49 = vrot.slane %v2891_v43, 1  ;;  %v1071_v51 = vrot.slane %v2894_v44, 5  ;;  %v1072_v56 = vrot.slane %v2891_v43, 6 }
  0x94   : > { %v437_v52 = vpop.permute.xlu1 %436  ;;  %v432_v53 = vpop.permute.xlu0 %431  ;;  %v524_v27 = vrot.slane %v2897_v47, 1  ;;  %v2930_v6 = vsel %vm920_vm1, %v924_v55, %v926_v57  ;;  %v1075_v7 = vrot.slane %v2906_v54, 5  ;;  %v1076_v15 = vrot.slane %v2897_v47, 6 }
  0x95   : > { %v468_v58 = vmul.f32 %v437_v52, %v370_v39  ;;  %v467_v59 = vmul.f32 %v432_v53, %v369_v40  ;;  %v520_v60 = vor.u32 %v2894_v44, %v516_v49  ;;  %v501_v62 = vshll.u32 %v2900_v48, 16  ;;  %v2643_v40 = vld [vmem:[%s3526_s5 + $0x58] sm:$0xff]  }
  0x96   : > { %v2922_v1 = vor.u32 %v1072_v56, %v1071_v51  ;;  %v499_v23 = vshrl.u32 %v2900_v48, 16  ;;  %v1077_v24 = vor.u32 %v1076_v15, %v1075_v7  ;;  %v528_v30 = vor.u32 %v2906_v54, %v524_v27  ;;  %v2646_v56 = vld [vmem:[%s3526_s5] sm:$0xff]  }
  0x97   : > { %v2919_v63 = vpack.c.bf16 %v468_v58, %v467_v59  ;;  %v525_v0 = vsel %vm497_vm2, %v520_v60, %v524_v27  ;;  %v503_v13 = vrot.slane %v501_v62, 1  ;;  %v778_v60 = vrot.slane %v2900_v48, 1 }
  0x98   : > { %v407_v2 = vpop.permute.xlu1 %406  ;;  %v402_v3 = vpop.permute.xlu0 %401  ;;  %2379 = vmatmul.mubr.msk.bf16.vlgmr.msra.gmra.mxu1 %vm566_vm3, %v525_v0  ;;  %v2976_v41 = vsel %vm1063_vm4, %v2922_v1, %v1077_v24 }
  0x99   : > { %v462_v8 = vmul.f32 %v407_v2, %v364_v45  ;;  %v461_v9 = vmul.f32 %v402_v3, %v363_v46  ;;  %2391 = vmatpush3.bf16.msra.mxu1 %v2641_v61  ;;  %2382 = vmatprep.mubr.msk.bf16.mxu1 %vm2683_vm0, %v2682_v5  ;;  %v2939_v12 = vshll.u32 %v2919_v63, 16  ;;  %v2945_v14 = vshrl.u32 %v2919_v63, 16  ;;  %v2645_v61 = vld [vmem:[%s3526_s5 + $0x50] sm:$0xff]  }
  0x9a   : > { %2392 = vmatprep.subr.bf16.mxu1 %v2682_v5  ;;  %v504_v32 = vor.u32 %v503_v13, %v499_v23  ;;  %v928_v29 = vrot.slane %v2919_v63, 5 }
  0x9b   : > { %v2948_v16 = vpack.c.bf16 %v462_v8, %v461_v9  ;;  %v532_v18 = vrot.slane %v2939_v12, 1  ;;  %v1079_v33 = vrot.slane %v2945_v14, 5  ;;  %v1080_v36 = vrot.slane %v2939_v12, 6 }
  0x9c   : > { %v447_v19 = vpop.permute.xlu1 %446  ;;  %v442_v21 = vpop.permute.xlu0 %441  ;;  %v3008_v2 = vsel %vm920_vm1, %v926_v57, %v928_v29  ;;  %v1221_v8 = vrot.slane %v2900_v48, 6 }
  0x9d   : > { %v470_v25 = vmul.f32 %v447_v19, %v372_v4  ;;  %v469_v26 = vmul.f32 %v442_v21, %v371_v10  ;;  %2393 = vmatpush3.bf16.msra.mxu1 %v2642_v11  ;;  %v2956_v31 = vshll.u32 %v2948_v16, 16  ;;  %v533_v38 = vsel %vm497_vm2, %v528_v30, %v532_v18 }
  0x9e   : > { %2394 = vmatprep.subr.bf16.mxu1 %v2682_v5  ;;  %v2980_v46 = vshrl.u32 %v2948_v16, 16  ;;  %v779_v20 = vrot.slane %v2948_v16, 1  ;;  %v536_v58 = vor.u32 %v2945_v14, %v532_v18  ;;  %v1081_v3 = vor.u32 %v1080_v36, %v1079_v33  ;;  %v2647_v18 = vld [vmem:[%s3526_s5 + $0x48] sm:$0xff]  }
  0x9f   : > { %v2967_v37 = vpack.c.bf16 %v470_v25, %v469_v26  ;;  %v508_v39 = vrot.slane %v2956_v31, 1  ;;  %v1222_v13 = vrot.slane %v2948_v16, 6  ;;  %v1365_v15 = vrot.slane %v2948_v16, 2 }
  0xa0   : > { %v457_v42 = vpop.permute.xlu1 %456  ;;  %v452_v45 = vpop.permute.xlu0 %451  ;;  %2383 = vmatmul.mubr.msk.bf16.gmra.mxu1 %vm566_vm3, %v533_v38  ;;  %v3017_v7 = vsel %vm777_vm5, %v778_v60, %v779_v20  ;;  %v3022_v57 = vsel %vm1063_vm4, %v1077_v24, %v1081_v3  ;;  %v1368_v24 = vrot.slane %v2885_v34, 2  ;;  %v1226_v30 = vrot.slane %v2885_v34, 6 }
  0xa1   : > { %v472_v50 = vmul.f32 %v457_v42, %v374_v17  ;;  %v471_v51 = vmul.f32 %v452_v45, %v373_v22  ;;  %v509_v52 = vsel %vm497_vm2, %v504_v32, %v508_v39  ;;  %2395 = vmatpush3.bf16.msra.mxu1 %v2644_v28  ;;  %2386 = vmatprep.mubr.msk.bf16.mxu1 %vm2683_vm0, %v2682_v5  ;;  %v2987_v53 = vshll.u32 %v2967_v37, 16  ;;  %v2648_v45 = vld [vmem:[%s3526_s5 + $0x40] sm:$0xff]  }
  0xa2   : > { %2371 = vmatmul.mubr.msk.bf16.vlgmr.msra.gmra.mxu0 %vm566_vm3, %v509_v52  ;;  %2396 = vmatprep.subr.bf16.mxu1 %v2682_v5  ;;  %v512_v59 = vor.u32 %v2980_v46, %v508_v39  ;;  %v930_v10 = vrot.slane %v2967_v37, 5  ;;  %v1083_v11 = vshrl.u32 %v2967_v37, 16  ;;  %v1366_v17 = vrot.slane %v2887_v35, 2 }
  0xa3   : > { %v2997_v27 = vpack.c.bf16 %v472_v50, %v471_v51  ;;  %2419 = vmatpush3.bf16.msra.mxu0 %v2643_v40  ;;  %v540_v0 = vrot.slane %v2987_v53, 1  ;;  %2374 = vmatprep.mubr.msk.bf16.mxu0 %vm2683_vm0, %v2682_v5  ;;  %v1224_v22 = vrot.slane %v2887_v35, 6  ;;  %v3042_v25 = vsel %vm1220_vm6, %v1221_v8, %v1222_v13 }
  0xa4   : > { %2420 = vmatprep.subr.bf16.mxu0 %v2682_v5  ;;  %v517_v4 = vsel %vm497_vm2, %v512_v59, %v516_v49  ;;  %v1086_v49 = vrot.slane %v2987_v53, 6  ;;  %v3035_v19 = vsel %vm920_vm1, %v928_v29, %v930_v10  ;;  %v1085_v21 = vrot.slane %v1083_v11, 5 }
  0xa5   : > { %v541_v9 = vsel %vm497_vm2, %v536_v58, %v540_v0  ;;  %2397 = vmatpush3.bf16.msra.mxu1 %v2646_v56  ;;  %v3045_v26 = vsel %vm1364_vm7, %v1365_v15, %v1366_v17  ;;  %v1370_v28 = vrot.slane %v2919_v63, 2  ;;  %v3052_v29 = vsel %vm1220_vm6, %v1222_v13, %v1224_v22  ;;  %v2649_v0 = vld [vmem:[%s3526_s5 + $0x78] sm:$0xff]  }
  0xa6   : > { %2446 = vmatprep.subr.bf16.mxu1 %v2682_v5  ;;  %v1087_v32 = vor.u32 %v1086_v49, %v1085_v21  ;;  %v3055_v33 = vsel %vm1364_vm7, %v1366_v17, %v1368_v24  ;;  %v1228_v36 = vrot.slane %v2919_v63, 6  ;;  %v3060_v38 = vsel %vm1220_vm6, %v1224_v22, %v1226_v30  ;;  %v2650_v15 = vld [vmem:[%s3526_s5 + $0x98] sm:$0xff]  }
  0xa7   : > { %2421 = vmatpush3.bf16.msra.mxu0 %v2645_v61  ;;  %v3063_v39 = vsel %vm1364_vm7, %v1368_v24, %v1370_v28  ;;  %v1372_v40 = vrot.slane %v2967_v37, 2  ;;  %v1230_v42 = vrot.slane %v2967_v37, 6  ;;  %v1374_v52 = vrot.slane %v2997_v27, 2 }
  0xa8   : > { %2387 = vmatmul.mubr.msk.bf16.gmra.mxu1 %vm566_vm3, %v541_v9  ;;  %2422 = vmatprep.subr.bf16.mxu0 %v2682_v5  ;;  %v3073_v50 = vsel %vm1063_vm4, %v1081_v3, %v1087_v32  ;;  %v3076_v51 = vsel %vm1220_vm6, %v1226_v30, %v1228_v36  ;;  %v1508_v56 = vrot.slane %v2980_v46, 2  ;;  %v1509_v60 = vrot.slane %v2956_v31, 3 }
  0xa9   : > { %2398 = vmatprep.mubr.msk.bf16.mxu1 %vm2683_vm0, %v2682_v5  ;;  %v3082_v58 = vsel %vm1364_vm7, %v1370_v28, %v1372_v40  ;;  %v3085_v59 = vsel %vm1220_vm6, %v1228_v36, %v1230_v42  ;;  %v1511_v61 = vrot.slane %v2894_v44, 2  ;;  %v3093_v3 = vsel %vm1364_vm7, %v1372_v40, %v1374_v52 }
  0xaa   : > { %2375 = vmatmul.mubr.msk.bf16.gmra.mxu0 %vm566_vm3, %v517_v4  ;;  %v1512_v4 = vrot.slane %v2891_v43, 3  ;;  %v1668_v8 = vrot.slane %v2948_v16, 3  ;;  %v1669_v9 = vrot.slane %v2887_v35, 3  ;;  %v1510_v10 = vor.u32 %v1509_v60, %v1508_v56 }
  0xab   : > { %2423 = vmatpush3.bf16.msra.mxu0 %v2647_v18  ;;  %2426 = vmatprep.mubr.msk.bf16.mxu0 %vm2683_vm0, %v2682_v5  ;;  %v1515_v49 = vrot.slane %v2906_v54, 2  ;;  %v1516_v13 = vrot.slane %v2897_v47, 3  ;;  %v1671_v44 = vrot.slane %v2885_v34, 3  ;;  %v1519_v43 = vrot.slane %v2945_v14, 2 }
  0xac   : > { %2424 = vmatprep.subr.bf16.mxu0 %v2682_v5  ;;  %v1513_v17 = vor.u32 %v1512_v4, %v1511_v61  ;;  %v3105_v18 = vsel %vm1667_vm8, %v1668_v8, %v1669_v9  ;;  %v1520_v21 = vrot.slane %v2939_v12, 3  ;;  %v1673_v22 = vrot.slane %v2919_v63, 3  ;;  %v2651_v12 = vld [vmem:[%s3526_s5 + $0x70] sm:$0xff]  }
  0xad   : > { %v1517_v47 = vor.u32 %v1516_v13, %v1515_v49  ;;  %v3113_v54 = vsel %vm1667_vm8, %v1669_v9, %v1671_v44  ;;  %v1523_v24 = vrot.slane %v1083_v11, 2  ;;  %v1524_v28 = vrot.slane %v2987_v53, 3  ;;  %v2652_v53 = vld [vmem:[%s3526_s5 + $0x90] sm:$0xff]  }
  0xae   : > { %v3122_v14 = vsel %vm1507_vm9, %v1510_v10, %v1513_v17  ;;  %v1521_v30 = vor.u32 %v1520_v21, %v1519_v43  ;;  %v1675_v32 = vrot.slane %v2967_v37, 3  ;;  %v3133_v36 = vsel %vm1667_vm8, %v1671_v44, %v1673_v22  ;;  %v2654_v10 = vld [vmem:[%s3526_s5 + $0x88] sm:$0xff]   ;;  %v2655_v44 = vld [vmem:[%s3526_s5 + $0x60] sm:$0xff]  }
  0xaf   : > { %2425 = vmatpush3.bf16.msra.mxu0 %v2648_v45  ;;  %v3130_v11 = vsel %vm1507_vm9, %v1513_v17, %v1517_v47  ;;  %v1528_v40 = vshrl.u32 %v2997_v27, 16  ;;  %v1531_v42 = vshll.u32 %v2997_v27, 16  ;;  %v1525_v45 = vor.u32 %v1524_v28, %v1523_v24 }
  0xb0   : > { %2399 = vmatmul.mubr.msk.bf16.vlgmr.msra.gmra.mxu1 %vm566_vm3, %v2900_v48  ;;  %2474 = vmatprep.subr.bf16.mxu0 %v2682_v5  ;;  %v3146_v52 = vsel %vm1667_vm8, %v1673_v22, %v1675_v32  ;;  %v1677_v56 = vrot.slane %v2997_v27, 3  ;;  %v781_v27 = vrot.slane %v2887_v35, 1  ;;  %v785_v43 = vrot.slane %v2919_v63, 1 }
  0xb1   : > { %2447 = vmatpush3.bf16.msra.mxu1 %v2649_v0  ;;  %2402 = vmatprep.mubr.msk.bf16.mxu1 %vm2683_vm0, %v2682_v5  ;;  %v1530_v60 = vrot.slane %v1528_v40, 2  ;;  %v1533_v61 = vrot.slane %v1531_v42, 3  ;;  %v2653_v0 = vld [vmem:[%s3526_s5 + $0x68] sm:$0xff]   ;;  %v3154_v4 = vsel %vm1507_vm9, %v1521_v30, %v1525_v45  ;;  %v1068_v24 = vrot.slane %v2956_v31, 6 }
  0xb2   : > { %2427 = vmatmul.mubr.msk.bf16.vlgmr.msra.gmra.mxu0 %vm566_vm3, %v3017_v7  ;;  %2448 = vmatprep.subr.bf16.mxu1 %v2682_v5  ;;  %v3143_v7 = vsel %vm1507_vm9, %v1517_v47, %v1521_v30  ;;  %v3157_v8 = vsel %vm1667_vm8, %v1675_v32, %v1677_v56  ;;  %v782_v13 = vsel %vm777_vm5, %v779_v20, %v781_v27  ;;  %v2656_v20 = vld [vmem:[%s3526_s5 + $0x80] sm:$0xff]   ;;  %v787_v47 = vrot.slane %v2967_v37, 1  ;;  %v2661_v40 = vld [vmem:[%s3526_s5 + $0xa8] sm:$0xff]  }
  0xb3   : > { %2475 = vmatpush3.bf16.msra.mxu0 %v2650_v15  ;;  %2430 = vmatprep.mubr.msk.bf16.mxu0 %vm2683_vm0, %v2682_v5  ;;  %v1534_v9 = vor.u32 %v1533_v61, %v1530_v60  ;;  %v783_v15 = vrot.slane %v2885_v34, 1  ;;  %v1065_v37 = vrot.slane %v501_v62, 6  ;;  %v922_v30 = vrot.slane %v2948_v16, 5 }
  0xb4   : > { %2476 = vmatprep.subr.bf16.mxu0 %v2682_v5  ;;  %v788_v22 = vsel %vm777_vm5, %v785_v43, %v787_v47 }
  0xb5   : > { %2449 = vmatpush3.bf16.msra.mxu1 %v2651_v12  ;;  %v3168_v49 = vsel %vm1507_vm9, %v1525_v45, %v1534_v9  ;;  %v784_v17 = vsel %vm777_vm5, %v781_v27, %v783_v15  ;;  %v786_v21 = vsel %vm777_vm5, %v783_v15, %v785_v43  ;;  %v1064_v12 = vrot.slane %v499_v23, 5  ;;  %v2658_v23 = vld [vmem:[%s3526_s5 + $0xd8] sm:$0xff]  }
  0xb6   : > { %2450 = vmatprep.subr.bf16.mxu1 %v2682_v5  ;;  %v925_v42 = vsel %vm920_vm1, %v922_v30, %v924_v55  ;;  %v2664_v55 = vld [vmem:[%s3526_s5 + $0xc0] sm:$0xff]  }
  0xb7   : > { %2477 = vmatpush3.bf16.msra.mxu0 %v2652_v53  ;;  %v1066_v32 = vor.u32 %v1065_v37, %v1064_v12  ;;  %v2662_v53 = vld [vmem:[%s3526_s5 + $0xc8] sm:$0xff]  }
  0xb8   : > { %2403 = vmatmul.mubr.msk.bf16.gmra.mxu1 %vm566_vm3, %v2948_v16  ;;  %2478 = vmatprep.subr.bf16.mxu0 %v2682_v5  ;;  %v2660_v16 = vld [vmem:[%s3526_s5 + $0xd0] sm:$0xff]  }
  0xb9   : > { %2406 = vmatprep.mubr.msk.bf16.mxu1 %vm2683_vm0, %v2682_v5  ;;  %2451 = vmatpush3.bf16.msra.mxu1 %v2653_v0 }
  0xba   : > { %2431 = vmatmul.mubr.msk.bf16.gmra.mxu0 %vm566_vm3, %v782_v13  ;;  %2452 = vmatprep.subr.bf16.mxu1 %v2682_v5 }
  0xbb   : > { %2434 = vmatprep.mubr.msk.bf16.mxu0 %vm2683_vm0, %v2682_v5  ;;  %2479 = vmatpush3.bf16.msra.mxu0 %v2654_v10 }
  0xbc   : > { %2480 = vmatprep.subr.bf16.mxu0 %v2682_v5 }
  0xbd   : > { %2453 = vmatpush3.bf16.msra.mxu1 %v2655_v44 }
  0xbe   : > { %2502 = vmatprep.subr.bf16.mxu1 %v2682_v5 }
  0xbf   : > { %2481 = vmatpush3.bf16.msra.mxu0 %v2656_v20 }
  0xc0   : > { %2407 = vmatmul.mubr.msk.bf16.gmra.mxu1 %vm566_vm3, %v2887_v35  ;;  %2530 = vmatprep.subr.bf16.mxu0 %v2682_v5  ;;  %v2663_v35 = vld [vmem:[%s3526_s5 + $0xa0] sm:$0xff]  }
  0xc1   : > { %2410 = vmatprep.mubr.msk.bf16.mxu1 %vm2683_vm0, %v2682_v5 }
  0xc2   : > { %2435 = vmatmul.mubr.msk.bf16.gmra.mxu0 %vm566_vm3, %v784_v17 }
  0xc3   : > { %2438 = vmatprep.mubr.msk.bf16.mxu0 %vm2683_vm0, %v2682_v5 }
  0xc8   : > { %2411 = vmatmul.mubr.msk.bf16.gmra.mxu1 %vm566_vm3, %v2885_v34  ;;  %v1067_v34 = vrot.slane %v2980_v46, 5  ;;  %v2657_v46 = vld [vmem:[%s3526_s5 + $0xb8] sm:$0xff]  }
  0xc9   : > { %2414 = vmatprep.mubr.msk.bf16.mxu1 %vm2683_vm0, %v2682_v5 }
  0xca   : > { %2439 = vmatmul.mubr.msk.bf16.gmra.mxu0 %vm566_vm3, %v786_v21  ;;  %v1069_v31 = vor.u32 %v1068_v24, %v1067_v34 }
  0xcb   : > { %2442 = vmatprep.mubr.msk.bf16.mxu0 %vm2683_vm0, %v2682_v5 }
  0xcc   : > { %v1070_v62 = vsel %vm1063_vm4, %v1066_v32, %v1069_v31  ;;  %v1074_v45 = vsel %vm1063_vm4, %v1069_v31, %v2922_v1  ;;  %v2665_v1 = vld [vmem:[%s3526_s5 + $0xf8] sm:$0xff]  }
  0xd0   : > { %2415 = vmatmul.mubr.msk.bf16.gmra.mxu1 %vm566_vm3, %v2919_v63  ;;  %v921_v63 = vrot.slane %v2900_v48, 5  ;;  %v2659_v48 = vld [vmem:[%s3526_s5 + $0xb0] sm:$0xff]  }
  0xd1   : > { %2454 = vmatprep.mubr.msk.bf16.mxu1 %vm2683_vm0, %v2682_v5 }
  0xd2   : > { %2443 = vmatmul.mubr.msk.bf16.gmra.mxu0 %vm566_vm3, %v788_v22  ;;  %v923_v28 = vsel %vm920_vm1, %v921_v63, %v922_v30 }
  0xd3   : > { %2482 = vmatprep.mubr.msk.bf16.mxu0 %vm2683_vm0, %v2682_v5 }
  0xd8   : > { %2455 = vmatmul.mubr.msk.bf16.vlgmr.msra.gmra.mxu1 %vm566_vm3, %v923_v28 }
  0xd9   : > { %2503 = vmatpush3.bf16.msra.mxu1 %v2657_v46  ;;  %2458 = vmatprep.mubr.msk.bf16.mxu1 %vm2683_vm0, %v2682_v5 }
  0xda   : > { %2483 = vmatmul.mubr.msk.bf16.vlgmr.msra.gmra.mxu0 %vm566_vm3, %v1070_v62  ;;  %2504 = vmatprep.subr.bf16.mxu1 %v2682_v5 }
  0xdb   : > { %2531 = vmatpush3.bf16.msra.mxu0 %v2658_v23  ;;  %2486 = vmatprep.mubr.msk.bf16.mxu0 %vm2683_vm0, %v2682_v5 }
  0xdc   : > { %2532 = vmatprep.subr.bf16.mxu0 %v2682_v5 }
  0xdd   : > { %2505 = vmatpush3.bf16.msra.mxu1 %v2659_v48 }
  0xde   : > { %2506 = vmatprep.subr.bf16.mxu1 %v2682_v5 }
  0xdf   : > { %2533 = vmatpush3.bf16.msra.mxu0 %v2660_v16 }
  0xe0   : > { %2459 = vmatmul.mubr.msk.bf16.gmra.mxu1 %vm566_vm3, %v925_v42  ;;  %2534 = vmatprep.subr.bf16.mxu0 %v2682_v5 }
  0xe1   : > { %2462 = vmatprep.mubr.msk.bf16.mxu1 %vm2683_vm0, %v2682_v5  ;;  %2507 = vmatpush3.bf16.msra.mxu1 %v2661_v40 }
  0xe2   : > { %2487 = vmatmul.mubr.msk.bf16.gmra.mxu0 %vm566_vm3, %v1074_v45  ;;  %2508 = vmatprep.subr.bf16.mxu1 %v2682_v5 }
  0xe3   : > { %2490 = vmatprep.mubr.msk.bf16.mxu0 %vm2683_vm0, %v2682_v5  ;;  %2535 = vmatpush3.bf16.msra.mxu0 %v2662_v53 }
  0xe4   : > { %2536 = vmatprep.subr.bf16.mxu0 %v2682_v5 }
  0xe5   : > { %2509 = vmatpush3.bf16.msra.mxu1 %v2663_v35 }
  0xe6   : > { %2558 = vmatprep.subr.bf16.mxu1 %v2682_v5 }
  0xe7   : > { %2537 = vmatpush3.bf16.msra.mxu0 %v2664_v55 }
  0xe8   : > { %2463 = vmatmul.mubr.msk.bf16.gmra.mxu1 %vm566_vm3, %v2930_v6  ;;  %2586 = vmatprep.subr.bf16.mxu0 %v2682_v5  ;;  %v2666_v6 = vld [vmem:[%s3526_s5 + $0x118] sm:$0xff]  }
  0xe9   : > { %2466 = vmatprep.mubr.msk.bf16.mxu1 %vm2683_vm0, %v2682_v5 }
  0xea   : > { %2491 = vmatmul.mubr.msk.bf16.gmra.mxu0 %vm566_vm3, %v2976_v41  ;;  %v2667_v41 = vld [vmem:[%s3526_s5 + $0xf0] sm:$0xff]  }
  0xeb   : > { %2494 = vmatprep.mubr.msk.bf16.mxu0 %vm2683_vm0, %v2682_v5 }
  0xf0   : > { %2467 = vmatmul.mubr.msk.bf16.gmra.mxu1 %vm566_vm3, %v3008_v2  ;;  %v2668_v2 = vld [vmem:[%s3526_s5 + $0x110] sm:$0xff]  }
  0xf1   : > { %2470 = vmatprep.mubr.msk.bf16.mxu1 %vm2683_vm0, %v2682_v5 }
  0xf2   : > { %2495 = vmatmul.mubr.msk.bf16.gmra.mxu0 %vm566_vm3, %v3022_v57  ;;  %v2669_v57 = vld [vmem:[%s3526_s5 + $0xe8] sm:$0xff]  }
  0xf3   : > { %2498 = vmatprep.mubr.msk.bf16.mxu0 %vm2683_vm0, %v2682_v5 }
  0xf8   : > { %2471 = vmatmul.mubr.msk.bf16.gmra.mxu1 %vm566_vm3, %v3035_v19  ;;  %v2670_v19 = vld [vmem:[%s3526_s5 + $0x108] sm:$0xff]  }
  0xf9   : > { %2510 = vmatprep.mubr.msk.bf16.mxu1 %vm2683_vm0, %v2682_v5 }
  0xfa   : > { %2499 = vmatmul.mubr.msk.bf16.gmra.mxu0 %vm566_vm3, %v3073_v50 }
  0xfb   : > { %2538 = vmatprep.mubr.msk.bf16.mxu0 %vm2683_vm0, %v2682_v5 }
 0x100   : > { %2511 = vmatmul.mubr.msk.bf16.vlgmr.msra.gmra.mxu1 %vm566_vm3, %v3042_v25  ;;  %v2671_v25 = vld [vmem:[%s3526_s5 + $0xe0] sm:$0xff]  }
 0x101   : > { %2559 = vmatpush3.bf16.msra.mxu1 %v2665_v1  ;;  %2514 = vmatprep.mubr.msk.bf16.mxu1 %vm2683_vm0, %v2682_v5 }
 0x102   : > { %2539 = vmatmul.mubr.msk.bf16.vlgmr.msra.gmra.mxu0 %vm566_vm3, %v3045_v26  ;;  %2560 = vmatprep.subr.bf16.mxu1 %v2682_v5  ;;  %v2672_v26 = vld [vmem:[%s3526_s5 + $0x100] sm:$0xff]  }
 0x103   : > { %2587 = vmatpush3.bf16.msra.mxu0 %v2666_v6  ;;  %2542 = vmatprep.mubr.msk.bf16.mxu0 %vm2683_vm0, %v2682_v5 }
 0x104   : > { %2588 = vmatprep.subr.bf16.mxu0 %v2682_v5 }
 0x105   : > { %2561 = vmatpush3.bf16.msra.mxu1 %v2667_v41 }
 0x106   : > { %2562 = vmatprep.subr.bf16.mxu1 %v2682_v5 }
 0x107   : > { %2589 = vmatpush3.bf16.msra.mxu0 %v2668_v2 }
 0x108   : > { %2515 = vmatmul.mubr.msk.bf16.gmra.mxu1 %vm566_vm3, %v3052_v29  ;;  %2590 = vmatprep.subr.bf16.mxu0 %v2682_v5 }
 0x109   : > { %2518 = vmatprep.mubr.msk.bf16.mxu1 %vm2683_vm0, %v2682_v5  ;;  %2563 = vmatpush3.bf16.msra.mxu1 %v2669_v57 }
 0x10a   : > { %2543 = vmatmul.mubr.msk.bf16.gmra.mxu0 %vm566_vm3, %v3055_v33  ;;  %2564 = vmatprep.subr.bf16.mxu1 %v2682_v5 }
 0x10b   : > { %2546 = vmatprep.mubr.msk.bf16.mxu0 %vm2683_vm0, %v2682_v5  ;;  %2591 = vmatpush3.bf16.msra.mxu0 %v2670_v19 }
 0x10c   : > { %2592 = vmatprep.subr.bf16.mxu0 %v2682_v5 }
 0x10d   : > { %2565 = vmatpush3.bf16.msra.mxu1 %v2671_v25 }
 0x10f   : > { %2593 = vmatpush3.bf16.msra.mxu0 %v2672_v26 }
 0x110   : > { %2519 = vmatmul.mubr.msk.bf16.gmra.mxu1 %vm566_vm3, %v3060_v38 }
 0x111   : > { %2522 = vmatprep.mubr.msk.bf16.mxu1 %vm2683_vm0, %v2682_v5 }
 0x112   : > { %2547 = vmatmul.mubr.msk.bf16.gmra.mxu0 %vm566_vm3, %v3063_v39 }
 0x113   : > { %2550 = vmatprep.mubr.msk.bf16.mxu0 %vm2683_vm0, %v2682_v5 }
 0x118   : > { %2523 = vmatmul.mubr.msk.bf16.gmra.mxu1 %vm566_vm3, %v3076_v51 }
 0x119   : > { %2526 = vmatprep.mubr.msk.bf16.mxu1 %vm2683_vm0, %v2682_v5 }
 0x11a   : > { %2551 = vmatmul.mubr.msk.bf16.gmra.mxu0 %vm566_vm3, %v3082_v58 }
 0x11b   : > { %2554 = vmatprep.mubr.msk.bf16.mxu0 %vm2683_vm0, %v2682_v5 }
 0x120   : > { %2527 = vmatmul.mubr.msk.bf16.gmra.mxu1 %vm566_vm3, %v3085_v59 }
 0x121   : > { %2566 = vmatprep.mubr.msk.bf16.mxu1 %vm2683_vm0, %v2682_v5 }
 0x122   : > { %2555 = vmatmul.mubr.msk.bf16.gmra.mxu0 %vm566_vm3, %v3093_v3 }
 0x123   : > { %2594 = vmatprep.mubr.msk.bf16.mxu0 %vm2683_vm0, %v2682_v5 }
 0x128   : > { %2567 = vmatmul.mubr.msk.bf16.vlgmr.msra.gmra.mxu1 %vm566_vm3, %v3122_v14 }
 0x129   : > { %2570 = vmatprep.mubr.msk.bf16.mxu1 %vm2683_vm0, %v2682_v5 }
 0x12a   : > { %2595 = vmatmul.mubr.msk.bf16.vlgmr.msra.gmra.mxu0 %vm566_vm3, %v3105_v18 }
 0x12b   : > { %2598 = vmatprep.mubr.msk.bf16.mxu0 %vm2683_vm0, %v2682_v5 }
 0x130   : > { %2571 = vmatmul.mubr.msk.bf16.gmra.mxu1 %vm566_vm3, %v3130_v11 }
 0x131   : > { %2574 = vmatprep.mubr.msk.bf16.mxu1 %vm2683_vm0, %v2682_v5 }
 0x132   : > { %2599 = vmatmul.mubr.msk.bf16.gmra.mxu0 %vm566_vm3, %v3113_v54 }
 0x133   : > { %2602 = vmatprep.mubr.msk.bf16.mxu0 %vm2683_vm0, %v2682_v5 }
 0x138   : > { %2575 = vmatmul.mubr.msk.bf16.gmra.mxu1 %vm566_vm3, %v3143_v7 }
 0x139   : > { %2578 = vmatprep.mubr.msk.bf16.mxu1 %vm2683_vm0, %v2682_v5 }
 0x13a   : > { %2603 = vmatmul.mubr.msk.bf16.gmra.mxu0 %vm566_vm3, %v3133_v36 }
 0x13b   : > { %2606 = vmatprep.mubr.msk.bf16.mxu0 %vm2683_vm0, %v2682_v5 }
 0x140   : > { %2579 = vmatmul.mubr.msk.bf16.gmra.mxu1 %vm566_vm3, %v3154_v4 }
 0x141   : > { %2582 = vmatprep.mubr.msk.bf16.mxu1 %vm2683_vm0, %v2682_v5 }
 0x142   : > { %2607 = vmatmul.mubr.msk.bf16.gmra.mxu0 %vm566_vm3, %v3146_v52 }
 0x143   : > { %2610 = vmatprep.mubr.msk.bf16.mxu0 %vm2683_vm0, %v2682_v5 }
 0x148   : > { %2583 = vmatmul.mubr.msk.bf16.gmra.mxu1 %vm566_vm3, %v3168_v49 }
 0x14a   : > { %2611 = vmatmul.mubr.msk.bf16.gmra.mxu0 %vm566_vm3, %v3157_v8 }
 0x158   : > { %v632_v29 = vpop.f32.mrf.mxu1 }
 0x15a   : > { %v2380_v33 = vpop.f32.mrf.mxu1 }
 0x15c   : > { %v635_v38 = vpop.f32.mrf.mxu1 }
 0x15e   : > { %v2381_v39 = vpop.f32.mrf.mxu1 }
 0x160   : > { %v640_v50 = vpop.f32.mrf.mxu1 }
 0x162   : > { %v616_v51 = vpop.f32.mrf.mxu0  ;;  %v2384_v58 = vpop.f32.mrf.mxu1 }
 0x164   : > { %v2372_v59 = vpop.f32.mrf.mxu0  ;;  %v643_v3 = vpop.f32.mrf.mxu1 }
 0x166   : > { %v619_v18 = vpop.f32.mrf.mxu0  ;;  %v2385_v54 = vpop.f32.mrf.mxu1 }
 0x168   : > { %v2373_v14 = vpop.f32.mrf.mxu0  ;;  %v648_v11 = vpop.f32.mrf.mxu1 }
 0x16a   : > { %v624_v5 = vpop.f32.mrf.mxu0  ;;  %v2388_v36 = vpop.f32.mrf.mxu1 }
 0x16c   : > { %v2376_v7 = vpop.f32.mrf.mxu0  ;;  %v651_v52 = vpop.f32.mrf.mxu1 }
 0x16e   : > { %v627_v56 = vpop.f32.mrf.mxu0  ;;  %v2389_v60 = vpop.f32.mrf.mxu1 }
 0x170   : > { %v2377_v61 = vpop.f32.mrf.mxu0  ;;  %v723_v0 = vpop.f32.mrf.mxu1 }
 0x171   : > { %v724_v4 = vadd.f32 %v723_v0, %v616_v51 }
 0x172   : > { %v2400_v8 = vpop.f32.mrf.mxu1  ;;  %v862_v9 = vpop.f32.mrf.mxu0 }
 0x173   : > { %v901_v27 = vadd.f32 %v862_v9, %v724_v4 }
 0x174   : > { %v726_v10 = vpop.f32.mrf.mxu1  ;;  %v2428_v49 = vpop.f32.mrf.mxu0 }
 0x175   : > { %v727_v13 = vadd.f32 %v726_v10, %v619_v18 }
 0x176   : > { %v2401_v44 = vpop.f32.mrf.mxu1  ;;  %v865_v20 = vpop.f32.mrf.mxu0 }
 0x177   : > { %v902_v15 = vadd.f32 %v865_v20, %v727_v13 }
 0x178   : > { %v731_v17 = vpop.f32.mrf.mxu1  ;;  %v2429_v43 = vpop.f32.mrf.mxu0 }
 0x179   : > { %v732_v21 = vadd.f32 %v731_v17, %v624_v5 }
 0x17a   : > { %v2404_v47 = vpop.f32.mrf.mxu1  ;;  %v870_v22 = vpop.f32.mrf.mxu0 }
 0x17b   : > { %v903_v34 = vadd.f32 %v870_v22, %v732_v21 }
 0x17c   : > { %v734_v24 = vpop.f32.mrf.mxu1  ;;  %v2432_v12 = vpop.f32.mrf.mxu0 }
 0x17d   : > { %v735_v37 = vadd.f32 %v734_v24, %v627_v56 }
 0x17e   : > { %v2405_v30 = vpop.f32.mrf.mxu1  ;;  %v873_v63 = vpop.f32.mrf.mxu0 }
 0x17f   : > { %v904_v46 = vadd.f32 %v873_v63, %v735_v37 }
 0x180   : > { %v739_v31 = vpop.f32.mrf.mxu1  ;;  %v2433_v28 = vpop.f32.mrf.mxu0 }
 0x181   : > { %v740_v32 = vadd.f32 %v739_v31, %v632_v29 }
 0x182   : > { %v2408_v23 = vpop.f32.mrf.mxu1  ;;  %v878_v62 = vpop.f32.mrf.mxu0 }
 0x183   : > { %v905_v48 = vadd.f32 %v878_v62, %v740_v32 }
 0x184   : > { %v742_v16 = vpop.f32.mrf.mxu1  ;;  %v2436_v40 = vpop.f32.mrf.mxu0 }
 0x185   : > { %v743_v42 = vadd.f32 %v742_v16, %v635_v38 }
 0x186   : > { %v2409_v53 = vpop.f32.mrf.mxu1  ;;  %v881_v45 = vpop.f32.mrf.mxu0 }
 0x187   : > { %v906_v35 = vadd.f32 %v881_v45, %v743_v42 }
 0x188   : > { %v747_v55 = vpop.f32.mrf.mxu1  ;;  %v2437_v1 = vpop.f32.mrf.mxu0 }
 0x189   : > { %v748_v6 = vadd.f32 %v747_v55, %v640_v50 }
 0x18a   : > { %v2412_v41 = vpop.f32.mrf.mxu1  ;;  %v886_v2 = vpop.f32.mrf.mxu0 }
 0x18b   : > { %v907_v57 = vadd.f32 %v886_v2, %v748_v6 }
 0x18c   : > { %v750_v19 = vpop.f32.mrf.mxu1  ;;  %v2440_v25 = vpop.f32.mrf.mxu0 }
 0x18d   : > { %v751_v26 = vadd.f32 %v750_v19, %v643_v3 }
 0x18e   : > { %v2413_v33 = vpop.f32.mrf.mxu1  ;;  %v889_v29 = vpop.f32.mrf.mxu0 }
 0x18f   : > { %v908_v39 = vadd.f32 %v889_v29, %v751_v26 }
 0x190   : > { %v755_v51 = vpop.f32.mrf.mxu1  ;;  %v2441_v58 = vpop.f32.mrf.mxu0 }
 0x191   : > { %v756_v59 = vadd.f32 %v755_v51, %v648_v11 }
 0x192   : > { %v2416_v18 = vpop.f32.mrf.mxu1  ;;  %v894_v38 = vpop.f32.mrf.mxu0 }
 0x193   : > { %v909_v54 = vadd.f32 %v894_v38, %v756_v59 }
 0x194   : > { %v758_v14 = vpop.f32.mrf.mxu1  ;;  %v2444_v5 = vpop.f32.mrf.mxu0 }
 0x195   : > { %v759_v36 = vadd.f32 %v758_v14, %v651_v52 }
 0x196   : > { %v2417_v7 = vpop.f32.mrf.mxu1  ;;  %v897_v50 = vpop.f32.mrf.mxu0 }
 0x197   : > { %v910_v56 = vadd.f32 %v897_v50, %v759_v36 }
 0x198   : > { %v2445_v60 = vpop.f32.mrf.mxu0  ;;  %v1005_v61 = vpop.f32.mrf.mxu1 }
 0x199   : > { %v1044_v0 = vadd.f32 %v1005_v61, %v901_v27 }
 0x19a   : > { %v2456_v4 = vpop.f32.mrf.mxu1  ;;  %v1162_v3 = vpop.f32.mrf.mxu0 }
 0x19b   : > { %v3404_v8 = vadd.f32 %v1162_v3, %v1044_v0 }
 0x19c   : > { %v1008_v9 = vpop.f32.mrf.mxu1  ;;  %v2484_v10 = vpop.f32.mrf.mxu0 }
 0x19d   : > { %v1045_v49 = vadd.f32 %v1008_v9, %v902_v15 }
 0x19e   : > { %v2457_v11 = vpop.f32.mrf.mxu1  ;;  %v1165_v13 = vpop.f32.mrf.mxu0 }
 0x19f   : > { %v3406_v44 = vadd.f32 %v1165_v13, %v1045_v49 }
 0x1a0   : > { %v1013_v20 = vpop.f32.mrf.mxu1  ;;  %v2485_v17 = vpop.f32.mrf.mxu0 }
 0x1a1   : > { %v1046_v52 = vadd.f32 %v1013_v20, %v903_v34 }
 0x1a2   : > { %v2460_v43 = vpop.f32.mrf.mxu1  ;;  %v1170_v21 = vpop.f32.mrf.mxu0 }
 0x1a3   : > { %v3408_v47 = vadd.f32 %v1170_v21, %v1046_v52 }
 0x1a4   : > { %v1016_v22 = vpop.f32.mrf.mxu1  ;;  %v2488_v27 = vpop.f32.mrf.mxu0 }
 0x1a5   : > { %v1047_v24 = vadd.f32 %v1016_v22, %v904_v46 }
 0x1a6   : > { %v2461_v12 = vpop.f32.mrf.mxu1  ;;  %v1173_v37 = vpop.f32.mrf.mxu0 }
 0x1a7   : > { %v3410_v30 = vadd.f32 %v1173_v37, %v1047_v24 }
 0x1a8   : > { %v1021_v63 = vpop.f32.mrf.mxu1  ;;  %v2489_v15 = vpop.f32.mrf.mxu0 }
 0x1a9   : > { %v1048_v31 = vadd.f32 %v1021_v63, %v905_v48 }
 0x1aa   : > { %v2464_v28 = vpop.f32.mrf.mxu1  ;;  %v1178_v32 = vpop.f32.mrf.mxu0 }
 0x1ab   : > { %v3412_v23 = vadd.f32 %v1178_v32, %v1048_v31 }
 0x1ac   : > { %v1024_v62 = vpop.f32.mrf.mxu1  ;;  %v2492_v34 = vpop.f32.mrf.mxu0 }
 0x1ad   : > { %v1049_v16 = vadd.f32 %v1024_v62, %v906_v35 }
 0x1ae   : > { %v2465_v40 = vpop.f32.mrf.mxu1  ;;  %v1181_v42 = vpop.f32.mrf.mxu0 }
 0x1af   : > { %v3414_v53 = vadd.f32 %v1181_v42, %v1049_v16 }
 0x1b0   : > { %v1029_v45 = vpop.f32.mrf.mxu1  ;;  %v2493_v46 = vpop.f32.mrf.mxu0 }
 0x1b1   : > { %v1050_v55 = vadd.f32 %v1029_v45, %v907_v57 }
 0x1b2   : > { %v2468_v1 = vpop.f32.mrf.mxu1  ;;  %v1186_v6 = vpop.f32.mrf.mxu0 }
 0x1b3   : > { %v3416_v41 = vadd.f32 %v1186_v6, %v1050_v55 }
 0x1b4   : > { %v1032_v2 = vpop.f32.mrf.mxu1  ;;  %v2496_v48 = vpop.f32.mrf.mxu0 }
 0x1b5   : > { %v1051_v19 = vadd.f32 %v1032_v2, %v908_v39 }
 0x1b6   : > { %v2469_v25 = vpop.f32.mrf.mxu1  ;;  %v1189_v26 = vpop.f32.mrf.mxu0 }
 0x1b7   : > { %v3418_v33 = vadd.f32 %v1189_v26, %v1051_v19 }
 0x1b8   : > { %v1037_v29 = vpop.f32.mrf.mxu1  ;;  %v2497_v35 = vpop.f32.mrf.mxu0 }
 0x1b9   : > { %v1052_v51 = vadd.f32 %v1037_v29, %v909_v54 }
 0x1ba   : > { %v2472_v58 = vpop.f32.mrf.mxu1  ;;  %v1194_v59 = vpop.f32.mrf.mxu0 }
 0x1bb   : > { %v3420_v18 = vadd.f32 %v1194_v59, %v1052_v51  ;;  %v1865_v59 = vpop.permute.xlu0 %1864 }
 0x1bc   : > { %v1040_v38 = vpop.f32.mrf.mxu1  ;;  %v2500_v57 = vpop.f32.mrf.mxu0 }
 0x1bd   : > { %v1053_v14 = vadd.f32 %v1040_v38, %v910_v56 }
 0x1be   : > { %v2473_v5 = vpop.f32.mrf.mxu1  ;;  %v1197_v36 = vpop.f32.mrf.mxu0 }
 0x1bf   : > { %v3422_v7 = vadd.f32 %v1197_v36, %v1053_v14 }
 0x1c0   : > { %v2501_v50 = vpop.f32.mrf.mxu0  ;;  %v1305_v39 = vpop.f32.mrf.mxu1 }
 0x1c1   : > { %v1344_v55 = vadd.f32 %v1305_v39, %v3404_v8 }
 0x1c2   : > { %v2512_v60 = vpop.f32.mrf.mxu1  ;;  %v1449_v61 = vpop.f32.mrf.mxu0 }
 0x1c3   : > { %v1488_v19 = vadd.f32 %v1449_v61, %v1344_v55 }
 0x1c4   : > { %v1308_v0 = vpop.f32.mrf.mxu1  ;;  %v2540_v4 = vpop.f32.mrf.mxu0 }
 0x1c5   : > { %v1345_v25 = vadd.f32 %v1308_v0, %v3406_v44  ;;  %v1870_v0 = vpop.permute.xlu1 %1869 }
 0x1c6   : > { %v2513_v3 = vpop.f32.mrf.mxu1  ;;  %v1452_v9 = vpop.f32.mrf.mxu0 }
 0x1c7   : > { %v1489_v38 = vadd.f32 %v1452_v9, %v1345_v25 }
 0x1c8   : > { %v1313_v54 = vpop.f32.mrf.mxu1  ;;  %v2541_v10 = vpop.f32.mrf.mxu0 }
 0x1c9   : > { %v1346_v57 = vadd.f32 %v1313_v54, %v3408_v47  ;;  %v1880_v25 = vpop.permute.xlu1 %1879 }
 0x1ca   : > { %v2516_v49 = vpop.f32.mrf.mxu1  ;;  %v1457_v11 = vpop.f32.mrf.mxu0 }
 0x1cb   : > { %v1490_v47 = vadd.f32 %v1457_v11, %v1346_v57 }
 0x1cc   : > { %v1316_v13 = vpop.f32.mrf.mxu1  ;;  %v2544_v20 = vpop.f32.mrf.mxu0 }
 0x1cd   : > { %v1347_v39 = vadd.f32 %v1316_v13, %v3410_v30  ;;  %v1875_v30 = vpop.permute.xlu0 %1874 }
 0x1ce   : > { %v2517_v17 = vpop.f32.mrf.mxu1  ;;  %v1460_v56 = vpop.f32.mrf.mxu0 }
 0x1cf   : > { %v1491_v17 = vadd.f32 %v1460_v56, %v1347_v39 }
 0x1d0   : > { %v1321_v52 = vpop.f32.mrf.mxu1  ;;  %v2545_v43 = vpop.f32.mrf.mxu0 }
 0x1d1   : > { %v1348_v43 = vadd.f32 %v1321_v52, %v3412_v23 }
 0x1d2   : > { %v2520_v21 = vpop.f32.mrf.mxu1  ;;  %v3424_v22 = vpop.f32.mrf.mxu0 }
 0x1d3   : > { %v1492_v55 = vadd.f32 %v3424_v22, %v1348_v43 }
 0x1d4   : > { %v3426_v27 = vpop.f32.mrf.mxu1  ;;  %v2548_v24 = vpop.f32.mrf.mxu0 }
 0x1d6   : > { %v2521_v12 = vpop.f32.mrf.mxu1  ;;  %v3428_v37 = vpop.f32.mrf.mxu0 }
 0x1d8   : > { %v3430_v63 = vpop.f32.mrf.mxu1  ;;  %v2549_v15 = vpop.f32.mrf.mxu0 }
 0x1da   : > { %v2524_v31 = vpop.f32.mrf.mxu1  ;;  %v3432_v28 = vpop.f32.mrf.mxu0 }
 0x1dc   : > { %v3434_v32 = vpop.f32.mrf.mxu1  ;;  %v2552_v62 = vpop.f32.mrf.mxu0 }
 0x1de   : > { %v2525_v34 = vpop.f32.mrf.mxu1  ;;  %v3436_v16 = vpop.f32.mrf.mxu0 }
 0x1e0   : > { %v3438_v40 = vpop.f32.mrf.mxu1  ;;  %v2553_v42 = vpop.f32.mrf.mxu0 }
 0x1e2   : > { %v2528_v45 = vpop.f32.mrf.mxu1  ;;  %v3440_v46 = vpop.f32.mrf.mxu0 }
 0x1e4   : > { %v3443_v1 = vpop.f32.mrf.mxu1  ;;  %v2556_v6 = vpop.f32.mrf.mxu0 }
 0x1e6   : > { %v2529_v2 = vpop.f32.mrf.mxu1  ;;  %v3445_v48 = vpop.f32.mrf.mxu0 }
 0x1e8   : > { %v2557_v26 = vpop.f32.mrf.mxu0  ;;  %v1609_v29 = vpop.f32.mrf.mxu1 }
 0x1e9   : > { %v1648_v35 = vadd.f32 %v1609_v29, %v1488_v19  ;;  %v1349_v26 = vadd.f32 %v3426_v27, %v3414_v53 }
 0x1ea   : > { %v2568_v51 = vpop.f32.mrf.mxu1  ;;  %v1752_v58 = vpop.f32.mrf.mxu0 }
 0x1eb   : > { %v1791_v8 = vadd.f32 %v1752_v58, %v1648_v35 }
 0x1ec   : > { %v1612_v14 = vpop.f32.mrf.mxu1  ;;  %v2596_v44 = vpop.f32.mrf.mxu0 }
 0x1ed   : > { %v2242_v5 = vpack.c.bf16 %v1791_v8, %v1791_v8  ;;  %v1912_v36 = vmul.f32 %v1865_v59, %v1791_v8  ;;  %v1649_v50 = vadd.f32 %v1612_v14, %v1489_v38  ;;  %v1350_v44 = vadd.f32 %v3430_v63, %v3416_v41 }
 0x1ee   : > { %v2569_v60 = vpop.f32.mrf.mxu1  ;;  %v1755_v61 = vpop.f32.mrf.mxu0 }
 0x1ef   : > { %1842 = vst.msk [vmem:[%s3453_s8] sm:$0xf] %vm1841_vm10, %v2242_v5  ;;  %v1792_v4 = vadd.f32 %v1755_v61, %v1649_v50  ;;  %v1947_v3 = vmul.f32 %v1912_v36, %v1912_v36  ;;  %v1922_v13 = vsel %vm566_vm3, %v1912_v36, 0.0  ;;  %v1885_v36 = vpop.permute.xlu0 %1884  ;;  %v1493_v50 = vadd.f32 %v3428_v37, %v1349_v26 }
 0x1f0   : > { %v1617_v9 = vpop.f32.mrf.mxu1  ;;  %v2597_v54 = vpop.f32.mrf.mxu0 }
 0x1f1   : > { %v2243_v10 = vpack.c.bf16 %v1792_v4, %v1792_v4  ;;  %v1913_v49 = vmul.f32 %v1870_v0, %v1792_v4  ;;  %v1650_v20 = vadd.f32 %v1617_v9, %v1490_v47  ;;  %v1957_v31 = vsel %vm566_vm3, %v1947_v3, 0.0 }
 0x1f2   : > { %v2572_v21 = vpop.f32.mrf.mxu1  ;;  %v1760_v24 = vpop.f32.mrf.mxu0  ;;  %v1494_v54 = vadd.f32 %v3432_v28, %v1350_v44 }
 0x1f3   : > { %1843 = vst.msk [vmem:[%s3453_s8 + $0x4] sm:$0xf] %vm1841_vm10, %v2243_v10  ;;  %v1923_v11 = vsel %vm566_vm3, %v1913_v49, 0.0  ;;  %v1948_v12 = vmul.f32 %v1913_v49, %v1913_v49  ;;  %v1793_v15 = vadd.f32 %v1760_v24, %v1650_v20  ;;  %v1890_v20 = vpop.permute.xlu1 %1889 }
 0x1f4   : > { %v1924_v62 = vadd.f32 %v1923_v11, %v1922_v13  ;;  %v1620_v34 = vpop.f32.mrf.mxu1  ;;  %v2600_v42 = vpop.f32.mrf.mxu0 }
 0x1f5   : > { %v1958_v56 = vsel %vm566_vm3, %v1948_v12, 0.0  ;;  %v2244_v23 = vpack.c.bf16 %v1793_v15, %v1793_v15  ;;  %v1914_v52 = vmul.f32 %v1875_v30, %v1793_v15  ;;  %v1651_v45 = vadd.f32 %v1620_v34, %v1491_v17  ;;  %v1895_v42 = vpop.permute.xlu0 %1894 }
 0x1f6   : > { %v1959_v6 = vadd.f32 %v1958_v56, %v1957_v31  ;;  %v2573_v2 = vpop.f32.mrf.mxu1  ;;  %v1763_v19 = vpop.f32.mrf.mxu0  ;;  %v1351_v17 = vadd.f32 %v3434_v32, %v3418_v33 }
 0x1f7   : > { %1844 = vst.msk [vmem:[%s3453_s8 + $0x8] sm:$0xf] %vm1841_vm10, %v2244_v23  ;;  %v1925_v29 = vsel %vm566_vm3, %v1914_v52, 0.0  ;;  %v1949_v35 = vmul.f32 %v1914_v52, %v1914_v52  ;;  %v1794_v51 = vadd.f32 %v1763_v19, %v1651_v45 }
 0x1f8   : > { %v1926_v58 = vadd.f32 %v1925_v29, %v1924_v62  ;;  %v1625_v59 = vpop.f32.mrf.mxu1  ;;  %v2601_v38 = vpop.f32.mrf.mxu0  ;;  %v1352_v62 = vadd.f32 %v3438_v40, %v3420_v18  ;;  %v1495_v56 = vadd.f32 %v3436_v16, %v1351_v17 }
 0x1f9   : > { %v1960_v57 = vsel %vm566_vm3, %v1949_v35, 0.0  ;;  %v2245_v22 = vpack.c.bf16 %v1794_v51, %v1794_v51  ;;  %v1915_v8 = vmul.f32 %v1880_v25, %v1794_v51  ;;  %v1652_v14 = vadd.f32 %v1625_v59, %v1492_v55  ;;  %v1900_v51 = vpop.permute.xlu1 %1899 }
 0x1fa   : > { %v1961_v5 = vadd.f32 %v1960_v57, %v1959_v6  ;;  %v2576_v53 = vpop.f32.mrf.mxu1  ;;  %v1768_v27 = vpop.f32.mrf.mxu0  ;;  %v1496_v26 = vadd.f32 %v3440_v46, %v1352_v62 }
 0x1fb   : > { %1845 = vst.msk [vmem:[%s3453_s8 + $0xc] sm:$0xf] %vm1841_vm10, %v2245_v22  ;;  %v1927_v39 = vsel %vm566_vm3, %v1915_v8, 0.0  ;;  %v1950_v60 = vmul.f32 %v1915_v8, %v1915_v8  ;;  %v1795_v61 = vadd.f32 %v1768_v27, %v1652_v14 }
 0x1fc   : > { %v1928_v0 = vadd.f32 %v1927_v39, %v1926_v58  ;;  %v1628_v47 = vpop.f32.mrf.mxu1  ;;  %v2604_v4 = vpop.f32.mrf.mxu0  ;;  %v1353_v58 = vadd.f32 %v3443_v1, %v3422_v7 }
 0x1fd   : > { %v1962_v3 = vsel %vm566_vm3, %v1950_v60, 0.0  ;;  %v2246_v9 = vpack.c.bf16 %v1795_v61, %v1795_v61  ;;  %v1916_v41 = vmul.f32 %v1885_v36, %v1795_v61  ;;  %v1653_v63 = vadd.f32 %v1628_v47, %v1493_v50  ;;  %v1905_v39 = vpop.permute.xlu0 %1904  ;;  %v1910_v17 = vpop.permute.xlu1 %1909 }
 0x1fe   : > { %v1963_v10 = vadd.f32 %v1962_v3, %v1961_v5  ;;  %v2577_v49 = vpop.f32.mrf.mxu1  ;;  %v1771_v37 = vpop.f32.mrf.mxu0  ;;  %v1497_v7 = vadd.f32 %v3445_v48, %v1353_v58 }
 0x1ff   : > { %1846 = vst.msk [vmem:[%s3453_s8 + $0x10] sm:$0xf] %vm1841_vm10, %v2246_v9  ;;  %v1929_v43 = vsel %vm566_vm3, %v1916_v41, 0.0  ;;  %v1951_v21 = vmul.f32 %v1916_v41, %v1916_v41  ;;  %v1796_v24 = vadd.f32 %v1771_v37, %v1653_v63 }
 0x200   : > { %v1930_v30 = vadd.f32 %v1929_v43, %v1928_v0  ;;  %v1633_v13 = vpop.f32.mrf.mxu1  ;;  %v2605_v11 = vpop.f32.mrf.mxu0 }
 0x201   : > { %v1964_v12 = vsel %vm566_vm3, %v1951_v21, 0.0  ;;  %v2247_v28 = vpack.c.bf16 %v1796_v24, %v1796_v24  ;;  %v1917_v15 = vmul.f32 %v1890_v20, %v1796_v24  ;;  %v1654_v31 = vadd.f32 %v1633_v13, %v1494_v54 }
 0x202   : > { %v1965_v34 = vadd.f32 %v1964_v12, %v1963_v10  ;;  %v2580_v33 = vpop.f32.mrf.mxu1  ;;  %v1776_v32 = vpop.f32.mrf.mxu0 }
 0x203   : > { %1847 = vst.msk [vmem:[%s3453_s8 + $0x14] sm:$0xf] %vm1841_vm10, %v2247_v28  ;;  %v1931_v23 = vsel %vm566_vm3, %v1917_v15, 0.0  ;;  %v1952_v52 = vmul.f32 %v1917_v15, %v1917_v15  ;;  %v1797_v45 = vadd.f32 %v1776_v32, %v1654_v31 }
 0x204   : > { %v1932_v55 = vadd.f32 %v1931_v23, %v1930_v30  ;;  %v1636_v6 = vpop.f32.mrf.mxu1  ;;  %v2608_v2 = vpop.f32.mrf.mxu0 }
 0x205   : > { %v1966_v19 = vsel %vm566_vm3, %v1952_v52, 0.0  ;;  %v2248_v25 = vpack.c.bf16 %v1797_v45, %v1797_v45  ;;  %v1918_v18 = vmul.f32 %v1895_v42, %v1797_v45  ;;  %v1655_v40 = vadd.f32 %v1636_v6, %v1495_v56 }
 0x206   : > { %v1967_v29 = vadd.f32 %v1966_v19, %v1965_v34  ;;  %v2581_v35 = vpop.f32.mrf.mxu1  ;;  %v1779_v16 = vpop.f32.mrf.mxu0  ;;  %v1982_v42 = vlaneseq }
 0x207   : > { %1848 = vst.msk [vmem:[%s3453_s8 + $0x18] sm:$0xf] %vm1841_vm10, %v2248_v25  ;;  %v1933_v59 = vsel %vm566_vm3, %v1918_v18, 0.0  ;;  %v1953_v38 = vmul.f32 %v1918_v18, %v1918_v18  ;;  %v1798_v57 = vadd.f32 %v1779_v16, %v1655_v40 }
 0x208   : > { %v1934_v22 = vadd.f32 %v1933_v59, %v1932_v55  ;;  %v1641_v8 = vpop.f32.mrf.mxu1  ;;  %v2609_v14 = vpop.f32.mrf.mxu0  ;;  %v1983_v55 = vshrl.u32 %v1982_v42, 7 }
 0x209   : > { %v1968_v44 = vsel %vm566_vm3, %v1953_v38, 0.0  ;;  %v2249_v46 = vpack.c.bf16 %v1798_v57, %v1798_v57  ;;  %v1919_v5 = vmul.f32 %v1900_v51, %v1798_v57  ;;  %v1656_v53 = vadd.f32 %v1641_v8, %v1496_v26 }
 0x20a   : > { %v1969_v27 = vadd.f32 %v1968_v44, %v1967_v29  ;;  %v2584_v36 = vpop.f32.mrf.mxu1  ;;  %v1784_v50 = vpop.f32.mrf.mxu0  ;;  %vm1985_vm11 = vcmp.eq.s32.totalorder %v1983_v55, 1  ;;  %vm1984_vm12 = vcmp.eq.s32.totalorder %v1983_v55, 0 }
 0x20b   : > { %1849 = vst.msk [vmem:[%s3453_s8 + $0x1c] sm:$0xf] %vm1841_vm10, %v2249_v46  ;;  %v1935_v1 = vsel %vm566_vm3, %v1919_v5, 0.0  ;;  %v1954_v60 = vmul.f32 %v1919_v5, %v1919_v5  ;;  %v1799_v61 = vadd.f32 %v1784_v50, %v1656_v53 }
 0x20c   : > { %v1936_v0 = vadd.f32 %v1935_v1, %v1934_v22  ;;  %v1644_v47 = vpop.f32.mrf.mxu1  ;;  %v2612_v4 = vpop.f32.mrf.mxu0 }
 0x20d   : > { %v1970_v3 = vsel %vm566_vm3, %v1954_v60, 0.0  ;;  %v2250_v9 = vpack.c.bf16 %v1799_v61, %v1799_v61  ;;  %v1920_v41 = vmul.f32 %v1905_v39, %v1799_v61  ;;  %v1657_v63 = vadd.f32 %v1644_v47, %v1497_v7 }
 0x20e   : > { %v1971_v54 = vadd.f32 %v1970_v3, %v1969_v27  ;;  %v2585_v10 = vpop.f32.mrf.mxu1  ;;  %v1787_v49 = vpop.f32.mrf.mxu0 }
 0x20f   : > { %1850 = vst.msk [vmem:[%s3453_s8 + $0x20] sm:$0xf] %vm1841_vm10, %v2250_v9  ;;  %v1937_v48 = vsel %vm566_vm3, %v1920_v41, 0.0  ;;  %v1955_v37 = vmul.f32 %v1920_v41, %v1920_v41  ;;  %v1800_v20 = vadd.f32 %v1787_v49, %v1657_v63 }
 0x210   : > { %v1938_v43 = vadd.f32 %v1937_v48, %v1936_v0  ;;  %v2613_v21 = vpop.f32.mrf.mxu0 }
 0x211   : > { %v1972_v24 = vsel %vm566_vm3, %v1955_v37, 0.0  ;;  %v2251_v30 = vpack.c.bf16 %v1800_v20, %v1800_v20  ;;  %v1921_v13 = vmul.f32 %v1910_v17, %v1800_v20 }
 0x212   : > { %v1973_v11 = vadd.f32 %v1972_v24, %v1971_v54 }
 0x213   : > { %1851 = vst.msk [vmem:[%s3453_s8 + $0x24] sm:$0xf] %vm1841_vm10, %v2251_v30  ;;  %v1939_v12 = vsel %vm566_vm3, %v1921_v13, 0.0  ;;  %v1956_v28 = vmul.f32 %v1921_v13, %v1921_v13 }
 0x214   : > { %v1940_v15 = vadd.f32 %v1939_v12, %v1938_v43 }
 0x215   : > { %v1974_v31 = vsel %vm566_vm3, %v1956_v28, 0.0 }
 0x216   : > { %v1941_v62 = vrot.slane %v1940_v15, 4  ;;  %v1975_v34 = vadd.f32 %v1974_v31, %v1973_v11 }
 0x218   : > { %v1942_v33 = vadd.f32 %v1941_v62, %v1940_v15  ;;  %v1976_v32 = vrot.slane %v1975_v34, 4 }
 0x21a   : > { %v1943_v56 = vrot.slane %v1942_v33, 2  ;;  %v1977_v23 = vadd.f32 %v1976_v32, %v1975_v34 }
 0x21c   : > { %v1944_v52 = vadd.f32 %v1943_v56, %v1942_v33  ;;  %v1978_v45 = vrot.slane %v1977_v23, 2 }
 0x21e   : > { %v1979_v6 = vadd.f32 %v1978_v45, %v1977_v23  ;;  %v1945_v2 = vrot.slane %v1944_v52, 1 }
 0x220   : > { %v1980_v19 = vrot.slane %v1979_v6, 1  ;;  %v1946_v18 = vadd.f32 %v1945_v2, %v1944_v52 }
 0x222   : > { %v1981_v25 = vadd.f32 %v1980_v19, %v1979_v6 }
 0x224   : > { %v1986_v40 = vsel %vm1985_vm11, %v1981_v25, 0.0 }
 0x225   : > { %v1987_v26 = vsel %vm1984_vm12, %v1946_v18, %v1986_v40 }
 0x226   : > { %1988 = vst.msk [vmem:[%s289_s13] sm:$0xff] %vm566_vm3, %v1987_v26 }
 0x227 PF: > { %s18_s24 = sadd.s32 1, %s2679_s24  }
 0x228   : > { %p15_p4 = scmp.ge.s32.totalorder %s18_s24, 4  }
 0x22a   :  { %17 = sbr.rel (!%p15_p4) target bundleno = 1 (0x1), region = 94 }

// kernel: merge_forward.16
= control target key start
LH: loop header
LB: loop body
LE: loop exit
PB: predicated region body
PF: predicated region fallthrough
CT: control target
= control target key end

     0   :  { %vm885_vm0 = vcmask 523264   ;;  %vm1527_vm1 = vcmask 257024   ;;  %vm1592_vm2 = vcmask 261120   ;;  %s3300_s3 = inlined_call_operand.vmem [shape: bf16[128,32], index: 3, kind: input, shape index: {}]   ;;  %s3301_s2 = inlined_call_operand.vmem [shape: bf16[64,32], index: 2, kind: input, shape index: {}]   ;;  %s3302_s0 = inlined_call_operand.vmem [shape: bf16[512,64], index: 0, kind: input, shape index: {}]   ;;  %s3303_s1 = inlined_call_operand.vmem [shape: bf16[512,128], index: 1, kind: input, shape index: {}]   ;;  %s3304_s4 = inlined_call_operand.vmem [shape: bf16[512,32], index: 4, kind: output, shape index: {0}]   ;;  %s3305_s5 = inlined_call_operand.vmem [shape: f32[1,8,32], index: 5, kind: output, shape index: {1}]  }
   0x1   :  { %v2402_v0 = vld [vmem:[%s3300_s3 + $0x38] sm:$0xff]   ;;  %v2403_v1 = vld [vmem:[%s3300_s3 + $0x30] sm:$0xff]   ;;  %v2404_v3 = vld [vmem:[%s3300_s3 + $0x28] sm:$0xff]  }
   0x2   :  { %2250 = vmatprep.subr.bf16.mxu0 %v2402_v0  ;;  %v2405_v2 = vld [vmem:[%s3301_s2 + $0x18] sm:$0xff]   ;;  %v2407_v4 = vld [vmem:[%s3301_s2 + $0x10] sm:$0xff]   ;;  %v2409_v5 = vld [vmem:[%s3301_s2 + $0x8] sm:$0xff]  }
   0x3   :  { %2251 = vmatpush3.bf16.msra.mxu0 %v2402_v0  ;;  %2330 = vmatprep.subr.bf16.mxu1 %v2405_v2  ;;  %v2406_v6 = vld [vmem:[%s3300_s3 + $0x20] sm:$0xff]   ;;  %v2408_v9 = vld [vmem:[%s3300_s3 + $0x18] sm:$0xff]   ;;  %v2410_v11 = vld [vmem:[%s3300_s3 + $0x10] sm:$0xff]  }
   0x4   :  { %2252 = vmatprep.subr.bf16.mxu0 %v2403_v1  ;;  %2331 = vmatpush3.bf16.msra.mxu1 %v2405_v2  ;;  %v2411_v7 = vld [vmem:[%s3301_s2] sm:$0xff]   ;;  %v2414_v12 = vld [vmem:[%s3302_s0 + $0x8] sm:$0xff]   ;;  %v2418_v13 = vld [vmem:[%s3302_s0 + $0x10] sm:$0xff]  }
   0x5   :  { %2332 = vmatprep.subr.bf16.mxu1 %v2407_v4  ;;  %v2413_v8 = vld [vmem:[%s3302_s0] sm:$0xff]   ;;  %v2412_v14 = vld [vmem:[%s3300_s3 + $0x8] sm:$0xff]   ;;  %v2419_v16 = vld [vmem:[%s3302_s0 + $0x18] sm:$0xff]  }
   0x6   :  { %2338 = vmatprep.mubr.msk.bf16.mxu1 %vm885_vm0, %v2413_v8  ;;  %v2416_v10 = vld [vmem:[%s3303_s1] sm:$0xff]   ;;  %v2417_v18 = vld [vmem:[%s3303_s1 + $0x8] sm:$0xff]   ;;  %v2420_v19 = vld [vmem:[%s3303_s1 + $0x10] sm:$0xff]  }
   0x7   :  { %2253 = vmatpush3.bf16.msra.mxu0 %v2403_v1  ;;  %2266 = vmatprep.mubr.bf16.mxu0 %v2416_v10  ;;  %v2415_v15 = vld [vmem:[%s3300_s3] sm:$0xff]   ;;  %v2423_v20 = vld [vmem:[%s3302_s0 + $0x28] sm:$0xff]   ;;  %v2426_v21 = vld [vmem:[%s3302_s0 + $0x30] sm:$0xff]  }
   0x8   :  { %2254 = vmatprep.subr.bf16.mxu0 %v2404_v3  ;;  %2333 = vmatpush3.bf16.msra.mxu1 %v2407_v4  ;;  %v2422_v17 = vld [vmem:[%s3302_s0 + $0x20] sm:$0xff]   ;;  %v2421_v22 = vld [vmem:[%s3303_s1 + $0x18] sm:$0xff]   ;;  %v2425_v26 = vld [vmem:[%s3303_s1 + $0x28] sm:$0xff]  }
   0x9   :  { %2334 = vmatprep.subr.bf16.mxu1 %v2409_v5  ;;  %v2424_v23 = vld [vmem:[%s3303_s1 + $0x20] sm:$0xff]   ;;  %v2427_v24 = vld [vmem:[%s3302_s0 + $0x38] sm:$0xff]   ;;  %v2428_v27 = vld [vmem:[%s3303_s1 + $0x30] sm:$0xff]  }
   0xa   :  { %v2430_v25 = vld [vmem:[%s3302_s0 + $0x40] sm:$0xff]   ;;  %v2431_v28 = vld [vmem:[%s3302_s0 + $0x48] sm:$0xff]   ;;  %v2434_v29 = vld [vmem:[%s3302_s0 + $0x50] sm:$0xff]  }
   0xb   :  { %2255 = vmatpush3.bf16.msra.mxu0 %v2404_v3  ;;  %v2429_v30 = vld [vmem:[%s3303_s1 + $0x38] sm:$0xff]   ;;  %v2432_v31 = vld [vmem:[%s3303_s1 + $0x40] sm:$0xff]   ;;  %v2433_v34 = vld [vmem:[%s3303_s1 + $0x48] sm:$0xff]  }
   0xc   :  { %2256 = vmatprep.subr.bf16.mxu0 %v2406_v6  ;;  %2335 = vmatpush3.bf16.msra.mxu1 %v2409_v5  ;;  %v2435_v32 = vld [vmem:[%s3302_s0 + $0x58] sm:$0xff]   ;;  %v2438_v33 = vld [vmem:[%s3302_s0 + $0x60] sm:$0xff]   ;;  %v2436_v35 = vld [vmem:[%s3303_s1 + $0x50] sm:$0xff]  }
   0xd   :  { %2336 = vmatprep.subr.bf16.mxu1 %v2411_v7  ;;  %v2439_v36 = vld [vmem:[%s3302_s0 + $0x68] sm:$0xff]   ;;  %v2442_v37 = vld [vmem:[%s3302_s0 + $0x70] sm:$0xff]   ;;  %v2437_v38 = vld [vmem:[%s3303_s1 + $0x58] sm:$0xff]  }
   0xe   :  { %v2440_v39 = vld [vmem:[%s3303_s1 + $0x60] sm:$0xff]   ;;  %v2443_v40 = vld [vmem:[%s3302_s0 + $0x78] sm:$0xff]   ;;  %v2441_v42 = vld [vmem:[%s3303_s1 + $0x68] sm:$0xff]  }
   0xf   :  { %2257 = vmatpush3.bf16.msra.mxu0 %v2406_v6  ;;  %v2446_v41 = vld [vmem:[%s3302_s0 + $0x80] sm:$0xff]   ;;  %v2444_v43 = vld [vmem:[%s3303_s1 + $0x70] sm:$0xff]   ;;  %v2447_v44 = vld [vmem:[%s3302_s0 + $0x88] sm:$0xff]  }
  0x10   :  { %2258 = vmatprep.subr.bf16.mxu0 %v2408_v9  ;;  %2337 = vmatpush3.bf16.msra.mxu1 %v2411_v7  ;;  %v2450_v45 = vld [vmem:[%s3302_s0 + $0x90] sm:$0xff]   ;;  %v2445_v46 = vld [vmem:[%s3303_s1 + $0x78] sm:$0xff]   ;;  %v2448_v47 = vld [vmem:[%s3303_s1 + $0x80] sm:$0xff]  }
  0x11   :  { %v2451_v48 = vld [vmem:[%s3302_s0 + $0x98] sm:$0xff]   ;;  %v2454_v49 = vld [vmem:[%s3302_s0 + $0xa0] sm:$0xff]   ;;  %v2449_v50 = vld [vmem:[%s3303_s1 + $0x88] sm:$0xff]  }
  0x12   :  { %v2452_v51 = vld [vmem:[%s3303_s1 + $0x90] sm:$0xff]   ;;  %v2455_v52 = vld [vmem:[%s3302_s0 + $0xa8] sm:$0xff]   ;;  %v2453_v54 = vld [vmem:[%s3303_s1 + $0x98] sm:$0xff]  }
  0x13   :  { %2259 = vmatpush3.bf16.msra.mxu0 %v2408_v9  ;;  %2339 = vmatmul.mubr.msk.bf16.vlgmr.msra.gmra.mxu1 %vm885_vm0, %v2414_v12  ;;  %v2458_v53 = vld [vmem:[%s3302_s0 + $0xb0] sm:$0xff]   ;;  %v2456_v55 = vld [vmem:[%s3303_s1 + $0xa0] sm:$0xff]   ;;  %v2459_v56 = vld [vmem:[%s3302_s0 + $0xb8] sm:$0xff]  }
  0x14   :  { %2260 = vmatprep.subr.bf16.mxu0 %v2410_v11  ;;  %2342 = vmatprep.mubr.msk.bf16.mxu1 %vm885_vm0, %v2418_v13  ;;  %v2462_v57 = vld [vmem:[%s3302_s0 + $0xc0] sm:$0xff]   ;;  %v2457_v58 = vld [vmem:[%s3303_s1 + $0xa8] sm:$0xff]   ;;  %v2460_v59 = vld [vmem:[%s3303_s1 + $0xb0] sm:$0xff]  }
  0x15   :  { %v2463_v60 = vld [vmem:[%s3302_s0 + $0xc8] sm:$0xff]   ;;  %v2466_v61 = vld [vmem:[%s3302_s0 + $0xd0] sm:$0xff]   ;;  %v2461_v62 = vld [vmem:[%s3303_s1 + $0xb8] sm:$0xff]  }
  0x16   :  { %v2464_v63 = vld [vmem:[%s3303_s1 + $0xc0] sm:$0xff]   ;;  %v2467_v0 = vld [vmem:[%s3302_s0 + $0xd8] sm:$0xff]   ;;  %v2465_v2 = vld [vmem:[%s3303_s1 + $0xc8] sm:$0xff]  }
  0x17   :  { %2261 = vmatpush3.bf16.msra.mxu0 %v2410_v11  ;;  %v2470_v1 = vld [vmem:[%s3302_s0 + $0xe0] sm:$0xff]   ;;  %v2468_v3 = vld [vmem:[%s3303_s1 + $0xd0] sm:$0xff]   ;;  %v2471_v4 = vld [vmem:[%s3302_s0 + $0xe8] sm:$0xff]  }
  0x18   :  { %2262 = vmatprep.subr.bf16.mxu0 %v2412_v14  ;;  %v2474_v5 = vld [vmem:[%s3302_s0 + $0xf0] sm:$0xff]   ;;  %v2469_v6 = vld [vmem:[%s3303_s1 + $0xd8] sm:$0xff]   ;;  %v2472_v7 = vld [vmem:[%s3303_s1 + $0xe0] sm:$0xff]  }
  0x19   :  { %v2475_v8 = vld [vmem:[%s3302_s0 + $0xf8] sm:$0xff]   ;;  %v2473_v9 = vld [vmem:[%s3303_s1 + $0xe8] sm:$0xff]   ;;  %v2476_v10 = vld [vmem:[%s3303_s1 + $0xf0] sm:$0xff]  }
  0x1a   :  { %v2477_v11 = vld [vmem:[%s3303_s1 + $0xf8] sm:$0xff]  }
  0x1b   :  { %2263 = vmatpush3.bf16.msra.mxu0 %v2412_v14  ;;  %2343 = vmatmul.mubr.msk.bf16.gmra.mxu1 %vm885_vm0, %v2419_v16 }
  0x1c   :  { %2264 = vmatprep.subr.bf16.mxu0 %v2415_v15  ;;  %2346 = vmatprep.mubr.msk.bf16.mxu1 %vm885_vm0, %v2422_v17 }
  0x1f   :  { %2265 = vmatpush3.bf16.msra.mxu0 %v2415_v15 }
  0x22   :  { %2267 = vmatmul.mubr.bf16.vlgmr.msra.gmra.mxu0 %v2417_v18 }
  0x23   :  { %2270 = vmatprep.mubr.bf16.mxu0 %v2420_v19  ;;  %2347 = vmatmul.mubr.msk.bf16.gmra.mxu1 %vm885_vm0, %v2423_v20 }
  0x24   :  { %2350 = vmatprep.mubr.msk.bf16.mxu1 %vm885_vm0, %v2426_v21 }
  0x2a   :  { %2271 = vmatmul.mubr.bf16.gmra.mxu0 %v2421_v22 }
  0x2b   :  { %2274 = vmatprep.mubr.bf16.mxu0 %v2424_v23  ;;  %2351 = vmatmul.mubr.msk.bf16.gmra.mxu1 %vm885_vm0, %v2427_v24 }
  0x2c   :  { %2354 = vmatprep.mubr.msk.bf16.mxu1 %vm885_vm0, %v2430_v25 }
  0x32   :  { %2275 = vmatmul.mubr.bf16.gmra.mxu0 %v2425_v26 }
  0x33   :  { %2278 = vmatprep.mubr.bf16.mxu0 %v2428_v27  ;;  %2355 = vmatmul.mubr.msk.bf16.gmra.mxu1 %vm885_vm0, %v2431_v28 }
  0x34   :  { %2358 = vmatprep.mubr.msk.bf16.mxu1 %vm885_vm0, %v2434_v29 }
  0x3a   :  { %2279 = vmatmul.mubr.bf16.gmra.mxu0 %v2429_v30 }
  0x3b   :  { %2282 = vmatprep.mubr.bf16.mxu0 %v2432_v31  ;;  %2359 = vmatmul.mubr.msk.bf16.gmra.mxu1 %vm885_vm0, %v2435_v32 }
  0x3c   :  { %2362 = vmatprep.mubr.msk.bf16.mxu1 %vm885_vm0, %v2438_v33 }
  0x42   :  { %2283 = vmatmul.mubr.bf16.gmra.mxu0 %v2433_v34 }
  0x43   :  { %2286 = vmatprep.mubr.bf16.mxu0 %v2436_v35  ;;  %2363 = vmatmul.mubr.msk.bf16.gmra.mxu1 %vm885_vm0, %v2439_v36 }
  0x44   :  { %2366 = vmatprep.mubr.msk.bf16.mxu1 %vm885_vm0, %v2442_v37 }
  0x4a   :  { %2287 = vmatmul.mubr.bf16.gmra.mxu0 %v2437_v38 }
  0x4b   :  { %2290 = vmatprep.mubr.bf16.mxu0 %v2440_v39  ;;  %2367 = vmatmul.mubr.msk.bf16.gmra.mxu1 %vm885_vm0, %v2443_v40 }
  0x4c   :  { %2370 = vmatprep.mubr.msk.bf16.mxu1 %vm885_vm0, %v2446_v41 }
  0x52   :  { %2291 = vmatmul.mubr.bf16.gmra.mxu0 %v2441_v42 }
  0x53   :  { %2294 = vmatprep.mubr.bf16.mxu0 %v2444_v43  ;;  %2371 = vmatmul.mubr.msk.bf16.gmra.mxu1 %vm885_vm0, %v2447_v44 }
  0x54   :  { %2374 = vmatprep.mubr.msk.bf16.mxu1 %vm885_vm0, %v2450_v45 }
  0x5a   :  { %2295 = vmatmul.mubr.bf16.gmra.mxu0 %v2445_v46 }
  0x5b   :  { %2298 = vmatprep.mubr.bf16.mxu0 %v2448_v47  ;;  %2375 = vmatmul.mubr.msk.bf16.gmra.mxu1 %vm885_vm0, %v2451_v48 }
  0x5c   :  { %2378 = vmatprep.mubr.msk.bf16.mxu1 %vm885_vm0, %v2454_v49 }
  0x62   :  { %2299 = vmatmul.mubr.bf16.gmra.mxu0 %v2449_v50 }
  0x63   :  { %2302 = vmatprep.mubr.bf16.mxu0 %v2452_v51  ;;  %2379 = vmatmul.mubr.msk.bf16.gmra.mxu1 %vm885_vm0, %v2455_v52 }
  0x64   :  { %2382 = vmatprep.mubr.msk.bf16.mxu1 %vm885_vm0, %v2458_v53 }
  0x6a   :  { %2303 = vmatmul.mubr.bf16.gmra.mxu0 %v2453_v54 }
  0x6b   :  { %2306 = vmatprep.mubr.bf16.mxu0 %v2456_v55  ;;  %2383 = vmatmul.mubr.msk.bf16.gmra.mxu1 %vm885_vm0, %v2459_v56 }
  0x6c   :  { %2386 = vmatprep.mubr.msk.bf16.mxu1 %vm885_vm0, %v2462_v57 }
  0x72   :  { %2307 = vmatmul.mubr.bf16.gmra.mxu0 %v2457_v58 }
  0x73   :  { %2310 = vmatprep.mubr.bf16.mxu0 %v2460_v59  ;;  %2387 = vmatmul.mubr.msk.bf16.gmra.mxu1 %vm885_vm0, %v2463_v60 }
  0x74   :  { %2390 = vmatprep.mubr.msk.bf16.mxu1 %vm885_vm0, %v2466_v61 }
  0x7a   :  { %2311 = vmatmul.mubr.bf16.gmra.mxu0 %v2461_v62 }
  0x7b   :  { %2314 = vmatprep.mubr.bf16.mxu0 %v2464_v63  ;;  %2391 = vmatmul.mubr.msk.bf16.gmra.mxu1 %vm885_vm0, %v2467_v0 }
  0x7c   :  { %2394 = vmatprep.mubr.msk.bf16.mxu1 %vm885_vm0, %v2470_v1 }
  0x82   :  { %2315 = vmatmul.mubr.bf16.gmra.mxu0 %v2465_v2 }
  0x83   :  { %2318 = vmatprep.mubr.bf16.mxu0 %v2468_v3  ;;  %2395 = vmatmul.mubr.msk.bf16.gmra.mxu1 %vm885_vm0, %v2471_v4 }
  0x84   :  { %2398 = vmatprep.mubr.msk.bf16.mxu1 %vm885_vm0, %v2474_v5 }
  0x8a   :  { %2319 = vmatmul.mubr.bf16.gmra.mxu0 %v2469_v6 }
  0x8b   :  { %2322 = vmatprep.mubr.bf16.mxu0 %v2472_v7  ;;  %2399 = vmatmul.mubr.msk.bf16.gmra.mxu1 %vm885_vm0, %v2475_v8 }
  0x92   :  { %2323 = vmatmul.mubr.bf16.gmra.mxu0 %v2473_v9 }
  0x93   :  { %2326 = vmatprep.mubr.bf16.mxu0 %v2476_v10 }
  0x9a   :  { %2327 = vmatmul.mubr.bf16.gmra.mxu0 %v2477_v11 }
  0xd3   :  { %v2340_v12 = vpop.f32.mrf.mxu1 }
  0xd5   :  { %v1016_v13 = vpop.f32.mrf.mxu1 }
  0xd7   :  { %v2341_v14 = vpop.f32.mrf.mxu1 }
  0xd9   :  { %v1019_v15 = vpop.f32.mrf.mxu1 }
  0xdb   :  { %v2344_v16 = vpop.f32.mrf.mxu1 }
  0xdd   :  { %v1032_v17 = vpop.f32.mrf.mxu1 }
  0xdf   :  { %v2345_v18 = vpop.f32.mrf.mxu1 }
  0xe1   :  { %v1035_v21 = vpop.f32.mrf.mxu1 }
  0xe2   :  { %v2268_v19 = vpop.f32.mrf.mxu0 }
  0xe3   :  { %v1025_v20 = vadd.f32 %v2340_v12, %v2268_v19  ;;  %v2348_v25 = vpop.f32.mrf.mxu1 }
  0xe4   :  { %v446_v22 = vpop.f32.mrf.mxu0 }
  0xe5   :  { %v2112_v23 = vpack.c.bf16 %v1025_v20, %v1025_v20  ;;  %v1017_v24 = vadd.f32 %v1016_v13, %v446_v22  ;;  %v2772_v28 = vpop.f32.mrf.mxu1  ;;  %v1728_v34 = vmul.f32 %v1025_v20, %v1025_v20  ;;  %v1596_v43 = vsel %vm1592_vm2, %v1025_v20, 0.0 }
  0xe6   :  { %v2269_v26 = vpop.f32.mrf.mxu0 }
  0xe7   :  { %1530 = vst.msk [vmem:[%s3304_s4 + $0x8] sm:$0xf] %vm1527_vm1, %v2112_v23  ;;  %v2110_v27 = vpack.c.bf16 %v1017_v24, %v1017_v24  ;;  %v1028_v29 = vadd.f32 %v2341_v14, %v2269_v26  ;;  %v1726_v31 = vmul.f32 %v1017_v24, %v1017_v24  ;;  %v2778_v33 = vpop.f32.mrf.mxu1  ;;  %v1593_v35 = vsel %vm1592_vm2, %v1017_v24, 0.0 }
  0xe8   :  { %v449_v30 = vpop.f32.mrf.mxu0  ;;  %v1793_v55 = vsel %vm1592_vm2, %v1728_v34, 0.0 }
  0xe9   :  { %1528 = vst.msk [vmem:[%s3304_s4] sm:$0xf] %vm1527_vm1, %v2110_v27  ;;  %v1020_v32 = vadd.f32 %v1019_v15, %v449_v30  ;;  %v2113_v36 = vpack.c.bf16 %v1028_v29, %v1028_v29  ;;  %v2782_v42 = vpop.f32.mrf.mxu1  ;;  %v1790_v46 = vsel %vm1592_vm2, %v1726_v31, 0.0  ;;  %v1729_v47 = vmul.f32 %v1028_v29, %v1028_v29 }
  0xea   :  { %v2272_v37 = vpop.f32.mrf.mxu0  ;;  %v1598_v56 = vsel %vm1592_vm2, %v1028_v29, 0.0 }
  0xeb   :  { %v2111_v38 = vpack.c.bf16 %v1020_v32, %v1020_v32  ;;  %v1594_v39 = vsel %vm1592_vm2, %v1020_v32, 0.0  ;;  %v1727_v40 = vmul.f32 %v1020_v32, %v1020_v32  ;;  %v1041_v41 = vadd.f32 %v2344_v16, %v2272_v37  ;;  %1531 = vst.msk [vmem:[%s3304_s4 + $0xc] sm:$0xf] %vm1527_vm1, %v2113_v36  ;;  %v2795_v50 = vpop.f32.mrf.mxu1 }
  0xec   :  { %v1595_v44 = vadd.f32 %v1594_v39, %v1593_v35  ;;  %v462_v45 = vpop.f32.mrf.mxu0  ;;  %v1795_v63 = vsel %vm1592_vm2, %v1729_v47, 0.0 }
  0xed   :  { %1529 = vst.msk [vmem:[%s3304_s4 + $0x4] sm:$0xf] %vm1527_vm1, %v2111_v38  ;;  %v1791_v48 = vsel %vm1592_vm2, %v1727_v40, 0.0  ;;  %v2116_v49 = vpack.c.bf16 %v1041_v41, %v1041_v41  ;;  %v1033_v53 = vadd.f32 %v1032_v17, %v462_v45  ;;  %v2803_v58 = vpop.f32.mrf.mxu1  ;;  %v1732_v8 = vmul.f32 %v1041_v41, %v1041_v41 }
  0xee   :  { %v1597_v51 = vadd.f32 %v1596_v43, %v1595_v44  ;;  %v1792_v52 = vadd.f32 %v1791_v48, %v1790_v46  ;;  %v2273_v54 = vpop.f32.mrf.mxu0  ;;  %v1604_v20 = vsel %vm1592_vm2, %v1041_v41, 0.0 }
  0xef   :  { %1534 = vst.msk [vmem:[%s3304_s4 + $0x18] sm:$0xf] %vm1527_vm1, %v2116_v49  ;;  %v1044_v57 = vadd.f32 %v2345_v18, %v2273_v54  ;;  %v2114_v60 = vpack.c.bf16 %v1033_v53, %v1033_v53  ;;  %v1600_v0 = vsel %vm1592_vm2, %v1033_v53, 0.0  ;;  %v1730_v1 = vmul.f32 %v1033_v53, %v1033_v53  ;;  %v2807_v3 = vpop.f32.mrf.mxu1 }
  0xf0   :  { %v1794_v59 = vadd.f32 %v1793_v55, %v1792_v52  ;;  %v1599_v61 = vadd.f32 %v1598_v56, %v1597_v51  ;;  %v465_v62 = vpop.f32.mrf.mxu0  ;;  %v1801_v30 = vsel %vm1592_vm2, %v1732_v8, 0.0 }
  0xf1   :  { %v2117_v2 = vpack.c.bf16 %v1044_v57, %v1044_v57  ;;  %1532 = vst.msk [vmem:[%s3304_s4 + $0x10] sm:$0xf] %vm1527_vm1, %v2114_v60  ;;  %v1036_v6 = vadd.f32 %v1035_v21, %v465_v62  ;;  %v1797_v9 = vsel %vm1592_vm2, %v1730_v1, 0.0  ;;  %v2818_v11 = vpop.f32.mrf.mxu1  ;;  %v1733_v21 = vmul.f32 %v1044_v57, %v1044_v57 }
  0xf2   :  { %v1601_v4 = vadd.f32 %v1600_v0, %v1599_v61  ;;  %v1796_v5 = vadd.f32 %v1795_v63, %v1794_v59  ;;  %v2276_v7 = vpop.f32.mrf.mxu0  ;;  %v1606_v31 = vsel %vm1592_vm2, %v1044_v57, 0.0 }
  0xf3   :  { %1535 = vst.msk [vmem:[%s3304_s4 + $0x1c] sm:$0xf] %vm1527_vm1, %v2117_v2  ;;  %v1057_v10 = vadd.f32 %v2348_v25, %v2276_v7  ;;  %v2115_v13 = vpack.c.bf16 %v1036_v6, %v1036_v6  ;;  %v1602_v14 = vsel %vm1592_vm2, %v1036_v6, 0.0  ;;  %v1731_v15 = vmul.f32 %v1036_v6, %v1036_v6  ;;  %v2821_v19 = vpop.f32.mrf.mxu1 }
  0xf4   :  { %v1798_v12 = vadd.f32 %v1797_v9, %v1796_v5  ;;  %v478_v16 = vpop.f32.mrf.mxu0  ;;  %v1603_v17 = vadd.f32 %v1602_v14, %v1601_v4  ;;  %v1803_v39 = vsel %vm1592_vm2, %v1733_v21, 0.0 }
  0xf5   :  { %v2120_v18 = vpack.c.bf16 %v1057_v10, %v1057_v10  ;;  %1533 = vst.msk [vmem:[%s3304_s4 + $0x14] sm:$0xf] %vm1527_vm1, %v2115_v13  ;;  %v1799_v22 = vsel %vm1592_vm2, %v1731_v15, 0.0  ;;  %v1049_v23 = vadd.f32 %v2772_v28, %v478_v16  ;;  %v2835_v29 = vpop.f32.mrf.mxu1  ;;  %v1736_v43 = vmul.f32 %v1057_v10, %v1057_v10 }
  0xf6   :  { %v2277_v24 = vpop.f32.mrf.mxu0  ;;  %v1605_v25 = vadd.f32 %v1604_v20, %v1603_v17  ;;  %v1800_v26 = vadd.f32 %v1799_v22, %v1798_v12  ;;  %v1612_v57 = vsel %vm1592_vm2, %v1057_v10, 0.0 }
  0xf7   :  { %1538 = vst.msk [vmem:[%s3304_s4 + $0x28] sm:$0xf] %vm1527_vm1, %v2120_v18  ;;  %v1060_v27 = vadd.f32 %v2778_v33, %v2277_v24  ;;  %v2118_v32 = vpack.c.bf16 %v1049_v23, %v1049_v23  ;;  %v1734_v34 = vmul.f32 %v1049_v23, %v1049_v23  ;;  %v2839_v38 = vpop.f32.mrf.mxu1  ;;  %v1608_v33 = vsel %vm1592_vm2, %v1049_v23, 0.0 }
  0xf8   :  { %v481_v35 = vpop.f32.mrf.mxu0  ;;  %v1802_v28 = vadd.f32 %v1801_v30, %v1800_v26  ;;  %v1607_v36 = vadd.f32 %v1606_v31, %v1605_v25  ;;  %v1809_v2 = vsel %vm1592_vm2, %v1736_v43, 0.0 }
  0xf9   :  { %v2121_v37 = vpack.c.bf16 %v1060_v27, %v1060_v27  ;;  %1536 = vst.msk [vmem:[%s3304_s4 + $0x20] sm:$0xf] %vm1527_vm1, %v2118_v32  ;;  %v1052_v40 = vadd.f32 %v2782_v42, %v481_v35  ;;  %v2853_v47 = vpop.f32.mrf.mxu1  ;;  %v1805_v48 = vsel %vm1592_vm2, %v1734_v34, 0.0  ;;  %v1737_v59 = vmul.f32 %v1060_v27, %v1060_v27 }
  0xfa   :  { %v2280_v41 = vpop.f32.mrf.mxu0  ;;  %v1609_v44 = vadd.f32 %v1608_v33, %v1607_v36  ;;  %v1804_v45 = vadd.f32 %v1803_v39, %v1802_v28  ;;  %v1614_v4 = vsel %vm1592_vm2, %v1060_v27, 0.0 }
  0xfb   :  { %1539 = vst.msk [vmem:[%s3304_s4 + $0x2c] sm:$0xf] %vm1527_vm1, %v2121_v37  ;;  %v1073_v46 = vadd.f32 %v2795_v50, %v2280_v41  ;;  %v2119_v49 = vpack.c.bf16 %v1052_v40, %v1052_v40  ;;  %v1610_v51 = vsel %vm1592_vm2, %v1052_v40, 0.0  ;;  %v1735_v52 = vmul.f32 %v1052_v40, %v1052_v40  ;;  %v2857_v56 = vpop.f32.mrf.mxu1 }
  0xfc   :  { %v494_v42 = vpop.f32.mrf.mxu0  ;;  %v1806_v53 = vadd.f32 %v1805_v48, %v1804_v45  ;;  %v1611_v54 = vadd.f32 %v1610_v51, %v1609_v44  ;;  %v1811_v12 = vsel %vm1592_vm2, %v1737_v59, 0.0 }
  0xfd   :  { %v2124_v55 = vpack.c.bf16 %v1073_v46, %v1073_v46  ;;  %1537 = vst.msk [vmem:[%s3304_s4 + $0x24] sm:$0xf] %vm1527_vm1, %v2119_v49  ;;  %v1807_v50 = vsel %vm1592_vm2, %v1735_v52, 0.0  ;;  %v1065_v60 = vadd.f32 %v2803_v58, %v494_v42  ;;  %v2871_v1 = vpop.f32.mrf.mxu1  ;;  %v1740_v15 = vmul.f32 %v1073_v46, %v1073_v46 }
  0xfe   :  { %v2281_v61 = vpop.f32.mrf.mxu0  ;;  %v1613_v62 = vadd.f32 %v1612_v57, %v1611_v54  ;;  %v1808_v63 = vadd.f32 %v1807_v50, %v1806_v53  ;;  %v1620_v31 = vsel %vm1592_vm2, %v1073_v46, 0.0 }
  0xff   :  { %1542 = vst.msk [vmem:[%s3304_s4 + $0x38] sm:$0xf] %vm1527_vm1, %v2124_v55  ;;  %v1076_v0 = vadd.f32 %v2807_v3, %v2281_v61  ;;  %v2122_v5 = vpack.c.bf16 %v1065_v60, %v1065_v60  ;;  %v1738_v6 = vmul.f32 %v1065_v60, %v1065_v60  ;;  %v2875_v10 = vpop.f32.mrf.mxu1  ;;  %v1616_v3 = vsel %vm1592_vm2, %v1065_v60, 0.0 }
 0x100   :  { %v497_v7 = vpop.f32.mrf.mxu0  ;;  %v1810_v58 = vadd.f32 %v1809_v2, %v1808_v63  ;;  %v1615_v8 = vadd.f32 %v1614_v4, %v1613_v62  ;;  %v1817_v33 = vsel %vm1592_vm2, %v1740_v15, 0.0 }
 0x101   :  { %v2125_v9 = vpack.c.bf16 %v1076_v0, %v1076_v0  ;;  %1540 = vst.msk [vmem:[%s3304_s4 + $0x30] sm:$0xf] %vm1527_vm1, %v2122_v5  ;;  %v1068_v13 = vadd.f32 %v2818_v11, %v497_v7  ;;  %v2889_v20 = vpop.f32.mrf.mxu1  ;;  %v1813_v21 = vsel %vm1592_vm2, %v1738_v6, 0.0  ;;  %v1741_v32 = vmul.f32 %v1076_v0, %v1076_v0 }
 0x102   :  { %v2284_v14 = vpop.f32.mrf.mxu0  ;;  %v1617_v16 = vadd.f32 %v1616_v3, %v1615_v8  ;;  %v1812_v17 = vadd.f32 %v1811_v12, %v1810_v58  ;;  %v1622_v40 = vsel %vm1592_vm2, %v1076_v0, 0.0 }
 0x103   :  { %1543 = vst.msk [vmem:[%s3304_s4 + $0x3c] sm:$0xf] %vm1527_vm1, %v2125_v9  ;;  %v1089_v18 = vadd.f32 %v2821_v19, %v2284_v14  ;;  %v2123_v22 = vpack.c.bf16 %v1068_v13, %v1068_v13  ;;  %v1618_v23 = vsel %vm1592_vm2, %v1068_v13, 0.0  ;;  %v1739_v24 = vmul.f32 %v1068_v13, %v1068_v13  ;;  %v2893_v30 = vpop.f32.mrf.mxu1 }
 0x104   :  { %v510_v11 = vpop.f32.mrf.mxu0  ;;  %v1814_v25 = vadd.f32 %v1813_v21, %v1812_v17  ;;  %v1619_v26 = vadd.f32 %v1618_v23, %v1617_v16  ;;  %v1819_v49 = vsel %vm1592_vm2, %v1741_v32, 0.0 }
 0x105   :  { %v2128_v27 = vpack.c.bf16 %v1089_v18, %v1089_v18  ;;  %1541 = vst.msk [vmem:[%s3304_s4 + $0x34] sm:$0xf] %vm1527_vm1, %v2123_v22  ;;  %v1815_v19 = vsel %vm1592_vm2, %v1739_v24, 0.0  ;;  %v1081_v34 = vadd.f32 %v2835_v29, %v510_v11  ;;  %v2907_v39 = vpop.f32.mrf.mxu1  ;;  %v1744_v42 = vmul.f32 %v1089_v18, %v1089_v18 }
 0x106   :  { %v2285_v35 = vpop.f32.mrf.mxu0  ;;  %v1621_v28 = vadd.f32 %v1620_v31, %v1619_v26  ;;  %v1816_v36 = vadd.f32 %v1815_v19, %v1814_v25  ;;  %v1628_v4 = vsel %vm1592_vm2, %v1089_v18, 0.0 }
 0x107   :  { %1546 = vst.msk [vmem:[%s3304_s4 + $0x48] sm:$0xf] %vm1527_vm1, %v2128_v27  ;;  %v1092_v37 = vadd.f32 %v2839_v38, %v2285_v35  ;;  %v2126_v41 = vpack.c.bf16 %v1081_v34, %v1081_v34  ;;  %v1742_v43 = vmul.f32 %v1081_v34, %v1081_v34  ;;  %v2911_v48 = vpop.f32.mrf.mxu1  ;;  %v1624_v38 = vsel %vm1592_vm2, %v1081_v34, 0.0 }
 0x108   :  { %v513_v44 = vpop.f32.mrf.mxu0  ;;  %v1818_v29 = vadd.f32 %v1817_v33, %v1816_v36  ;;  %v1623_v45 = vadd.f32 %v1622_v40, %v1621_v28  ;;  %v1825_v3 = vsel %vm1592_vm2, %v1744_v42, 0.0 }
 0x109   :  { %v2129_v46 = vpack.c.bf16 %v1092_v37, %v1092_v37  ;;  %1544 = vst.msk [vmem:[%s3304_s4 + $0x40] sm:$0xf] %vm1527_vm1, %v2126_v41  ;;  %v1084_v51 = vadd.f32 %v2853_v47, %v513_v44  ;;  %v2925_v57 = vpop.f32.mrf.mxu1  ;;  %v1821_v59 = vsel %vm1592_vm2, %v1742_v43, 0.0  ;;  %v1745_v5 = vmul.f32 %v1092_v37, %v1092_v37 }
 0x10a   :  { %v2288_v52 = vpop.f32.mrf.mxu0  ;;  %v1625_v53 = vadd.f32 %v1624_v38, %v1623_v45  ;;  %v1820_v54 = vadd.f32 %v1819_v49, %v1818_v29  ;;  %v1630_v13 = vsel %vm1592_vm2, %v1092_v37, 0.0 }
 0x10b   :  { %1547 = vst.msk [vmem:[%s3304_s4 + $0x4c] sm:$0xf] %vm1527_vm1, %v2129_v46  ;;  %v1105_v55 = vadd.f32 %v2857_v56, %v2288_v52  ;;  %v2127_v50 = vpack.c.bf16 %v1084_v51, %v1084_v51  ;;  %v1626_v60 = vsel %vm1592_vm2, %v1084_v51, 0.0  ;;  %v1743_v61 = vmul.f32 %v1084_v51, %v1084_v51  ;;  %v2929_v2 = vpop.f32.mrf.mxu1 }
 0x10c   :  { %v526_v47 = vpop.f32.mrf.mxu0  ;;  %v1822_v62 = vadd.f32 %v1821_v59, %v1820_v54  ;;  %v1627_v63 = vadd.f32 %v1626_v60, %v1625_v53  ;;  %v1827_v22 = vsel %vm1592_vm2, %v1745_v5, 0.0 }
 0x10d   :  { %v2132_v0 = vpack.c.bf16 %v1105_v55, %v1105_v55  ;;  %1545 = vst.msk [vmem:[%s3304_s4 + $0x44] sm:$0xf] %vm1527_vm1, %v2127_v50  ;;  %v1823_v56 = vsel %vm1592_vm2, %v1743_v61, 0.0  ;;  %v1097_v6 = vadd.f32 %v2871_v1, %v526_v47  ;;  %v2943_v12 = vpop.f32.mrf.mxu1  ;;  %v1748_v11 = vmul.f32 %v1105_v55, %v1105_v55 }
 0x10e   :  { %v2289_v7 = vpop.f32.mrf.mxu0  ;;  %v1629_v58 = vadd.f32 %v1628_v4, %v1627_v63  ;;  %v1824_v8 = vadd.f32 %v1823_v56, %v1822_v62  ;;  %v1636_v40 = vsel %vm1592_vm2, %v1105_v55, 0.0 }
 0x10f   :  { %1550 = vst.msk [vmem:[%s3304_s4 + $0x58] sm:$0xf] %vm1527_vm1, %v2132_v0  ;;  %v1108_v9 = vadd.f32 %v2875_v10, %v2289_v7  ;;  %v2130_v14 = vpack.c.bf16 %v1097_v6, %v1097_v6  ;;  %v1746_v15 = vmul.f32 %v1097_v6, %v1097_v6  ;;  %v2947_v21 = vpop.f32.mrf.mxu1  ;;  %v1632_v10 = vsel %vm1592_vm2, %v1097_v6, 0.0 }
 0x110   :  { %v529_v16 = vpop.f32.mrf.mxu0  ;;  %v1826_v1 = vadd.f32 %v1825_v3, %v1824_v8  ;;  %v1631_v17 = vadd.f32 %v1630_v13, %v1629_v58  ;;  %v1833_v38 = vsel %vm1592_vm2, %v1748_v11, 0.0 }
 0x111   :  { %v2133_v18 = vpack.c.bf16 %v1108_v9, %v1108_v9  ;;  %1548 = vst.msk [vmem:[%s3304_s4 + $0x50] sm:$0xf] %vm1527_vm1, %v2130_v14  ;;  %v1100_v23 = vadd.f32 %v2889_v20, %v529_v16  ;;  %v2961_v31 = vpop.f32.mrf.mxu1  ;;  %v1829_v32 = vsel %vm1592_vm2, %v1746_v15, 0.0  ;;  %v1749_v41 = vmul.f32 %v1108_v9, %v1108_v9 }
 0x112   :  { %v2292_v24 = vpop.f32.mrf.mxu0  ;;  %v1633_v25 = vadd.f32 %v1632_v10, %v1631_v17  ;;  %v1828_v26 = vadd.f32 %v1827_v22, %v1826_v1  ;;  %v1638_v51 = vsel %vm1592_vm2, %v1108_v9, 0.0 }
 0x113   :  { %1551 = vst.msk [vmem:[%s3304_s4 + $0x5c] sm:$0xf] %vm1527_vm1, %v2133_v18  ;;  %v1121_v27 = vadd.f32 %v2893_v30, %v2292_v24  ;;  %v2131_v19 = vpack.c.bf16 %v1100_v23, %v1100_v23  ;;  %v1634_v34 = vsel %vm1592_vm2, %v1100_v23, 0.0  ;;  %v1747_v35 = vmul.f32 %v1100_v23, %v1100_v23  ;;  %v2965_v33 = vpop.f32.mrf.mxu1 }
 0x114   :  { %v542_v20 = vpop.f32.mrf.mxu0  ;;  %v1830_v28 = vadd.f32 %v1829_v32, %v1828_v26  ;;  %v1635_v36 = vadd.f32 %v1634_v34, %v1633_v25  ;;  %v1835_v50 = vsel %vm1592_vm2, %v1749_v41, 0.0 }
 0x115   :  { %v2136_v37 = vpack.c.bf16 %v1121_v27, %v1121_v27  ;;  %1549 = vst.msk [vmem:[%s3304_s4 + $0x54] sm:$0xf] %vm1527_vm1, %v2131_v19  ;;  %v1831_v30 = vsel %vm1592_vm2, %v1747_v35, 0.0  ;;  %v1113_v43 = vadd.f32 %v2907_v39, %v542_v20  ;;  %v2979_v49 = vpop.f32.mrf.mxu1  ;;  %v1752_v47 = vmul.f32 %v1121_v27, %v1121_v27 }
 0x116   :  { %v2293_v44 = vpop.f32.mrf.mxu0  ;;  %v1637_v29 = vadd.f32 %v1636_v40, %v1635_v36  ;;  %v1832_v45 = vadd.f32 %v1831_v30, %v1830_v28  ;;  %v1644_v13 = vsel %vm1592_vm2, %v1121_v27, 0.0 }
 0x117   :  { %1554 = vst.msk [vmem:[%s3304_s4 + $0x68] sm:$0xf] %vm1527_vm1, %v2136_v37  ;;  %v1124_v46 = vadd.f32 %v2911_v48, %v2293_v44  ;;  %v2134_v52 = vpack.c.bf16 %v1113_v43, %v1113_v43  ;;  %v1750_v42 = vmul.f32 %v1113_v43, %v1113_v43  ;;  %v2983_v59 = vpop.f32.mrf.mxu1  ;;  %v1640_v48 = vsel %vm1592_vm2, %v1113_v43, 0.0 }
 0x118   :  { %v545_v53 = vpop.f32.mrf.mxu0  ;;  %v1834_v39 = vadd.f32 %v1833_v38, %v1832_v45  ;;  %v1639_v54 = vadd.f32 %v1638_v51, %v1637_v29  ;;  %v1841_v10 = vsel %vm1592_vm2, %v1752_v47, 0.0 }
 0x119   :  { %v2137_v55 = vpack.c.bf16 %v1124_v46, %v1124_v46  ;;  %1552 = vst.msk [vmem:[%s3304_s4 + $0x60] sm:$0xf] %vm1527_vm1, %v2134_v52  ;;  %v1116_v60 = vadd.f32 %v2925_v57, %v545_v53  ;;  %v2997_v4 = vpop.f32.mrf.mxu1  ;;  %v1837_v5 = vsel %vm1592_vm2, %v1750_v42, 0.0  ;;  %v1753_v14 = vmul.f32 %v1124_v46, %v1124_v46 }
 0x11a   :  { %v2296_v61 = vpop.f32.mrf.mxu0  ;;  %v1641_v62 = vadd.f32 %v1640_v48, %v1639_v54  ;;  %v1836_v63 = vadd.f32 %v1835_v50, %v1834_v39  ;;  %v1646_v23 = vsel %vm1592_vm2, %v1124_v46, 0.0 }
 0x11b   :  { %1555 = vst.msk [vmem:[%s3304_s4 + $0x6c] sm:$0xf] %vm1527_vm1, %v2137_v55  ;;  %v1137_v0 = vadd.f32 %v2929_v2, %v2296_v61  ;;  %v2135_v56 = vpack.c.bf16 %v1116_v60, %v1116_v60  ;;  %v1642_v6 = vsel %vm1592_vm2, %v1116_v60, 0.0  ;;  %v1751_v7 = vmul.f32 %v1116_v60, %v1116_v60  ;;  %v3001_v3 = vpop.f32.mrf.mxu1 }
 0x11c   :  { %v558_v57 = vpop.f32.mrf.mxu0  ;;  %v1838_v58 = vadd.f32 %v1837_v5, %v1836_v63  ;;  %v1643_v8 = vadd.f32 %v1642_v6, %v1641_v62  ;;  %v1843_v19 = vsel %vm1592_vm2, %v1753_v14, 0.0 }
 0x11d   :  { %v2140_v9 = vpack.c.bf16 %v1137_v0, %v1137_v0  ;;  %1553 = vst.msk [vmem:[%s3304_s4 + $0x64] sm:$0xf] %vm1527_vm1, %v2135_v56  ;;  %v1839_v2 = vsel %vm1592_vm2, %v1751_v7, 0.0  ;;  %v1129_v15 = vadd.f32 %v2943_v12, %v558_v57  ;;  %v3015_v22 = vpop.f32.mrf.mxu1  ;;  %v1756_v20 = vmul.f32 %v1137_v0, %v1137_v0 }
 0x11e   :  { %v2297_v16 = vpop.f32.mrf.mxu0  ;;  %v1645_v1 = vadd.f32 %v1644_v13, %v1643_v8  ;;  %v1840_v17 = vadd.f32 %v1839_v2, %v1838_v58  ;;  %v1652_v51 = vsel %vm1592_vm2, %v1137_v0, 0.0 }
 0x11f   :  { %1558 = vst.msk [vmem:[%s3304_s4 + $0x78] sm:$0xf] %vm1527_vm1, %v2140_v9  ;;  %v1140_v18 = vadd.f32 %v2947_v21, %v2297_v16  ;;  %v2138_v24 = vpack.c.bf16 %v1129_v15, %v1129_v15  ;;  %v1754_v11 = vmul.f32 %v1129_v15, %v1129_v15  ;;  %v3019_v32 = vpop.f32.mrf.mxu1  ;;  %v1648_v21 = vsel %vm1592_vm2, %v1129_v15, 0.0 }
 0x120   :  { %v561_v25 = vpop.f32.mrf.mxu0  ;;  %v1842_v12 = vadd.f32 %v1841_v10, %v1840_v17  ;;  %v1647_v26 = vadd.f32 %v1646_v23, %v1645_v1  ;;  %v1849_v48 = vsel %vm1592_vm2, %v1756_v20, 0.0 }
 0x121   :  { %v2141_v27 = vpack.c.bf16 %v1140_v18, %v1140_v18  ;;  %1556 = vst.msk [vmem:[%s3304_s4 + $0x70] sm:$0xf] %vm1527_vm1, %v2138_v24  ;;  %v1132_v34 = vadd.f32 %v2961_v31, %v561_v25  ;;  %v3033_v40 = vpop.f32.mrf.mxu1  ;;  %v1845_v41 = vsel %vm1592_vm2, %v1754_v11, 0.0  ;;  %v1757_v52 = vmul.f32 %v1140_v18, %v1140_v18 }
 0x122   :  { %v2300_v35 = vpop.f32.mrf.mxu0  ;;  %v1649_v28 = vadd.f32 %v1648_v21, %v1647_v26  ;;  %v1844_v36 = vadd.f32 %v1843_v19, %v1842_v12  ;;  %v1654_v60 = vsel %vm1592_vm2, %v1140_v18, 0.0 }
 0x123   :  { %1559 = vst.msk [vmem:[%s3304_s4 + $0x7c] sm:$0xf] %vm1527_vm1, %v2141_v27  ;;  %v1153_v37 = vadd.f32 %v2965_v33, %v2300_v35  ;;  %v2139_v30 = vpack.c.bf16 %v1132_v34, %v1132_v34  ;;  %v1650_v43 = vsel %vm1592_vm2, %v1132_v34, 0.0  ;;  %v1755_v44 = vmul.f32 %v1132_v34, %v1132_v34  ;;  %v3037_v38 = vpop.f32.mrf.mxu1 }
 0x124   :  { %v574_v31 = vpop.f32.mrf.mxu0  ;;  %v1846_v29 = vadd.f32 %v1845_v41, %v1844_v36  ;;  %v1651_v45 = vadd.f32 %v1650_v43, %v1649_v28  ;;  %v1851_v56 = vsel %vm1592_vm2, %v1757_v52, 0.0 }
 0x125   :  { %v2144_v46 = vpack.c.bf16 %v1153_v37, %v1153_v37  ;;  %1557 = vst.msk [vmem:[%s3304_s4 + $0x74] sm:$0xf] %vm1527_vm1, %v2139_v30  ;;  %v1847_v33 = vsel %vm1592_vm2, %v1755_v44, 0.0  ;;  %v1145_v42 = vadd.f32 %v2979_v49, %v574_v31  ;;  %v3051_v50 = vpop.f32.mrf.mxu1  ;;  %v1760_v57 = vmul.f32 %v1153_v37, %v1153_v37 }
 0x126   :  { %v2301_v53 = vpop.f32.mrf.mxu0  ;;  %v1653_v39 = vadd.f32 %v1652_v51, %v1651_v45  ;;  %v1848_v54 = vadd.f32 %v1847_v33, %v1846_v29  ;;  %v1660_v23 = vsel %vm1592_vm2, %v1153_v37, 0.0 }
 0x127   :  { %1562 = vst.msk [vmem:[%s3304_s4 + $0x88] sm:$0xf] %vm1527_vm1, %v2144_v46  ;;  %v1156_v55 = vadd.f32 %v2983_v59, %v2301_v53  ;;  %v2142_v61 = vpack.c.bf16 %v1145_v42, %v1145_v42  ;;  %v1758_v47 = vmul.f32 %v1145_v42, %v1145_v42  ;;  %v3055_v5 = vpop.f32.mrf.mxu1  ;;  %v1656_v59 = vsel %vm1592_vm2, %v1145_v42, 0.0 }
 0x128   :  { %v577_v62 = vpop.f32.mrf.mxu0  ;;  %v1850_v49 = vadd.f32 %v1849_v48, %v1848_v54  ;;  %v1655_v63 = vadd.f32 %v1654_v60, %v1653_v39  ;;  %v1857_v21 = vsel %vm1592_vm2, %v1760_v57, 0.0 }
 0x129   :  { %v2145_v0 = vpack.c.bf16 %v1156_v55, %v1156_v55  ;;  %1560 = vst.msk [vmem:[%s3304_s4 + $0x80] sm:$0xf] %vm1527_vm1, %v2142_v61  ;;  %v1148_v6 = vadd.f32 %v2997_v4, %v577_v62  ;;  %v3069_v13 = vpop.f32.mrf.mxu1  ;;  %v1853_v14 = vsel %vm1592_vm2, %v1758_v47, 0.0  ;;  %v1761_v24 = vmul.f32 %v1156_v55, %v1156_v55 }
 0x12a   :  { %v2304_v7 = vpop.f32.mrf.mxu0  ;;  %v1657_v58 = vadd.f32 %v1656_v59, %v1655_v63  ;;  %v1852_v8 = vadd.f32 %v1851_v56, %v1850_v49  ;;  %v1662_v34 = vsel %vm1592_vm2, %v1156_v55, 0.0 }
 0x12b   :  { %1563 = vst.msk [vmem:[%s3304_s4 + $0x8c] sm:$0xf] %vm1527_vm1, %v2145_v0  ;;  %v1169_v9 = vadd.f32 %v3001_v3, %v2304_v7  ;;  %v2143_v2 = vpack.c.bf16 %v1148_v6, %v1148_v6  ;;  %v1658_v15 = vsel %vm1592_vm2, %v1148_v6, 0.0  ;;  %v1759_v16 = vmul.f32 %v1148_v6, %v1148_v6  ;;  %v3073_v10 = vpop.f32.mrf.mxu1 }
 0x12c   :  { %v590_v4 = vpop.f32.mrf.mxu0  ;;  %v1854_v1 = vadd.f32 %v1853_v14, %v1852_v8  ;;  %v1659_v17 = vadd.f32 %v1658_v15, %v1657_v58  ;;  %v1859_v30 = vsel %vm1592_vm2, %v1761_v24, 0.0 }
 0x12d   :  { %v2148_v18 = vpack.c.bf16 %v1169_v9, %v1169_v9  ;;  %1561 = vst.msk [vmem:[%s3304_s4 + $0x84] sm:$0xf] %vm1527_vm1, %v2143_v2  ;;  %v1855_v3 = vsel %vm1592_vm2, %v1759_v16, 0.0  ;;  %v1161_v11 = vadd.f32 %v3015_v22, %v590_v4  ;;  %v3087_v19 = vpop.f32.mrf.mxu1  ;;  %v1764_v31 = vmul.f32 %v1169_v9, %v1169_v9 }
 0x12e   :  { %v2305_v25 = vpop.f32.mrf.mxu0  ;;  %v1661_v12 = vadd.f32 %v1660_v23, %v1659_v17  ;;  %v1856_v26 = vadd.f32 %v1855_v3, %v1854_v1  ;;  %v1668_v60 = vsel %vm1592_vm2, %v1169_v9, 0.0 }
 0x12f   :  { %1566 = vst.msk [vmem:[%s3304_s4 + $0x98] sm:$0xf] %vm1527_vm1, %v2148_v18  ;;  %v1172_v27 = vadd.f32 %v3019_v32, %v2305_v25  ;;  %v2146_v35 = vpack.c.bf16 %v1161_v11, %v1161_v11  ;;  %v1762_v20 = vmul.f32 %v1161_v11, %v1161_v11  ;;  %v3091_v41 = vpop.f32.mrf.mxu1  ;;  %v1664_v32 = vsel %vm1592_vm2, %v1161_v11, 0.0 }
 0x130   :  { %v593_v28 = vpop.f32.mrf.mxu0  ;;  %v1858_v22 = vadd.f32 %v1857_v21, %v1856_v26  ;;  %v1663_v36 = vadd.f32 %v1662_v34, %v1661_v12  ;;  %v1865_v59 = vsel %vm1592_vm2, %v1764_v31, 0.0 }
 0x131   :  { %v2149_v37 = vpack.c.bf16 %v1172_v27, %v1172_v27  ;;  %1564 = vst.msk [vmem:[%s3304_s4 + $0x90] sm:$0xf] %vm1527_vm1, %v2146_v35  ;;  %v1164_v43 = vadd.f32 %v3033_v40, %v593_v28  ;;  %v3105_v51 = vpop.f32.mrf.mxu1  ;;  %v1861_v52 = vsel %vm1592_vm2, %v1762_v20, 0.0  ;;  %v1765_v61 = vmul.f32 %v1172_v27, %v1172_v27 }
 0x132   :  { %v2308_v44 = vpop.f32.mrf.mxu0  ;;  %v1665_v29 = vadd.f32 %v1664_v32, %v1663_v36  ;;  %v1860_v45 = vadd.f32 %v1859_v30, %v1858_v22  ;;  %v1670_v6 = vsel %vm1592_vm2, %v1172_v27, 0.0 }
 0x133   :  { %1567 = vst.msk [vmem:[%s3304_s4 + $0x9c] sm:$0xf] %vm1527_vm1, %v2149_v37  ;;  %v1185_v46 = vadd.f32 %v3037_v38, %v2308_v44  ;;  %v2147_v33 = vpack.c.bf16 %v1164_v43, %v1164_v43  ;;  %v1666_v42 = vsel %vm1592_vm2, %v1164_v43, 0.0  ;;  %v1763_v53 = vmul.f32 %v1164_v43, %v1164_v43  ;;  %v3109_v48 = vpop.f32.mrf.mxu1 }
 0x134   :  { %v606_v40 = vpop.f32.mrf.mxu0  ;;  %v1862_v39 = vadd.f32 %v1861_v52, %v1860_v45  ;;  %v1667_v54 = vadd.f32 %v1666_v42, %v1665_v29  ;;  %v1867_v2 = vsel %vm1592_vm2, %v1765_v61, 0.0 }
 0x135   :  { %v2152_v55 = vpack.c.bf16 %v1185_v46, %v1185_v46  ;;  %1565 = vst.msk [vmem:[%s3304_s4 + $0x94] sm:$0xf] %vm1527_vm1, %v2147_v33  ;;  %v1863_v38 = vsel %vm1592_vm2, %v1763_v53, 0.0  ;;  %v1177_v47 = vadd.f32 %v3051_v50, %v606_v40  ;;  %v3123_v56 = vpop.f32.mrf.mxu1  ;;  %v1768_v4 = vmul.f32 %v1185_v46, %v1185_v46 }
 0x136   :  { %v2309_v62 = vpop.f32.mrf.mxu0  ;;  %v1669_v49 = vadd.f32 %v1668_v60, %v1667_v54  ;;  %v1864_v63 = vadd.f32 %v1863_v38, %v1862_v39  ;;  %v1676_v34 = vsel %vm1592_vm2, %v1185_v46, 0.0 }
 0x137   :  { %1570 = vst.msk [vmem:[%s3304_s4 + $0xa8] sm:$0xf] %vm1527_vm1, %v2152_v55  ;;  %v1188_v0 = vadd.f32 %v3055_v5, %v2309_v62  ;;  %v2150_v7 = vpack.c.bf16 %v1177_v47, %v1177_v47  ;;  %v1766_v57 = vmul.f32 %v1177_v47, %v1177_v47  ;;  %v3127_v14 = vpop.f32.mrf.mxu1  ;;  %v1672_v5 = vsel %vm1592_vm2, %v1177_v47, 0.0 }
 0x138   :  { %v609_v58 = vpop.f32.mrf.mxu0  ;;  %v1866_v50 = vadd.f32 %v1865_v59, %v1864_v63  ;;  %v1671_v8 = vadd.f32 %v1670_v6, %v1669_v49  ;;  %v1873_v32 = vsel %vm1592_vm2, %v1768_v4, 0.0 }
 0x139   :  { %v2153_v9 = vpack.c.bf16 %v1188_v0, %v1188_v0  ;;  %1568 = vst.msk [vmem:[%s3304_s4 + $0xa0] sm:$0xf] %vm1527_vm1, %v2150_v7  ;;  %v1180_v15 = vadd.f32 %v3069_v13, %v609_v58  ;;  %v3141_v23 = vpop.f32.mrf.mxu1  ;;  %v1869_v24 = vsel %vm1592_vm2, %v1766_v57, 0.0  ;;  %v1769_v35 = vmul.f32 %v1188_v0, %v1188_v0 }
 0x13a   :  { %v2312_v16 = vpop.f32.mrf.mxu0  ;;  %v1673_v1 = vadd.f32 %v1672_v5, %v1671_v8  ;;  %v1868_v17 = vadd.f32 %v1867_v2, %v1866_v50  ;;  %v1678_v43 = vsel %vm1592_vm2, %v1188_v0, 0.0 }
 0x13b   :  { %1571 = vst.msk [vmem:[%s3304_s4 + $0xac] sm:$0xf] %vm1527_vm1, %v2153_v9  ;;  %v1201_v18 = vadd.f32 %v3073_v10, %v2312_v16  ;;  %v2151_v3 = vpack.c.bf16 %v1180_v15, %v1180_v15  ;;  %v1674_v11 = vsel %vm1592_vm2, %v1180_v15, 0.0  ;;  %v1767_v25 = vmul.f32 %v1180_v15, %v1180_v15  ;;  %v3145_v21 = vpop.f32.mrf.mxu1 }
 0x13c   :  { %v622_v13 = vpop.f32.mrf.mxu0  ;;  %v1870_v12 = vadd.f32 %v1869_v24, %v1868_v17  ;;  %v1675_v26 = vadd.f32 %v1674_v11, %v1673_v1  ;;  %v1875_v33 = vsel %vm1592_vm2, %v1769_v35, 0.0 }
 0x13d   :  { %v2156_v27 = vpack.c.bf16 %v1201_v18, %v1201_v18  ;;  %1569 = vst.msk [vmem:[%s3304_s4 + $0xa4] sm:$0xf] %vm1527_vm1, %v2151_v3  ;;  %v1871_v10 = vsel %vm1592_vm2, %v1767_v25, 0.0  ;;  %v1193_v20 = vadd.f32 %v3087_v19, %v622_v13  ;;  %v3159_v30 = vpop.f32.mrf.mxu1  ;;  %v1772_v40 = vmul.f32 %v1201_v18, %v1201_v18 }
 0x13e   :  { %v2313_v28 = vpop.f32.mrf.mxu0  ;;  %v1677_v22 = vadd.f32 %v1676_v34, %v1675_v26  ;;  %v1872_v36 = vadd.f32 %v1871_v10, %v1870_v12  ;;  %v1684_v6 = vsel %vm1592_vm2, %v1201_v18, 0.0 }
 0x13f   :  { %1574 = vst.msk [vmem:[%s3304_s4 + $0xb8] sm:$0xf] %vm1527_vm1, %v2156_v27  ;;  %v1204_v37 = vadd.f32 %v3091_v41, %v2313_v28  ;;  %v2154_v44 = vpack.c.bf16 %v1193_v20, %v1193_v20  ;;  %v1770_v31 = vmul.f32 %v1193_v20, %v1193_v20  ;;  %v3163_v52 = vpop.f32.mrf.mxu1  ;;  %v1680_v41 = vsel %vm1592_vm2, %v1193_v20, 0.0 }
 0x140   :  { %v625_v29 = vpop.f32.mrf.mxu0  ;;  %v1874_v19 = vadd.f32 %v1873_v32, %v1872_v36  ;;  %v1679_v45 = vadd.f32 %v1678_v43, %v1677_v22  ;;  %v1881_v2 = vsel %vm1592_vm2, %v1772_v40, 0.0 }
 0x141   :  { %v2157_v46 = vpack.c.bf16 %v1204_v37, %v1204_v37  ;;  %1572 = vst.msk [vmem:[%s3304_s4 + $0xb0] sm:$0xf] %vm1527_vm1, %v2154_v44  ;;  %v1196_v42 = vadd.f32 %v3105_v51, %v625_v29  ;;  %v3177_v60 = vpop.f32.mrf.mxu1  ;;  %v1877_v61 = vsel %vm1592_vm2, %v1770_v31, 0.0  ;;  %v1773_v7 = vmul.f32 %v1204_v37, %v1204_v37 }
 0x142   :  { %v2316_v53 = vpop.f32.mrf.mxu0  ;;  %v1681_v39 = vadd.f32 %v1680_v41, %v1679_v45  ;;  %v1876_v54 = vadd.f32 %v1875_v33, %v1874_v19  ;;  %v1686_v5 = vsel %vm1592_vm2, %v1204_v37, 0.0 }
 0x143   :  { %1575 = vst.msk [vmem:[%s3304_s4 + $0xbc] sm:$0xf] %vm1527_vm1, %v2157_v46  ;;  %v1217_v55 = vadd.f32 %v3109_v48, %v2316_v53  ;;  %v2155_v38 = vpack.c.bf16 %v1196_v42, %v1196_v42  ;;  %v1682_v47 = vsel %vm1592_vm2, %v1196_v42, 0.0  ;;  %v1771_v62 = vmul.f32 %v1196_v42, %v1196_v42  ;;  %v3181_v59 = vpop.f32.mrf.mxu1 }
 0x144   :  { %v638_v51 = vpop.f32.mrf.mxu0  ;;  %v1878_v49 = vadd.f32 %v1877_v61, %v1876_v54  ;;  %v1683_v63 = vadd.f32 %v1682_v47, %v1681_v39  ;;  %v1883_v24 = vsel %vm1592_vm2, %v1773_v7, 0.0 }
 0x145   :  { %v2160_v0 = vpack.c.bf16 %v1217_v55, %v1217_v55  ;;  %1573 = vst.msk [vmem:[%s3304_s4 + $0xb4] sm:$0xf] %vm1527_vm1, %v2155_v38  ;;  %v1879_v48 = vsel %vm1592_vm2, %v1771_v62, 0.0  ;;  %v1209_v57 = vadd.f32 %v3123_v56, %v638_v51  ;;  %v1240_v18 = vpop.f32.mrf.mxu1  ;;  %v1776_v25 = vmul.f32 %v1217_v55, %v1217_v55 }
 0x146   :  { %v2317_v58 = vpop.f32.mrf.mxu0  ;;  %v1685_v50 = vadd.f32 %v1684_v6, %v1683_v63  ;;  %v1880_v8 = vadd.f32 %v1879_v48, %v1878_v49  ;;  %v1692_v37 = vsel %vm1592_vm2, %v1217_v55, 0.0 }
 0x147   :  { %1578 = vst.msk [vmem:[%s3304_s4 + $0xc8] sm:$0xf] %vm1527_vm1, %v2160_v0  ;;  %v1220_v9 = vadd.f32 %v3127_v14, %v2317_v58  ;;  %v2158_v15 = vpack.c.bf16 %v1209_v57, %v1209_v57  ;;  %v1774_v16 = vmul.f32 %v1209_v57, %v1209_v57  ;;  %v1688_v14 = vsel %vm1592_vm2, %v1209_v57, 0.0  ;;  %v2397_v36 = vpop.f32.mrf.mxu1 }
 0x148   :  { %v641_v4 = vpop.f32.mrf.mxu0  ;;  %v1882_v1 = vadd.f32 %v1881_v2, %v1880_v8  ;;  %v1687_v17 = vadd.f32 %v1686_v5, %v1685_v50  ;;  %v1889_v45 = vsel %vm1592_vm2, %v1776_v25, 0.0 }
 0x149   :  { %v2161_v56 = vpack.c.bf16 %v1220_v9, %v1220_v9  ;;  %1576 = vst.msk [vmem:[%s3304_s4 + $0xc0] sm:$0xf] %vm1527_vm1, %v2158_v15  ;;  %v1212_v3 = vadd.f32 %v3141_v23, %v641_v4  ;;  %v1885_v27 = vsel %vm1592_vm2, %v1774_v16, 0.0  ;;  %v1777_v32 = vmul.f32 %v1220_v9, %v1220_v9  ;;  %v1243_v39 = vpop.f32.mrf.mxu1 }
 0x14a   :  { %v2320_v11 = vpop.f32.mrf.mxu0  ;;  %v1689_v13 = vadd.f32 %v1688_v14, %v1687_v17  ;;  %v1884_v12 = vadd.f32 %v1883_v24, %v1882_v1  ;;  %v1694_v46 = vsel %vm1592_vm2, %v1220_v9, 0.0 }
 0x14b   :  { %1579 = vst.msk [vmem:[%s3304_s4 + $0xcc] sm:$0xf] %vm1527_vm1, %v2161_v56  ;;  %v1233_v26 = vadd.f32 %v3145_v21, %v2320_v11  ;;  %v2159_v34 = vpack.c.bf16 %v1212_v3, %v1212_v3  ;;  %v1690_v35 = vsel %vm1592_vm2, %v1212_v3, 0.0  ;;  %v1775_v10 = vmul.f32 %v1212_v3, %v1212_v3  ;;  %v2400_v58 = vpop.f32.mrf.mxu1 }
 0x14c   :  { %v654_v20 = vpop.f32.mrf.mxu0  ;;  %v1886_v28 = vadd.f32 %v1885_v27, %v1884_v12  ;;  %v1691_v23 = vadd.f32 %v1690_v35, %v1689_v13  ;;  %v1891_v54 = vsel %vm1592_vm2, %v1777_v32, 0.0 }
 0x14d   :  { %v2164_v22 = vpack.c.bf16 %v1233_v26, %v1233_v26  ;;  %1577 = vst.msk [vmem:[%s3304_s4 + $0xc4] sm:$0xf] %vm1527_vm1, %v2159_v34  ;;  %v1887_v21 = vsel %vm1592_vm2, %v1775_v10, 0.0  ;;  %v1225_v43 = vadd.f32 %v3159_v30, %v654_v20  ;;  %v1780_v38 = vmul.f32 %v1233_v26, %v1233_v26 }
 0x14e   :  { %v2321_v44 = vpop.f32.mrf.mxu0  ;;  %v1693_v31 = vadd.f32 %v1692_v37, %v1691_v23  ;;  %v1888_v29 = vadd.f32 %v1887_v21, %v1886_v28  ;;  %v1700_v50 = vsel %vm1592_vm2, %v1233_v26, 0.0 }
 0x14f   :  { %1582 = vst.msk [vmem:[%s3304_s4 + $0xd8] sm:$0xf] %vm1527_vm1, %v2164_v22  ;;  %v1236_v19 = vadd.f32 %v3163_v52, %v2321_v44  ;;  %v2162_v33 = vpack.c.bf16 %v1225_v43, %v1225_v43  ;;  %v1778_v41 = vmul.f32 %v1225_v43, %v1225_v43  ;;  %v1696_v52 = vsel %vm1592_vm2, %v1225_v43, 0.0 }
 0x150   :  { %v657_v42 = vpop.f32.mrf.mxu0  ;;  %v1890_v53 = vadd.f32 %v1889_v45, %v1888_v29  ;;  %v1695_v40 = vadd.f32 %v1694_v46, %v1693_v31  ;;  %v1897_v4 = vsel %vm1592_vm2, %v1780_v38, 0.0 }
 0x151   :  { %v2165_v30 = vpack.c.bf16 %v1236_v19, %v1236_v19  ;;  %1580 = vst.msk [vmem:[%s3304_s4 + $0xd0] sm:$0xf] %vm1527_vm1, %v2162_v33  ;;  %v1228_v55 = vadd.f32 %v3177_v60, %v657_v42  ;;  %v1893_v49 = vsel %vm1592_vm2, %v1778_v41, 0.0  ;;  %v1781_v8 = vmul.f32 %v1236_v19, %v1236_v19 }
 0x152   :  { %v2324_v61 = vpop.f32.mrf.mxu0  ;;  %v1697_v47 = vadd.f32 %v1696_v52, %v1695_v40  ;;  %v1892_v62 = vadd.f32 %v1891_v54, %v1890_v53  ;;  %v1702_v1 = vsel %vm1592_vm2, %v1236_v19, 0.0 }
 0x153   :  { %1583 = vst.msk [vmem:[%s3304_s4 + $0xdc] sm:$0xf] %vm1527_vm1, %v2165_v30  ;;  %v1249_v51 = vadd.f32 %v3181_v59, %v2324_v61  ;;  %v2163_v63 = vpack.c.bf16 %v1228_v55, %v1228_v55  ;;  %v1698_v0 = vsel %vm1592_vm2, %v1228_v55, 0.0  ;;  %v1779_v6 = vmul.f32 %v1228_v55, %v1228_v55 }
 0x154   :  { %v670_v7 = vpop.f32.mrf.mxu0  ;;  %v1894_v48 = vadd.f32 %v1893_v49, %v1892_v62  ;;  %v1699_v60 = vadd.f32 %v1698_v0, %v1697_v47  ;;  %v1899_v25 = vsel %vm1592_vm2, %v1781_v8, 0.0 }
 0x155   :  { %v2168_v57 = vpack.c.bf16 %v1249_v51, %v1249_v51  ;;  %1581 = vst.msk [vmem:[%s3304_s4 + $0xd4] sm:$0xf] %vm1527_vm1, %v2163_v63  ;;  %v1895_v59 = vsel %vm1592_vm2, %v1779_v6, 0.0  ;;  %v1241_v9 = vadd.f32 %v1240_v18, %v670_v7  ;;  %v1256_v18 = vpop.f32.mrf.mxu1  ;;  %v1784_v27 = vmul.f32 %v1249_v51, %v1249_v51 }
 0x156   :  { %v2325_v2 = vpop.f32.mrf.mxu0  ;;  %v1701_v5 = vadd.f32 %v1700_v50, %v1699_v60  ;;  %v1896_v15 = vadd.f32 %v1895_v59, %v1894_v48  ;;  %v1708_v44 = vsel %vm1592_vm2, %v1249_v51, 0.0 }
 0x157   :  { %1586 = vst.msk [vmem:[%s3304_s4 + $0xe8] sm:$0xf] %vm1527_vm1, %v2168_v57  ;;  %v1252_v16 = vadd.f32 %v2397_v36, %v2325_v2  ;;  %v2166_v17 = vpack.c.bf16 %v1241_v9, %v1241_v9  ;;  %v1782_v56 = vmul.f32 %v1241_v9, %v1241_v9  ;;  %v1704_v13 = vsel %vm1592_vm2, %v1241_v9, 0.0  ;;  %v2401_v21 = vpop.f32.mrf.mxu1 }
 0x158   :  { %v673_v24 = vpop.f32.mrf.mxu0  ;;  %v1898_v14 = vadd.f32 %v1897_v4, %v1896_v15  ;;  %v1703_v3 = vadd.f32 %v1702_v1, %v1701_v5  ;;  %v1905_v42 = vsel %vm1592_vm2, %v1784_v27, 0.0 }
 0x159   :  { %v2169_v11 = vpack.c.bf16 %v1252_v16, %v1252_v16  ;;  %1584 = vst.msk [vmem:[%s3304_s4 + $0xe0] sm:$0xf] %vm1527_vm1, %v2166_v17  ;;  %v1244_v12 = vadd.f32 %v1243_v39, %v673_v24  ;;  %v1901_v20 = vsel %vm1592_vm2, %v1782_v56, 0.0  ;;  %v1785_v31 = vmul.f32 %v1252_v16, %v1252_v16  ;;  %v1259_v52 = vpop.f32.mrf.mxu1 }
 0x15a   :  { %v2328_v26 = vpop.f32.mrf.mxu0  ;;  %v1705_v34 = vadd.f32 %v1704_v13, %v1703_v3  ;;  %v1900_v35 = vadd.f32 %v1899_v25, %v1898_v14  ;;  %v1710_v53 = vsel %vm1592_vm2, %v1252_v16, 0.0  ;;  %v1923_v14 = vlaneseq }
 0x15b   :  { %1587 = vst.msk [vmem:[%s3304_s4 + $0xec] sm:$0xf] %vm1527_vm1, %v2169_v11  ;;  %v1265_v10 = vadd.f32 %v2400_v58, %v2328_v26  ;;  %v2167_v28 = vpack.c.bf16 %v1244_v12, %v1244_v12  ;;  %v1706_v23 = vsel %vm1592_vm2, %v1244_v12, 0.0  ;;  %v1783_v22 = vmul.f32 %v1244_v12, %v1244_v12 }
 0x15c   :  { %v686_v36 = vpop.f32.mrf.mxu0  ;;  %v1902_v37 = vadd.f32 %v1901_v20, %v1900_v35  ;;  %v1707_v32 = vadd.f32 %v1706_v23, %v1705_v34  ;;  %v1907_v38 = vsel %vm1592_vm2, %v1785_v31, 0.0  ;;  %v1924_v13 = vshrl.u32 %v1923_v14, 7 }
 0x15d   :  { %v2172_v43 = vpack.c.bf16 %v1265_v10, %v1265_v10  ;;  %1585 = vst.msk [vmem:[%s3304_s4 + $0xe4] sm:$0xf] %vm1527_vm1, %v2167_v28  ;;  %v1903_v29 = vsel %vm1592_vm2, %v1783_v22, 0.0  ;;  %v1257_v19 = vadd.f32 %v1256_v18, %v686_v36  ;;  %v1788_v51 = vmul.f32 %v1265_v10, %v1265_v10 }
 0x15e   :  { %v2329_v45 = vpop.f32.mrf.mxu0  ;;  %v1709_v46 = vadd.f32 %v1708_v44, %v1707_v32  ;;  %v1904_v33 = vadd.f32 %v1903_v29, %v1902_v37  ;;  %v1716_v58 = vsel %vm1592_vm2, %v1265_v10, 0.0  ;;  %vm1926_vm3 = vcmp.eq.s32.totalorder %v1924_v13, 1 }
 0x15f   :  { %1590 = vst.msk [vmem:[%s3304_s4 + $0xf8] sm:$0xf] %vm1527_vm1, %v2172_v43  ;;  %v1268_v41 = vadd.f32 %v2401_v21, %v2329_v45  ;;  %v2170_v40 = vpack.c.bf16 %v1257_v19, %v1257_v19  ;;  %v1786_v30 = vmul.f32 %v1257_v19, %v1257_v19  ;;  %v1712_v47 = vsel %vm1592_vm2, %v1257_v19, 0.0 }
 0x160   :  { %v689_v39 = vpop.f32.mrf.mxu0  ;;  %v1906_v54 = vadd.f32 %v1905_v42, %v1904_v33  ;;  %v1711_v55 = vadd.f32 %v1710_v53, %v1709_v46  ;;  %v1913_v2 = vsel %vm1592_vm2, %v1788_v51, 0.0  ;;  %vm1925_vm4 = vcmp.eq.s32.totalorder %v1924_v13, 0 }
 0x161   :  { %v2173_v61 = vpack.c.bf16 %v1268_v41, %v1268_v41  ;;  %1588 = vst.msk [vmem:[%s3304_s4 + $0xf0] sm:$0xf] %vm1527_vm1, %v2170_v40  ;;  %v1260_v62 = vadd.f32 %v1259_v52, %v689_v39  ;;  %v1909_v0 = vsel %vm1592_vm2, %v1786_v30, 0.0  ;;  %v1789_v50 = vmul.f32 %v1268_v41, %v1268_v41 }
 0x162   :  { %v1713_v49 = vadd.f32 %v1712_v47, %v1711_v55  ;;  %v1908_v63 = vadd.f32 %v1907_v38, %v1906_v54  ;;  %v1718_v5 = vsel %vm1592_vm2, %v1268_v41, 0.0 }
 0x163   :  { %1591 = vst.msk [vmem:[%s3304_s4 + $0xfc] sm:$0xf] %vm1527_vm1, %v2173_v61  ;;  %v2171_v6 = vpack.c.bf16 %v1260_v62, %v1260_v62  ;;  %v1714_v7 = vsel %vm1592_vm2, %v1260_v62, 0.0  ;;  %v1787_v48 = vmul.f32 %v1260_v62, %v1260_v62  ;;  %v1915_v4 = vsel %vm1592_vm2, %v1789_v50, 0.0 }
 0x164   :  { %v1910_v60 = vadd.f32 %v1909_v0, %v1908_v63  ;;  %v1715_v57 = vadd.f32 %v1714_v7, %v1713_v49 }
 0x165   :  { %1589 = vst.msk [vmem:[%s3304_s4 + $0xf4] sm:$0xf] %vm1527_vm1, %v2171_v6  ;;  %v1911_v8 = vsel %vm1592_vm2, %v1787_v48, 0.0 }
 0x166   :  { %v1717_v59 = vadd.f32 %v1716_v58, %v1715_v57  ;;  %v1912_v9 = vadd.f32 %v1911_v8, %v1910_v60 }
 0x168   :  { %v1719_v15 = vadd.f32 %v1718_v5, %v1717_v59  ;;  %v1914_v16 = vadd.f32 %v1913_v2, %v1912_v9 }
 0x16a   :  { %v1720_v1 = vrot.slane %v1719_v15, 4  ;;  %v1916_v17 = vadd.f32 %v1915_v4, %v1914_v16 }
 0x16c   :  { %v1721_v56 = vadd.f32 %v1720_v1, %v1719_v15  ;;  %v1917_v24 = vrot.slane %v1916_v17, 4 }
 0x16e   :  { %v1722_v3 = vrot.slane %v1721_v56, 2  ;;  %v1918_v11 = vadd.f32 %v1917_v24, %v1916_v17 }
 0x170   :  { %v1723_v18 = vadd.f32 %v1722_v3, %v1721_v56  ;;  %v1919_v25 = vrot.slane %v1918_v11, 2 }
 0x172   :  { %v1920_v12 = vadd.f32 %v1919_v25, %v1918_v11  ;;  %v1724_v26 = vrot.slane %v1723_v18, 1 }
 0x174   :  { %v1921_v27 = vrot.slane %v1920_v12, 1  ;;  %v1725_v35 = vadd.f32 %v1724_v26, %v1723_v18 }
 0x176   :  { %v1922_v34 = vadd.f32 %v1921_v27, %v1920_v12 }
 0x178   :  { %v1927_v10 = vsel %vm1926_vm3, %v1922_v34, 0.0 }
 0x179   :  { %v1928_v20 = vsel %vm1925_vm4, %v1725_v35, %v1927_v10 }
 0x17a   :  { %1929 = vst.msk [vmem:[%s3305_s5] sm:$0xff] %vm1592_vm2, %v1928_v20 }

// kernel: merge_forward.19
= control target key start
LH: loop header
LB: loop body
LE: loop exit
PB: predicated region body
PF: predicated region fallthrough
CT: control target
= control target key end

     0   :  { %s303_s0 = inlined_call_operand.vmem [shape: bf16[128,128], index: 0, kind: input, shape index: {}]   ;;  %s304_s1 = inlined_call_operand.vmem [shape: f32[1,128], index: 1, kind: input, shape index: {}]   ;;  %s305_s2 = inlined_call_operand.vmem [shape: f32[1,128], index: 2, kind: input, shape index: {}]   ;;  %s306_s3 = inlined_call_operand.vmem [shape: f32[128,128], index: 3, kind: output, shape index: {}]  }
   0x1   :  { %v131_v0 = vld [vmem:[%s303_s0] sm:$0xff]   ;;  %v162_v4 = vld [vmem:[%s303_s0 + $0x8] sm:$0xff]   ;;  %v163_v5 = vld [vmem:[%s303_s0 + $0x10] sm:$0xff]  }
   0x2   :  { %v195_v1 = vld [vmem:[%s304_s1] ss:$0 sm:$0xff]  ;;  %v132_v2 = vunpack.c.l.bf16 %v131_v0  ;;  %v133_v3 = vunpack.c.h.bf16 %v131_v0  ;;  %v164_v6 = vld [vmem:[%s303_s0 + $0x18] sm:$0xff]   ;;  %v136_v8 = vunpack.c.l.bf16 %v162_v4  ;;  %v137_v9 = vunpack.c.h.bf16 %v162_v4  ;;  %v166_v33 = vld [vmem:[%s303_s0 + $0x28] sm:$0xff]  }
   0x3   :  { %v209_v7 = vld [vmem:[%s305_s2] ss:$0 sm:$0xff]  ;;  %v140_v10 = vunpack.c.l.bf16 %v163_v5  ;;  %v141_v11 = vunpack.c.h.bf16 %v163_v5  ;;  %v144_v14 = vunpack.c.l.bf16 %v164_v6  ;;  %v145_v15 = vunpack.c.h.bf16 %v164_v6  ;;  %v167_v34 = vld [vmem:[%s303_s0 + $0x30] sm:$0xff]   ;;  %v168_v39 = vld [vmem:[%s303_s0 + $0x38] sm:$0xff]  }
   0x4   :  { %v53_v12 = vmul.f32 %v132_v2, %v195_v1  ;;  %v54_v13 = vmul.f32 %v133_v3, %v195_v1  ;;  %v55_v16 = vmul.f32 %v136_v8, %v195_v1  ;;  %v56_v17 = vmul.f32 %v137_v9, %v195_v1  ;;  %v165_v28 = vld [vmem:[%s303_s0 + $0x20] sm:$0xff]  }
   0x5   :  { %v57_v18 = vmul.f32 %v140_v10, %v195_v1  ;;  %v58_v19 = vmul.f32 %v141_v11, %v195_v1  ;;  %v59_v22 = vmul.f32 %v144_v14, %v195_v1  ;;  %v60_v23 = vmul.f32 %v145_v15, %v195_v1 }
   0x6   :  { %v76_v20 = vadd.f32 %v209_v7, %v53_v12  ;;  %v77_v21 = vadd.f32 %v209_v7, %v54_v13  ;;  %v78_v24 = vadd.f32 %v209_v7, %v55_v16  ;;  %v79_v25 = vadd.f32 %v209_v7, %v56_v17 }
   0x7   :  { %v80_v26 = vadd.f32 %v209_v7, %v57_v18  ;;  %v81_v27 = vadd.f32 %v209_v7, %v58_v19  ;;  %v82_v31 = vadd.f32 %v209_v7, %v59_v22  ;;  %v83_v32 = vadd.f32 %v209_v7, %v60_v23 }
   0x8   :  { %v92_v29 = vmax.f32 %v76_v20, 0.0  ;;  %v93_v30 = vmax.f32 %v77_v21, 0.0  ;;  %v94_v35 = vmax.f32 %v78_v24, 0.0  ;;  %v95_v36 = vmax.f32 %v79_v25, 0.0 }
   0x9   :  { %v96_v37 = vmax.f32 %v80_v26, 0.0  ;;  %v97_v38 = vmax.f32 %v81_v27, 0.0  ;;  %v98_v40 = vmax.f32 %v82_v31, 0.0  ;;  %v99_v41 = vmax.f32 %v83_v32, 0.0 }
   0xa   :  { %108 = vst [vmem:[%s306_s3] sm:$0xff] %v92_v29  ;;  %109 = vst [vmem:[%s306_s3 + $0x8] sm:$0xff] %v93_v30  ;;  %v148_v42 = vunpack.c.l.bf16 %v165_v28  ;;  %v149_v43 = vunpack.c.h.bf16 %v165_v28  ;;  %v152_v44 = vunpack.c.l.bf16 %v166_v33  ;;  %v153_v45 = vunpack.c.h.bf16 %v166_v33 }
   0xb   :  { %110 = vst [vmem:[%s306_s3 + $0x10] sm:$0xff] %v94_v35  ;;  %111 = vst [vmem:[%s306_s3 + $0x18] sm:$0xff] %v95_v36  ;;  %v156_v46 = vunpack.c.l.bf16 %v167_v34  ;;  %v157_v47 = vunpack.c.h.bf16 %v167_v34  ;;  %v160_v50 = vunpack.c.l.bf16 %v168_v39  ;;  %v161_v51 = vunpack.c.h.bf16 %v168_v39 }
   0xc   :  { %112 = vst [vmem:[%s306_s3 + $0x20] sm:$0xff] %v96_v37  ;;  %113 = vst [vmem:[%s306_s3 + $0x28] sm:$0xff] %v97_v38  ;;  %v61_v48 = vmul.f32 %v148_v42, %v195_v1  ;;  %v62_v49 = vmul.f32 %v149_v43, %v195_v1  ;;  %v63_v52 = vmul.f32 %v152_v44, %v195_v1 }
   0xd   :  { %114 = vst [vmem:[%s306_s3 + $0x30] sm:$0xff] %v98_v40  ;;  %115 = vst [vmem:[%s306_s3 + $0x38] sm:$0xff] %v99_v41  ;;  %v64_v53 = vmul.f32 %v153_v45, %v195_v1  ;;  %v65_v54 = vmul.f32 %v156_v46, %v195_v1  ;;  %v66_v55 = vmul.f32 %v157_v47, %v195_v1 }
   0xe   :  { %v84_v56 = vadd.f32 %v209_v7, %v61_v48  ;;  %v85_v57 = vadd.f32 %v209_v7, %v62_v49  ;;  %v67_v58 = vmul.f32 %v160_v50, %v195_v1  ;;  %v68_v59 = vmul.f32 %v161_v51, %v195_v1 }
   0xf   :  { %v86_v60 = vadd.f32 %v209_v7, %v63_v52  ;;  %v87_v61 = vadd.f32 %v209_v7, %v64_v53  ;;  %v88_v62 = vadd.f32 %v209_v7, %v65_v54  ;;  %v89_v63 = vadd.f32 %v209_v7, %v66_v55 }
  0x10   :  { %v100_v0 = vmax.f32 %v84_v56, 0.0  ;;  %v101_v2 = vmax.f32 %v85_v57, 0.0  ;;  %v90_v3 = vadd.f32 %v209_v7, %v67_v58  ;;  %v91_v4 = vadd.f32 %v209_v7, %v68_v59 }
  0x11   :  { %v102_v5 = vmax.f32 %v86_v60, 0.0  ;;  %v103_v6 = vmax.f32 %v87_v61, 0.0  ;;  %v104_v8 = vmax.f32 %v88_v62, 0.0  ;;  %v105_v9 = vmax.f32 %v89_v63, 0.0 }
  0x12   :  { %116 = vst [vmem:[%s306_s3 + $0x40] sm:$0xff] %v100_v0  ;;  %117 = vst [vmem:[%s306_s3 + $0x48] sm:$0xff] %v101_v2  ;;  %v106_v1 = vmax.f32 %v90_v3, 0.0  ;;  %v107_v10 = vmax.f32 %v91_v4, 0.0 }
  0x13   :  { %118 = vst [vmem:[%s306_s3 + $0x50] sm:$0xff] %v102_v5  ;;  %119 = vst [vmem:[%s306_s3 + $0x58] sm:$0xff] %v103_v6 }
  0x14   :  { %120 = vst [vmem:[%s306_s3 + $0x60] sm:$0xff] %v104_v8  ;;  %121 = vst [vmem:[%s306_s3 + $0x68] sm:$0xff] %v105_v9 }
  0x15   :  { %122 = vst [vmem:[%s306_s3 + $0x70] sm:$0xff] %v106_v1  ;;  %123 = vst [vmem:[%s306_s3 + $0x78] sm:$0xff] %v107_v10 }

// kernel: merge_forward.17
= control target key start
LH: loop header
LB: loop body
LE: loop exit
PB: predicated region body
PF: predicated region fallthrough
CT: control target
= control target key end

     0   :  { %s5381_s24 = smov 0   ;;  %s7509_s0 = inlined_call_operand.vmem [shape: bf16[2,332,32], index: 0, kind: input, shape index: {}]   ;;  %s7510_s1 = inlined_call_operand.vmem [shape: f32[1,32], index: 1, kind: input, shape index: {}]   ;;  %s7511_s2 = inlined_call_operand.vmem [shape: f32[1,32], index: 2, kind: input, shape index: {}]   ;;  %s7512_s3 = inlined_call_operand.vmem [shape: f32[1,332,1], index: 3, kind: input, shape index: {}]   ;;  %s7513_s4 = inlined_call_operand.vmem [shape: f32[1,288,1], index: 4, kind: input, shape index: {}]   ;;  %s7514_s5 = inlined_call_operand.vmem [shape: bf16[9,32,32], index: 5, kind: input, shape index: {}]   ;;  %s7515_s6 = inlined_call_operand.vmem [shape: bf16[2,288,32], index: 6, kind: output, shape index: {0}]   ;;  %s7516_s7 = inlined_call_operand.vmem [shape: f32[2,8,32], index: 7, kind: output, shape index: {1}]  }
   0x1 LB: > { %s4362_s25 = sadd.s32 4294967295, %s5338_s24   ;;  %p4366_p0 = scmp.ge.s32.totalorder %s5338_s24, 1  ;;  %s5338_s24 = sphi %s5381_s24, %s18_s24  }
   0x2   : > { %p240_p1 = scmp.lt.s32.totalorder %s5338_s24, 3 }
   0x4   : > { %p241_p2 = pnand %p4366_p0, %p240_p1 }
   0x6   : > { %244 = sbr.rel (%p241_p2) target bundleno = 744 (0x2e8), region = 44 }
   0xb   : > { %v517_v0 = vld [vmem:[%s7512_s3 + $0x10] sm:$0xff]  ;;  %v515_v1 = vld [vmem:[%s7512_s3] sm:$0xff]  ;;  %v5340_v2 = vmov 0   ;;  %v518_v3 = vld [vmem:[%s7512_s3 + $0x18] sm:$0xff]  ;;  %p276_p3 = scmp.lt.s32.totalorder %s4362_s25, 1  ;;  %vm1000_vm1 = vcmask 261120  }
   0xc   : > { %5313 = vset.pattern.permute.xlu1 %v5340_v2  ;;  %5312 = vset.pattern.permute.xlu0 %v5340_v2  ;;  %v516_v4 = vld [vmem:[%s7512_s3 + $0x8] sm:$0xff]  ;;  %v519_v6 = vld [vmem:[%s7512_s3 + $0x20] sm:$0xff]  ;;  %v538_v9 = vld [vmem:[%s7512_s3 + $0xb8] sm:$0xff]  ;;  %vm839_vm0 = vsmask.f32 7424  ;;  %vm2406_vm3 = vcmask 1045504  }
   0xd   : > { %569 = vperm.xlu1 %5313, %v517_v0   ;;  %559 = vperm.xlu0 %5312, %v515_v1   ;;  %v520_v5 = vld [vmem:[%s7512_s3 + $0x28] sm:$0xff]  ;;  %v535_v8 = vld [vmem:[%s7512_s3 + $0xa0] sm:$0xff]  ;;  %v537_v10 = vld [vmem:[%s7512_s3 + $0xb0] sm:$0xff]  ;;  %s7712_s25 = smov (!%p276_p3, %s4362_s25), 1  ;;  %vm2039_vm2 = vsmask.f32 6400 }
   0xe   : > { %v536_v7 = vld [vmem:[%s7512_s3 + $0xa8] sm:$0xff]  ;;  %v522_v11 = vld [vmem:[%s7512_s3 + $0x38] sm:$0xff]  ;;  %v521_v12 = vld [vmem:[%s7512_s3 + $0x30] sm:$0xff]  ;;  %s5301_s23 = smul.u32 168, %s7712_s25  ;;  %vm1481_vm4 = vcmask 1046528   ;;  %vm3329_vm5 = vcmask 1044480  }
   0xf   : > { %v540_v13 = vld [vmem:[%s7512_s3 + $0xc8] sm:$0xff]  ;;  %v539_v14 = vld [vmem:[%s7512_s3 + $0xc0] sm:$0xff]  ;;  %v5314_v15 = vld [vmem:[%s7514_s5 + $0x18] sm:$0xff]   ;;  %vm2964_vm6 = vsmask.f32 5376  ;;  %s5302_s19 = smul.u32 144, %s7712_s25 }
  0x10   : > { %v524_v16 = vld [vmem:[%s7512_s3 + $0x48] sm:$0xff]  ;;  %v523_v17 = vld [vmem:[%s7512_s3 + $0x40] sm:$0xff]  ;;  %4937 = vmatprep.subr.bf16.mxu0 %v5314_v15  ;;  %v5315_v18 = vld [vmem:[%s7514_s5 + $0x10] sm:$0xff]   ;;  %5297 = vmatprep.subr.bf16.mxu1 %v5314_v15  ;;  %s5506_s11 = scalar_lea.vmem %s7509_s0, %s5301_s23  ;;  %vm3790_vm7 = vcmask 257024   ;;  %s4369_s22 = sshll.u32 %s7712_s25, 3 }
  0x11   : > { %574 = vperm.xlu1 %5313, %v518_v3   ;;  %564 = vperm.xlu0 %5312, %v516_v4   ;;  %v542_v19 = vld [vmem:[%s7512_s3 + $0xd8] sm:$0xff]  ;;  %v541_v20 = vld [vmem:[%s7512_s3 + $0xd0] sm:$0xff]  ;;  %v544_v23 = vld [vmem:[%s7512_s3 + $0xe8] sm:$0xff]  ;;  %s7261_s21 = scalar_lea.vmem %s7515_s6, %s5302_s19  ;;  %s289_s27 = scalar_lea.vmem %s7516_s7, %s4369_s22 }
  0x12   : > { %4938 = vmatpush3.bf16.msra.mxu0 %v5314_v15  ;;  %5299 = vmatpush3.bf16.msra.mxu1 %v5314_v15  ;;  %v526_v21 = vld [vmem:[%s7512_s3 + $0x58] sm:$0xff]  ;;  %v525_v22 = vld [vmem:[%s7512_s3 + $0x50] sm:$0xff]  ;;  %v543_v24 = vld [vmem:[%s7512_s3 + $0xe0] sm:$0xff] }
  0x13   : > { %4939 = vmatprep.subr.bf16.mxu0 %v5315_v18  ;;  %5298 = vmatprep.subr.bf16.mxu1 %v5315_v18  ;;  %v528_v25 = vld [vmem:[%s7512_s3 + $0x68] sm:$0xff]  ;;  %v527_v26 = vld [vmem:[%s7512_s3 + $0x60] sm:$0xff]  ;;  %v546_v27 = vld [vmem:[%s7512_s3 + $0xf8] sm:$0xff] }
  0x14   : > { %v545_v28 = vld [vmem:[%s7512_s3 + $0xf0] sm:$0xff]  ;;  %v5478_v29 = vld [vmem:[%s7514_s5 + $0x28] sm:$0xff]   ;;  %v530_v30 = vld [vmem:[%s7512_s3 + $0x78] sm:$0xff] }
  0x15   : > { %584 = vperm.xlu1 %5313, %v520_v5   ;;  %579 = vperm.xlu0 %5312, %v519_v6   ;;  %v529_v31 = vld [vmem:[%s7512_s3 + $0x70] sm:$0xff]  ;;  %v548_v32 = vld [vmem:[%s7512_s3 + $0x108] sm:$0xff]  ;;  %v547_v33 = vld [vmem:[%s7512_s3 + $0x100] sm:$0xff] }
  0x16   : > { %4940 = vmatpush3.bf16.msra.mxu0 %v5315_v18  ;;  %5300 = vmatpush3.bf16.msra.mxu1 %v5315_v18  ;;  %v5501_v34 = vld [vmem:[%s7514_s5 + $0x8] sm:$0xff]   ;;  %v531_v37 = vld [vmem:[%s7512_s3 + $0x80] sm:$0xff]  ;;  %v4755_v44 = vld [vmem:[%s5506_s11 + $0x90] sm:$0xff]  }
  0x17   : > { %5017 = vmatprep.subr.bf16.mxu0 %v5478_v29  ;;  %v4746_v35 = vld [vmem:[%s5506_s11 + $0x48] sm:$0xff]   ;;  %4977 = vmatprep.subr.bf16.mxu1 %v5501_v34  ;;  %v5519_v40 = vld [vmem:[%s7510_s1] ss:$0 sm:$0xff]  ;;  %v550_v45 = vld [vmem:[%s7512_s3 + $0x118] sm:$0xff]  ;;  %v4733_v49 = vunpack.c.h.bf16 %v4755_v44  ;;  %v4732_v50 = vunpack.c.l.bf16 %v4755_v44 }
  0x18   : > { %v532_v36 = vld [vmem:[%s7512_s3 + $0x88] sm:$0xff]  ;;  %v4697_v38 = vunpack.c.h.bf16 %v4746_v35  ;;  %v4696_v39 = vunpack.c.l.bf16 %v4746_v35  ;;  %v5526_v43 = vld [vmem:[%s7511_s2] ss:$0 sm:$0xff]  ;;  %v549_v46 = vld [vmem:[%s7512_s3 + $0x110] sm:$0xff] }
  0x19   : > { %664 = vperm.xlu1 %5313, %v536_v7   ;;  %659 = vperm.xlu0 %5312, %v535_v8   ;;  %v419_v51 = vmul.f32 %v4733_v49, %v5519_v40  ;;  %v418_v52 = vmul.f32 %v4732_v50, %v5519_v40  ;;  %v4756_v53 = vld [vmem:[%s5506_s11 + $0x98] sm:$0xff]   ;;  %v533_v55 = vld [vmem:[%s7512_s3 + $0x90] sm:$0xff]  ;;  %v332_v62 = vld [vmem:[%s5506_s11 + $0xa4] sm:$0x3] }
  0x1a   : > { %v401_v41 = vmul.f32 %v4697_v38, %v5519_v40  ;;  %v400_v42 = vmul.f32 %v4696_v39, %v5519_v40  ;;  %v534_v54 = vld [vmem:[%s7512_s3 + $0x98] sm:$0xff]  ;;  %v4737_v58 = vunpack.c.h.bf16 %v4756_v53  ;;  %v4736_v59 = vunpack.c.l.bf16 %v4756_v53  ;;  %v331_v63 = vld [vmem:[%s5506_s11 + $0xa0] sm:$0xf]  ;;  %v552_v0 = vld [vmem:[%s7512_s3 + $0x128] sm:$0xff] }
  0x1b   : > { %v5551_v56 = vadd.f32 %v5526_v43, %v419_v51  ;;  %v5554_v57 = vadd.f32 %v5526_v43, %v418_v52  ;;  %v551_v1 = vld [vmem:[%s7512_s3 + $0x120] sm:$0xff]  ;;  %v374_v4 = vunpack.c.l.bf16 %v332_v62  ;;  %v373_v5 = vunpack.c.l.bf16 %v331_v63  ;;  %v554_v8 = vld [vmem:[%s7512_s3 + $0x138] sm:$0xff]  ;;  %v3832_v18 = vld [vmem:[%s7513_s4 + $0x28] sm:$0xff] }
  0x1c   : > { %v5536_v47 = vadd.f32 %v5526_v43, %v401_v41  ;;  %v5539_v48 = vadd.f32 %v5526_v43, %v400_v42  ;;  %v421_v60 = vmul.f32 %v4737_v58, %v5519_v40  ;;  %v420_v61 = vmul.f32 %v4736_v59, %v5519_v40  ;;  %v3827_v15 = vld [vmem:[%s7513_s4] sm:$0xff]  ;;  %v4748_v42 = vld [vmem:[%s5506_s11 + $0x58] sm:$0xff]   ;;  %v3844_v49 = vld [vmem:[%s7513_s4 + $0x88] sm:$0xff] }
  0x1d   : > { %674 = vperm.xlu1 %5313, %v538_v9   ;;  %669 = vperm.xlu0 %5312, %v537_v10   ;;  %v423_v6 = vmul.f32 %v5519_v40, %v374_v4  ;;  %v422_v7 = vmul.f32 %v5519_v40, %v373_v5  ;;  %v553_v9 = vld [vmem:[%s7512_s3 + $0x130] sm:$0xff]  ;;  %v3843_v50 = vld [vmem:[%s7513_s4 + $0x80] sm:$0xff]  ;;  %v4705_v53 = vunpack.c.h.bf16 %v4748_v42 }
  0x1e   : > { %v5567_v2 = vadd.f32 %v5526_v43, %v421_v60  ;;  %v5570_v3 = vadd.f32 %v5526_v43, %v420_v61  ;;  %v4749_v60 = vld [vmem:[%s5506_s11 + $0x60] sm:$0xff]   ;;  %v3845_v4 = vld [vmem:[%s7513_s4 + $0x90] sm:$0xff] }
  0x1f   : > { %v5581_v10 = vadd.f32 %v5526_v43, %v423_v6  ;;  %v4704_v6 = vunpack.c.l.bf16 %v4748_v42 }
  0x21   : > { %594 = vperm.xlu1 %5313, %v522_v11   ;;  %589 = vperm.xlu0 %5312, %v521_v12   ;;  %v5584_v11 = vadd.f32 %v5526_v43, %v422_v7  ;;  %v556_v12 = vld [vmem:[%s7512_s3 + $0x148] sm:$0xf] }
  0x25   : > { %684 = vperm.xlu1 %5313, %v540_v13   ;;  %679 = vperm.xlu0 %5312, %v539_v14   ;;  %v555_v13 = vld [vmem:[%s7512_s3 + $0x140] sm:$0xff]  ;;  %v3828_v14 = vld [vmem:[%s7513_s4 + $0x8] sm:$0xff] }
  0x29   : > { %604 = vperm.xlu1 %5313, %v524_v16   ;;  %599 = vperm.xlu0 %5312, %v523_v17   ;;  %v3830_v16 = vld [vmem:[%s7513_s4 + $0x18] sm:$0xff]  ;;  %v3829_v17 = vld [vmem:[%s7513_s4 + $0x10] sm:$0xff] }
  0x2d   : > { %694 = vperm.xlu1 %5313, %v542_v19   ;;  %689 = vperm.xlu0 %5312, %v541_v20   ;;  %v3831_v19 = vld [vmem:[%s7513_s4 + $0x20] sm:$0xff]  ;;  %v3834_v20 = vld [vmem:[%s7513_s4 + $0x38] sm:$0xff] }
  0x31   : > { %614 = vperm.xlu1 %5313, %v526_v21   ;;  %609 = vperm.xlu0 %5312, %v525_v22   ;;  %v3833_v21 = vld [vmem:[%s7513_s4 + $0x30] sm:$0xff]  ;;  %v3836_v22 = vld [vmem:[%s7513_s4 + $0x48] sm:$0xff] }
  0x35   : > { %704 = vperm.xlu1 %5313, %v544_v23   ;;  %699 = vperm.xlu0 %5312, %v543_v24   ;;  %v3835_v23 = vld [vmem:[%s7513_s4 + $0x40] sm:$0xff]  ;;  %v3838_v24 = vld [vmem:[%s7513_s4 + $0x58] sm:$0xff] }
  0x39   : > { %624 = vperm.xlu1 %5313, %v528_v25   ;;  %619 = vperm.xlu0 %5312, %v527_v26   ;;  %v3837_v25 = vld [vmem:[%s7513_s4 + $0x50] sm:$0xff]  ;;  %v3840_v26 = vld [vmem:[%s7513_s4 + $0x68] sm:$0xff] }
  0x3d   : > { %714 = vperm.xlu1 %5313, %v546_v27   ;;  %709 = vperm.xlu0 %5312, %v545_v28   ;;  %v3839_v27 = vld [vmem:[%s7513_s4 + $0x60] sm:$0xff]  ;;  %v4738_v28 = vld [vmem:[%s5506_s11 + $0x8] sm:$0xff]  }
  0x3e   : > { %v4664_v35 = vunpack.c.l.bf16 %v4738_v28 }
  0x40   : > { %v384_v51 = vmul.f32 %v4664_v35, %v5519_v40 }
  0x41   : > { %634 = vperm.xlu1 %5313, %v530_v30   ;;  %629 = vperm.xlu0 %5312, %v529_v31   ;;  %v4659_v30 = vld [vmem:[%s5506_s11] sm:$0xff]   ;;  %v4739_v31 = vld [vmem:[%s5506_s11 + $0x10] sm:$0xff]  }
  0x42   : > { %v4660_v38 = vunpack.c.l.bf16 %v4659_v30  ;;  %v4661_v39 = vunpack.c.h.bf16 %v4659_v30  ;;  %v4669_v41 = vunpack.c.h.bf16 %v4739_v31  ;;  %v4668_v44 = vunpack.c.l.bf16 %v4739_v31 }
  0x43   : > { %v433_v5 = vadd.f32 %v5526_v43, %v384_v51  ;;  %v3849_v51 = vld [vmem:[%s7513_s4 + $0xb0] sm:$0xff] }
  0x44   : > { %v383_v58 = vmul.f32 %v4661_v39, %v5519_v40  ;;  %v387_v59 = vmul.f32 %v4669_v41, %v5519_v40  ;;  %v386_v61 = vmul.f32 %v4668_v44, %v5519_v40  ;;  %v4750_v41 = vld [vmem:[%s5506_s11 + $0x68] sm:$0xff]  }
  0x45   : > { %724 = vperm.xlu1 %5313, %v548_v32   ;;  %719 = vperm.xlu0 %5312, %v547_v33   ;;  %v3842_v32 = vld [vmem:[%s7513_s4 + $0x78] sm:$0xff]  ;;  %v3841_v33 = vld [vmem:[%s7513_s4 + $0x70] sm:$0xff] }
  0x49   : > { %644 = vperm.xlu1 %5313, %v532_v36   ;;  %639 = vperm.xlu0 %5312, %v531_v37   ;;  %v4747_v36 = vld [vmem:[%s5506_s11 + $0x50] sm:$0xff]   ;;  %v4665_v37 = vunpack.c.h.bf16 %v4738_v28  ;;  %v475_v28 = vmax.f32 %v433_v5, 0.0 }
  0x4b   : > { %v385_v52 = vmul.f32 %v4665_v37, %v5519_v40 }
  0x4d   : > { %734 = vperm.xlu1 %5313, %v550_v45   ;;  %729 = vperm.xlu0 %5312, %v549_v46   ;;  %v4701_v45 = vunpack.c.h.bf16 %v4747_v36  ;;  %v4700_v46 = vunpack.c.l.bf16 %v4747_v36 }
  0x4f   : > { %v403_v62 = vmul.f32 %v4701_v45, %v5519_v40  ;;  %v402_v63 = vmul.f32 %v4700_v46, %v5519_v40 }
  0x51   : > { %654 = vperm.xlu1 %5313, %v534_v54   ;;  %649 = vperm.xlu0 %5312, %v533_v55   ;;  %v4740_v54 = vld [vmem:[%s5506_s11 + $0x18] sm:$0xff]   ;;  %v382_v55 = vmul.f32 %v4660_v38, %v5519_v40 }
  0x52   : > { %v4673_v7 = vunpack.c.h.bf16 %v4740_v54 }
  0x55   : > { %744 = vperm.xlu1 %5313, %v552_v0   ;;  %739 = vperm.xlu0 %5312, %v551_v1   ;;  %v4741_v0 = vld [vmem:[%s5506_s11 + $0x20] sm:$0xff]   ;;  %v3846_v1 = vld [vmem:[%s7513_s4 + $0x98] sm:$0xff] }
  0x59   : > { %754 = vperm.xlu1 %5313, %v554_v8   ;;  %749 = vperm.xlu0 %5312, %v553_v9   ;;  %v4672_v8 = vunpack.c.l.bf16 %v4740_v54  ;;  %v434_v9 = vadd.f32 %v5526_v43, %v385_v52 }
  0x5b   : > { %v476_v37 = vmax.f32 %v434_v9, 0.0 }
  0x5d   : > { %764 = vperm.xlu1 %5313, %v556_v12   ;;  %759 = vperm.xlu0 %5312, %v555_v13   ;;  %v405_v12 = vmul.f32 %v4705_v53, %v5519_v40  ;;  %v4709_v13 = vunpack.c.h.bf16 %v4749_v60 }
  0x5f   : > { %v5695_v30 = vadd.f32 %v5526_v43, %v405_v12  ;;  %v407_v31 = vmul.f32 %v4709_v13, %v5519_v40  ;;  %v3852_v12 = vld [vmem:[%s7513_s4 + $0xc8] sm:$0xff]  ;;  %v3851_v13 = vld [vmem:[%s7513_s4 + $0xc0] sm:$0xff] }
  0x61   : > { %3870 = vperm.xlu1 %5313, %v3828_v14   ;;  %3865 = vperm.xlu0 %5312, %v3827_v15   ;;  %v4708_v14 = vunpack.c.l.bf16 %v4749_v60  ;;  %v431_v15 = vadd.f32 %v5526_v43, %v382_v55 }
  0x63   : > { %v473_v36 = vmax.f32 %v431_v15, 0.0 }
  0x65   : > { %3880 = vperm.xlu1 %5313, %v3830_v16   ;;  %3875 = vperm.xlu0 %5312, %v3829_v17   ;;  %v432_v16 = vadd.f32 %v5526_v43, %v383_v58  ;;  %v5674_v17 = vadd.f32 %v5526_v43, %v387_v59  ;;  %v496_v58 = vmax.f32 %v5695_v30, 0.0  ;;  %v5724_v59 = vadd.f32 %v5526_v43, %v407_v31  ;;  %v3858_v30 = vld [vmem:[%s7513_s4 + $0xf8] sm:$0xff] }
  0x67   : > { %v474_v38 = vmax.f32 %v432_v16, 0.0  ;;  %v478_v42 = vmax.f32 %v5674_v17, 0.0 }
  0x69   : > { %3890 = vperm.xlu1 %5313, %v3832_v18   ;;  %3885 = vperm.xlu0 %5312, %v3831_v19   ;;  %v4677_v18 = vunpack.c.h.bf16 %v4741_v0  ;;  %v5677_v19 = vadd.f32 %v5526_v43, %v386_v61  ;;  %v4713_v61 = vunpack.c.h.bf16 %v4750_v41 }
  0x6b   : > { %v391_v39 = vmul.f32 %v4677_v18, %v5519_v40  ;;  %v477_v44 = vmax.f32 %v5677_v19, 0.0 }
  0x6d   : > { %3900 = vperm.xlu1 %5313, %v3834_v20   ;;  %3895 = vperm.xlu0 %5312, %v3833_v21   ;;  %v5680_v20 = vadd.f32 %v5526_v43, %v403_v62  ;;  %v5683_v21 = vadd.f32 %v5526_v43, %v402_v63 }
  0x6f   : > { %v494_v45 = vmax.f32 %v5680_v20, 0.0  ;;  %v493_v46 = vmax.f32 %v5683_v21, 0.0  ;;  %v3855_v20 = vld [vmem:[%s7513_s4 + $0xe0] sm:$0xff] }
  0x71   : > { %3910 = vperm.xlu1 %5313, %v3836_v22   ;;  %3905 = vperm.xlu0 %5312, %v3835_v23   ;;  %v3848_v22 = vld [vmem:[%s7513_s4 + $0xa8] sm:$0xff]  ;;  %v3847_v23 = vld [vmem:[%s7513_s4 + $0xa0] sm:$0xff] }
  0x75   : > { %3920 = vperm.xlu1 %5313, %v3838_v24   ;;  %3915 = vperm.xlu0 %5312, %v3837_v25   ;;  %v404_v24 = vmul.f32 %v4704_v6, %v5519_v40  ;;  %v389_v25 = vmul.f32 %v4673_v7, %v5519_v40 }
  0x77   : > { %v5713_v52 = vadd.f32 %v5526_v43, %v404_v24  ;;  %v5716_v53 = vadd.f32 %v5526_v43, %v389_v25  ;;  %v5751_v24 = vld [vmem:[%s5506_s11 + $0x70] sm:$0xff]  }
  0x78   : > { %v4716_v21 = vunpack.c.l.bf16 %v5751_v24 }
  0x79   : > { %3930 = vperm.xlu1 %5313, %v3840_v26   ;;  %3925 = vperm.xlu0 %5312, %v3839_v27   ;;  %v388_v26 = vmul.f32 %v4672_v8, %v5519_v40  ;;  %v4676_v27 = vunpack.c.l.bf16 %v4741_v0  ;;  %v480_v15 = vmax.f32 %v5716_v53, 0.0  ;;  %v3859_v53 = vld [vmem:[%s7513_s4 + $0x100] sm:$0xff] }
  0x7b   : > { %v5719_v54 = vadd.f32 %v5526_v43, %v388_v26  ;;  %v390_v55 = vmul.f32 %v4676_v27, %v5519_v40 }
  0x7d   : > { %3940 = vperm.xlu1 %5313, %v3842_v32   ;;  %3935 = vperm.xlu0 %5312, %v3841_v33   ;;  %v406_v32 = vmul.f32 %v4708_v14, %v5519_v40  ;;  %v495_v14 = vmax.f32 %v5713_v52, 0.0  ;;  %v479_v16 = vmax.f32 %v5719_v54, 0.0  ;;  %v5742_v17 = vadd.f32 %v5526_v43, %v390_v55  ;;  %v3857_v52 = vld [vmem:[%s7513_s4 + $0xf0] sm:$0xff] }
  0x7f   : > { %v5727_v60 = vadd.f32 %v5526_v43, %v406_v32 }
  0x81   : > { %3950 = vperm.xlu1 %5313, %v3844_v49   ;;  %3945 = vperm.xlu0 %5312, %v3843_v50   ;;  %v4742_v49 = vld [vmem:[%s5506_s11 + $0x28] sm:$0xff]   ;;  %v3850_v50 = vld [vmem:[%s7513_s4 + $0xb8] sm:$0xff]  ;;  %v497_v27 = vmax.f32 %v5727_v60, 0.0 }
  0x82   : > { %v4681_v5 = vunpack.c.h.bf16 %v4742_v49  ;;  %v4680_v9 = vunpack.c.l.bf16 %v4742_v49  ;;  %v4717_v49 = vunpack.c.h.bf16 %v5751_v24  ;;  %v5318_v24 = vld [vmem:[%s7514_s5 + $0x20] sm:$0xff]  }
  0x84   : > { %v393_v32 = vmul.f32 %v4681_v5, %v5519_v40 }
  0x85   : > { %3960 = vperm.xlu1 %5313, %v3846_v1   ;;  %3955 = vperm.xlu0 %5312, %v3845_v4   ;;  %v5730_v1 = vadd.f32 %v5526_v43, %v391_v39  ;;  %v4712_v4 = vunpack.c.l.bf16 %v4750_v41  ;;  %v3853_v39 = vld [vmem:[%s7513_s4 + $0xd0] sm:$0xff] }
  0x87   : > { %v408_v31 = vmul.f32 %v4712_v4, %v5519_v40 }
  0x88   : > { %v570_v33 = vpop.permute.xlu1 %569  ;;  %v560_v35 = vpop.permute.xlu0 %559 }
  0x89   : > { %3970 = vperm.xlu1 %5313, %v3848_v22   ;;  %3965 = vperm.xlu0 %5312, %v3847_v23   ;;  %v769_v62 = vmul.f32 %v570_v33, %v475_v28  ;;  %v767_v6 = vmul.f32 %v560_v35, %v473_v36  ;;  %v498_v22 = vmax.f32 %v5724_v59, 0.0  ;;  %v409_v23 = vmul.f32 %v4713_v61, %v5519_v40  ;;  %v3861_v59 = vld [vmem:[%s7513_s4 + $0x110] sm:$0xff] }
  0x8a   : > { %v482_v28 = vmax.f32 %v5730_v1, 0.0  ;;  %v5776_v5 = vadd.f32 %v5526_v43, %v408_v31 }
  0x8b   : > { %v5773_v61 = vadd.f32 %v5526_v43, %v409_v23 }
  0x8c   : > { %v575_v63 = vpop.permute.xlu1 %574  ;;  %v565_v0 = vpop.permute.xlu0 %564 }
  0x8d   : > { %v770_v7 = vmul.f32 %v575_v63, %v476_v37  ;;  %v768_v8 = vmul.f32 %v565_v0, %v474_v38  ;;  %3980 = vperm.xlu1 %5313, %v3850_v50   ;;  %3975 = vperm.xlu0 %5312, %v3849_v51   ;;  %v392_v37 = vmul.f32 %v4680_v9, %v5519_v40  ;;  %v3854_v38 = vld [vmem:[%s7513_s4 + $0xd8] sm:$0xff] }
  0x8f   : > { %v5744_v18 = vpack.c.bf16 %v770_v7, %v769_v62  ;;  %v5746_v19 = vpack.c.bf16 %v768_v8, %v767_v6 }
  0x90   : > { %v585_v25 = vpop.permute.xlu1 %584  ;;  %v580_v26 = vpop.permute.xlu0 %579 }
  0x91   : > { %v772_v33 = vmul.f32 %v585_v25, %v478_v42  ;;  %v771_v35 = vmul.f32 %v580_v26, %v477_v44  ;;  %3990 = vperm.xlu1 %5313, %v3852_v12   ;;  %3985 = vperm.xlu0 %5312, %v3851_v13   ;;  %v843_v36 = vshll.u32 %v5746_v19, 16  ;;  %v848_v41 = vshll.u32 %v5744_v18, 16  ;;  %v4743_v13 = vld [vmem:[%s5506_s11 + $0x30] sm:$0xff]   ;;  %v3856_v25 = vld [vmem:[%s7513_s4 + $0xe8] sm:$0xff] }
  0x92   : > { %v852_v42 = vshrl.u32 %v5744_v18, 16  ;;  %v481_v44 = vmax.f32 %v5742_v17, 0.0  ;;  %v841_v51 = vshrl.u32 %v5746_v19, 16 }
  0x93   : > { %v5769_v50 = vpack.c.bf16 %v772_v33, %v771_v35  ;;  %v845_v55 = vrot.slane %v843_v36, 1  ;;  %v850_v0 = vrot.slane %v848_v41, 1  ;;  %v2041_v4 = vrot.slane %v848_v41, 2 }
  0x94   : > { %v665_v62 = vpop.permute.xlu1 %664  ;;  %v660_v63 = vpop.permute.xlu0 %659  ;;  %v2040_v6 = vrot.slane %v852_v42, 1  ;;  %v411_v41 = vmul.f32 %v4717_v49, %v5519_v40 }
  0x95   : > { %v788_v7 = vmul.f32 %v665_v62, %v494_v45  ;;  %v787_v8 = vmul.f32 %v660_v63, %v493_v46  ;;  %4000 = vperm.xlu1 %5313, %v3854_v38   ;;  %3995 = vperm.xlu0 %5312, %v3853_v39   ;;  %v846_v9 = vor.u32 %v845_v55, %v841_v51  ;;  %v5783_v12 = vshll.u32 %v5769_v50, 16 }
  0x96   : > { %v854_v23 = vor.u32 %v852_v42, %v850_v0  ;;  %v5793_v45 = vshrl.u32 %v5769_v50, 16  ;;  %v2042_v46 = vor.u32 %v2041_v4, %v2040_v6  ;;  %v5803_v39 = vadd.f32 %v5526_v43, %v393_v32 }
  0x97   : > { %v5796_v26 = vpack.c.bf16 %v788_v7, %v787_v8  ;;  %v851_v31 = vsel %vm839_vm0, %v846_v9, %v850_v0  ;;  %v858_v33 = vrot.slane %v5783_v12, 1  ;;  %v2044_v35 = vrot.slane %v5783_v12, 2  ;;  %v4752_v9 = vld [vmem:[%s5506_s11 + $0x78] sm:$0xff]  }
  0x98   : > { %v675_v36 = vpop.permute.xlu1 %674  ;;  %v670_v38 = vpop.permute.xlu0 %669  ;;  %4941 = vmatprep.mubr.msk.bf16.mxu0 %vm1000_vm1, %v851_v31  ;;  %v4685_v42 = vunpack.c.h.bf16 %v4743_v13  ;;  %v2043_v51 = vrot.slane %v5793_v45, 1  ;;  %v4684_v63 = vunpack.c.l.bf16 %v4743_v13  ;;  %v500_v7 = vmax.f32 %v5773_v61, 0.0 }
  0x99   : > { %7563 = vst [vmem:[#allocation2_spill] sm:$0xff] %v5796_v26  ;;  %v790_v55 = vmul.f32 %v675_v36, %v496_v58  ;;  %v789_v62 = vmul.f32 %v670_v38, %v495_v14  ;;  %4010 = vperm.xlu1 %5313, %v3856_v25   ;;  %4005 = vperm.xlu0 %5312, %v3855_v20   ;;  %v5818_v49 = vshll.u32 %v5796_v26, 16  ;;  %v5859_v36 = vshrl.u32 %v5796_v26, 16 }
  0x9a   : > { %v859_v32 = vsel %vm839_vm0, %v854_v23, %v858_v33  ;;  %v5828_v58 = vadd.f32 %v5526_v43, %v392_v37  ;;  %v410_v14 = vmul.f32 %v4716_v21, %v5519_v40  ;;  %v5831_v0 = vor.u32 %v2044_v35, %v2043_v51  ;;  %v5848_v21 = vld [vmem:[%s7514_s5 + $0x48] sm:$0xff]  }
  0x9b   : > { %4942 = vmatmul.mubr.msk.bf16.vlgmr.msra.gmra.mxu0 %vm1000_vm1, %v859_v32  ;;  %v5833_v4 = vpack.c.bf16 %v790_v55, %v789_v62  ;;  %v7517_v6 = vrot.slane %v5818_v49, 1  ;;  %v5842_v13 = vadd.f32 %v5526_v43, %v411_v41  ;;  %v395_v20 = vmul.f32 %v4685_v42, %v5519_v40  ;;  %7566 = vst [vmem:[#allocation5_spill] sm:$0xff] %v5859_v36  ;;  %v4744_v41 = vld [vmem:[%s5506_s11 + $0x38] sm:$0xff]  }
  0x9c   : > { %5018 = vmatpush3.bf16.msra.mxu0 %v5478_v29  ;;  %v595_v23 = vpop.permute.xlu1 %594  ;;  %v590_v37 = vpop.permute.xlu0 %589  ;;  %v5852_v31 = vsel %vm2039_vm2, %v2042_v46, %v5831_v0  ;;  %v3860_v46 = vld [vmem:[%s7513_s4 + $0x108] sm:$0xff]  ;;  %v4721_v42 = vunpack.c.h.bf16 %v4752_v9  ;;  %v4720_v32 = vunpack.c.l.bf16 %v4752_v9 }
  0x9d   : > { %7564 = vst [vmem:[#allocation3_spill] sm:$0xff] %v5833_v4  ;;  %5019 = vmatprep.subr.bf16.mxu0 %v5318_v24  ;;  %7565 = vst [vmem:[#allocation4_spill] sm:$0xff] %v5852_v31  ;;  %v774_v29 = vmul.f32 %v595_v23, %v480_v15  ;;  %v773_v35 = vmul.f32 %v590_v37, %v479_v16  ;;  %4020 = vperm.xlu1 %5313, %v3858_v30   ;;  %v5862_v38 = vshll.u32 %v5833_v4, 16 }
  0x9e   : > { %4015 = vperm.xlu0 %5312, %v3857_v52   ;;  %v5873_v15 = vadd.f32 %v5526_v43, %v410_v14  ;;  %v394_v16 = vmul.f32 %v4684_v63, %v5519_v40  ;;  %v926_v55 = vor.u32 %v5859_v36, %v7517_v6  ;;  %v5884_v14 = vadd.f32 %v5526_v43, %v395_v20  ;;  %v3862_v20 = vld [vmem:[%s7513_s4 + $0x118] sm:$0xff] }
  0x9f   : > { %7567 = vst [vmem:[#allocation6_spill] sm:$0xff] %v5862_v38  ;;  %v5876_v51 = vpack.c.bf16 %v774_v29, %v773_v35  ;;  %v930_v62 = vrot.slane %v5862_v38, 1  ;;  %v4689_v37 = vunpack.c.h.bf16 %v4744_v41  ;;  %v4688_v63 = vunpack.c.l.bf16 %v4744_v41 }
  0xa0   : > { %5020 = vmatpush3.bf16.msra.mxu0 %v5318_v24  ;;  %v685_v30 = vpop.permute.xlu1 %684  ;;  %v680_v52 = vpop.permute.xlu0 %679  ;;  %v413_v41 = vmul.f32 %v4721_v42, %v5519_v40  ;;  %v412_v42 = vmul.f32 %v4720_v32, %v5519_v40 }
  0xa1   : > { %5097 = vmatprep.subr.bf16.mxu0 %v5848_v21  ;;  %v792_v29 = vmul.f32 %v685_v30, %v498_v22  ;;  %v791_v35 = vmul.f32 %v680_v52, %v497_v27  ;;  %4030 = vperm.xlu1 %5313, %v3860_v46   ;;  %v931_v24 = vsel %vm839_vm0, %v926_v55, %v930_v62  ;;  %v5893_v9 = vshll.u32 %v5876_v51, 16  ;;  %v4753_v30 = vld [vmem:[%s5506_s11 + $0x80] sm:$0xff]  }
  0xa2   : > { %4025 = vperm.xlu0 %5312, %v3859_v53   ;;  %4961 = vmatprep.mubr.msk.bf16.mxu1 %vm1000_vm1, %v931_v24  ;;  %v5903_v60 = vshrl.u32 %v5876_v51, 16  ;;  %v5907_v27 = vadd.f32 %v5526_v43, %v394_v16  ;;  %v862_v53 = vor.u32 %v5793_v45, %v858_v33  ;;  %v5919_v24 = vshrl.u32 %v5833_v4, 16 }
  0xa3   : > { %v5910_v46 = vpack.c.bf16 %v792_v29, %v791_v35  ;;  %v866_v55 = vrot.slane %v5893_v9, 1  ;;  %v2048_v52 = vrot.slane %v5893_v9, 2  ;;  %v397_v16 = vmul.f32 %v4689_v37, %v5519_v40 }
  0xa4   : > { %7569 = vst [vmem:[#allocation8_spill] sm:$0xff] %v5919_v24  ;;  %v605_v6 = vpop.permute.xlu1 %604  ;;  %v600_v22 = vpop.permute.xlu0 %599  ;;  %v2047_v29 = vrot.slane %v5903_v60, 1  ;;  %v396_v32 = vmul.f32 %v4688_v63, %v5519_v40  ;;  %v4725_v25 = vunpack.c.h.bf16 %v4753_v30  ;;  %v934_v1 = vor.u32 %v5919_v24, %v930_v62  ;;  %v5319_v62 = vld [vmem:[%s7514_s5] sm:$0xff]  }
  0xa5   : > { %7568 = vst [vmem:[#allocation7_spill] sm:$0xff] %v5910_v46  ;;  %v776_v35 = vmul.f32 %v605_v6, %v482_v28  ;;  %v775_v33 = vmul.f32 %v600_v22, %v481_v44  ;;  %4040 = vperm.xlu1 %5313, %v3862_v20   ;;  %v867_v23 = vsel %vm839_vm0, %v862_v53, %v866_v55  ;;  %v5930_v54 = vshll.u32 %v5910_v46, 16 }
  0xa6   : > { %4035 = vperm.xlu0 %5312, %v3861_v59   ;;  %4945 = vmatprep.mubr.msk.bf16.mxu0 %vm1000_vm1, %v867_v23  ;;  %v2049_v8 = vor.u32 %v2048_v52, %v2047_v29  ;;  %v5941_v59 = vadd.f32 %v5526_v43, %v413_v41  ;;  %v5944_v23 = vadd.f32 %v5526_v43, %v412_v42  ;;  %v4724_v37 = vunpack.c.l.bf16 %v4753_v30 }
  0xa7   : > { %7570 = vst [vmem:[#allocation9_spill] sm:$0xff] %v5930_v54  ;;  %v5936_v28 = vpack.c.bf16 %v776_v35, %v775_v33  ;;  %v938_v17 = vrot.slane %v5930_v54, 1  ;;  %v7572_v53 = vmax.f32 %v5776_v5, 0.0  ;;  %v5966_v29 = vadd.f32 %v5526_v43, %v397_v16  ;;  %v4745_v33 = vld [vmem:[%s5506_s11 + $0x40] sm:$0xff]  }
  0xa8   : > { %v695_v6 = vpop.permute.xlu1 %694  ;;  %v690_v20 = vpop.permute.xlu0 %689  ;;  %v5951_v63 = vsel %vm2039_vm2, %v5831_v0, %v2049_v8  ;;  %v5969_v0 = vadd.f32 %v5526_v43, %v396_v32  ;;  %v415_v61 = vmul.f32 %v4725_v25, %v5519_v40  ;;  %v5980_v16 = vshrl.u32 %v5910_v46, 16 }
  0xa9   : > { %7571 = vst [vmem:[#allocation10_spill] sm:$0xff] %v5951_v63  ;;  %v794_v22 = vmul.f32 %v695_v6, %v500_v7  ;;  %v793_v41 = vmul.f32 %v690_v20, %v7572_v53  ;;  %v939_v52 = vsel %vm839_vm0, %v934_v1, %v938_v17  ;;  %v5959_v42 = vshll.u32 %v5936_v28, 16 }
  0xaa   : > { %4962 = vmatmul.mubr.msk.bf16.vlgmr.msra.gmra.mxu1 %vm1000_vm1, %v939_v52  ;;  %v5963_v30 = vshrl.u32 %v5936_v28, 16  ;;  %v870_v7 = vor.u32 %v5903_v60, %v866_v55  ;;  %7574 = vst [vmem:[#allocation12_spill] sm:$0xff] %v5980_v16  ;;  %v5987_v55 = vld [vmem:[%s7514_s5 + $0x38] sm:$0xff]   ;;  %v414_v54 = vmul.f32 %v4724_v37, %v5519_v40  ;;  %v4693_v38 = vunpack.c.h.bf16 %v4745_v33 }
  0xab   : > { %v5972_v5 = vpack.c.bf16 %v794_v22, %v793_v41  ;;  %v874_v35 = vrot.slane %v5959_v42, 1  ;;  %4978 = vmatpush3.bf16.msra.mxu1 %v5501_v34  ;;  %v2052_v1 = vrot.slane %v5959_v42, 2  ;;  %v7575_v22 = vmax.f32 %v5803_v39, 0.0 }
  0xac   : > { %v615_v6 = vpop.permute.xlu1 %614  ;;  %v610_v20 = vpop.permute.xlu0 %609  ;;  %4979 = vmatprep.subr.bf16.mxu1 %v5319_v62  ;;  %v2051_v34 = vrot.slane %v5963_v30, 1  ;;  %v7576_v41 = vmax.f32 %v5828_v58, 0.0  ;;  %v942_v39 = vor.u32 %v5980_v16, %v938_v17 }
  0xad   : > { %7573 = vst [vmem:[#allocation11_spill] sm:$0xff] %v5972_v5  ;;  %v778_v53 = vmul.f32 %v615_v6, %v7575_v22  ;;  %v875_v44 = vsel %vm839_vm0, %v870_v7, %v874_v35  ;;  %v5996_v32 = vshll.u32 %v5972_v5, 16  ;;  %v6000_v25 = vshrl.u32 %v5972_v5, 16 }
  0xae   : > { %v777_v52 = vmul.f32 %v610_v20, %v7576_v41  ;;  %4946 = vmatmul.mubr.msk.bf16.gmra.mxu0 %vm1000_vm1, %v875_v44  ;;  %v2053_v24 = vor.u32 %v2052_v1, %v2051_v34  ;;  %v6010_v22 = vadd.f32 %v5526_v43, %v415_v61  ;;  %v7578_v1 = vmax.f32 %v5842_v13, 0.0 }
  0xaf   : > { %v946_v58 = vrot.slane %v5996_v32, 1  ;;  %4980 = vmatpush3.bf16.msra.mxu1 %v5319_v62  ;;  %v2088_v7 = vrot.slane %v5996_v32, 2  ;;  %v2087_v17 = vrot.slane %v6000_v25, 1  ;;  %v7579_v34 = vmax.f32 %v5873_v15, 0.0 }
  0xb0   : > { %v6003_v36 = vpack.c.bf16 %v778_v53, %v777_v52  ;;  %v705_v6 = vpop.permute.xlu1 %704  ;;  %v700_v20 = vpop.permute.xlu0 %699  ;;  %5057 = vmatprep.subr.bf16.mxu1 %v5987_v55  ;;  %v6014_v37 = vsel %vm2039_vm2, %v2049_v8, %v2053_v24  ;;  %v487_v61 = vmax.f32 %v5969_v0, 0.0  ;;  %v4692_v44 = vunpack.c.l.bf16 %v4745_v33 }
  0xb1   : > { %7577 = vst [vmem:[#allocation13_spill] sm:$0xff] %v6014_v37  ;;  %v796_v62 = vmul.f32 %v705_v6, %v7578_v1  ;;  %v795_v53 = vmul.f32 %v700_v20, %v7579_v34  ;;  %v947_v41 = vsel %vm839_vm0, %v942_v39, %v946_v58  ;;  %v6030_v16 = vor.u32 %v2088_v7, %v2087_v17  ;;  %v4754_v39 = vld [vmem:[%s5506_s11 + $0x88] sm:$0xff]  }
  0xb2   : > { %v6023_v52 = vshll.u32 %v6003_v36, 16  ;;  %4965 = vmatprep.mubr.msk.bf16.mxu1 %vm1000_vm1, %v947_v41  ;;  %v6028_v8 = vshrl.u32 %v6003_v36, 16  ;;  %v878_v15 = vor.u32 %v5963_v30, %v874_v35  ;;  %v506_v41 = vmax.f32 %v6010_v22, 0.0 }
  0xb3   : > { %7580 = vst [vmem:[#allocation14_spill] sm:$0xff] %v6030_v16  ;;  %v6032_v13 = vpack.c.bf16 %v796_v62, %v795_v53  ;;  %v463_v0 = vadd.f32 %v5526_v43, %v414_v54  ;;  %v399_v37 = vmul.f32 %v4693_v38, %v5519_v40  ;;  %v7582_v7 = vmax.f32 %v5884_v14, 0.0 }
  0xb4   : > { %v882_v6 = vrot.slane %v6023_v52, 1  ;;  %v2056_v20 = vrot.slane %v6023_v52, 2  ;;  %v625_v1 = vpop.permute.xlu1 %624  ;;  %v620_v34 = vpop.permute.xlu0 %619  ;;  %v2055_v33 = vrot.slane %v6028_v8, 1  ;;  %v7583_v35 = vmax.f32 %v5907_v27, 0.0 }
  0xb5   : > { %7581 = vst [vmem:[#allocation15_spill] sm:$0xff] %v6032_v13  ;;  %v780_v17 = vmul.f32 %v625_v1, %v7582_v7  ;;  %v6048_v63 = vshll.u32 %v6032_v13, 16  ;;  %v6052_v22 = vshrl.u32 %v6032_v13, 16  ;;  %v398_v38 = vmul.f32 %v4692_v44, %v5519_v40 }
  0xb6   : > { %v779_v62 = vmul.f32 %v620_v34, %v7583_v35  ;;  %v883_v53 = vsel %vm839_vm0, %v878_v15, %v882_v6  ;;  %v4729_v54 = vunpack.c.h.bf16 %v4754_v39  ;;  %v2057_v31 = vor.u32 %v2056_v20, %v2055_v33 }
  0xb7   : > { %4949 = vmatprep.mubr.msk.bf16.mxu0 %vm1000_vm1, %v883_v53  ;;  %v950_v14 = vor.u32 %v6000_v25, %v946_v58  ;;  %v954_v27 = vrot.slane %v6048_v63, 1  ;;  %v2092_v15 = vrot.slane %v6048_v63, 2  ;;  %v505_v7 = vmax.f32 %v463_v0, 0.0 }
  0xb8   : > { %v6055_v5 = vpack.c.bf16 %v780_v17, %v779_v62  ;;  %v715_v1 = vpop.permute.xlu1 %714  ;;  %v710_v34 = vpop.permute.xlu0 %709  ;;  %v4728_v35 = vunpack.c.l.bf16 %v4754_v39  ;;  %v6061_v53 = vsel %vm2039_vm2, %v2053_v24, %v2057_v31  ;;  %v2091_v13 = vrot.slane %v6052_v22, 1 }
  0xb9   : > { %7584 = vst [vmem:[#allocation16_spill] sm:$0xff] %v6061_v53  ;;  %v7585_v44 = vmax.f32 %v5941_v59, 0.0  ;;  %v7586_v33 = vmax.f32 %v5944_v23, 0.0  ;;  %v955_v58 = vsel %vm839_vm0, %v950_v14, %v954_v27  ;;  %v448_v39 = vadd.f32 %v5526_v43, %v399_v37 }
  0xba   : > { %v6070_v62 = vshll.u32 %v6055_v5, 16  ;;  %4966 = vmatmul.mubr.msk.bf16.gmra.mxu1 %vm1000_vm1, %v955_v58  ;;  %v6075_v24 = vshrl.u32 %v6055_v5, 16  ;;  %v417_v0 = vmul.f32 %v4729_v54, %v5519_v40  ;;  %v2093_v53 = vor.u32 %v2092_v15, %v2091_v13 }
  0xbb   : > { %v798_v20 = vmul.f32 %v715_v1, %v7585_v44  ;;  %v797_v17 = vmul.f32 %v710_v34, %v7586_v33  ;;  %v886_v23 = vor.u32 %v6028_v8, %v882_v6  ;;  %v447_v33 = vadd.f32 %v5526_v43, %v398_v38 }
  0xbc   : > { %v890_v1 = vrot.slane %v6070_v62, 1  ;;  %v2060_v14 = vrot.slane %v6070_v62, 2  ;;  %v635_v34 = vpop.permute.xlu1 %634  ;;  %v630_v44 = vpop.permute.xlu0 %629  ;;  %v416_v37 = vmul.f32 %v4728_v35, %v5519_v40  ;;  %v2059_v58 = vrot.slane %v6075_v24, 1 }
  0xbd   : > { %v6078_v59 = vpack.c.bf16 %v798_v20, %v797_v17  ;;  %v6088_v54 = vsel %vm2039_vm2, %v6030_v16, %v2093_v53  ;;  %v7589_v13 = vmax.f32 %v5966_v29, 0.0  ;;  %v781_v6 = vmul.f32 %v630_v44, %v487_v61 }
  0xbe   : > { %7588 = vst [vmem:[#allocation18_spill] sm:$0xff] %v6088_v54  ;;  %v891_v20 = vsel %vm839_vm0, %v886_v23, %v890_v1  ;;  %v490_v38 = vmax.f32 %v448_v39, 0.0  ;;  %v466_v40 = vadd.f32 %v5526_v43, %v417_v0  ;;  %v2061_v46 = vor.u32 %v2060_v14, %v2059_v58 }
  0xbf   : > { %7587 = vst [vmem:[#allocation17_spill] sm:$0xff] %v6078_v59  ;;  %v782_v15 = vmul.f32 %v635_v34, %v7589_v13  ;;  %v6094_v17 = vshll.u32 %v6078_v59, 16  ;;  %4950 = vmatmul.mubr.msk.bf16.gmra.mxu0 %vm1000_vm1, %v891_v20  ;;  %v6099_v35 = vshrl.u32 %v6078_v59, 16  ;;  %v958_v29 = vor.u32 %v6052_v22, %v954_v27 }
  0xc0   : > { %v725_v34 = vpop.permute.xlu1 %724  ;;  %v720_v44 = vpop.permute.xlu0 %719  ;;  %v489_v13 = vmax.f32 %v447_v33, 0.0  ;;  %v465_v20 = vadd.f32 %v5526_v43, %v416_v37  ;;  %v6108_v39 = vsel %vm2039_vm2, %v2057_v31, %v2061_v46 }
  0xc1   : > { %v6101_v16 = vpack.c.bf16 %v782_v15, %v781_v6  ;;  %v962_v61 = vrot.slane %v6094_v17, 1  ;;  %v2096_v23 = vrot.slane %v6094_v17, 2  ;;  %7590 = vst [vmem:[#allocation19_spill] sm:$0xff] %v6108_v39  ;;  %v2095_v0 = vrot.slane %v6099_v35, 1 }
  0xc2   : > { %v800_v54 = vmul.f32 %v725_v34, %v506_v41  ;;  %v799_v14 = vmul.f32 %v720_v44, %v505_v7  ;;  %v894_v15 = vor.u32 %v6075_v24, %v890_v1  ;;  %v508_v6 = vmax.f32 %v466_v40, 0.0 }
  0xc3   : > { %v963_v58 = vsel %vm839_vm0, %v958_v29, %v962_v61  ;;  %v6113_v27 = vshll.u32 %v6101_v16, 16  ;;  %v6118_v33 = vshrl.u32 %v6101_v16, 16  ;;  %v2097_v43 = vor.u32 %v2096_v23, %v2095_v0 }
  0xc4   : > { %4969 = vmatprep.mubr.msk.bf16.mxu1 %vm1000_vm1, %v963_v58  ;;  %v6120_v31 = vpack.c.bf16 %v800_v54, %v799_v14  ;;  %v2418_v7 = vrot.slane %v6101_v16, 2  ;;  %v645_v29 = vpop.permute.xlu1 %644  ;;  %v640_v34 = vpop.permute.xlu0 %639  ;;  %v507_v44 = vmax.f32 %v465_v20, 0.0  ;;  %v966_v14 = vor.u32 %v6099_v35, %v962_v61 }
  0xc5   : > { %v898_v37 = vrot.slane %v6113_v27, 1  ;;  %v2064_v41 = vrot.slane %v6113_v27, 2  ;;  %v2063_v58 = vrot.slane %v6118_v33, 1  ;;  %v6127_v1 = vsel %vm2039_vm2, %v2093_v53, %v2097_v43 }
  0xc6   : > { %7591 = vst [vmem:[#allocation20_spill] sm:$0xff] %v6120_v31  ;;  %7592 = vst [vmem:[#allocation21_spill] sm:$0xff] %v6127_v1  ;;  %v784_v39 = vmul.f32 %v645_v29, %v490_v38  ;;  %v783_v23 = vmul.f32 %v640_v34, %v489_v13  ;;  %v6132_v0 = vshll.u32 %v6120_v31, 16  ;;  %v6137_v20 = vshrl.u32 %v6120_v31, 16 }
  0xc7   : > { %v899_v54 = vsel %vm839_vm0, %v894_v15, %v898_v37  ;;  %v2065_v59 = vor.u32 %v2064_v41, %v2063_v58  ;;  %v7594_v13 = vrot.slane %v6055_v5, 2  ;;  %v492_v61 = vmax.f32 %v5536_v47, 0.0 }
  0xc8   : > { %7593 = vst [vmem:[#allocation22_spill] sm:$0xff] %v6132_v0  ;;  %4953 = vmatprep.mubr.msk.bf16.mxu0 %vm1000_vm1, %v899_v54  ;;  %v6139_v53 = vpack.c.bf16 %v784_v39, %v783_v23  ;;  %v970_v40 = vrot.slane %v6132_v0, 1  ;;  %v2100_v38 = vrot.slane %v6132_v0, 2  ;;  %v735_v29 = vpop.permute.xlu1 %734  ;;  %v730_v34 = vpop.permute.xlu0 %729  ;;  %v491_v54 = vmax.f32 %v5539_v48, 0.0 }
  0xc9   : > { %v6146_v15 = vsel %vm2406_vm3, %v7594_v13, %v2418_v7  ;;  %v6151_v41 = vsel %vm2039_vm2, %v2061_v46, %v2065_v59  ;;  %v2099_v39 = vrot.slane %v6137_v20, 1  ;;  %v802_v58 = vmul.f32 %v735_v29, %v508_v6 }
  0xca   : > { %7595 = vst [vmem:[#allocation23_spill] sm:$0xff] %v6146_v15  ;;  %7596 = vst [vmem:[#allocation24_spill] sm:$0xff] %v6151_v41  ;;  %v801_v23 = vmul.f32 %v730_v34, %v507_v44  ;;  %v971_v1 = vsel %vm839_vm0, %v966_v14, %v970_v40  ;;  %v6156_v31 = vshll.u32 %v6139_v53, 16  ;;  %v902_v13 = vor.u32 %v6118_v33, %v898_v37 }
  0xcb   : > { %4970 = vmatmul.mubr.msk.bf16.gmra.mxu1 %vm1000_vm1, %v971_v1  ;;  %v510_v47 = vmax.f32 %v5551_v56, 0.0  ;;  %v6162_v48 = vshrl.u32 %v6139_v53, 16  ;;  %v2101_v46 = vor.u32 %v2100_v38, %v2099_v39  ;;  %v2420_v14 = vrot.slane %v6139_v53, 2 }
  0xcc   : > { %v6164_v15 = vpack.c.bf16 %v802_v58, %v801_v23  ;;  %v906_v6 = vrot.slane %v6156_v31, 1  ;;  %v2068_v44 = vrot.slane %v6156_v31, 2  ;;  %v655_v29 = vpop.permute.xlu1 %654  ;;  %v650_v34 = vpop.permute.xlu0 %649  ;;  %v509_v1 = vmax.f32 %v5554_v57, 0.0 }
  0xcd   : > { %v512_v37 = vmax.f32 %v5567_v2, 0.0  ;;  %v2067_v56 = vrot.slane %v6162_v48, 1  ;;  %v6173_v41 = vsel %vm2039_vm2, %v2097_v43, %v2101_v46  ;;  %v786_v38 = vmul.f32 %v655_v29, %v492_v61 }
  0xce   : > { %7597 = vst [vmem:[#allocation25_spill] sm:$0xff] %v6164_v15  ;;  %7598 = vst [vmem:[#allocation26_spill] sm:$0xff] %v6173_v41  ;;  %v785_v39 = vmul.f32 %v650_v34, %v491_v54  ;;  %v907_v58 = vsel %vm839_vm0, %v902_v13, %v906_v6  ;;  %v6177_v23 = vshll.u32 %v6164_v15, 16  ;;  %v974_v26 = vor.u32 %v6137_v20, %v970_v40 }
  0xcf   : > { %4954 = vmatmul.mubr.msk.bf16.gmra.mxu0 %vm1000_vm1, %v907_v58  ;;  %v511_v57 = vmax.f32 %v5570_v3, 0.0  ;;  %v6183_v2 = vshrl.u32 %v6164_v15, 16  ;;  %v2069_v4 = vor.u32 %v2068_v44, %v2067_v56  ;;  %v6190_v54 = vsel %vm2406_vm3, %v2418_v7, %v2420_v14 }
  0xd0   : > { %7599 = vst [vmem:[#allocation27_spill] sm:$0xff] %v6177_v23  ;;  %v6185_v0 = vpack.c.bf16 %v786_v38, %v785_v39  ;;  %v978_v43 = vrot.slane %v6177_v23, 1  ;;  %v2104_v61 = vrot.slane %v6177_v23, 2  ;;  %7601 = vst [vmem:[#allocation29_spill] sm:$0xff] %v6190_v54  ;;  %v745_v13 = vpop.permute.xlu1 %744  ;;  %v740_v29 = vpop.permute.xlu0 %739  ;;  %v1482_v34 = vrot.slane %v5746_v19, 1 }
  0xd1   : > { %v6195_v3 = vsel %vm2039_vm2, %v2065_v59, %v2069_v4  ;;  %v2103_v44 = vrot.slane %v6183_v2, 1  ;;  %v804_v56 = vmul.f32 %v745_v13, %v510_v47  ;;  %v803_v38 = vmul.f32 %v740_v29, %v509_v1 }
  0xd2   : > { %7600 = vst [vmem:[#allocation28_spill] sm:$0xff] %v6185_v0  ;;  %7602 = vst [vmem:[#allocation30_spill] sm:$0xff] %v6195_v3  ;;  %v979_v39 = vsel %vm839_vm0, %v974_v26, %v978_v43  ;;  %v6200_v58 = vshll.u32 %v6185_v0, 16  ;;  %v910_v7 = vor.u32 %v6162_v48, %v906_v6  ;;  %v514_v54 = vmax.f32 %v5581_v10, 0.0 }
  0xd3   : > { %4973 = vmatprep.mubr.msk.bf16.mxu1 %vm1000_vm1, %v979_v39  ;;  %v6206_v40 = vshrl.u32 %v6185_v0, 16  ;;  %v2105_v59 = vor.u32 %v2104_v61, %v2103_v44  ;;  %v6208_v41 = vpack.c.bf16 %v804_v56, %v803_v38  ;;  %v513_v39 = vmax.f32 %v5584_v11, 0.0 }
  0xd4   : > { %v914_v47 = vrot.slane %v6200_v58, 1  ;;  %v2072_v1 = vrot.slane %v6200_v58, 2  ;;  %v755_v13 = vpop.permute.xlu1 %754  ;;  %v750_v29 = vpop.permute.xlu0 %749  ;;  %v7603_v6 = vrot.slane %v5744_v18, 1  ;;  %v1485_v11 = vrot.slane %v5769_v50, 1 }
  0xd5   : > { %v2071_v3 = vrot.slane %v6206_v40, 1  ;;  %v6219_v61 = vsel %vm2039_vm2, %v2101_v46, %v2105_v59  ;;  %v806_v44 = vmul.f32 %v755_v13, %v512_v37  ;;  %v805_v56 = vmul.f32 %v750_v29, %v511_v57 }
  0xd6   : > { %v1484_v10 = vsel %vm1481_vm4, %v1482_v34, %v7603_v6  ;;  %v915_v38 = vsel %vm839_vm0, %v910_v7, %v914_v47  ;;  %v918_v15 = vor.u32 %v6206_v40, %v914_v47  ;;  %v6225_v26 = vshll.u32 %v6208_v41, 16 }
  0xd7   : > { %4957 = vmatprep.mubr.msk.bf16.mxu0 %vm1000_vm1, %v915_v38  ;;  %v6228_v23 = vor.u32 %v2072_v1, %v2071_v3  ;;  %v2107_v34 = vshrl.u32 %v6208_v41, 16  ;;  %v6231_v6 = vpack.c.bf16 %v806_v44, %v805_v56  ;;  %v7604_v46 = vrot.slane %v5818_v49, 1 }
  0xd8   : > { %v7605_v57 = vrot.slane %v6185_v0, 2  ;;  %v2965_v47 = vrot.slane %v5793_v45, 2  ;;  %v765_v13 = vpop.permute.xlu1 %764  ;;  %v760_v29 = vpop.permute.xlu0 %759  ;;  %v982_v3 = vor.u32 %v6183_v2, %v978_v43  ;;  %v986_v1 = vrot.slane %v6225_v26, 1 }
  0xd9   : > { %v923_v37 = vsel %vm839_vm0, %v918_v15, %v7604_v46  ;;  %v6248_v15 = vsel %vm2039_vm2, %v2069_v4, %v6228_v23  ;;  %v808_v56 = vmul.f32 %v765_v13, %v514_v54  ;;  %v807_v38 = vmul.f32 %v760_v29, %v513_v39 }
  0xda   : > { %v6239_v7 = vsel %vm2406_vm3, %v2420_v14, %v7605_v57  ;;  %4958 = vmatmul.mubr.msk.bf16.gmra.mxu0 %vm1000_vm1, %v923_v37  ;;  %v2109_v45 = vrot.slane %v2107_v34, 1  ;;  %v2110_v14 = vrot.slane %v6225_v26, 2  ;;  %v987_v46 = vsel %vm839_vm0, %v982_v3, %v986_v1 }
  0xdb   : > { %5021 = vmatprep.mubr.msk.bf16.mxu0 %vm1000_vm1, %v1484_v10  ;;  %v7552_v43 = vshrl.u32 %v6231_v6, 16  ;;  %v7549_v37 = vshll.u32 %v6231_v6, 16  ;;  %v1804_v57 = vrot.slane %v6231_v6, 1  ;;  %v6258_v44 = vpack.c.bf16 %v808_v56, %v807_v38  ;;  %4974 = vmatmul.mubr.msk.bf16.gmra.mxu1 %vm1000_vm1, %v987_v46 }
  0xdc   : > { %v1487_v4 = vrot.slane %v5876_v51, 1  ;;  %v2111_v54 = vor.u32 %v2110_v14, %v2109_v45  ;;  %v2966_v39 = vrot.slane %v5783_v12, 3  ;;  %4981 = vmatprep.mubr.msk.bf16.mxu1 %vm1000_vm1, %v5746_v19  ;;  %v7606_v29 = vrot.slane %v6208_v41, 1  ;;  %v5323_v45 = vld [vmem:[%s7514_s5 + $0x40] sm:$0xff]  }
  0xdd   : > { %v2116_v10 = vrot.slane %v7552_v43, 1  ;;  %v2119_v13 = vrot.slane %v7549_v37, 2  ;;  %v2973_v1 = vrot.slane %v5959_v42, 3  ;;  %v2972_v56 = vrot.slane %v5963_v30, 2 }
  0xde   : > { %v6272_v3 = vsel %vm1481_vm4, %v7606_v29, %v1804_v57  ;;  %v7607_v12 = vrot.slane %v5744_v18, 1  ;;  %v6282_v19 = vsel %vm2039_vm2, %v2105_v59, %v2111_v54  ;;  %v7551_v46 = vrot.slane %v6208_v41, 2 }
  0xdf   : > { %v2120_v14 = vor.u32 %v2119_v13, %v2116_v10  ;;  %v2442_v57 = vrot.slane %v6231_v6, 2  ;;  %v2729_v42 = vrot.slane %v6258_v44, 2  ;;  %v6291_v30 = vsel %vm1481_vm4, %v1485_v11, %v1487_v4 }
  0xe0   : > { %v6279_v38 = vsel %vm1481_vm4, %v7607_v12, %v1485_v11  ;;  %v1489_v29 = vrot.slane %v5936_v28, 1  ;;  %v1491_v12 = vrot.slane %v6003_v36, 1  ;;  %v2967_v59 = vor.u32 %v2966_v39, %v2965_v47  ;;  %v5322_v47 = vld [vmem:[%s7514_s5 + $0x30] sm:$0xff]  }
  0xe1   : > { %v6298_v37 = vsel %vm2039_vm2, %v2111_v54, %v2120_v14  ;;  %v6303_v10 = vsel %vm2406_vm3, %v7551_v46, %v2442_v57  ;;  %v6306_v13 = vsel %vm2406_vm3, %v2442_v57, %v2729_v42  ;;  %v2968_v11 = vrot.slane %v5903_v60, 2  ;;  %v6319_v14 = vld [vmem:[%s7514_s5 + $0x68] sm:$0xff]  }
  0xe2   : > { %5022 = vmatmul.mubr.msk.bf16.vlgmr.msra.gmra.mxu0 %vm1000_vm1, %v6279_v38  ;;  %v2969_v54 = vrot.slane %v5893_v9, 3  ;;  %v2974_v39 = vor.u32 %v2973_v1, %v2972_v56  ;;  %v2976_v60 = vrot.slane %v6028_v8, 2  ;;  %v2977_v57 = vrot.slane %v6023_v52, 3 }
  0xe3   : > { %5025 = vmatprep.mubr.msk.bf16.mxu0 %vm1000_vm1, %v6291_v30  ;;  %5098 = vmatpush3.bf16.msra.mxu0 %v5848_v21  ;;  %v7550_v21 = vrot.slane %v6055_v5, 3  ;;  %v3339_v42 = vrot.slane %v6101_v16, 3  ;;  %v6328_v9 = vsel %vm1481_vm4, %v1487_v4, %v1489_v29  ;;  %v2980_v56 = vrot.slane %v6075_v24, 2 }
  0xe4   : > { %5099 = vmatprep.subr.bf16.mxu0 %v5323_v45  ;;  %4982 = vmatmul.mubr.msk.bf16.vlgmr.msra.gmra.mxu1 %vm1000_vm1, %v5744_v18  ;;  %v2970_v1 = vor.u32 %v2969_v54, %v2968_v11  ;;  %v6337_v52 = vsel %vm1481_vm4, %v1489_v29, %v1491_v12  ;;  %v2978_v8 = vor.u32 %v2977_v57, %v2976_v60  ;;  %v2981_v11 = vrot.slane %v6070_v62, 3 }
  0xe5   : > { %5058 = vmatpush3.bf16.msra.mxu1 %v5987_v55  ;;  %4985 = vmatprep.mubr.msk.bf16.mxu1 %vm1000_vm1, %v5769_v50  ;;  %v6342_v4 = vsel %vm3329_vm5, %v7550_v21, %v3339_v42  ;;  %v6348_v55 = vld [vmem:[%s7514_s5 + $0x58] sm:$0xff]   ;;  %v2984_v54 = vrot.slane %v6118_v33, 2  ;;  %v2985_v60 = vrot.slane %v6113_v27, 3  ;;  %v3341_v57 = vrot.slane %v6139_v53, 3 }
  0xe6   : > { %5059 = vmatprep.subr.bf16.mxu1 %v5322_v47  ;;  %v6351_v24 = vsel %vm2964_vm6, %v2967_v59, %v2970_v1  ;;  %v6354_v29 = vsel %vm2964_vm6, %v2970_v1, %v2974_v39  ;;  %v6360_v62 = vsel %vm2964_vm6, %v2974_v39, %v2978_v8  ;;  %v7553_v21 = vrot.slane %v6185_v0, 3 }
  0xe7   : > { %5100 = vmatpush3.bf16.msra.mxu0 %v5323_v45  ;;  %v2982_v45 = vor.u32 %v2981_v11, %v2980_v56  ;;  %v2986_v46 = vor.u32 %v2985_v60, %v2984_v54  ;;  %v2988_v59 = vrot.slane %v6162_v48, 2  ;;  %v2989_v1 = vrot.slane %v6156_v31, 3 }
  0xe8   : > { %5177 = vmatprep.subr.bf16.mxu0 %v6319_v14  ;;  %v2992_v43 = vrot.slane %v6206_v40, 2  ;;  %v6373_v33 = vsel %vm3329_vm5, %v3339_v42, %v3341_v57  ;;  %v6378_v39 = vsel %vm3329_vm5, %v3341_v57, %v7553_v21  ;;  %v2993_v48 = vrot.slane %v6200_v58, 3 }
  0xe9   : > { %5060 = vmatpush3.bf16.msra.mxu1 %v5322_v47  ;;  %v6370_v27 = vsel %vm2964_vm6, %v2978_v8, %v2982_v45  ;;  %v6385_v31 = vsel %vm2964_vm6, %v2982_v45, %v2986_v46  ;;  %v2990_v40 = vor.u32 %v2989_v1, %v2988_v59  ;;  %v1493_v42 = vrot.slane %v6055_v5, 1 }
  0xea   : > { %5026 = vmatmul.mubr.msk.bf16.gmra.mxu0 %vm1000_vm1, %v6328_v9  ;;  %5137 = vmatprep.subr.bf16.mxu1 %v6348_v55  ;;  %v6387_v47 = vor.u32 %v2993_v48, %v2992_v43  ;;  %v1495_v56 = vrot.slane %v6101_v16, 1  ;;  %v3008_v43 = vrot.slane %v6000_v25, 2  ;;  %v3009_v11 = vrot.slane %v5996_v32, 3 }
  0xeb   : > { %5029 = vmatprep.mubr.msk.bf16.mxu0 %vm1000_vm1, %v6337_v52  ;;  %v6394_v58 = vsel %vm2964_vm6, %v2986_v46, %v2990_v40  ;;  %v3037_v54 = vshrl.u32 %v6258_v44, 16  ;;  %v6408_v60 = vsel %vm1481_vm4, %v1491_v12, %v1493_v42  ;;  %v3012_v45 = vrot.slane %v6052_v22, 2 }
  0xec   : > { %7608 = vst [vmem:[#allocation31_spill] sm:$0xff] %v6387_v47  ;;  %4986 = vmatmul.mubr.msk.bf16.gmra.mxu1 %vm1000_vm1, %v5876_v51  ;;  %v6400_v8 = vsel %vm2964_vm6, %v2990_v40, %v6387_v47  ;;  %v6411_v46 = vsel %vm1481_vm4, %v1493_v42, %v1495_v56  ;;  %v3040_v57 = vshll.u32 %v6258_v44, 16  ;;  %v6417_v25 = vor.u32 %v3009_v11, %v3008_v43 }
  0xed   : > { %4989 = vmatprep.mubr.msk.bf16.mxu1 %vm1000_vm1, %v5936_v28  ;;  %v3013_v32 = vrot.slane %v6048_v63, 3  ;;  %v3016_v59 = vrot.slane %v6099_v35, 2  ;;  %v3017_v12 = vrot.slane %v6094_v17, 3  ;;  %v1497_v1 = vrot.slane %v6139_v53, 1  ;;  %v7610_v63 = vld [vmem:[#allocation22_spill] sm:$0xff] }
  0xee   : > { %7609 = vst [vmem:[#allocation32_spill] sm:$0xff] %v6417_v25  ;;  %v1499_v22 = vrot.slane %v6185_v0, 1  ;;  %v3020_v40 = vrot.slane %v6137_v20, 2  ;;  %v3039_v42 = vrot.slane %v3037_v54, 2  ;;  %v3021_v11 = vrot.slane %v7610_v63, 3 }
  0xef   : > { %v3014_v48 = vor.u32 %v3013_v32, %v3012_v45  ;;  %v3018_v43 = vor.u32 %v3017_v12, %v3016_v59  ;;  %v3024_v35 = vrot.slane %v6183_v2, 2  ;;  %v3042_v21 = vrot.slane %v3040_v57, 3  ;;  %v7612_v45 = vld [vmem:[#allocation27_spill] sm:$0xff] }
  0xf0   : > { %v3025_v32 = vrot.slane %v7612_v45, 3  ;;  %v3022_v59 = vor.u32 %v3021_v11, %v3020_v40  ;;  %v3363_v12 = vrot.slane %v6231_v6, 3  ;;  %v3028_v2 = vrot.slane %v2107_v34, 2 }
  0xf1   : > { %v6435_v17 = vsel %vm2964_vm6, %v6417_v25, %v3014_v48  ;;  %v6440_v54 = vsel %vm2964_vm6, %v3014_v48, %v3018_v43  ;;  %v6446_v57 = vsel %vm1481_vm4, %v1495_v56, %v1497_v1  ;;  %v3029_v25 = vrot.slane %v6225_v26, 3 }
  0xf2   : > { %5030 = vmatmul.mubr.msk.bf16.gmra.mxu0 %vm1000_vm1, %v6408_v60  ;;  %7611 = vst [vmem:[#allocation22_spill] sm:$0xff] %v6435_v17  ;;  %7613 = vst [vmem:[#allocation27_spill] sm:$0xff] %v6440_v54  ;;  %v3026_v63 = vor.u32 %v3025_v32, %v3024_v35  ;;  %v7614_v17 = vshrl.u32 %v6231_v6, 16  ;;  %v6452_v20 = vsel %vm2964_vm6, %v3018_v43, %v3022_v59  ;;  %v7616_v48 = vrot.slane %v6208_v41, 3 }
  0xf3   : > { %5033 = vmatprep.mubr.msk.bf16.mxu0 %vm1000_vm1, %v6411_v46  ;;  %7615 = vst [vmem:[#allocation33_spill] sm:$0xff] %v6452_v20  ;;  %v7618_v11 = vshll.u32 %v6231_v6, 16  ;;  %v3365_v56 = vrot.slane %v6258_v44, 3  ;;  %v6465_v26 = vsel %vm1481_vm4, %v1497_v1, %v1499_v22  ;;  %v3030_v43 = vor.u32 %v3029_v25, %v3028_v2  ;;  %v7644_v20 = vld [vmem:[#allocation9_spill] sm:$0xff] }
  0xf4   : > { %4990 = vmatmul.mubr.msk.bf16.gmra.mxu1 %vm1000_vm1, %v6003_v36  ;;  %v3032_v45 = vrot.slane %v7614_v17, 2  ;;  %v6457_v40 = vsel %vm3329_vm5, %v7616_v48, %v3363_v12  ;;  %v6468_v35 = vsel %vm2964_vm6, %v3022_v59, %v3026_v63  ;;  %v3043_v17 = vor.u32 %v3042_v21, %v3039_v42  ;;  %v7624_v21 = vld [vmem:[#allocation3_spill] sm:$0xff]  ;;  %v7625_v42 = vld [vmem:[#allocation2_spill] sm:$0xff] }
  0xf5   : > { %4993 = vmatprep.mubr.msk.bf16.mxu1 %vm1000_vm1, %v6055_v5  ;;  %7617 = vst [vmem:[#allocation34_spill] sm:$0xff] %v6457_v40  ;;  %v3033_v34 = vrot.slane %v7618_v11, 3  ;;  %7619 = vst [vmem:[#allocation35_spill] sm:$0xff] %v6468_v35  ;;  %v6473_v6 = vsel %vm3329_vm5, %v3363_v12, %v3365_v56  ;;  %v6476_v44 = vsel %vm2964_vm6, %v3026_v63, %v3030_v43  ;;  %v1503_v25 = vrot.slane %v7624_v21, 1  ;;  %v7634_v40 = vld [vmem:[#allocation10_spill] sm:$0xff]  ;;  %v7635_v35 = vld [vmem:[#allocation13_spill] sm:$0xff] }
  0xf6   : > { %7620 = vst [vmem:[#allocation36_spill] sm:$0xff] %v6473_v6  ;;  %7621 = vst [vmem:[#allocation37_spill] sm:$0xff] %v6476_v44  ;;  %v1501_v12 = vrot.slane %v7625_v42, 1  ;;  %v7633_v44 = vld [vmem:[#allocation4_spill] sm:$0xff]  ;;  %v2084_v54 = vrot.slane %v7644_v20, 2 }
  0xf7   : > { %v3034_v32 = vor.u32 %v3033_v34, %v3032_v45  ;;  %v7627_v45 = vld [vmem:[#allocation11_spill] sm:$0xff] }
  0xf8   : > { %v6491_v2 = vsel %vm1481_vm4, %v1499_v22, %v1501_v12  ;;  %v1507_v22 = vrot.slane %v7627_v45, 1  ;;  %v7628_v34 = vld [vmem:[#allocation15_spill] sm:$0xff] }
  0xf9   : > { %v6481_v1 = vsel %vm2964_vm6, %v3030_v43, %v3034_v32  ;;  %v6484_v59 = vsel %vm2964_vm6, %v3034_v32, %v3043_v17  ;;  %v1509_v56 = vrot.slane %v7628_v34, 1  ;;  %v7629_v43 = vld [vmem:[#allocation17_spill] sm:$0xff] }
  0xfa   : > { %5034 = vmatmul.mubr.msk.bf16.gmra.mxu0 %vm1000_vm1, %v6446_v57  ;;  %7622 = vst [vmem:[#allocation38_spill] sm:$0xff] %v6481_v1  ;;  %7623 = vst [vmem:[#allocation39_spill] sm:$0xff] %v6484_v59  ;;  %v1511_v17 = vrot.slane %v7629_v43, 1  ;;  %v7631_v59 = vld [vmem:[#allocation25_spill] sm:$0xff]  ;;  %v7632_v1 = vrot.slane %v6208_v41, 1 }
  0xfb   : > { %5037 = vmatprep.mubr.msk.bf16.mxu0 %vm1000_vm1, %v6465_v26  ;;  %v6523_v32 = vsel %vm1481_vm4, %v1507_v22, %v1509_v56 }
  0xfc   : > { %4994 = vmatmul.mubr.msk.bf16.gmra.mxu1 %vm1000_vm1, %v6101_v16  ;;  %v6496_v16 = vsel %vm1481_vm4, %v1501_v12, %v1503_v25  ;;  %v7630_v12 = vld [vmem:[#allocation20_spill] sm:$0xff] }
  0xfd   : > { %4997 = vmatprep.mubr.msk.bf16.mxu1 %vm1000_vm1, %v6139_v53  ;;  %v7626_v53 = vld [vmem:[#allocation7_spill] sm:$0xff] }
  0xfe   : > { %v1505_v63 = vrot.slane %v7626_v53, 1 }
 0x100   : > { %v6507_v48 = vsel %vm1481_vm4, %v1503_v25, %v1505_v63  ;;  %v6512_v11 = vsel %vm1481_vm4, %v1505_v63, %v1507_v22  ;;  %v6528_v25 = vsel %vm1481_vm4, %v1509_v56, %v1511_v17  ;;  %v1513_v63 = vrot.slane %v7630_v12, 1 }
 0x101   : > { %v1515_v22 = vrot.slane %v7631_v59, 1 }
 0x102   : > { %5038 = vmatmul.mubr.msk.bf16.gmra.mxu0 %vm1000_vm1, %v6491_v2  ;;  %v6539_v6 = vsel %vm1481_vm4, %v1511_v17, %v1513_v63 }
 0x103   : > { %5041 = vmatprep.mubr.msk.bf16.mxu0 %vm1000_vm1, %v6496_v16  ;;  %v6544_v56 = vsel %vm1481_vm4, %v1513_v63, %v1515_v22  ;;  %v1518_v17 = vsel %vm1481_vm4, %v1515_v22, %v7632_v1  ;;  %v5327_v63 = vld [vmem:[%s7514_s5 + $0x60] sm:$0xff]   ;;  %v2076_v22 = vrot.slane %v5818_v49, 2 }
 0x104   : > { %4998 = vmatmul.mubr.msk.bf16.gmra.mxu1 %vm1000_vm1, %v6185_v0 }
 0x105   : > { %5001 = vmatprep.mubr.msk.bf16.mxu1 %vm1000_vm1, %v7625_v42 }
 0x10a   : > { %5042 = vmatmul.mubr.msk.bf16.gmra.mxu0 %vm1000_vm1, %v6507_v48 }
 0x10b   : > { %5045 = vmatprep.mubr.msk.bf16.mxu0 %vm1000_vm1, %v6512_v11 }
 0x10c   : > { %5002 = vmatmul.mubr.msk.bf16.gmra.mxu1 %vm1000_vm1, %v7624_v21 }
 0x10d   : > { %5005 = vmatprep.mubr.msk.bf16.mxu1 %vm1000_vm1, %v7626_v53 }
 0x112   : > { %5046 = vmatmul.mubr.msk.bf16.gmra.mxu0 %vm1000_vm1, %v6523_v32 }
 0x113   : > { %5049 = vmatprep.mubr.msk.bf16.mxu0 %vm1000_vm1, %v6528_v25 }
 0x114   : > { %5006 = vmatmul.mubr.msk.bf16.gmra.mxu1 %vm1000_vm1, %v7627_v45 }
 0x115   : > { %5009 = vmatprep.mubr.msk.bf16.mxu1 %vm1000_vm1, %v7628_v34 }
 0x11a   : > { %5050 = vmatmul.mubr.msk.bf16.gmra.mxu0 %vm1000_vm1, %v6539_v6 }
 0x11b   : > { %5053 = vmatprep.mubr.msk.bf16.mxu0 %vm1000_vm1, %v6544_v56 }
 0x11c   : > { %5010 = vmatmul.mubr.msk.bf16.gmra.mxu1 %vm1000_vm1, %v7629_v43 }
 0x11d   : > { %5013 = vmatprep.mubr.msk.bf16.mxu1 %vm1000_vm1, %v7630_v12 }
 0x122   : > { %5054 = vmatmul.mubr.msk.bf16.gmra.mxu0 %vm1000_vm1, %v1518_v17 }
 0x123   : > { %5101 = vmatprep.mubr.msk.bf16.mxu0 %vm1000_vm1, %v7633_v44  ;;  %v5326_v44 = vld [vmem:[%s7514_s5 + $0x50] sm:$0xff]  }
 0x124   : > { %5014 = vmatmul.mubr.msk.bf16.gmra.mxu1 %vm1000_vm1, %v7631_v59 }
 0x125   : > { %5061 = vmatprep.mubr.msk.bf16.mxu1 %vm1000_vm1, %v6279_v38  ;;  %v6576_v38 = vld [vmem:[%s7514_s5 + $0x88] sm:$0xff]  }
 0x12a   : > { %5102 = vmatmul.mubr.msk.bf16.vlgmr.msra.gmra.mxu0 %vm1000_vm1, %v7634_v40  ;;  %v7636_v40 = vld [vmem:[#allocation16_spill] sm:$0xff] }
 0x12b   : > { %5105 = vmatprep.mubr.msk.bf16.mxu0 %vm1000_vm1, %v7635_v35  ;;  %5178 = vmatpush3.bf16.msra.mxu0 %v6319_v14  ;;  %v6586_v14 = vld [vmem:[%s7514_s5 + $0x78] sm:$0xff]   ;;  %v7637_v35 = vld [vmem:[#allocation19_spill] sm:$0xff] }
 0x12c   : > { %5179 = vmatprep.subr.bf16.mxu0 %v5327_v63  ;;  %5062 = vmatmul.mubr.msk.bf16.vlgmr.msra.gmra.mxu1 %vm1000_vm1, %v6291_v30  ;;  %v7638_v30 = vld [vmem:[#allocation24_spill] sm:$0xff] }
 0x12d   : > { %5138 = vmatpush3.bf16.msra.mxu1 %v6348_v55  ;;  %5065 = vmatprep.mubr.msk.bf16.mxu1 %vm1000_vm1, %v6328_v9  ;;  %v7639_v9 = vld [vmem:[#allocation30_spill] sm:$0xff]  ;;  %v7640_v55 = vld [vmem:[#allocation5_spill] sm:$0xff] }
 0x12e   : > { %5139 = vmatprep.subr.bf16.mxu1 %v5326_v44  ;;  %v2075_v1 = vrot.slane %v7640_v55, 1 }
 0x12f   : > { %5180 = vmatpush3.bf16.msra.mxu0 %v5327_v63  ;;  %v7641_v63 = vld [vmem:[#allocation8_spill] sm:$0xff] }
 0x130   : > { %5257 = vmatprep.subr.bf16.mxu0 %v6576_v38 }
 0x131   : > { %5140 = vmatpush3.bf16.msra.mxu1 %v5326_v44  ;;  %v2079_v44 = vrot.slane %v7641_v63, 1 }
 0x132   : > { %5106 = vmatmul.mubr.msk.bf16.gmra.mxu0 %vm1000_vm1, %v7636_v40  ;;  %5217 = vmatprep.subr.bf16.mxu1 %v6586_v14 }
 0x133   : > { %5109 = vmatprep.mubr.msk.bf16.mxu0 %vm1000_vm1, %v7637_v35 }
 0x134   : > { %5066 = vmatmul.mubr.msk.bf16.gmra.mxu1 %vm1000_vm1, %v6337_v52  ;;  %v2077_v52 = vor.u32 %v2076_v22, %v2075_v1  ;;  %v2414_v22 = vrot.slane %v6003_v36, 2 }
 0x135   : > { %5069 = vmatprep.mubr.msk.bf16.mxu1 %vm1000_vm1, %v6408_v60  ;;  %v7642_v60 = vld [vmem:[#allocation6_spill] sm:$0xff] }
 0x136   : > { %v2080_v40 = vrot.slane %v7642_v60, 2  ;;  %v2078_v35 = vsel %vm2039_vm2, %v6228_v23, %v2077_v52 }
 0x13a   : > { %5110 = vmatmul.mubr.msk.bf16.gmra.mxu0 %vm1000_vm1, %v7638_v30  ;;  %v7643_v30 = vld [vmem:[#allocation12_spill] sm:$0xff] }
 0x13b   : > { %5113 = vmatprep.mubr.msk.bf16.mxu0 %vm1000_vm1, %v7639_v9  ;;  %v2083_v9 = vrot.slane %v7643_v30, 1 }
 0x13c   : > { %5070 = vmatmul.mubr.msk.bf16.gmra.mxu1 %vm1000_vm1, %v6411_v46  ;;  %v2081_v46 = vor.u32 %v2080_v40, %v2079_v44  ;;  %v5330_v40 = vld [vmem:[%s7514_s5 + $0x70] sm:$0xff]  }
 0x13d   : > { %5073 = vmatprep.mubr.msk.bf16.mxu1 %vm1000_vm1, %v6446_v57  ;;  %v2085_v57 = vor.u32 %v2084_v54, %v2083_v9  ;;  %v7646_v54 = vld [vmem:[#allocation18_spill] sm:$0xff] }
 0x13e   : > { %v2082_v1 = vsel %vm2039_vm2, %v2077_v52, %v2081_v46 }
 0x13f   : > { %v2086_v23 = vsel %vm2039_vm2, %v2081_v46, %v2085_v57 }
 0x142   : > { %5114 = vmatmul.mubr.msk.bf16.gmra.mxu0 %vm1000_vm1, %v6248_v15  ;;  %v7645_v15 = vld [vmem:[#allocation14_spill] sm:$0xff] }
 0x143   : > { %5117 = vmatprep.mubr.msk.bf16.mxu0 %vm1000_vm1, %v2078_v35 }
 0x144   : > { %5074 = vmatmul.mubr.msk.bf16.gmra.mxu1 %vm1000_vm1, %v6465_v26  ;;  %v2090_v26 = vsel %vm2039_vm2, %v2085_v57, %v7645_v15 }
 0x145   : > { %5077 = vmatprep.mubr.msk.bf16.mxu1 %vm1000_vm1, %v6491_v2  ;;  %v7647_v2 = vld [vmem:[#allocation21_spill] sm:$0xff] }
 0x14a   : > { %5118 = vmatmul.mubr.msk.bf16.gmra.mxu0 %vm1000_vm1, %v2082_v1 }
 0x14b   : > { %5121 = vmatprep.mubr.msk.bf16.mxu0 %vm1000_vm1, %v2086_v23  ;;  %v7651_v23 = vld [vmem:[#allocation23_spill] sm:$0xff] }
 0x14c   : > { %5078 = vmatmul.mubr.msk.bf16.gmra.mxu1 %vm1000_vm1, %v6496_v16  ;;  %v7648_v16 = vld [vmem:[#allocation26_spill] sm:$0xff] }
 0x14d   : > { %5081 = vmatprep.mubr.msk.bf16.mxu1 %vm1000_vm1, %v6507_v48 }
 0x152   : > { %5122 = vmatmul.mubr.msk.bf16.gmra.mxu0 %vm1000_vm1, %v2090_v26 }
 0x153   : > { %5125 = vmatprep.mubr.msk.bf16.mxu0 %vm1000_vm1, %v7646_v54 }
 0x154   : > { %5082 = vmatmul.mubr.msk.bf16.gmra.mxu1 %vm1000_vm1, %v6512_v11  ;;  %v2410_v11 = vrot.slane %v5876_v51, 2 }
 0x155   : > { %5085 = vmatprep.mubr.msk.bf16.mxu1 %vm1000_vm1, %v6523_v32  ;;  %v2408_v32 = vrot.slane %v5769_v50, 2 }
 0x15a   : > { %5126 = vmatmul.mubr.msk.bf16.gmra.mxu0 %vm1000_vm1, %v7647_v2 }
 0x15b   : > { %5129 = vmatprep.mubr.msk.bf16.mxu0 %vm1000_vm1, %v7648_v16  ;;  %v6652_v48 = vpop.f32.mrf.mxu0  ;;  %v7654_v16 = vld [vmem:[#allocation29_spill] sm:$0xff] }
 0x15c   : > { %5086 = vmatmul.mubr.msk.bf16.gmra.mxu1 %vm1000_vm1, %v6528_v25 }
 0x15d   : > { %5089 = vmatprep.mubr.msk.bf16.mxu1 %vm1000_vm1, %v6539_v6  ;;  %v6657_v25 = vpop.f32.mrf.mxu0 }
 0x162   : > { %5130 = vmatmul.mubr.msk.bf16.gmra.mxu0 %vm1000_vm1, %v6219_v61  ;;  %v2411_v61 = vsel %vm2406_vm3, %v2408_v32, %v2410_v11 }
 0x163   : > { %5133 = vmatprep.mubr.msk.bf16.mxu0 %vm1000_vm1, %v6282_v19  ;;  %v2407_v19 = vrot.slane %v5744_v18, 2 }
 0x164   : > { %5090 = vmatmul.mubr.msk.bf16.gmra.mxu1 %vm1000_vm1, %v6544_v56  ;;  %v2412_v56 = vrot.slane %v5936_v28, 2 }
 0x165   : > { %5093 = vmatprep.mubr.msk.bf16.mxu1 %vm1000_vm1, %v1518_v17  ;;  %v2409_v6 = vsel %vm2406_vm3, %v2407_v19, %v2408_v32  ;;  %v6668_v17 = vpop.f32.mrf.mxu0  ;;  %v2424_v19 = vrot.slane %v7625_v42, 2 }
 0x166   : > { %v2413_v52 = vsel %vm2406_vm3, %v2410_v11, %v2412_v56 }
 0x167   : > { %v6676_v18 = vpop.f32.mrf.mxu0 }
 0x16a   : > { %5134 = vmatmul.mubr.msk.bf16.gmra.mxu0 %vm1000_vm1, %v6298_v37  ;;  %v5331_v37 = vld [vmem:[%s7514_s5 + $0x80] sm:$0xff]   ;;  %v6680_v44 = vpop.f32.mrf.mxu1 }
 0x16b   : > { %5181 = vmatprep.mubr.msk.bf16.mxu0 %vm1000_vm1, %v2411_v61 }
 0x16c   : > { %5094 = vmatmul.mubr.msk.bf16.gmra.mxu1 %vm1000_vm1, %v6272_v3  ;;  %v2415_v3 = vsel %vm2406_vm3, %v2412_v56, %v2414_v22  ;;  %v6692_v9 = vpop.f32.mrf.mxu1  ;;  %v7657_v56 = vrot.slane %v6185_v0, 2 }
 0x16d   : > { %5141 = vmatprep.mubr.msk.bf16.mxu1 %vm1000_vm1, %v2409_v6 }
 0x16e   : > { %v6687_v35 = vpop.f32.mrf.mxu0  ;;  %v6700_v1 = vpop.f32.mrf.mxu1 }
 0x16f   : > { %7650 = vst [vmem:[#allocation3_spill] sm:$0xff] %v6700_v1 }
 0x170   : > { %v6694_v46 = vpop.f32.mrf.mxu0  ;;  %v6708_v15 = vpop.f32.mrf.mxu1 }
 0x171   : > { %7652 = vst [vmem:[#allocation2_spill] sm:$0xff] %v6708_v15 }
 0x172   : > { %5182 = vmatmul.mubr.msk.bf16.vlgmr.msra.gmra.mxu0 %vm1000_vm1, %v2413_v52 }
 0x173   : > { %5185 = vmatprep.mubr.msk.bf16.mxu0 %vm1000_vm1, %v2415_v3  ;;  %5258 = vmatpush3.bf16.msra.mxu0 %v6576_v38  ;;  %v7649_v38 = vrot.slane %v6055_v5, 2 }
 0x174   : > { %5259 = vmatprep.subr.bf16.mxu0 %v5331_v37  ;;  %5142 = vmatmul.mubr.msk.bf16.vlgmr.msra.gmra.mxu1 %vm1000_vm1, %v2411_v61  ;;  %v2426_v61 = vrot.slane %v7624_v21, 2 }
 0x175   : > { %5218 = vmatpush3.bf16.msra.mxu1 %v6586_v14  ;;  %5145 = vmatprep.mubr.msk.bf16.mxu1 %vm1000_vm1, %v2413_v52  ;;  %v2417_v57 = vsel %vm2406_vm3, %v2414_v22, %v7649_v38  ;;  %v6704_v14 = vpop.f32.mrf.mxu0  ;;  %v2425_v22 = vsel %vm2406_vm3, %v7657_v56, %v2424_v19 }
 0x176   : > { %5219 = vmatprep.subr.bf16.mxu1 %v5330_v40  ;;  %v2427_v52 = vsel %vm2406_vm3, %v2424_v19, %v2426_v61 }
 0x177   : > { %5260 = vmatpush3.bf16.msra.mxu0 %v5331_v37  ;;  %v6710_v26 = vpop.f32.mrf.mxu0 }
 0x179   : > { %5220 = vmatpush3.bf16.msra.mxu1 %v5330_v40  ;;  %v2428_v40 = vrot.slane %v7626_v53, 2 }
 0x17a   : > { %5186 = vmatmul.mubr.msk.bf16.gmra.mxu0 %vm1000_vm1, %v2417_v57  ;;  %v6712_v54 = vpop.f32.mrf.mxu1 }
 0x17b   : > { %5189 = vmatprep.mubr.msk.bf16.mxu0 %vm1000_vm1, %v7651_v23  ;;  %7653 = vst [vmem:[#allocation4_spill] sm:$0xff] %v6712_v54  ;;  %v2429_v19 = vsel %vm2406_vm3, %v2426_v61, %v2428_v40  ;;  %v2434_v61 = vrot.slane %v7629_v43, 2  ;;  %v2438_v43 = vrot.slane %v7631_v59, 2 }
 0x17c   : > { %5146 = vmatmul.mubr.msk.bf16.gmra.mxu1 %vm1000_vm1, %v2415_v3  ;;  %v6720_v11 = vpop.f32.mrf.mxu1 }
 0x17d   : > { %5149 = vmatprep.mubr.msk.bf16.mxu1 %vm1000_vm1, %v2417_v57  ;;  %7655 = vst [vmem:[#allocation10_spill] sm:$0xff] %v6720_v11  ;;  %v2430_v57 = vrot.slane %v7627_v45, 2 }
 0x17e   : > { %v6730_v6 = vpop.f32.mrf.mxu1 }
 0x17f   : > { %v6714_v2 = vpop.f32.mrf.mxu0  ;;  %7656 = vst [vmem:[#allocation13_spill] sm:$0xff] %v6730_v6 }
 0x180   : > { %v6740_v3 = vpop.f32.mrf.mxu1 }
 0x181   : > { %v6724_v32 = vpop.f32.mrf.mxu0  ;;  %7658 = vst [vmem:[#allocation16_spill] sm:$0xff] %v6740_v3 }
 0x182   : > { %5190 = vmatmul.mubr.msk.bf16.gmra.mxu0 %vm1000_vm1, %v7654_v16 }
 0x183   : > { %5193 = vmatprep.mubr.msk.bf16.mxu0 %vm1000_vm1, %v6239_v7  ;;  %v6735_v37 = vpop.f32.mrf.mxu0 }
 0x184   : > { %5150 = vmatmul.mubr.msk.bf16.gmra.mxu1 %vm1000_vm1, %v7651_v23 }
 0x185   : > { %5153 = vmatprep.mubr.msk.bf16.mxu1 %vm1000_vm1, %v7654_v16  ;;  %v6745_v38 = vpop.f32.mrf.mxu0 }
 0x18a   : > { %5194 = vmatmul.mubr.msk.bf16.gmra.mxu0 %vm1000_vm1, %v2425_v22 }
 0x18b   : > { %5197 = vmatprep.mubr.msk.bf16.mxu0 %vm1000_vm1, %v2427_v52  ;;  %v6749_v23 = vpop.f32.mrf.mxu1 }
 0x18c   : > { %5154 = vmatmul.mubr.msk.bf16.gmra.mxu1 %vm1000_vm1, %v6239_v7  ;;  %7659 = vst [vmem:[#allocation19_spill] sm:$0xff] %v6749_v23  ;;  %v2431_v7 = vsel %vm2406_vm3, %v2428_v40, %v2430_v57 }
 0x18d   : > { %5157 = vmatprep.mubr.msk.bf16.mxu1 %vm1000_vm1, %v2425_v22  ;;  %v6758_v3 = vpop.f32.mrf.mxu1  ;;  %v2432_v22 = vrot.slane %v7628_v34, 2 }
 0x18e   : > { %7660 = vst [vmem:[#allocation24_spill] sm:$0xff] %v6758_v3 }
 0x18f   : > { %v6751_v16 = vpop.f32.mrf.mxu0  ;;  %v6767_v23 = vpop.f32.mrf.mxu1  ;;  %v2433_v40 = vsel %vm2406_vm3, %v2430_v57, %v2432_v22  ;;  %v2435_v3 = vsel %vm2406_vm3, %v2432_v22, %v2434_v61 }
 0x190   : > { %7661 = vst [vmem:[#allocation30_spill] sm:$0xff] %v6767_v23  ;;  %v2436_v23 = vrot.slane %v7630_v12, 2 }
 0x191   : > { %v6754_v56 = vpop.f32.mrf.mxu0  ;;  %v6776_v54 = vpop.f32.mrf.mxu1 }
 0x192   : > { %5198 = vmatmul.mubr.msk.bf16.gmra.mxu0 %vm1000_vm1, %v2429_v19  ;;  %7662 = vst [vmem:[#allocation5_spill] sm:$0xff] %v6776_v54  ;;  %v2437_v53 = vsel %vm2406_vm3, %v2434_v61, %v2436_v23 }
 0x193   : > { %5201 = vmatprep.mubr.msk.bf16.mxu0 %vm1000_vm1, %v2431_v7  ;;  %v6761_v6 = vpop.f32.mrf.mxu0 }
 0x194   : > { %5158 = vmatmul.mubr.msk.bf16.gmra.mxu1 %vm1000_vm1, %v2427_v52 }
 0x195   : > { %5161 = vmatprep.mubr.msk.bf16.mxu1 %vm1000_vm1, %v2429_v19  ;;  %v6769_v11 = vpop.f32.mrf.mxu0 }
 0x19a   : > { %v6772_v45 = vpop.f32.mrf.mxu0  ;;  %5202 = vmatmul.mubr.msk.bf16.gmra.mxu0 %vm1000_vm1, %v2433_v40 }
 0x19b   : > { %5205 = vmatprep.mubr.msk.bf16.mxu0 %vm1000_vm1, %v2435_v3  ;;  %v6781_v19 = vpop.f32.mrf.mxu1 }
 0x19c   : > { %v6779_v52 = vpop.f32.mrf.mxu0  ;;  %7663 = vst [vmem:[#allocation8_spill] sm:$0xff] %v6781_v19  ;;  %5162 = vmatmul.mubr.msk.bf16.gmra.mxu1 %vm1000_vm1, %v2431_v7  ;;  %v2439_v7 = vsel %vm2406_vm3, %v2436_v23, %v2438_v43 }
 0x19d   : > { %5165 = vmatprep.mubr.msk.bf16.mxu1 %vm1000_vm1, %v2433_v40  ;;  %v6789_v34 = vpop.f32.mrf.mxu1 }
 0x19e   : > { %v6786_v57 = vpop.f32.mrf.mxu0  ;;  %7664 = vst [vmem:[#allocation6_spill] sm:$0xff] %v6789_v34 }
 0x19f   : > { %v6793_v54 = vpop.f32.mrf.mxu1 }
 0x1a0   : > { %v6791_v22 = vpop.f32.mrf.mxu0  ;;  %7665 = vst [vmem:[#allocation14_spill] sm:$0xff] %v6793_v54 }
 0x1a1   : > { %v6798_v19 = vpop.f32.mrf.mxu1 }
 0x1a2   : > { %v5023_v20 = vpop.f32.mrf.mxu0  ;;  %5206 = vmatmul.mubr.msk.bf16.gmra.mxu0 %vm1000_vm1, %v2437_v53  ;;  %7666 = vst [vmem:[#allocation18_spill] sm:$0xff] %v6798_v19  ;;  %v7667_v19 = vrot.slane %v6208_v41, 2 }
 0x1a3   : > { %5209 = vmatprep.mubr.msk.bf16.mxu0 %vm1000_vm1, %v2439_v7 }
 0x1a4   : > { %v1619_v40 = vpop.f32.mrf.mxu0  ;;  %v4983_v12 = vpop.f32.mrf.mxu1  ;;  %5166 = vmatmul.mubr.msk.bf16.gmra.mxu1 %vm1000_vm1, %v2435_v3  ;;  %v2441_v30 = vsel %vm2406_vm3, %v2438_v43, %v7667_v19 }
 0x1a5   : > { %v1323_v34 = vadd.f32 %v4983_v12, %v6652_v48  ;;  %5169 = vmatprep.mubr.msk.bf16.mxu1 %vm1000_vm1, %v2437_v53 }
 0x1a6   : > { %v5024_v54 = vpop.f32.mrf.mxu0  ;;  %v1314_v59 = vpop.f32.mrf.mxu1 }
 0x1a7   : > { %v1315_v61 = vadd.f32 %v1314_v59, %v6657_v25  ;;  %v6805_v15 = vadd.f32 %v5023_v20, %v1323_v34 }
 0x1a8   : > { %v1622_v47 = vpop.f32.mrf.mxu0  ;;  %v4984_v23 = vpop.f32.mrf.mxu1 }
 0x1a9   : > { %v1326_v1 = vadd.f32 %v4984_v23, %v6668_v17  ;;  %v6812_v12 = vadd.f32 %v1619_v40, %v1315_v61  ;;  %v3331_v17 = vrot.slane %v5876_v51, 3 }
 0x1aa   : > { %v5027_v0 = vpop.f32.mrf.mxu0  ;;  %5210 = vmatmul.mubr.msk.bf16.gmra.mxu0 %vm1000_vm1, %v2441_v30  ;;  %v1317_v53 = vpop.f32.mrf.mxu1 }
 0x1ab   : > { %5213 = vmatprep.mubr.msk.bf16.mxu0 %vm1000_vm1, %v6303_v10  ;;  %v1318_v59 = vadd.f32 %v1317_v53, %v6676_v18  ;;  %v6817_v34 = vadd.f32 %v5024_v54, %v1326_v1  ;;  %v3330_v18 = vrot.slane %v5769_v50, 3 }
 0x1ac   : > { %v1635_v20 = vpop.f32.mrf.mxu0  ;;  %v4987_v48 = vpop.f32.mrf.mxu1  ;;  %5170 = vmatmul.mubr.msk.bf16.gmra.mxu1 %vm1000_vm1, %v2439_v7 }
 0x1ad   : > { %v1339_v43 = vadd.f32 %v4987_v48, %v6687_v35  ;;  %5173 = vmatprep.mubr.msk.bf16.mxu1 %vm1000_vm1, %v2441_v30  ;;  %v6823_v3 = vadd.f32 %v1622_v47, %v1318_v59  ;;  %v3332_v30 = vsel %vm3329_vm5, %v3330_v18, %v3331_v17  ;;  %v3335_v59 = vrot.slane %v6003_v36, 3 }
 0x1ae   : > { %v5028_v25 = vpop.f32.mrf.mxu0  ;;  %v1330_v19 = vpop.f32.mrf.mxu1 }
 0x1af   : > { %v1331_v40 = vadd.f32 %v1330_v19, %v6694_v46  ;;  %v6827_v1 = vadd.f32 %v5027_v0, %v1339_v43 }
 0x1b0   : > { %v1638_v61 = vpop.f32.mrf.mxu0  ;;  %v4988_v54 = vpop.f32.mrf.mxu1 }
 0x1b1   : > { %v1342_v7 = vadd.f32 %v4988_v54, %v6704_v14  ;;  %v6833_v51 = vadd.f32 %v1635_v20, %v1331_v40  ;;  %v3333_v14 = vrot.slane %v5936_v28, 3 }
 0x1b2   : > { %v5031_v23 = vpop.f32.mrf.mxu0  ;;  %5214 = vmatmul.mubr.msk.bf16.gmra.mxu0 %vm1000_vm1, %v6306_v13  ;;  %v1333_v47 = vpop.f32.mrf.mxu1 }
 0x1b3   : > { %5261 = vmatprep.mubr.msk.bf16.mxu0 %vm1000_vm1, %v3332_v30  ;;  %v1334_v35 = vadd.f32 %v1333_v47, %v6710_v26  ;;  %v6837_v50 = vadd.f32 %v5028_v25, %v1342_v7 }
 0x1b4   : > { %v1651_v46 = vpop.f32.mrf.mxu0  ;;  %v4991_v0 = vpop.f32.mrf.mxu1  ;;  %5174 = vmatmul.mubr.msk.bf16.gmra.mxu1 %vm1000_vm1, %v6303_v10  ;;  %v3334_v10 = vsel %vm3329_vm5, %v3331_v17, %v3333_v14 }
 0x1b5   : > { %v1355_v13 = vadd.f32 %v4991_v0, %v6714_v2  ;;  %5221 = vmatprep.mubr.msk.bf16.mxu1 %vm1000_vm1, %v6351_v24  ;;  %v6846_v20 = vadd.f32 %v1638_v61, %v1334_v35  ;;  %v3336_v24 = vsel %vm3329_vm5, %v3333_v14, %v3335_v59 }
 0x1b6   : > { %v5032_v53 = vpop.f32.mrf.mxu0  ;;  %v1346_v26 = vpop.f32.mrf.mxu1 }
 0x1b7   : > { %v1347_v48 = vadd.f32 %v1346_v26, %v6724_v32  ;;  %v6849_v25 = vadd.f32 %v5031_v23, %v1355_v13 }
 0x1b8   : > { %v1654_v43 = vpop.f32.mrf.mxu0  ;;  %v4992_v19 = vpop.f32.mrf.mxu1 }
 0x1b9   : > { %v1358_v28 = vadd.f32 %v4992_v19, %v6735_v37  ;;  %v6855_v40 = vadd.f32 %v1651_v46, %v1347_v48  ;;  %v7668_v46 = vrot.slane %v6055_v5, 3 }
 0x1ba   : > { %v5035_v2 = vpop.f32.mrf.mxu0  ;;  %5262 = vmatmul.mubr.msk.bf16.vlgmr.msra.gmra.mxu0 %vm1000_vm1, %v3334_v10  ;;  %v1349_v36 = vpop.f32.mrf.mxu1 }
 0x1bb   : > { %5265 = vmatprep.mubr.msk.bf16.mxu0 %vm1000_vm1, %v3336_v24  ;;  %v1350_v32 = vadd.f32 %v1349_v36, %v6745_v38  ;;  %v6859_v18 = vadd.f32 %v5032_v53, %v1358_v28  ;;  %v3338_v0 = vsel %vm3329_vm5, %v3335_v59, %v7668_v46  ;;  %v3000_v36 = vrot.slane %v7641_v63, 2 }
 0x1bc   : > { %v1667_v61 = vpop.f32.mrf.mxu0  ;;  %v4995_v54 = vpop.f32.mrf.mxu1  ;;  %5222 = vmatmul.mubr.msk.bf16.vlgmr.msra.gmra.mxu1 %vm1000_vm1, %v6354_v29 }
 0x1bd   : > { %v1371_v37 = vadd.f32 %v4995_v54, %v6751_v16  ;;  %5225 = vmatprep.mubr.msk.bf16.mxu1 %vm1000_vm1, %v6360_v62  ;;  %v6866_v7 = vadd.f32 %v1654_v43, %v1350_v32 }
 0x1be   : > { %v5036_v17 = vpop.f32.mrf.mxu0  ;;  %v1362_v23 = vpop.f32.mrf.mxu1 }
 0x1bf   : > { %v1363_v30 = vadd.f32 %v1362_v23, %v6754_v56  ;;  %v6869_v38 = vadd.f32 %v5035_v2, %v1371_v37 }
 0x1c0   : > { %v1670_v47 = vpop.f32.mrf.mxu0  ;;  %v4996_v35 = vpop.f32.mrf.mxu1 }
 0x1c1   : > { %v1374_v29 = vadd.f32 %v4996_v35, %v6761_v6  ;;  %v6876_v62 = vadd.f32 %v1667_v61, %v1363_v30  ;;  %v2997_v61 = vrot.slane %v5818_v49, 3 }
 0x1c2   : > { %v5039_v16 = vpop.f32.mrf.mxu0  ;;  %5266 = vmatmul.mubr.msk.bf16.gmra.mxu0 %vm1000_vm1, %v3338_v0  ;;  %v1365_v14 = vpop.f32.mrf.mxu1  ;;  %v7672_v0 = vld [vmem:[#allocation12_spill] sm:$0xff] }
 0x1c3   : > { %5269 = vmatprep.mubr.msk.bf16.mxu0 %vm1000_vm1, %v6342_v4  ;;  %v1366_v56 = vadd.f32 %v1365_v14, %v6769_v11  ;;  %v6881_v53 = vadd.f32 %v5036_v17, %v1374_v29  ;;  %v3004_v29 = vrot.slane %v7672_v0, 2  ;;  %v7682_v0 = vld [vmem:[#allocation32_spill] sm:$0xff] }
 0x1c4   : > { %v1683_v13 = vpop.f32.mrf.mxu0  ;;  %v4999_v26 = vpop.f32.mrf.mxu1  ;;  %5226 = vmatmul.mubr.msk.bf16.gmra.mxu1 %vm1000_vm1, %v6370_v27 }
 0x1c5   : > { %v1387_v5 = vadd.f32 %v4999_v26, %v6772_v45  ;;  %5229 = vmatprep.mubr.msk.bf16.mxu1 %vm1000_vm1, %v6385_v31  ;;  %v6888_v59 = vadd.f32 %v1670_v47, %v1366_v56  ;;  %v7671_v47 = vld [vmem:[#allocation3_spill] sm:$0xff] }
 0x1c6   : > { %v5040_v6 = vpop.f32.mrf.mxu0  ;;  %v1378_v48 = vpop.f32.mrf.mxu1 }
 0x1c7   : > { %v1379_v4 = vadd.f32 %v1378_v48, %v6779_v52  ;;  %v6891_v11 = vadd.f32 %v5039_v16, %v1387_v5  ;;  %v7673_v16 = vld [vmem:[#allocation2_spill] sm:$0xff]  ;;  %v7675_v5 = vld [vmem:[#allocation9_spill] sm:$0xff] }
 0x1c8   : > { %v1686_v43 = vpop.f32.mrf.mxu0  ;;  %v5000_v19 = vpop.f32.mrf.mxu1 }
 0x1c9   : > { %v1390_v10 = vadd.f32 %v5000_v19, %v6786_v57  ;;  %v6896_v27 = vadd.f32 %v1683_v13, %v1379_v4  ;;  %v3347_v57 = vrot.slane %v7624_v21, 3  ;;  %v7674_v13 = vld [vmem:[#allocation31_spill] sm:$0xff] }
 0x1ca   : > { %v5043_v28 = vpop.f32.mrf.mxu0  ;;  %5270 = vmatmul.mubr.msk.bf16.gmra.mxu0 %vm1000_vm1, %v6373_v33  ;;  %v1381_v45 = vpop.f32.mrf.mxu1  ;;  %v3001_v33 = vrot.slane %v7642_v60, 3  ;;  %v7676_v19 = vld [vmem:[#allocation7_spill] sm:$0xff] }
 0x1cb   : > { %5273 = vmatprep.mubr.msk.bf16.mxu0 %vm1000_vm1, %v6378_v39  ;;  %v1382_v31 = vadd.f32 %v1381_v45, %v6791_v22  ;;  %v6901_v52 = vadd.f32 %v5040_v6, %v1390_v10  ;;  %v2996_v22 = vrot.slane %v7640_v55, 2  ;;  %v3005_v6 = vrot.slane %v7675_v5, 3  ;;  %v7685_v5 = vld [vmem:[#allocation17_spill] sm:$0xff] }
 0x1cc   : > { %v1699_v2 = vpop.f32.mrf.mxu0  ;;  %v5003_v24 = vpop.f32.mrf.mxu1  ;;  %5230 = vmatmul.mubr.msk.bf16.gmra.mxu1 %vm1000_vm1, %v6394_v58  ;;  %v3345_v58 = vrot.slane %v7625_v42, 3  ;;  %v3002_v30 = vor.u32 %v3001_v33, %v3000_v36  ;;  %v3349_v10 = vrot.slane %v7676_v19, 3 }
 0x1cd   : > { %v1403_v32 = vadd.f32 %v5003_v24, %v6680_v44  ;;  %5233 = vmatprep.mubr.msk.bf16.mxu1 %vm1000_vm1, %v6400_v8  ;;  %v6913_v54 = vadd.f32 %v1686_v43, %v1382_v31  ;;  %v7669_v44 = vld [vmem:[#allocation28_spill] sm:$0xff]  ;;  %v2998_v46 = vor.u32 %v2997_v61, %v2996_v22  ;;  %v3006_v61 = vor.u32 %v3005_v6, %v3004_v29 }
 0x1ce   : > { %v5044_v39 = vpop.f32.mrf.mxu0  ;;  %v1394_v37 = vpop.f32.mrf.mxu1  ;;  %v7670_v23 = vrot.slane %v7669_v44, 3  ;;  %v3348_v49 = vsel %vm3329_vm5, %v3345_v58, %v3347_v57  ;;  %v3355_v6 = vrot.slane %v7685_v5, 3 }
 0x1cf   : > { %v1395_v21 = vadd.f32 %v1394_v37, %v6692_v9  ;;  %v6917_v17 = vadd.f32 %v5043_v28, %v1403_v32  ;;  %v2999_v26 = vsel %vm2964_vm6, %v7674_v13, %v2998_v46  ;;  %v3003_v43 = vsel %vm2964_vm6, %v2998_v46, %v3002_v30  ;;  %v7677_v28 = vld [vmem:[#allocation4_spill] sm:$0xff]  ;;  %v7679_v32 = vld [vmem:[#allocation10_spill] sm:$0xff] }
 0x1d0   : > { %v1702_v63 = vpop.f32.mrf.mxu0  ;;  %v5004_v60 = vpop.f32.mrf.mxu1  ;;  %v3346_v8 = vsel %vm3329_vm5, %v7670_v23, %v3345_v58  ;;  %v3011_v29 = vsel %vm2964_vm6, %v3006_v61, %v7682_v0 }
 0x1d1   : > { %v1406_v55 = vadd.f32 %v5004_v60, %v7671_v47  ;;  %v6925_v42 = vadd.f32 %v1699_v2, %v1395_v21  ;;  %v7678_v2 = vld [vmem:[#allocation11_spill] sm:$0xff]  ;;  %v3350_v21 = vsel %vm3329_vm5, %v3347_v57, %v3349_v10  ;;  %v7680_v60 = vld [vmem:[#allocation13_spill] sm:$0xff] }
 0x1d2   : > { %v5047_v35 = vpop.f32.mrf.mxu0  ;;  %5274 = vmatmul.mubr.msk.bf16.gmra.mxu0 %vm1000_vm1, %v3346_v8  ;;  %v1397_v9 = vpop.f32.mrf.mxu1  ;;  %v3351_v24 = vrot.slane %v7678_v2, 3  ;;  %v7687_v2 = vld [vmem:[#allocation30_spill] sm:$0xff] }
 0x1d3   : > { %5277 = vmatprep.mubr.msk.bf16.mxu0 %vm1000_vm1, %v3348_v49  ;;  %v1398_v14 = vadd.f32 %v1397_v9, %v7673_v16  ;;  %v6933_v48 = vadd.f32 %v5044_v39, %v1406_v55  ;;  %v7681_v55 = vld [vmem:[#allocation16_spill] sm:$0xff]  ;;  %v7683_v16 = vld [vmem:[#allocation15_spill] sm:$0xff] }
 0x1d4   : > { %v1715_v56 = vpop.f32.mrf.mxu0  ;;  %v5007_v4 = vpop.f32.mrf.mxu1  ;;  %5234 = vmatmul.mubr.msk.bf16.gmra.mxu1 %vm1000_vm1, %v2999_v26  ;;  %v3352_v8 = vsel %vm3329_vm5, %v3349_v10, %v3351_v24 }
 0x1d5   : > { %v1419_v45 = vadd.f32 %v5007_v4, %v7677_v28  ;;  %5237 = vmatprep.mubr.msk.bf16.mxu1 %vm1000_vm1, %v3003_v43  ;;  %v6941_v36 = vadd.f32 %v1702_v63, %v1398_v14  ;;  %v3353_v14 = vrot.slane %v7683_v16, 3  ;;  %v7686_v43 = vld [vmem:[#allocation24_spill] sm:$0xff] }
 0x1d6   : > { %v5048_v31 = vpop.f32.mrf.mxu0  ;;  %v1410_v33 = vpop.f32.mrf.mxu1 }
 0x1d7   : > { %v1411_v39 = vadd.f32 %v1410_v33, %v7679_v32  ;;  %v6944_v37 = vadd.f32 %v5047_v35, %v1419_v45  ;;  %v3007_v35 = vsel %vm2964_vm6, %v3002_v30, %v3006_v61 }
 0x1d8   : > { %v1718_v22 = vpop.f32.mrf.mxu0  ;;  %v5008_v58 = vpop.f32.mrf.mxu1 }
 0x1d9   : > { %v1422_v44 = vadd.f32 %v5008_v58, %v7680_v60  ;;  %v6950_v47 = vadd.f32 %v1715_v56, %v1411_v39  ;;  %v7684_v56 = vld [vmem:[#allocation19_spill] sm:$0xff]  ;;  %v3356_v39 = vsel %vm3329_vm5, %v3353_v14, %v3355_v6  ;;  %v7688_v58 = vld [vmem:[#allocation5_spill] sm:$0xff] }
 0x1da   : > { %v5051_v23 = vpop.f32.mrf.mxu0  ;;  %5278 = vmatmul.mubr.msk.bf16.gmra.mxu0 %vm1000_vm1, %v3350_v21  ;;  %v1413_v63 = vpop.f32.mrf.mxu1 }
 0x1db   : > { %5281 = vmatprep.mubr.msk.bf16.mxu0 %vm1000_vm1, %v3352_v8  ;;  %v1414_v49 = vadd.f32 %v1413_v63, %v7681_v55  ;;  %v6955_v9 = vadd.f32 %v5048_v31, %v1422_v44  ;;  %v3354_v31 = vsel %vm3329_vm5, %v3351_v24, %v3353_v14  ;;  %v7689_v8 = vld [vmem:[#allocation22_spill] sm:$0xff]  ;;  %v7690_v24 = vld [vmem:[#allocation20_spill] sm:$0xff] }
 0x1dc   : > { %v1731_v46 = vpop.f32.mrf.mxu0  ;;  %v5011_v57 = vpop.f32.mrf.mxu1  ;;  %5238 = vmatmul.mubr.msk.bf16.gmra.mxu1 %vm1000_vm1, %v3007_v35  ;;  %v3357_v63 = vrot.slane %v7690_v24, 3  ;;  %v7691_v55 = vld [vmem:[#allocation8_spill] sm:$0xff]  ;;  %v7692_v35 = vld [vmem:[#allocation27_spill] sm:$0xff]  ;;  %v7694_v14 = vld [vmem:[#allocation6_spill] sm:$0xff] }
 0x1dd   : > { %v1435_v13 = vadd.f32 %v5011_v57, %v7684_v56  ;;  %5241 = vmatprep.mubr.msk.bf16.mxu1 %vm1000_vm1, %v3011_v29  ;;  %v6964_v4 = vadd.f32 %v1718_v22, %v1414_v49  ;;  %v7693_v57 = vld [vmem:[#allocation25_spill] sm:$0xff] }
 0x1de   : > { %v5052_v26 = vpop.f32.mrf.mxu0  ;;  %v1426_v30 = vpop.f32.mrf.mxu1  ;;  %v3359_v0 = vrot.slane %v7693_v57, 3 }
 0x1df   : > { %v1427_v19 = vadd.f32 %v1426_v30, %v7686_v43  ;;  %v6967_v28 = vadd.f32 %v5051_v23, %v1435_v13  ;;  %v3358_v30 = vsel %vm3329_vm5, %v3355_v6, %v3357_v63  ;;  %v7695_v43 = vld [vmem:[#allocation14_spill] sm:$0xff] }
 0x1e0   : > { %v1734_v10 = vpop.f32.mrf.mxu0  ;;  %v5012_v45 = vpop.f32.mrf.mxu1 }
 0x1e1   : > { %v1438_v33 = vadd.f32 %v5012_v45, %v7687_v2  ;;  %v6973_v61 = vadd.f32 %v1731_v46, %v1427_v19 }
 0x1e2   : > { %v5055_v32 = vpop.f32.mrf.mxu0  ;;  %5282 = vmatmul.mubr.msk.bf16.gmra.mxu0 %vm1000_vm1, %v3354_v31  ;;  %v1429_v22 = vpop.f32.mrf.mxu1  ;;  %v3360_v31 = vsel %vm3329_vm5, %v3357_v63, %v3359_v0 }
 0x1e3   : > { %5285 = vmatprep.mubr.msk.bf16.mxu0 %vm1000_vm1, %v3356_v39  ;;  %v1430_v21 = vadd.f32 %v1429_v22, %v7688_v58  ;;  %v6977_v44 = vadd.f32 %v5052_v26, %v1438_v33  ;;  %v7696_v33 = vld [vmem:[#allocation18_spill] sm:$0xff] }
 0x1e4   : > { %v1747_v60 = vpop.f32.mrf.mxu0  ;;  %v5015_v23 = vpop.f32.mrf.mxu1  ;;  %5242 = vmatmul.mubr.msk.bf16.gmra.mxu1 %vm1000_vm1, %v7689_v8 }
 0x1e5   : > { %v1451_v49 = vadd.f32 %v5015_v23, %v7691_v55  ;;  %5245 = vmatprep.mubr.msk.bf16.mxu1 %vm1000_vm1, %v7692_v35  ;;  %v6986_v29 = vadd.f32 %v1734_v10, %v1430_v21  ;;  %v7697_v21 = vld [vmem:[#allocation33_spill] sm:$0xff]  ;;  %v7698_v23 = vld [vmem:[#allocation35_spill] sm:$0xff] }
 0x1e6   : > { %v5056_v46 = vpop.f32.mrf.mxu0  ;;  %v1442_v16 = vpop.f32.mrf.mxu1 }
 0x1e7   : > { %v1443_v56 = vadd.f32 %v1442_v16, %v7694_v14  ;;  %v6989_v26 = vadd.f32 %v5055_v32, %v1451_v49 }
 0x1e8   : > { %v1750_v13 = vpop.f32.mrf.mxu0  ;;  %v5016_v5 = vpop.f32.mrf.mxu1 }
 0x1e9   : > { %v1454_v19 = vadd.f32 %v5016_v5, %v7695_v43  ;;  %v6995_v2 = vadd.f32 %v1747_v60, %v1443_v56 }
 0x1ea   : > { %v5103_v45 = vpop.f32.mrf.mxu0  ;;  %5286 = vmatmul.mubr.msk.bf16.gmra.mxu0 %vm1000_vm1, %v3358_v30  ;;  %v1445_v10 = vpop.f32.mrf.mxu1 }
 0x1eb   : > { %5289 = vmatprep.mubr.msk.bf16.mxu0 %vm1000_vm1, %v3360_v31  ;;  %v1446_v39 = vadd.f32 %v1445_v10, %v7696_v33  ;;  %v6999_v32 = vadd.f32 %v5056_v46, %v1454_v19  ;;  %v7699_v46 = vrot.slane %v6208_v41, 3  ;;  %v7701_v41 = vld [vmem:[#allocation37_spill] sm:$0xff] }
 0x1ec   : > { %v2222_v22 = vpop.f32.mrf.mxu0  ;;  %v5063_v58 = vpop.f32.mrf.mxu1  ;;  %5246 = vmatmul.mubr.msk.bf16.gmra.mxu1 %vm1000_vm1, %v7697_v21  ;;  %v7703_v21 = vld [vmem:[#allocation36_spill] sm:$0xff] }
 0x1ed   : > { %v2000_v6 = vadd.f32 %v5063_v58, %v6805_v15  ;;  %5249 = vmatprep.mubr.msk.bf16.mxu1 %vm1000_vm1, %v7698_v23  ;;  %v7006_v60 = vadd.f32 %v1750_v13, %v1446_v39  ;;  %v3362_v57 = vsel %vm3329_vm5, %v3359_v0, %v7699_v46  ;;  %v7700_v13 = vld [vmem:[#allocation34_spill] sm:$0xff] }
 0x1ee   : > { %v5104_v8 = vpop.f32.mrf.mxu0  ;;  %v1855_v24 = vpop.f32.mrf.mxu1  ;;  %v7702_v0 = vld [vmem:[#allocation38_spill] sm:$0xff] }
 0x1ef   : > { %v1998_v63 = vadd.f32 %v1855_v24, %v6812_v12  ;;  %v7009_v49 = vadd.f32 %v5103_v45, %v2000_v6 }
 0x1f0   : > { %v2225_v55 = vpop.f32.mrf.mxu0  ;;  %v5064_v35 = vpop.f32.mrf.mxu1 }
 0x1f1   : > { %v2001_v16 = vadd.f32 %v5064_v35, %v6817_v34  ;;  %v7016_v14 = vadd.f32 %v2222_v22, %v1998_v63 }
 0x1f2   : > { %v5107_v15 = vpop.f32.mrf.mxu0  ;;  %5290 = vmatmul.mubr.msk.bf16.gmra.mxu0 %vm1000_vm1, %v3362_v57  ;;  %v1858_v56 = vpop.f32.mrf.mxu1 }
 0x1f3   : > { %5293 = vmatprep.mubr.msk.bf16.mxu0 %vm1000_vm1, %v7700_v13  ;;  %v1999_v12 = vadd.f32 %v1858_v56, %v6823_v3  ;;  %v7021_v30 = vadd.f32 %v5104_v8, %v2001_v16 }
 0x1f4   : > { %v2238_v5 = vpop.f32.mrf.mxu0  ;;  %v5067_v43 = vpop.f32.mrf.mxu1  ;;  %5250 = vmatmul.mubr.msk.bf16.gmra.mxu1 %vm1000_vm1, %v7701_v41 }
 0x1f5   : > { %v2004_v34 = vadd.f32 %v5067_v43, %v6827_v1  ;;  %5253 = vmatprep.mubr.msk.bf16.mxu1 %vm1000_vm1, %v7702_v0  ;;  %v7028_v45 = vadd.f32 %v2225_v55, %v1999_v12 }
 0x1f6   : > { %v5108_v19 = vpop.f32.mrf.mxu0  ;;  %v1871_v31 = vpop.f32.mrf.mxu1 }
 0x1f7   : > { %v2002_v10 = vadd.f32 %v1871_v31, %v6833_v51  ;;  %v7031_v3 = vadd.f32 %v5107_v15, %v2004_v34  ;;  %v7704_v51 = vld [vmem:[#allocation39_spill] sm:$0xff] }
 0x1f8   : > { %v2241_v33 = vpop.f32.mrf.mxu0  ;;  %v5068_v39 = vpop.f32.mrf.mxu1 }
 0x1f9   : > { %v2005_v22 = vadd.f32 %v5068_v39, %v6837_v50  ;;  %v7036_v1 = vadd.f32 %v2238_v5, %v2002_v10 }
 0x1fa   : > { %v5111_v58 = vpop.f32.mrf.mxu0  ;;  %5294 = vmatmul.mubr.msk.bf16.gmra.mxu0 %vm1000_vm1, %v7703_v21  ;;  %v1874_v6 = vpop.f32.mrf.mxu1 }
 0x1fb   : > { %v2003_v23 = vadd.f32 %v1874_v6, %v6846_v20  ;;  %v7039_v24 = vadd.f32 %v5108_v19, %v2005_v22 }
 0x1fc   : > { %v2254_v8 = vpop.f32.mrf.mxu0  ;;  %v5071_v63 = vpop.f32.mrf.mxu1  ;;  %5254 = vmatmul.mubr.msk.bf16.gmra.mxu1 %vm1000_vm1, %v7704_v51 }
 0x1fd   : > { %v2008_v55 = vadd.f32 %v5071_v63, %v6849_v25  ;;  %v7044_v50 = vadd.f32 %v2241_v33, %v2003_v23 }
 0x1fe   : > { %v5112_v35 = vpop.f32.mrf.mxu0  ;;  %v1887_v46 = vpop.f32.mrf.mxu1 }
 0x1ff   : > { %v2006_v57 = vadd.f32 %v1887_v46, %v6855_v40  ;;  %v7047_v15 = vadd.f32 %v5111_v58, %v2008_v55 }
 0x200   : > { %v2257_v16 = vpop.f32.mrf.mxu0  ;;  %v5072_v56 = vpop.f32.mrf.mxu1 }
 0x201   : > { %v2009_v20 = vadd.f32 %v5072_v56, %v6859_v18  ;;  %v7050_v12 = vadd.f32 %v2254_v8, %v2006_v57 }
 0x202   : > { %v5115_v13 = vpop.f32.mrf.mxu0  ;;  %v1890_v5 = vpop.f32.mrf.mxu1 }
 0x203   : > { %v2007_v43 = vadd.f32 %v1890_v5, %v6866_v7  ;;  %v7053_v25 = vadd.f32 %v5112_v35, %v2009_v20 }
 0x204   : > { %v2270_v41 = vpop.f32.mrf.mxu0  ;;  %v5075_v34 = vpop.f32.mrf.mxu1 }
 0x205   : > { %v2012_v0 = vadd.f32 %v5075_v34, %v6869_v38  ;;  %v7056_v40 = vadd.f32 %v2257_v16, %v2007_v43 }
 0x206   : > { %v5116_v19 = vpop.f32.mrf.mxu0  ;;  %v1903_v31 = vpop.f32.mrf.mxu1 }
 0x207   : > { %v2010_v10 = vadd.f32 %v1903_v31, %v6876_v62  ;;  %v7059_v18 = vadd.f32 %v5115_v13, %v2012_v0 }
 0x208   : > { %v2273_v33 = vpop.f32.mrf.mxu0  ;;  %v5076_v39 = vpop.f32.mrf.mxu1 }
 0x209   : > { %v2013_v22 = vadd.f32 %v5076_v39, %v6881_v53  ;;  %v7062_v7 = vadd.f32 %v2270_v41, %v2010_v10 }
 0x20a   : > { %v5119_v58 = vpop.f32.mrf.mxu0  ;;  %v1906_v21 = vpop.f32.mrf.mxu1 }
 0x20b   : > { %v2011_v6 = vadd.f32 %v1906_v21, %v6888_v59  ;;  %v7065_v38 = vadd.f32 %v5116_v19, %v2013_v22 }
 0x20c   : > { %v2286_v23 = vpop.f32.mrf.mxu0  ;;  %v5079_v8 = vpop.f32.mrf.mxu1 }
 0x20d   : > { %v2016_v63 = vadd.f32 %v5079_v8, %v6891_v11  ;;  %v7068_v62 = vadd.f32 %v2273_v33, %v2011_v6 }
 0x20e   : > { %v5120_v51 = vpop.f32.mrf.mxu0  ;;  %v1919_v55 = vpop.f32.mrf.mxu1 }
 0x20f   : > { %v2014_v35 = vadd.f32 %v1919_v55, %v6896_v27  ;;  %v7071_v53 = vadd.f32 %v5119_v58, %v2016_v63 }
 0x210   : > { %v2289_v46 = vpop.f32.mrf.mxu0  ;;  %v5080_v57 = vpop.f32.mrf.mxu1 }
 0x211   : > { %v2017_v16 = vadd.f32 %v5080_v57, %v6901_v52  ;;  %v7074_v59 = vadd.f32 %v2286_v23, %v2014_v35 }
 0x212   : > { %v5123_v56 = vpop.f32.mrf.mxu0  ;;  %v1922_v20 = vpop.f32.mrf.mxu1 }
 0x213   : > { %v2015_v13 = vadd.f32 %v1922_v20, %v6913_v54  ;;  %v7077_v11 = vadd.f32 %v5120_v51, %v2017_v16 }
 0x214   : > { %v2302_v5 = vpop.f32.mrf.mxu0  ;;  %v5083_v43 = vpop.f32.mrf.mxu1 }
 0x215   : > { %v2020_v41 = vadd.f32 %v5083_v43, %v6917_v17  ;;  %v7080_v27 = vadd.f32 %v2289_v46, %v2015_v13 }
 0x216   : > { %v5124_v34 = vpop.f32.mrf.mxu0  ;;  %v1935_v0 = vpop.f32.mrf.mxu1 }
 0x217   : > { %v2018_v19 = vadd.f32 %v1935_v0, %v6925_v42  ;;  %v7083_v52 = vadd.f32 %v5123_v56, %v2020_v41 }
 0x218   : > { %v2305_v31 = vpop.f32.mrf.mxu0  ;;  %v5084_v10 = vpop.f32.mrf.mxu1 }
 0x219   : > { %v2021_v33 = vadd.f32 %v5084_v10, %v6933_v48  ;;  %v7086_v54 = vadd.f32 %v2302_v5, %v2018_v19 }
 0x21a   : > { %v5127_v39 = vpop.f32.mrf.mxu0  ;;  %v1938_v22 = vpop.f32.mrf.mxu1 }
 0x21b   : > { %v2019_v58 = vadd.f32 %v1938_v22, %v6941_v36  ;;  %v7089_v17 = vadd.f32 %v5124_v34, %v2021_v33 }
 0x21c   : > { %v2318_v21 = vpop.f32.mrf.mxu0  ;;  %v5087_v6 = vpop.f32.mrf.mxu1 }
 0x21d   : > { %v2024_v23 = vadd.f32 %v5087_v6, %v6944_v37  ;;  %v7092_v42 = vadd.f32 %v2305_v31, %v2019_v58 }
 0x21e   : > { %v5128_v8 = vpop.f32.mrf.mxu0  ;;  %v1951_v63 = vpop.f32.mrf.mxu1 }
 0x21f   : > { %v2022_v51 = vadd.f32 %v1951_v63, %v6950_v47  ;;  %v7095_v48 = vadd.f32 %v5127_v39, %v2024_v23 }
 0x220   : > { %v2321_v55 = vpop.f32.mrf.mxu0  ;;  %v5088_v35 = vpop.f32.mrf.mxu1 }
 0x221   : > { %v2025_v46 = vadd.f32 %v5088_v35, %v6955_v9  ;;  %v7098_v36 = vadd.f32 %v2318_v21, %v2022_v51 }
 0x222   : > { %v5131_v57 = vpop.f32.mrf.mxu0  ;;  %v1954_v16 = vpop.f32.mrf.mxu1 }
 0x223   : > { %v2023_v56 = vadd.f32 %v1954_v16, %v6964_v4  ;;  %v7101_v37 = vadd.f32 %v5128_v8, %v2025_v46 }
 0x224   : > { %v2334_v20 = vpop.f32.mrf.mxu0  ;;  %v5091_v13 = vpop.f32.mrf.mxu1 }
 0x225   : > { %v2028_v5 = vadd.f32 %v5091_v13, %v6967_v28  ;;  %v7104_v47 = vadd.f32 %v2321_v55, %v2023_v56 }
 0x226   : > { %v5132_v43 = vpop.f32.mrf.mxu0  ;;  %v1967_v41 = vpop.f32.mrf.mxu1 }
 0x227   : > { %v2026_v34 = vadd.f32 %v1967_v41, %v6973_v61  ;;  %v7107_v9 = vadd.f32 %v5131_v57, %v2028_v5 }
 0x228   : > { %v2337_v0 = vpop.f32.mrf.mxu0  ;;  %v5092_v19 = vpop.f32.mrf.mxu1 }
 0x229   : > { %v2029_v31 = vadd.f32 %v5092_v19, %v6977_v44  ;;  %v7110_v4 = vadd.f32 %v2334_v20, %v2026_v34 }
 0x22a   : > { %v5135_v10 = vpop.f32.mrf.mxu0  ;;  %v1970_v33 = vpop.f32.mrf.mxu1 }
 0x22b   : > { %v2027_v39 = vadd.f32 %v1970_v33, %v6986_v29  ;;  %v7113_v28 = vadd.f32 %v5132_v43, %v2029_v31 }
 0x22c   : > { %v2350_v22 = vpop.f32.mrf.mxu0  ;;  %v5095_v58 = vpop.f32.mrf.mxu1 }
 0x22d   : > { %v2032_v21 = vadd.f32 %v5095_v58, %v6989_v26  ;;  %v7116_v61 = vadd.f32 %v2337_v0, %v2027_v39 }
 0x22e   : > { %v5136_v6 = vpop.f32.mrf.mxu0  ;;  %v1983_v23 = vpop.f32.mrf.mxu1 }
 0x22f   : > { %v2030_v8 = vadd.f32 %v1983_v23, %v6995_v2  ;;  %v7119_v44 = vadd.f32 %v5135_v10, %v2032_v21 }
 0x230   : > { %v2353_v63 = vpop.f32.mrf.mxu0  ;;  %v5096_v51 = vpop.f32.mrf.mxu1 }
 0x231   : > { %v2033_v55 = vadd.f32 %v5096_v51, %v6999_v32  ;;  %v7122_v29 = vadd.f32 %v2350_v22, %v2030_v8 }
 0x232   : > { %v5183_v35 = vpop.f32.mrf.mxu0  ;;  %v1986_v46 = vpop.f32.mrf.mxu1 }
 0x233   : > { %v2031_v57 = vadd.f32 %v1986_v46, %v7006_v60  ;;  %v7125_v26 = vadd.f32 %v5136_v6, %v2033_v55 }
 0x234   : > { %v2780_v16 = vpop.f32.mrf.mxu0  ;;  %v5143_v56 = vpop.f32.mrf.mxu1 }
 0x235   : > { %v2689_v20 = vadd.f32 %v5143_v56, %v7009_v49  ;;  %v7128_v2 = vadd.f32 %v2353_v63, %v2031_v57 }
 0x236   : > { %v5184_v13 = vpop.f32.mrf.mxu0  ;;  %v2544_v5 = vpop.f32.mrf.mxu1 }
 0x237   : > { %v2687_v43 = vadd.f32 %v2544_v5, %v7016_v14  ;;  %v7131_v32 = vadd.f32 %v5183_v35, %v2689_v20 }
 0x238   : > { %v2783_v41 = vpop.f32.mrf.mxu0  ;;  %v5144_v34 = vpop.f32.mrf.mxu1 }
 0x239   : > { %v2690_v0 = vadd.f32 %v5144_v34, %v7021_v30  ;;  %v7134_v60 = vadd.f32 %v2780_v16, %v2687_v43 }
 0x23a   : > { %v5187_v19 = vpop.f32.mrf.mxu0  ;;  %v2547_v31 = vpop.f32.mrf.mxu1 }
 0x23b   : > { %v2688_v10 = vadd.f32 %v2547_v31, %v7028_v45  ;;  %v7137_v49 = vadd.f32 %v5184_v13, %v2690_v0 }
 0x23c   : > { %v2796_v33 = vpop.f32.mrf.mxu0  ;;  %v5147_v39 = vpop.f32.mrf.mxu1 }
 0x23d   : > { %v2693_v22 = vadd.f32 %v5147_v39, %v7031_v3  ;;  %v7140_v14 = vadd.f32 %v2783_v41, %v2688_v10 }
 0x23e   : > { %v5188_v58 = vpop.f32.mrf.mxu0  ;;  %v2560_v21 = vpop.f32.mrf.mxu1 }
 0x23f   : > { %v2691_v6 = vadd.f32 %v2560_v21, %v7036_v1  ;;  %v7143_v30 = vadd.f32 %v5187_v19, %v2693_v22 }
 0x240   : > { %v2799_v23 = vpop.f32.mrf.mxu0  ;;  %v5148_v8 = vpop.f32.mrf.mxu1 }
 0x241   : > { %v2694_v63 = vadd.f32 %v5148_v8, %v7039_v24  ;;  %v7146_v45 = vadd.f32 %v2796_v33, %v2691_v6 }
 0x242   : > { %v5191_v51 = vpop.f32.mrf.mxu0  ;;  %v2563_v55 = vpop.f32.mrf.mxu1 }
 0x243   : > { %v2692_v35 = vadd.f32 %v2563_v55, %v7044_v50  ;;  %v7149_v3 = vadd.f32 %v5188_v58, %v2694_v63 }
 0x244   : > { %v2812_v46 = vpop.f32.mrf.mxu0  ;;  %v5151_v57 = vpop.f32.mrf.mxu1 }
 0x245   : > { %v2697_v16 = vadd.f32 %v5151_v57, %v7047_v15  ;;  %v7152_v1 = vadd.f32 %v2799_v23, %v2692_v35 }
 0x246   : > { %v5192_v56 = vpop.f32.mrf.mxu0  ;;  %v2576_v20 = vpop.f32.mrf.mxu1 }
 0x247   : > { %v2695_v13 = vadd.f32 %v2576_v20, %v7050_v12  ;;  %v7155_v24 = vadd.f32 %v5191_v51, %v2697_v16 }
 0x248   : > { %v2815_v5 = vpop.f32.mrf.mxu0  ;;  %v5152_v43 = vpop.f32.mrf.mxu1 }
 0x249   : > { %v2698_v41 = vadd.f32 %v5152_v43, %v7053_v25  ;;  %v7158_v50 = vadd.f32 %v2812_v46, %v2695_v13 }
 0x24a   : > { %v5195_v34 = vpop.f32.mrf.mxu0  ;;  %v2579_v0 = vpop.f32.mrf.mxu1 }
 0x24b   : > { %v2696_v19 = vadd.f32 %v2579_v0, %v7056_v40  ;;  %v7161_v15 = vadd.f32 %v5192_v56, %v2698_v41 }
 0x24c   : > { %v2828_v31 = vpop.f32.mrf.mxu0  ;;  %v5155_v10 = vpop.f32.mrf.mxu1 }
 0x24d   : > { %v2701_v33 = vadd.f32 %v5155_v10, %v7059_v18  ;;  %v7164_v12 = vadd.f32 %v2815_v5, %v2696_v19 }
 0x24e   : > { %v5196_v39 = vpop.f32.mrf.mxu0  ;;  %v2592_v22 = vpop.f32.mrf.mxu1 }
 0x24f   : > { %v2699_v58 = vadd.f32 %v2592_v22, %v7062_v7  ;;  %v7167_v25 = vadd.f32 %v5195_v34, %v2701_v33 }
 0x250   : > { %v2831_v21 = vpop.f32.mrf.mxu0  ;;  %v5156_v6 = vpop.f32.mrf.mxu1 }
 0x251   : > { %v2702_v23 = vadd.f32 %v5156_v6, %v7065_v38  ;;  %v7170_v40 = vadd.f32 %v2828_v31, %v2699_v58 }
 0x252   : > { %v5199_v8 = vpop.f32.mrf.mxu0  ;;  %v2595_v63 = vpop.f32.mrf.mxu1 }
 0x253   : > { %v2700_v51 = vadd.f32 %v2595_v63, %v7068_v62  ;;  %v7173_v18 = vadd.f32 %v5196_v39, %v2702_v23 }
 0x254   : > { %v2844_v55 = vpop.f32.mrf.mxu0  ;;  %v5159_v35 = vpop.f32.mrf.mxu1 }
 0x255   : > { %v2705_v46 = vadd.f32 %v5159_v35, %v7071_v53  ;;  %v7176_v7 = vadd.f32 %v2831_v21, %v2700_v51 }
 0x256   : > { %v5200_v57 = vpop.f32.mrf.mxu0  ;;  %v2608_v16 = vpop.f32.mrf.mxu1 }
 0x257   : > { %v2703_v56 = vadd.f32 %v2608_v16, %v7074_v59  ;;  %v7179_v38 = vadd.f32 %v5199_v8, %v2705_v46 }
 0x258   : > { %v2847_v20 = vpop.f32.mrf.mxu0  ;;  %v5160_v13 = vpop.f32.mrf.mxu1 }
 0x259   : > { %v2706_v5 = vadd.f32 %v5160_v13, %v7077_v11  ;;  %v7182_v62 = vadd.f32 %v2844_v55, %v2703_v56 }
 0x25a   : > { %v5203_v43 = vpop.f32.mrf.mxu0  ;;  %v2611_v41 = vpop.f32.mrf.mxu1 }
 0x25b   : > { %v2704_v34 = vadd.f32 %v2611_v41, %v7080_v27  ;;  %v7185_v53 = vadd.f32 %v5200_v57, %v2706_v5  ;;  %v7202_v57 = vpop.permute.xlu0 %3865 }
 0x25c   : > { %v2860_v0 = vpop.f32.mrf.mxu0  ;;  %v5163_v19 = vpop.f32.mrf.mxu1 }
 0x25d   : > { %v2709_v31 = vadd.f32 %v5163_v19, %v7083_v52  ;;  %v7188_v59 = vadd.f32 %v2847_v20, %v2704_v34  ;;  %v7207_v20 = vpop.permute.xlu1 %3870 }
 0x25e   : > { %v5204_v10 = vpop.f32.mrf.mxu0  ;;  %v2624_v33 = vpop.f32.mrf.mxu1 }
 0x25f   : > { %v2707_v39 = vadd.f32 %v2624_v33, %v7086_v54  ;;  %v7191_v11 = vadd.f32 %v5203_v43, %v2709_v31  ;;  %v7215_v31 = vpop.permute.xlu0 %3875 }
 0x260   : > { %v2863_v22 = vpop.f32.mrf.mxu0  ;;  %v5164_v58 = vpop.f32.mrf.mxu1 }
 0x261   : > { %v2710_v21 = vadd.f32 %v5164_v58, %v7089_v17  ;;  %v7194_v27 = vadd.f32 %v2860_v0, %v2707_v39  ;;  %v7220_v39 = vpop.permute.xlu1 %3880 }
 0x262   : > { %v5207_v6 = vpop.f32.mrf.mxu0  ;;  %v2627_v23 = vpop.f32.mrf.mxu1 }
 0x263   : > { %v2708_v8 = vadd.f32 %v2627_v23, %v7092_v42  ;;  %v7197_v52 = vadd.f32 %v5204_v10, %v2710_v21 }
 0x264   : > { %v2876_v63 = vpop.f32.mrf.mxu0  ;;  %v5167_v51 = vpop.f32.mrf.mxu1 }
 0x265   : > { %v2713_v55 = vadd.f32 %v5167_v51, %v7095_v48  ;;  %v7200_v54 = vadd.f32 %v2863_v22, %v2708_v8  ;;  %v7228_v51 = vpop.permute.xlu0 %3885 }
 0x266   : > { %v5208_v35 = vpop.f32.mrf.mxu0  ;;  %v2640_v46 = vpop.f32.mrf.mxu1 }
 0x267   : > { %v2711_v17 = vadd.f32 %v2640_v46, %v7098_v36  ;;  %v7205_v56 = vadd.f32 %v5207_v6, %v2713_v55  ;;  %v7233_v46 = vpop.permute.xlu1 %3890 }
 0x268   : > { %v2879_v16 = vpop.f32.mrf.mxu0  ;;  %v5168_v42 = vpop.f32.mrf.mxu1 }
 0x269   : > { %v2714_v13 = vadd.f32 %v5168_v42, %v7101_v37  ;;  %v7210_v43 = vadd.f32 %v2876_v63, %v2711_v17 }
 0x26a   : > { %v5211_v5 = vpop.f32.mrf.mxu0  ;;  %v2643_v48 = vpop.f32.mrf.mxu1 }
 0x26b   : > { %v2712_v41 = vadd.f32 %v2643_v48, %v7104_v47  ;;  %v7213_v0 = vadd.f32 %v5208_v35, %v2714_v13 }
 0x26c   : > { %v2892_v34 = vpop.f32.mrf.mxu0  ;;  %v5171_v19 = vpop.f32.mrf.mxu1 }
 0x26d   : > { %v2717_v36 = vadd.f32 %v5171_v19, %v7107_v9  ;;  %v7218_v33 = vadd.f32 %v2879_v16, %v2712_v41 }
 0x26e   : > { %v5212_v10 = vpop.f32.mrf.mxu0  ;;  %v2656_v37 = vpop.f32.mrf.mxu1 }
 0x26f   : > { %v2715_v22 = vadd.f32 %v2656_v37, %v7110_v4  ;;  %v7223_v21 = vadd.f32 %v5211_v5, %v2717_v36 }
 0x270   : > { %v2895_v58 = vpop.f32.mrf.mxu0  ;;  %v5172_v47 = vpop.f32.mrf.mxu1 }
 0x271   : > { %v2718_v6 = vadd.f32 %v5172_v47, %v7113_v28  ;;  %v7226_v8 = vadd.f32 %v2892_v34, %v2715_v22 }
 0x272   : > { %v5215_v23 = vpop.f32.mrf.mxu0  ;;  %v2659_v63 = vpop.f32.mrf.mxu1 }
 0x273   : > { %v2716_v9 = vadd.f32 %v2659_v63, %v7116_v61  ;;  %v7231_v35 = vadd.f32 %v5212_v10, %v2718_v6  ;;  %v7241_v61 = vpop.permute.xlu0 %3895  ;;  %v7246_v10 = vpop.permute.xlu1 %3900 }
 0x274   : > { %v2908_v55 = vpop.f32.mrf.mxu0  ;;  %v5175_v4 = vpop.f32.mrf.mxu1 }
 0x275   : > { %v2721_v17 = vadd.f32 %v5175_v4, %v7119_v44  ;;  %v7236_v42 = vadd.f32 %v2895_v58, %v2716_v9 }
 0x276   : > { %v5216_v16 = vpop.f32.mrf.mxu0  ;;  %v2672_v28 = vpop.f32.mrf.mxu1 }
 0x277   : > { %v2719_v13 = vadd.f32 %v2672_v28, %v7122_v29  ;;  %v7239_v48 = vadd.f32 %v5215_v23, %v2721_v17 }
 0x278   : > { %v2911_v5 = vpop.f32.mrf.mxu0  ;;  %v5176_v41 = vpop.f32.mrf.mxu1 }
 0x279   : > { %v2722_v34 = vadd.f32 %v5176_v41, %v7125_v26  ;;  %v7244_v36 = vadd.f32 %v2908_v55, %v2719_v13  ;;  %v7255_v26 = vpop.permute.xlu0 %3905 }
 0x27a   : > { %v5263_v19 = vpop.f32.mrf.mxu0  ;;  %v2675_v44 = vpop.f32.mrf.mxu1 }
 0x27b   : > { %7705 = vst [vmem:[#allocation21_spill] sm:$0xff] %v7244_v36  ;;  %v2720_v37 = vadd.f32 %v2675_v44, %v7128_v2  ;;  %v7249_v58 = vadd.f32 %v5216_v16, %v2722_v34  ;;  %v7263_v2 = vpop.permute.xlu1 %3910 }
 0x27c   : > { %v3467_v22 = vpop.f32.mrf.mxu0  ;;  %v5223_v29 = vpop.f32.mrf.mxu1 }
 0x27d   : > { %7706 = vst [vmem:[#allocation26_spill] sm:$0xff] %v7249_v58  ;;  %v3290_v47 = vadd.f32 %v5223_v29, %v7131_v32  ;;  %v7253_v23 = vadd.f32 %v2911_v5, %v2720_v37  ;;  %v7270_v29 = vpop.permute.xlu0 %3915 }
 0x27e   : > { %v5264_v6 = vpop.f32.mrf.mxu0  ;;  %v3145_v63 = vpop.f32.mrf.mxu1 }
 0x27f   : > { %7707 = vst [vmem:[#allocation23_spill] sm:$0xff] %v7253_v23  ;;  %v3612_v9 = vadd.f32 %v5263_v19, %v3290_v47  ;;  %v3288_v55 = vadd.f32 %v3145_v63, %v7134_v60  ;;  %v7276_v63 = vpop.permute.xlu1 %3920 }
 0x280   : > { %v3470_v4 = vpop.f32.mrf.mxu0  ;;  %v5224_v32 = vpop.f32.mrf.mxu1 }
 0x281   : > { %v4624_v17 = vpack.c.bf16 %v3612_v9, %v3612_v9  ;;  %v3610_v16 = vadd.f32 %v3467_v22, %v3288_v55  ;;  %v3291_v28 = vadd.f32 %v5224_v32, %v7137_v49  ;;  %v4045_v47 = vmul.f32 %v7215_v31, %v3612_v9 }
 0x282   : > { %v5267_v13 = vpop.f32.mrf.mxu0  ;;  %v3148_v5 = vpop.f32.mrf.mxu1 }
 0x283   : > { %3793 = vst.msk [vmem:[%s7261_s21 + $0x8] sm:$0xf] %vm3790_vm7, %v4624_v17  ;;  %v4622_v60 = vpack.c.bf16 %v3610_v16, %v3610_v16  ;;  %v4043_v41 = vmul.f32 %v7202_v57, %v3610_v16  ;;  %v3613_v19 = vadd.f32 %v5264_v6, %v3291_v28  ;;  %v3289_v44 = vadd.f32 %v3148_v5, %v7140_v14 }
 0x284   : > { %v3483_v34 = vpop.f32.mrf.mxu0  ;;  %v5227_v37 = vpop.f32.mrf.mxu1  ;;  %v4158_v5 = vmul.f32 %v4045_v47, %v4045_v47  ;;  %v4082_v23 = vsel %vm1000_vm1, %v4045_v47, 0.0 }
 0x285   : > { %3791 = vst.msk [vmem:[%s7261_s21] sm:$0xf] %vm3790_vm7, %v4622_v60  ;;  %v3294_v49 = vadd.f32 %v5227_v37, %v7143_v30  ;;  %v4625_v55 = vpack.c.bf16 %v3613_v19, %v3613_v19  ;;  %v3611_v32 = vadd.f32 %v3470_v4, %v3289_v44  ;;  %v4156_v17 = vmul.f32 %v4043_v41, %v4043_v41  ;;  %v7294_v47 = vpop.permute.xlu1 %3930 }
 0x286   : > { %v5268_v22 = vpop.f32.mrf.mxu0  ;;  %v3161_v57 = vpop.f32.mrf.mxu1  ;;  %v4046_v14 = vmul.f32 %v7220_v39, %v3613_v19  ;;  %v4079_v39 = vsel %vm1000_vm1, %v4043_v41, 0.0 }
 0x287   : > { %v3616_v6 = vadd.f32 %v5267_v13, %v3294_v49  ;;  %v3292_v16 = vadd.f32 %v3161_v57, %v7146_v45  ;;  %3794 = vst.msk [vmem:[%s7261_s21 + $0xc] sm:$0xf] %vm3790_vm7, %v4625_v55  ;;  %v4623_v31 = vpack.c.bf16 %v3611_v32, %v3611_v32  ;;  %v4044_v9 = vmul.f32 %v7207_v20, %v3611_v32  ;;  %v7289_v49 = vpop.permute.xlu0 %3925 }
 0x288   : > { %v3486_v28 = vpop.f32.mrf.mxu0  ;;  %v5228_v30 = vpop.f32.mrf.mxu1  ;;  %v4192_v20 = vsel %vm1000_vm1, %v4156_v17, 0.0  ;;  %v4159_v55 = vmul.f32 %v4046_v14, %v4046_v14 }
 0x289   : > { %v4628_v60 = vpack.c.bf16 %v3616_v6, %v3616_v6  ;;  %v3614_v37 = vadd.f32 %v3483_v34, %v3292_v16  ;;  %v3295_v4 = vadd.f32 %v5228_v30, %v7149_v3  ;;  %3792 = vst.msk [vmem:[%s7261_s21 + $0x4] sm:$0xf] %vm3790_vm7, %v4623_v31  ;;  %v4080_v45 = vsel %vm1000_vm1, %v4044_v9, 0.0 }
 0x28a   : > { %v5271_v44 = vpop.f32.mrf.mxu0  ;;  %v4157_v13 = vmul.f32 %v4044_v9, %v4044_v9  ;;  %v3164_v19 = vpop.f32.mrf.mxu1  ;;  %v4081_v34 = vadd.f32 %v4080_v45, %v4079_v39  ;;  %v4195_v30 = vsel %vm1000_vm1, %v4158_v5, 0.0  ;;  %v4084_v45 = vsel %vm1000_vm1, %v4046_v14, 0.0 }
 0x28b   : > { %3797 = vst.msk [vmem:[%s7261_s21 + $0x18] sm:$0xf] %vm3790_vm7, %v4628_v60  ;;  %v4626_v3 = vpack.c.bf16 %v3614_v37, %v3614_v37  ;;  %v4047_v57 = vmul.f32 %v7228_v51, %v3614_v37  ;;  %v3617_v16 = vadd.f32 %v5268_v22, %v3295_v4  ;;  %v3293_v31 = vadd.f32 %v3164_v19, %v7152_v1 }
 0x28c   : > { %v3499_v32 = vpop.f32.mrf.mxu0  ;;  %v4193_v41 = vsel %vm1000_vm1, %v4157_v13, 0.0  ;;  %v5231_v9 = vpop.f32.mrf.mxu1  ;;  %v4083_v58 = vadd.f32 %v4082_v23, %v4081_v34  ;;  %v4049_v13 = vmul.f32 %v7241_v61, %v3616_v6  ;;  %v4197_v23 = vsel %vm1000_vm1, %v4159_v55, 0.0 }
 0x28d   : > { %v4194_v17 = vadd.f32 %v4193_v41, %v4192_v20  ;;  %3795 = vst.msk [vmem:[%s7261_s21 + $0x10] sm:$0xf] %vm3790_vm7, %v4626_v3  ;;  %v3298_v60 = vadd.f32 %v5231_v9, %v7155_v24  ;;  %v4160_v36 = vmul.f32 %v4047_v57, %v4047_v57  ;;  %v4629_v51 = vpack.c.bf16 %v3617_v16, %v3617_v16  ;;  %v7311_v6 = vpop.permute.xlu0 %3935  ;;  %v7314_v55 = vpop.permute.xlu1 %3940 }
 0x28e   : > { %v5272_v39 = vpop.f32.mrf.mxu0  ;;  %v3177_v22 = vpop.f32.mrf.mxu1  ;;  %v4085_v1 = vadd.f32 %v4084_v45, %v4083_v58  ;;  %v3615_v4 = vadd.f32 %v3486_v28, %v3293_v31  ;;  %v4086_v20 = vsel %vm1000_vm1, %v4047_v57, 0.0  ;;  %v4050_v24 = vmul.f32 %v7246_v10, %v3617_v16 }
 0x28f   : > { %v4196_v37 = vadd.f32 %v4195_v30, %v4194_v17  ;;  %v3620_v19 = vadd.f32 %v5271_v44, %v3298_v60  ;;  %3798 = vst.msk [vmem:[%s7261_s21 + $0x1c] sm:$0xf] %vm3790_vm7, %v4629_v51  ;;  %v3296_v14 = vadd.f32 %v3177_v22, %v7158_v50  ;;  %v4162_v41 = vmul.f32 %v4049_v13, %v4049_v13 }
 0x290   : > { %v3502_v5 = vpop.f32.mrf.mxu0  ;;  %v5232_v61 = vpop.f32.mrf.mxu1  ;;  %v4087_v34 = vadd.f32 %v4086_v20, %v4085_v1  ;;  %v4627_v58 = vpack.c.bf16 %v3615_v4, %v3615_v4  ;;  %v4048_v28 = vmul.f32 %v7233_v46, %v3615_v4  ;;  %v4199_v57 = vsel %vm1000_vm1, %v4160_v36, 0.0 }
 0x291   : > { %v4198_v3 = vadd.f32 %v4197_v23, %v4196_v37  ;;  %v4632_v31 = vpack.c.bf16 %v3620_v19, %v3620_v19  ;;  %v3618_v10 = vadd.f32 %v3499_v32, %v3296_v14  ;;  %v3299_v17 = vadd.f32 %v5232_v61, %v7161_v15 }
 0x292   : > { %v5275_v44 = vpop.f32.mrf.mxu0  ;;  %v3180_v16 = vpop.f32.mrf.mxu1  ;;  %3796 = vst.msk [vmem:[%s7261_s21 + $0x14] sm:$0xf] %vm3790_vm7, %v4627_v58  ;;  %v4088_v50 = vsel %vm1000_vm1, %v4048_v28, 0.0  ;;  %v4161_v30 = vmul.f32 %v4048_v28, %v4048_v28  ;;  %v4090_v60 = vsel %vm1000_vm1, %v4049_v13, 0.0  ;;  %v4163_v45 = vmul.f32 %v4050_v24, %v4050_v24 }
 0x293   : > { %v4200_v9 = vadd.f32 %v4199_v57, %v4198_v3  ;;  %v4089_v51 = vadd.f32 %v4088_v50, %v4087_v34  ;;  %3801 = vst.msk [vmem:[%s7261_s21 + $0x28] sm:$0xf] %vm3790_vm7, %v4632_v31  ;;  %v4630_v36 = vpack.c.bf16 %v3618_v10, %v3618_v10  ;;  %v4051_v37 = vmul.f32 %v7255_v26, %v3618_v10  ;;  %v7331_v34 = vpop.permute.xlu0 %3945  ;;  %v7335_v28 = vpop.permute.xlu1 %3950 }
 0x294   : > { %v3515_v46 = vpop.f32.mrf.mxu0  ;;  %v5235_v22 = vpop.f32.mrf.mxu1  ;;  %v4201_v32 = vsel %vm1000_vm1, %v4161_v30, 0.0  ;;  %v3621_v1 = vadd.f32 %v5272_v39, %v3299_v17  ;;  %v3297_v4 = vadd.f32 %v3180_v16, %v7164_v12  ;;  %v4203_v15 = vsel %vm1000_vm1, %v4162_v41, 0.0 }
 0x295   : > { %v4091_v20 = vadd.f32 %v4090_v60, %v4089_v51  ;;  %v4202_v14 = vadd.f32 %v4201_v32, %v4200_v9  ;;  %3799 = vst.msk [vmem:[%s7261_s21 + $0x20] sm:$0xf] %vm3790_vm7, %v4630_v36  ;;  %v3302_v13 = vadd.f32 %v5235_v22, %v7167_v25  ;;  %v4092_v3 = vsel %vm1000_vm1, %v4050_v24, 0.0 }
 0x296   : > { %v5276_v23 = vpop.f32.mrf.mxu0  ;;  %v3193_v61 = vpop.f32.mrf.mxu1  ;;  %v4053_v26 = vmul.f32 %v7270_v29, %v3620_v19  ;;  %v4164_v39 = vmul.f32 %v4051_v37, %v4051_v37  ;;  %v4633_v58 = vpack.c.bf16 %v3621_v1, %v3621_v1  ;;  %v3619_v31 = vadd.f32 %v3502_v5, %v3297_v4 }
 0x297   : > { %v4204_v41 = vadd.f32 %v4203_v15, %v4202_v14  ;;  %v4093_v57 = vadd.f32 %v4092_v3, %v4091_v20  ;;  %v3624_v10 = vadd.f32 %v5275_v44, %v3302_v13  ;;  %v4205_v25 = vsel %vm1000_vm1, %v4163_v45, 0.0  ;;  %v7349_v4 = vpop.permute.xlu0 %3955  ;;  %v7354_v13 = vpop.permute.xlu1 %3960 }
 0x298   : > { %v3518_v12 = vpop.f32.mrf.mxu0  ;;  %v5236_v16 = vpop.f32.mrf.mxu1  ;;  %v4094_v9 = vsel %vm1000_vm1, %v4051_v37, 0.0  ;;  %3802 = vst.msk [vmem:[%s7261_s21 + $0x2c] sm:$0xf] %vm3790_vm7, %v4633_v58  ;;  %v4054_v24 = vmul.f32 %v7276_v63, %v3621_v1  ;;  %v3300_v29 = vadd.f32 %v3193_v61, %v7170_v40  ;;  %v4631_v17 = vpack.c.bf16 %v3619_v31, %v3619_v31 }
 0x299   : > { %v4095_v50 = vadd.f32 %v4094_v9, %v4093_v57  ;;  %v4206_v30 = vadd.f32 %v4205_v25, %v4204_v41  ;;  %v4052_v60 = vmul.f32 %v7263_v2, %v3619_v31  ;;  %v4166_v44 = vmul.f32 %v4053_v26, %v4053_v26 }
 0x29a   : > { %v5279_v19 = vpop.f32.mrf.mxu0  ;;  %v3196_v5 = vpop.f32.mrf.mxu1  ;;  %v4207_v45 = vsel %vm1000_vm1, %v4164_v39, 0.0  ;;  %v4636_v51 = vpack.c.bf16 %v3624_v10, %v3624_v10  ;;  %v3622_v36 = vadd.f32 %v3515_v46, %v3300_v29  ;;  %3800 = vst.msk [vmem:[%s7261_s21 + $0x24] sm:$0xf] %vm3790_vm7, %v4631_v17  ;;  %v3303_v37 = vadd.f32 %v5236_v16, %v7173_v18 }
 0x29b   : > { %v4208_v32 = vadd.f32 %v4207_v45, %v4206_v30  ;;  %v4096_v63 = vsel %vm1000_vm1, %v4052_v60, 0.0  ;;  %v4165_v40 = vmul.f32 %v4052_v60, %v4052_v60  ;;  %v4098_v2 = vsel %vm1000_vm1, %v4053_v26, 0.0 }
 0x29c   : > { %v3531_v22 = vpop.f32.mrf.mxu0  ;;  %v5239_v1 = vpop.f32.mrf.mxu1  ;;  %v4167_v15 = vmul.f32 %v4054_v24, %v4054_v24  ;;  %v4097_v20 = vadd.f32 %v4096_v63, %v4095_v50  ;;  %3805 = vst.msk [vmem:[%s7261_s21 + $0x38] sm:$0xf] %vm3790_vm7, %v4636_v51  ;;  %v4634_v46 = vpack.c.bf16 %v3622_v36, %v3622_v36  ;;  %v4055_v3 = vmul.f32 %v7289_v49, %v3622_v36 }
 0x29d   : > { %v4209_v61 = vsel %vm1000_vm1, %v4165_v40, 0.0  ;;  %v3625_v39 = vadd.f32 %v5276_v23, %v3303_v37  ;;  %v3301_v18 = vadd.f32 %v3196_v5, %v7176_v7  ;;  %v4211_v41 = vsel %vm1000_vm1, %v4166_v44, 0.0 }
 0x29e   : > { %v5280_v14 = vpop.f32.mrf.mxu0  ;;  %v3209_v58 = vpop.f32.mrf.mxu1  ;;  %v4099_v57 = vadd.f32 %v4098_v2, %v4097_v20  ;;  %v4210_v26 = vadd.f32 %v4209_v61, %v4208_v32  ;;  %3803 = vst.msk [vmem:[%s7261_s21 + $0x30] sm:$0xf] %vm3790_vm7, %v4634_v46  ;;  %v3306_v31 = vadd.f32 %v5239_v1, %v7179_v38  ;;  %v4100_v25 = vsel %vm1000_vm1, %v4054_v24, 0.0 }
 0x29f   : > { %v4057_v9 = vmul.f32 %v7311_v6, %v3624_v10  ;;  %v4168_v29 = vmul.f32 %v4055_v3, %v4055_v3  ;;  %v4637_v49 = vpack.c.bf16 %v3625_v39, %v3625_v39  ;;  %v3623_v30 = vadd.f32 %v3518_v12, %v3301_v18  ;;  %v7371_v10 = vpop.permute.xlu0 %3965  ;;  %v7374_v32 = vpop.permute.xlu1 %3970 }
 0x2a0   : > { %v3534_v16 = vpop.f32.mrf.mxu0  ;;  %v5240_v23 = vpop.f32.mrf.mxu1  ;;  %v4212_v50 = vadd.f32 %v4211_v41, %v4210_v26  ;;  %v4101_v7 = vadd.f32 %v4100_v25, %v4099_v57  ;;  %v3628_v17 = vadd.f32 %v5279_v19, %v3306_v31  ;;  %v4213_v5 = vsel %vm1000_vm1, %v4167_v15, 0.0 }
 0x2a1   : > { %v4102_v44 = vsel %vm1000_vm1, %v4055_v3, 0.0  ;;  %3806 = vst.msk [vmem:[%s7261_s21 + $0x3c] sm:$0xf] %vm3790_vm7, %v4637_v49  ;;  %v4058_v38 = vmul.f32 %v7314_v55, %v3625_v39  ;;  %v3304_v24 = vadd.f32 %v3209_v58, %v7182_v62  ;;  %v4635_v36 = vpack.c.bf16 %v3623_v30, %v3623_v30 }
 0x2a2   : > { %v5283_v60 = vpop.f32.mrf.mxu0  ;;  %v3212_v6 = vpop.f32.mrf.mxu1  ;;  %v4103_v45 = vadd.f32 %v4102_v44, %v4101_v7  ;;  %v4214_v51 = vadd.f32 %v4213_v5, %v4212_v50  ;;  %v4056_v12 = vmul.f32 %v7294_v47, %v3623_v30  ;;  %v4170_v63 = vmul.f32 %v4057_v9, %v4057_v9 }
 0x2a3   : > { %v4215_v40 = vsel %vm1000_vm1, %v4168_v29, 0.0  ;;  %v4640_v37 = vpack.c.bf16 %v3628_v17, %v3628_v17  ;;  %v3626_v55 = vadd.f32 %v3531_v22, %v3304_v24  ;;  %3804 = vst.msk [vmem:[%s7261_s21 + $0x34] sm:$0xf] %vm3790_vm7, %v4635_v36  ;;  %v3307_v20 = vadd.f32 %v5240_v23, %v7185_v53  ;;  %v3976_v49 = vpop.permute.xlu0 %3975  ;;  %v3981_v7 = vpop.permute.xlu1 %3980 }
 0x2a4   : > { %v3547_v19 = vpop.f32.mrf.mxu0  ;;  %v5243_v1 = vpop.f32.mrf.mxu1  ;;  %v4216_v2 = vadd.f32 %v4215_v40, %v4214_v51  ;;  %v4104_v62 = vsel %vm1000_vm1, %v4056_v12, 0.0  ;;  %v4169_v15 = vmul.f32 %v4056_v12, %v4056_v12  ;;  %v4106_v46 = vsel %vm1000_vm1, %v4057_v9, 0.0 }
 0x2a5   : > { %v4171_v61 = vmul.f32 %v4058_v38, %v4058_v38  ;;  %v4105_v3 = vadd.f32 %v4104_v62, %v4103_v45  ;;  %3809 = vst.msk [vmem:[%s7261_s21 + $0x48] sm:$0xf] %vm3790_vm7, %v4640_v37  ;;  %v4638_v39 = vpack.c.bf16 %v3626_v55, %v3626_v55  ;;  %v4059_v58 = vmul.f32 %v7331_v34, %v3626_v55 }
 0x2a6   : > { %v5284_v47 = vpop.f32.mrf.mxu0  ;;  %v3225_v18 = vpop.f32.mrf.mxu1  ;;  %v4217_v22 = vsel %vm1000_vm1, %v4169_v15, 0.0  ;;  %v3629_v41 = vadd.f32 %v5280_v14, %v3307_v20  ;;  %v3305_v57 = vadd.f32 %v3212_v6, %v7188_v59  ;;  %v4219_v53 = vsel %vm1000_vm1, %v4170_v63, 0.0 }
 0x2a7   : > { %v4107_v31 = vadd.f32 %v4106_v46, %v4105_v3  ;;  %v4218_v25 = vadd.f32 %v4217_v22, %v4216_v2  ;;  %3807 = vst.msk [vmem:[%s7261_s21 + $0x40] sm:$0xf] %vm3790_vm7, %v4638_v39  ;;  %v3310_v9 = vadd.f32 %v5243_v1, %v7191_v11  ;;  %v4108_v23 = vsel %vm1000_vm1, %v4058_v38, 0.0  ;;  %v3986_v20 = vpop.permute.xlu0 %3985  ;;  %v7414_v39 = vpop.permute.xlu1 %3990 }
 0x2a8   : > { %v7387_v26 = vpop.f32.mrf.mxu0  ;;  %v5244_v29 = vpop.f32.mrf.mxu1  ;;  %v4061_v34 = vmul.f32 %v7349_v4, %v3628_v17  ;;  %v4172_v14 = vmul.f32 %v4059_v58, %v4059_v58  ;;  %v4641_v50 = vpack.c.bf16 %v3629_v41, %v3629_v41  ;;  %v3627_v44 = vadd.f32 %v3534_v16, %v3305_v57 }
 0x2a9   : > { %v4220_v30 = vadd.f32 %v4219_v53, %v4218_v25  ;;  %v4109_v5 = vadd.f32 %v4108_v23, %v4107_v31  ;;  %v3632_v24 = vadd.f32 %v5283_v60, %v3310_v9  ;;  %v4221_v45 = vsel %vm1000_vm1, %v4171_v61, 0.0 }
 0x2aa   : > { %v5287_v59 = vpop.f32.mrf.mxu0  ;;  %v3228_v6 = vpop.f32.mrf.mxu1  ;;  %v4110_v11 = vsel %vm1000_vm1, %v4059_v58, 0.0  ;;  %3810 = vst.msk [vmem:[%s7261_s21 + $0x4c] sm:$0xf] %vm3790_vm7, %v4641_v50  ;;  %v4062_v38 = vmul.f32 %v7354_v13, %v3629_v41  ;;  %v3308_v4 = vadd.f32 %v3225_v18, %v7194_v27  ;;  %v4639_v12 = vpack.c.bf16 %v3627_v44, %v3627_v44 }
 0x2ab   : > { %v4111_v51 = vadd.f32 %v4110_v11, %v4109_v5  ;;  %v4222_v36 = vadd.f32 %v4221_v45, %v4220_v30  ;;  %v4060_v63 = vmul.f32 %v7335_v28, %v3627_v44  ;;  %v4174_v60 = vmul.f32 %v4061_v34, %v4061_v34 }
 0x2ac   : > { %v3563_v17 = vpop.f32.mrf.mxu0  ;;  %v5247_v16 = vpop.f32.mrf.mxu1  ;;  %v4223_v40 = vsel %vm1000_vm1, %v4172_v14, 0.0  ;;  %v4644_v37 = vpack.c.bf16 %v3632_v24, %v3632_v24  ;;  %v3630_v55 = vadd.f32 %v3547_v19, %v3308_v4  ;;  %3808 = vst.msk [vmem:[%s7261_s21 + $0x44] sm:$0xf] %vm3790_vm7, %v4639_v12  ;;  %v3311_v62 = vadd.f32 %v5244_v29, %v7197_v52 }
 0x2ad   : > { %v4224_v2 = vadd.f32 %v4223_v40, %v4222_v36  ;;  %v4112_v27 = vsel %vm1000_vm1, %v4060_v63, 0.0  ;;  %v4173_v13 = vmul.f32 %v4060_v63, %v4060_v63  ;;  %v4114_v28 = vsel %vm1000_vm1, %v4061_v34, 0.0 }
 0x2ae   : > { %v7403_v1 = vpop.f32.mrf.mxu0  ;;  %v3241_v15 = vpop.f32.mrf.mxu1  ;;  %v4175_v46 = vmul.f32 %v4062_v38, %v4062_v38  ;;  %v4113_v61 = vadd.f32 %v4112_v27, %v4111_v51  ;;  %3813 = vst.msk [vmem:[%s7261_s21 + $0x58] sm:$0xf] %vm3790_vm7, %v4644_v37  ;;  %v4642_v19 = vpack.c.bf16 %v3630_v55, %v3630_v55  ;;  %v4063_v22 = vmul.f32 %v7371_v10, %v3630_v55 }
 0x2af   : > { %v4225_v18 = vsel %vm1000_vm1, %v4173_v13, 0.0  ;;  %v3633_v58 = vadd.f32 %v5284_v47, %v3311_v62  ;;  %v3309_v52 = vadd.f32 %v3228_v6, %v7200_v54  ;;  %v4227_v57 = vsel %vm1000_vm1, %v4174_v60, 0.0 }
 0x2b0   : > { %v7412_v3 = vpop.f32.mrf.mxu0  ;;  %v5248_v41 = vpop.f32.mrf.mxu1  ;;  %v4115_v53 = vadd.f32 %v4114_v28, %v4113_v61  ;;  %v4226_v31 = vadd.f32 %v4225_v18, %v4224_v2  ;;  %3811 = vst.msk [vmem:[%s7261_s21 + $0x50] sm:$0xf] %vm3790_vm7, %v4642_v19  ;;  %v3314_v25 = vadd.f32 %v5247_v16, %v7205_v56  ;;  %v4116_v29 = vsel %vm1000_vm1, %v4062_v38, 0.0 }
 0x2b1   : > { %v4065_v23 = vmul.f32 %v3976_v49, %v3632_v24  ;;  %v4176_v34 = vmul.f32 %v4063_v22, %v4063_v22  ;;  %v4645_v14 = vpack.c.bf16 %v3633_v58, %v3633_v58  ;;  %v3631_v54 = vadd.f32 %v7387_v26, %v3309_v52  ;;  %v3996_v49 = vpop.permute.xlu0 %3995 }
 0x2b2   : > { %v5291_v9 = vpop.f32.mrf.mxu0  ;;  %v3244_v10 = vpop.f32.mrf.mxu1  ;;  %v4228_v47 = vadd.f32 %v4227_v57, %v4226_v31  ;;  %v4117_v50 = vadd.f32 %v4116_v29, %v4115_v53  ;;  %v3636_v30 = vadd.f32 %v5287_v59, %v3314_v25  ;;  %v4229_v5 = vsel %vm1000_vm1, %v4175_v46, 0.0 }
 0x2b3   : > { %v4118_v44 = vsel %vm1000_vm1, %v4063_v22, 0.0  ;;  %3814 = vst.msk [vmem:[%s7261_s21 + $0x5c] sm:$0xf] %vm3790_vm7, %v4645_v14  ;;  %v4066_v6 = vmul.f32 %v3981_v7, %v3633_v58  ;;  %v3312_v56 = vadd.f32 %v3241_v15, %v7210_v43  ;;  %v4643_v38 = vpack.c.bf16 %v3631_v54, %v3631_v54  ;;  %v4001_v59 = vpop.permute.xlu1 %4000 }
 0x2b4   : > { %v5251_v45 = vpop.f32.mrf.mxu1  ;;  %v4119_v24 = vadd.f32 %v4118_v44, %v4117_v50  ;;  %v4230_v11 = vadd.f32 %v4229_v5, %v4228_v47  ;;  %v4064_v4 = vmul.f32 %v7374_v32, %v3631_v54  ;;  %v3579_v26 = vpop.f32.mrf.mxu0  ;;  %v4178_v51 = vmul.f32 %v4065_v23, %v4065_v23 }
 0x2b5   : > { %v4231_v36 = vsel %vm1000_vm1, %v4176_v34, 0.0  ;;  %v4648_v12 = vpack.c.bf16 %v3636_v30, %v3636_v30  ;;  %v3634_v63 = vadd.f32 %v3563_v17, %v3312_v56  ;;  %3812 = vst.msk [vmem:[%s7261_s21 + $0x54] sm:$0xf] %vm3790_vm7, %v4643_v38  ;;  %v3315_v40 = vadd.f32 %v5248_v41, %v7213_v0  ;;  %v4006_v22 = vpop.permute.xlu0 %4005 }
 0x2b6   : > { %v3257_v16 = vpop.f32.mrf.mxu1  ;;  %v4232_v7 = vadd.f32 %v4231_v36, %v4230_v11  ;;  %v4120_v43 = vsel %vm1000_vm1, %v4064_v4, 0.0  ;;  %v4177_v60 = vmul.f32 %v4064_v4, %v4064_v4  ;;  %v4122_v32 = vsel %vm1000_vm1, %v4065_v23, 0.0  ;;  %v5292_v28 = vpop.f32.mrf.mxu0 }
 0x2b7   : > { %v4179_v37 = vmul.f32 %v4066_v6, %v4066_v6  ;;  %v4121_v55 = vadd.f32 %v4120_v43, %v4119_v24  ;;  %3817 = vst.msk [vmem:[%s7261_s21 + $0x68] sm:$0xf] %vm3790_vm7, %v4648_v12  ;;  %v4646_v2 = vpack.c.bf16 %v3634_v63, %v3634_v63  ;;  %v4067_v13 = vmul.f32 %v3986_v20, %v3634_v63 }
 0x2b8   : > { %v5252_v27 = vpop.f32.mrf.mxu1  ;;  %v4233_v17 = vsel %vm1000_vm1, %v4177_v60, 0.0  ;;  %v3637_v62 = vadd.f32 %v7403_v1, %v3315_v40  ;;  %v3313_v15 = vadd.f32 %v3244_v10, %v7218_v33  ;;  %v4235_v46 = vsel %vm1000_vm1, %v4178_v51, 0.0  ;;  %v4011_v1 = vpop.permute.xlu1 %4010 }
 0x2b9   : > { %v4123_v61 = vadd.f32 %v4122_v32, %v4121_v55  ;;  %v4234_v0 = vadd.f32 %v4233_v17, %v4232_v7  ;;  %3815 = vst.msk [vmem:[%s7261_s21 + $0x60] sm:$0xf] %vm3790_vm7, %v4646_v2  ;;  %v3318_v19 = vadd.f32 %v5251_v45, %v7223_v21  ;;  %v4124_v58 = vsel %vm1000_vm1, %v4066_v6, 0.0  ;;  %v3582_v14 = vpop.f32.mrf.mxu0 }
 0x2ba   : > { %v3260_v18 = vpop.f32.mrf.mxu1  ;;  %v4069_v52 = vmul.f32 %v3996_v49, %v3636_v30  ;;  %v4180_v20 = vmul.f32 %v4067_v13, %v4067_v13  ;;  %v4649_v41 = vpack.c.bf16 %v3637_v62, %v3637_v62  ;;  %v3635_v53 = vadd.f32 %v7412_v3, %v3313_v15  ;;  %v4016_v49 = vpop.permute.xlu0 %4015 }
 0x2bb   : > { %v4236_v57 = vadd.f32 %v4235_v46, %v4234_v0  ;;  %v4125_v33 = vadd.f32 %v4124_v58, %v4123_v61  ;;  %v3640_v31 = vadd.f32 %v5291_v9, %v3318_v19  ;;  %v4237_v29 = vsel %vm1000_vm1, %v4179_v37, 0.0  ;;  %v5295_v4 = vpop.f32.mrf.mxu0 }
 0x2bc   : > { %v5255_v25 = vpop.f32.mrf.mxu1  ;;  %v4126_v23 = vsel %vm1000_vm1, %v4067_v13, 0.0  ;;  %3818 = vst.msk [vmem:[%s7261_s21 + $0x6c] sm:$0xf] %vm3790_vm7, %v4649_v41  ;;  %v4070_v21 = vmul.f32 %v4001_v59, %v3637_v62  ;;  %v3316_v34 = vadd.f32 %v3257_v16, %v7226_v8  ;;  %v4647_v50 = vpack.c.bf16 %v3635_v53, %v3635_v53 }
 0x2bd   : > { %v4127_v10 = vadd.f32 %v4126_v23, %v4125_v33  ;;  %v4238_v47 = vadd.f32 %v4237_v29, %v4236_v57  ;;  %v4068_v54 = vmul.f32 %v7414_v39, %v3635_v53  ;;  %v4182_v3 = vmul.f32 %v4069_v52, %v4069_v52  ;;  %v7709_v29 = vld [vmem:[#allocation26_spill] sm:$0xff] }
 0x2be   : > { %v4239_v9 = vsel %vm1000_vm1, %v4180_v20, 0.0  ;;  %v4652_v30 = vpack.c.bf16 %v3640_v31, %v3640_v31  ;;  %v3638_v5 = vadd.f32 %v3579_v26, %v3316_v34  ;;  %3816 = vst.msk [vmem:[%s7261_s21 + $0x64] sm:$0xf] %vm3790_vm7, %v4647_v50  ;;  %v3319_v8 = vadd.f32 %v5252_v27, %v7231_v35  ;;  %v3273_v45 = vpop.f32.mrf.mxu1  ;;  %v4021_v26 = vpop.permute.xlu1 %4020 }
 0x2bf   : > { %v4240_v44 = vadd.f32 %v4239_v9, %v4238_v47  ;;  %v4128_v6 = vsel %vm1000_vm1, %v4068_v54, 0.0  ;;  %v4181_v56 = vmul.f32 %v4068_v54, %v4068_v54  ;;  %v4130_v24 = vsel %vm1000_vm1, %v4069_v52, 0.0  ;;  %v4026_v46 = vpop.permute.xlu0 %4025  ;;  %v7710_v54 = vld [vmem:[#allocation23_spill] sm:$0xff] }
 0x2c0   : > { %v4183_v11 = vmul.f32 %v4070_v21, %v4070_v21  ;;  %v4129_v39 = vadd.f32 %v4128_v6, %v4127_v10  ;;  %3821 = vst.msk [vmem:[%s7261_s21 + $0x78] sm:$0xf] %vm3790_vm7, %v4652_v30  ;;  %v4650_v38 = vpack.c.bf16 %v3638_v5, %v3638_v5  ;;  %v4071_v51 = vmul.f32 %v4006_v22, %v3638_v5  ;;  %v5256_v37 = vpop.f32.mrf.mxu1 }
 0x2c1   : > { %v4241_v59 = vsel %vm1000_vm1, %v4181_v56, 0.0  ;;  %v3641_v36 = vadd.f32 %v5292_v28, %v3319_v8  ;;  %v3317_v12 = vadd.f32 %v3260_v18, %v7236_v42  ;;  %v4243_v35 = vsel %vm1000_vm1, %v4182_v3, 0.0  ;;  %v3595_v42 = vpop.f32.mrf.mxu0 }
 0x2c2   : > { %v4131_v63 = vadd.f32 %v4130_v24, %v4129_v39  ;;  %v4242_v16 = vadd.f32 %v4241_v59, %v4240_v44  ;;  %3819 = vst.msk [vmem:[%s7261_s21 + $0x70] sm:$0xf] %vm3790_vm7, %v4650_v38  ;;  %v3322_v7 = vadd.f32 %v5255_v25, %v7239_v48  ;;  %v4132_v43 = vsel %vm1000_vm1, %v4070_v21, 0.0  ;;  %v7708_v48 = vld [vmem:[#allocation21_spill] sm:$0xff]  ;;  %v4031_v22 = vpop.permute.xlu1 %4030  ;;  %v3276_v57 = vpop.f32.mrf.mxu1 }
 0x2c3   : > { %v4073_v60 = vmul.f32 %v4016_v49, %v3640_v31  ;;  %v4184_v40 = vmul.f32 %v4071_v51, %v4071_v51  ;;  %v4653_v32 = vpack.c.bf16 %v3641_v36, %v3641_v36  ;;  %v3639_v27 = vadd.f32 %v3582_v14, %v3317_v12  ;;  %v5296_v25 = vpop.f32.mrf.mxu0  ;;  %v4036_v5 = vpop.permute.xlu0 %4035 }
 0x2c4   : > { %v4244_v55 = vadd.f32 %v4243_v35, %v4242_v16  ;;  %v4133_v2 = vadd.f32 %v4132_v43, %v4131_v63  ;;  %v3644_v17 = vadd.f32 %v5295_v4, %v3322_v7  ;;  %v4245_v13 = vsel %vm1000_vm1, %v4183_v11, 0.0 }
 0x2c5   : > { %v4134_v62 = vsel %vm1000_vm1, %v4071_v51, 0.0  ;;  %3822 = vst.msk [vmem:[%s7261_s21 + $0x7c] sm:$0xf] %vm3790_vm7, %v4653_v32  ;;  %v4074_v15 = vmul.f32 %v4021_v26, %v3641_v36  ;;  %v3320_v28 = vadd.f32 %v3273_v45, %v7708_v48  ;;  %v4651_v19 = vpack.c.bf16 %v3639_v27, %v3639_v27  ;;  %v3598_v45 = vpop.f32.mrf.mxu0 }
 0x2c6   : > { %v4135_v61 = vadd.f32 %v4134_v62, %v4133_v2  ;;  %v4246_v0 = vadd.f32 %v4245_v13, %v4244_v55  ;;  %v4072_v18 = vmul.f32 %v4011_v1, %v3639_v27  ;;  %v4186_v58 = vmul.f32 %v4073_v60, %v4073_v60  ;;  %v4041_v49 = vpop.permute.xlu1 %4040 }
 0x2c7   : > { %v4247_v52 = vsel %vm1000_vm1, %v4184_v40, 0.0  ;;  %v4656_v20 = vpack.c.bf16 %v3644_v17, %v3644_v17  ;;  %v3642_v41 = vadd.f32 %v3595_v42, %v3320_v28  ;;  %3820 = vst.msk [vmem:[%s7261_s21 + $0x74] sm:$0xf] %vm3790_vm7, %v4651_v19  ;;  %v3323_v23 = vadd.f32 %v5256_v37, %v7709_v29 }
 0x2c8   : > { %v4248_v33 = vadd.f32 %v4247_v52, %v4246_v0  ;;  %v4136_v53 = vsel %vm1000_vm1, %v4072_v18, 0.0  ;;  %v4185_v31 = vmul.f32 %v4072_v18, %v4072_v18  ;;  %v4138_v1 = vsel %vm1000_vm1, %v4073_v60, 0.0 }
 0x2c9   : > { %v4187_v21 = vmul.f32 %v4074_v15, %v4074_v15  ;;  %v4137_v34 = vadd.f32 %v4136_v53, %v4135_v61  ;;  %3825 = vst.msk [vmem:[%s7261_s21 + $0x88] sm:$0xf] %vm3790_vm7, %v4656_v20  ;;  %v4654_v14 = vpack.c.bf16 %v3642_v41, %v3642_v41  ;;  %v4075_v47 = vmul.f32 %v4026_v46, %v3642_v41 }
 0x2ca   : > { %v4249_v10 = vsel %vm1000_vm1, %v4185_v31, 0.0  ;;  %v3645_v50 = vadd.f32 %v5296_v25, %v3323_v23  ;;  %v3321_v3 = vadd.f32 %v3276_v57, %v7710_v54  ;;  %v4251_v44 = vsel %vm1000_vm1, %v4186_v58, 0.0 }
 0x2cb   : > { %v4139_v9 = vadd.f32 %v4138_v1, %v4137_v34  ;;  %v4250_v30 = vadd.f32 %v4249_v10, %v4248_v33  ;;  %3823 = vst.msk [vmem:[%s7261_s21 + $0x80] sm:$0xf] %vm3790_vm7, %v4654_v14  ;;  %v4140_v6 = vsel %vm1000_vm1, %v4074_v15, 0.0  ;;  %v4188_v56 = vmul.f32 %v4075_v47, %v4075_v47 }
 0x2cc   : > { %v4657_v8 = vpack.c.bf16 %v3645_v50, %v3645_v50  ;;  %v4077_v11 = vmul.f32 %v4036_v5, %v3644_v17  ;;  %v3643_v38 = vadd.f32 %v3598_v45, %v3321_v3  ;;  %v4253_v4 = vsel %vm1000_vm1, %v4187_v21, 0.0 }
 0x2cd   : > { %v4252_v24 = vadd.f32 %v4251_v44, %v4250_v30  ;;  %v4141_v39 = vadd.f32 %v4140_v6, %v4139_v9  ;;  %v4142_v26 = vsel %vm1000_vm1, %v4075_v47, 0.0  ;;  %v4078_v59 = vmul.f32 %v4041_v49, %v3645_v50 }
 0x2ce   : > { %3826 = vst.msk [vmem:[%s7261_s21 + $0x8c] sm:$0xf] %vm3790_vm7, %v4657_v8  ;;  %v4655_v12 = vpack.c.bf16 %v3643_v38, %v3643_v38  ;;  %v4076_v35 = vmul.f32 %v4031_v22, %v3643_v38  ;;  %v4255_v63 = vsel %vm1000_vm1, %v4188_v56, 0.0  ;;  %v4190_v16 = vmul.f32 %v4077_v11, %v4077_v11 }
 0x2cf   : > { %v4143_v51 = vadd.f32 %v4142_v26, %v4141_v39  ;;  %v4254_v36 = vadd.f32 %v4253_v4, %v4252_v24  ;;  %v4146_v32 = vsel %vm1000_vm1, %v4077_v11, 0.0  ;;  %v4191_v37 = vmul.f32 %v4078_v59, %v4078_v59 }
 0x2d0   : > { %3824 = vst.msk [vmem:[%s7261_s21 + $0x84] sm:$0xf] %vm3790_vm7, %v4655_v12  ;;  %v4144_v43 = vsel %vm1000_vm1, %v4076_v35, 0.0  ;;  %v4189_v60 = vmul.f32 %v4076_v35, %v4076_v35  ;;  %v4259_v17 = vsel %vm1000_vm1, %v4190_v16, 0.0  ;;  %v4148_v42 = vsel %vm1000_vm1, %v4078_v59, 0.0 }
 0x2d1   : > { %v4256_v7 = vadd.f32 %v4255_v63, %v4254_v36  ;;  %v4145_v40 = vadd.f32 %v4144_v43, %v4143_v51  ;;  %v4261_v15 = vsel %vm1000_vm1, %v4191_v37, 0.0  ;;  %v4269_v0 = vlaneseq }
 0x2d2   : > { %v4257_v55 = vsel %vm1000_vm1, %v4189_v60, 0.0 }
 0x2d3   : > { %v4147_v2 = vadd.f32 %v4146_v32, %v4145_v40  ;;  %v4258_v27 = vadd.f32 %v4257_v55, %v4256_v7  ;;  %v4270_v52 = vshrl.u32 %v4269_v0, 7 }
 0x2d5   : > { %v4149_v13 = vadd.f32 %v4148_v42, %v4147_v2  ;;  %v4260_v62 = vadd.f32 %v4259_v17, %v4258_v27  ;;  %vm4272_vm8 = vcmp.eq.s32.totalorder %v4270_v52, 1  ;;  %vm4271_vm9 = vcmp.eq.s32.totalorder %v4270_v52, 0 }
 0x2d7   : > { %v4150_v48 = vrot.slane %v4149_v13, 4  ;;  %v4262_v28 = vadd.f32 %v4261_v15, %v4260_v62 }
 0x2d9   : > { %v4151_v46 = vadd.f32 %v4150_v48, %v4149_v13  ;;  %v4263_v61 = vrot.slane %v4262_v28, 4 }
 0x2db   : > { %v4152_v19 = vrot.slane %v4151_v46, 2  ;;  %v4264_v18 = vadd.f32 %v4263_v61, %v4262_v28 }
 0x2dd   : > { %v4153_v22 = vadd.f32 %v4152_v19, %v4151_v46  ;;  %v4265_v58 = vrot.slane %v4264_v18, 2 }
 0x2df   : > { %v4266_v20 = vadd.f32 %v4265_v58, %v4264_v18  ;;  %v4154_v41 = vrot.slane %v4153_v22, 1 }
 0x2e1   : > { %v4267_v57 = vrot.slane %v4266_v20, 1  ;;  %v4155_v53 = vadd.f32 %v4154_v41, %v4153_v22 }
 0x2e3   : > { %v4268_v33 = vadd.f32 %v4267_v57, %v4266_v20 }
 0x2e5   : > { %v4273_v31 = vsel %vm4272_vm8, %v4268_v33, 0.0 }
 0x2e6   : > { %v4274_v25 = vsel %vm4271_vm9, %v4155_v53, %v4273_v31 }
 0x2e7   : > { %4275 = vst.msk [vmem:[%s289_s27] sm:$0xff] %vm1000_vm1, %v4274_v25 }
 0x2e8 PF: > { %s18_s24 = sadd.s32 1, %s5338_s24  }
 0x2e9   : > { %p15_p4 = scmp.ge.s32.totalorder %s18_s24, 4  }
 0x2eb   :  { %17 = sbr.rel (!%p15_p4) target bundleno = 1 (0x1), region = 94 }

</bundles_post_ra>
